<compile_context>
chip_gen: v7x
topology: tpu7x:2x2x1
jax: 0.10.0
libtpu: 0.0.40
codegen_flags: <defaults>
</compile_context>

<pallas_src>
import functools

import jax
import jax.numpy as jnp
from jax.experimental import pallas as pl
from jax.experimental.pallas import tpu as pltpu

HIDDEN = 50        # nn.LSTM(hidden_size=50)
HIDDEN_PAD = 128   # each gate block padded to one full lane group


# --------------------------------------------------------------------------
# Kernel
# --------------------------------------------------------------------------
def _lstm_fc_kernel(x_ref,                          # (T, B, I)  time-major
                    wih0_ref, whh0_ref, b0_ref,     # (I,4HP) (HP,4HP)bf16 (1,4HP)
                    wih1_ref, whh1_ref, b1_ref,     # (HP,4HP)bf16 x2, (1,4HP)
                    wfc_ref, bfc_ref,               # (HP,O) (1,O)
                    out_ref,                        # (B, O)
                    xw0_s,                          # VMEM scratch (T*B, 4HP)
                    *, B, T):
    HP = HIDDEN_PAD

    # hoist parameter reads out of the unrolled loop (clarity; not a lever)
    wih0 = wih0_ref[...]
    whh0 = whh0_ref[...]         # bf16
    b0 = b0_ref[...]
    wih1 = wih1_ref[...]         # bf16
    whh1 = whh1_ref[...]         # bf16
    b1 = b1_ref[...]
    wfc = wfc_ref[...]
    bfc = bfc_ref[...]

    # layer-0 input projection for all timesteps, off the recurrent path (f32)
    x3 = x_ref[...]
    x2d = x3.reshape(T * B, x3.shape[-1])
    xw0_s[...] = jnp.dot(x2d, wih0, preferred_element_type=jnp.float32) + b0

    # gate blocks are [i, f, o, g], each HP lanes wide (real content in :50)
    def gates_to_hc(gates, c):
        sig = jax.nn.sigmoid(gates[:, :3 * HP])      # one EUP region for i,f,o
        i = sig[:, 0 * HP:1 * HP]
        f = sig[:, 1 * HP:2 * HP]
        o = sig[:, 2 * HP:3 * HP]
        g = jnp.tanh(gates[:, 3 * HP:])
        c_new = f * c + i * g                        # pad lanes stay exactly 0
        h_new = o * jnp.tanh(c_new)
        return h_new, c_new

    zeros_f32 = jnp.zeros((B, HP), jnp.float32)      # PyTorch zero init
    h0 = jnp.zeros((B, HP), jnp.bfloat16)
    h1 = jnp.zeros((B, HP), jnp.bfloat16)
    c0 = zeros_f32
    c1 = zeros_f32
    h1_f32 = zeros_f32
    # recurrent half of layer-1 pre-activation, carried one step ahead
    g1_rec = jnp.zeros((B, 4 * HP), jnp.float32)     # h1_{-1} == 0

    # static unroll over the (small) sequence length; states live in vregs
    for t in range(T):
        # layer 0: only the recurrent matmul is on the per-step chain
        g0 = (xw0_s[t * B:(t + 1) * B, :]
              + jnp.dot(h0, whh0, preferred_element_type=jnp.float32))
        h0_f32, c0 = gates_to_hc(g0, c0)
        h0 = h0_f32.astype(jnp.bfloat16)

        # layer 1: input matmul depends on h0_t; recurrent half was
        # precomputed last step (overlaps layer 0 of this step)
        g1 = (jnp.dot(h0, wih1, preferred_element_type=jnp.float32)
              + g1_rec + b1)
        h1_f32, c1 = gates_to_hc(g1, c1)
        h1 = h1_f32.astype(jnp.bfloat16)

        if t + 1 < T:
            # off the h0_{t+1} dependency chain -> overlaps next layer-0 step
            g1_rec = jnp.dot(h1, whh1, preferred_element_type=jnp.float32)

    # fc(out[:, -1, :]) == fc(h of layer 1 at the last step), full f32
    out_ref[...] = (jnp.dot(h1_f32, wfc, preferred_element_type=jnp.float32)
                    + bfc)


def opera_model_forward(x, kp, batch_block=None):
    """x: (B, T, I) batch-first.  kp: kernel-layout params (see pack_params).

    batch_block=None  -> single program over the whole (padded) batch
                         (best on single-TC v5e/v6e).
    batch_block=k     -> grid over batch blocks of size k with
                         dimension_semantics=("parallel",) -> v7x megacore.
    """
    B, T, I = x.shape
    O = kp["wfc"].shape[1]

    # pad batch to a multiple of 8 so every per-step slice is sublane-aligned
    B_pad = ((B + 7) // 8) * 8
    if batch_block is None:
        bb = B_pad
    else:
        bb = max(8, (int(batch_block) // 8) * 8)
        B_pad = ((B_pad + bb - 1) // bb) * bb
    if B_pad != B:
        x = jnp.pad(x, ((0, B_pad - B), (0, 0), (0, 0)))

    xt = jnp.transpose(x, (1, 0, 2))                 # (T, B_pad, I) time-major
    grid = (B_pad // bb,)

    kernel = functools.partial(_lstm_fc_kernel, B=bb, T=T)
    full = lambda a: pl.BlockSpec(a.shape, lambda b: (0,) * a.ndim)

    out = pl.pallas_call(
        kernel,
        out_shape=jax.ShapeDtypeStruct((B_pad, O), jnp.float32),
        grid=grid,
        in_specs=[
            pl.BlockSpec((T, bb, I), lambda b: (0, b, 0)),
            full(kp["wih0"]), full(kp["whh0"]), full(kp["b0"]),
            full(kp["wih1"]), full(kp["whh1"]), full(kp["b1"]),
            full(kp["wfc"]), full(kp["bfc"]),
        ],
        out_specs=pl.BlockSpec((bb, O), lambda b: (b, 0)),
        scratch_shapes=[pltpu.VMEM((T * bb, 4 * HIDDEN_PAD), jnp.float32)],
        compiler_params=pltpu.CompilerParams(
            dimension_semantics=("parallel",)),
    )(xt,
      kp["wih0"], kp["whh0"], kp["b0"],
      kp["wih1"], kp["whh1"], kp["b1"],
      kp["wfc"], kp["bfc"])
    return out[:B]


# --------------------------------------------------------------------------
# Parameter creation (PyTorch layout) and packing (kernel layout)
# --------------------------------------------------------------------------
def make_torch_params(key, input_size, output_size, hidden=HIDDEN):
    """PyTorch-shaped params: weight_ih (4H,in), weight_hh (4H,H), biases (4H,),
       fc (out,H)/(out,). Gate row order [i, f, g, o], init U(-1/sqrt(H), +)."""
    k = jax.random.split(key, 10)
    s = 1.0 / jnp.sqrt(hidden)

    def u(kk, shape):
        return jax.random.uniform(kk, shape, jnp.float32, -s, s)

    return {
        "w_ih_l0": u(k[0], (4 * hidden, input_size)),
        "w_hh_l0": u(k[1], (4 * hidden, hidden)),
        "b_ih_l0": u(k[2], (4 * hidden,)),
        "b_hh_l0": u(k[3], (4 * hidden,)),
        "w_ih_l1": u(k[4], (4 * hidden, hidden)),
        "w_hh_l1": u(k[5], (4 * hidden, hidden)),
        "b_ih_l1": u(k[6], (4 * hidden,)),
        "b_hh_l1": u(k[7], (4 * hidden,)),
        "w_fc":    u(k[8], (output_size, hidden)),
        "b_fc":    u(k[9], (output_size,)),
    }


def _pack_gate_cols(m, H=HIDDEN, HP=HIDDEN_PAD):
    """m: (rows, 4H), columns in torch gate order [i,f,g,o]
       -> (rows, 4*HP), kernel order [i,f,o,g], each gate zero-padded to HP."""
    i_ = m[:, 0 * H:1 * H]
    f_ = m[:, 1 * H:2 * H]
    g_ = m[:, 2 * H:3 * H]
    o_ = m[:, 3 * H:4 * H]
    pad = lambda a: jnp.pad(a, ((0, 0), (0, HP - H)))
    return jnp.concatenate([pad(i_), pad(f_), pad(o_), pad(g_)], axis=1)


def _pad_rows(m, HP=HIDDEN_PAD):
    return jnp.pad(m, ((0, HP - m.shape[0]), (0, 0)))


def pack_params(tp, input_size, output_size, H=HIDDEN, HP=HIDDEN_PAD):
    wih0 = _pack_gate_cols(tp["w_ih_l0"].T)                       # (I, 4HP) f32
    whh0 = _pad_rows(_pack_gate_cols(tp["w_hh_l0"].T))            # (HP, 4HP)
    b0 = _pack_gate_cols((tp["b_ih_l0"] + tp["b_hh_l0"]).reshape(1, 4 * H))

    wih1 = _pad_rows(_pack_gate_cols(tp["w_ih_l1"].T))            # (HP, 4HP)
    whh1 = _pad_rows(_pack_gate_cols(tp["w_hh_l1"].T))            # (HP, 4HP)
    b1 = _pack_gate_cols((tp["b_ih_l1"] + tp["b_hh_l1"]).reshape(1, 4 * H))

    wfc = _pad_rows(tp["w_fc"].T)                                 # (HP, O) f32
    bfc = tp["b_fc"].reshape(1, output_size)
    return {"wih0": wih0,
            "whh0": whh0.astype(jnp.bfloat16),                    # recurrent: bf16
            "b0": b0,
            "wih1": wih1.astype(jnp.bfloat16),
            "whh1": whh1.astype(jnp.bfloat16),
            "b1": b1,
            "wfc": wfc, "bfc": bfc}


# --------------------------------------------------------------------------
# Pure-JAX references (PyTorch-layout params, un-padded)
#   recurrent_dtype=None      -> full-f32 semantics of the original module
#   recurrent_dtype=bfloat16  -> mirrors the kernel's bf16 recurrent path
# --------------------------------------------------------------------------
def _reference_forward(x, tp, recurrent_dtype=None):
    H = HIDDEN
    B, T, _ = x.shape
    hp = jax.lax.Precision.HIGHEST
    rec_prec = hp if recurrent_dtype is None else None

    cast_w = (lambda w: w) if recurrent_dtype is None else (
        lambda w: w.astype(recurrent_dtype))
    cast_h = cast_w

    w_hh0 = cast_w(tp["w_hh_l0"])
    w_ih1 = cast_w(tp["w_ih_l1"])
    w_hh1 = cast_w(tp["w_hh_l1"])
    b0 = tp["b_ih_l0"] + tp["b_hh_l0"]
    b1 = tp["b_ih_l1"] + tp["b_hh_l1"]

    def gates_to_hc(g, c):
        i = jax.nn.sigmoid(g[:, :H])
        f = jax.nn.sigmoid(g[:, H:2 * H])
        gg = jnp.tanh(g[:, 2 * H:3 * H])
        o = jax.nn.sigmoid(g[:, 3 * H:])
        c = f * c + i * gg
        return o * jnp.tanh(c), c

    h0 = h1 = c0 = c1 = jnp.zeros((B, H), jnp.float32)
    for t in range(T):
        g0 = (jnp.dot(x[:, t, :], tp["w_ih_l0"].T, precision=hp,
                      preferred_element_type=jnp.float32)
              + jnp.dot(cast_h(h0), w_hh0.T, precision=rec_prec,
                        preferred_element_type=jnp.float32) + b0)
        h0, c0 = gates_to_hc(g0, c0)
        g1 = (jnp.dot(cast_h(h0), w_ih1.T, precision=rec_prec,
                      preferred_element_type=jnp.float32)
              + jnp.dot(cast_h(h1), w_hh1.T, precision=rec_prec,
                        preferred_element_type=jnp.float32) + b1)
        h1, c1 = gates_to_hc(g1, c1)
    return (jnp.dot(h1, tp["w_fc"].T, precision=hp,
                    preferred_element_type=jnp.float32) + tp["b_fc"])


# --------------------------------------------------------------------------
if __name__ == "__main__":
    INPUT_SIZE, OUTPUT_SIZE = 3, 4
    B, T = 32, 10                       # matches the spec's torch.randn(32, 10, 3)

    key = jax.random.PRNGKey(0)
    kx, kp_key = jax.random.split(key)
    x = jax.random.normal(kx, (B, T, INPUT_SIZE), jnp.float32)

    torch_params = make_torch_params(kp_key, INPUT_SIZE, OUTPUT_SIZE)
    kernel_params = pack_params(torch_params, INPUT_SIZE, OUTPUT_SIZE)

    ref_f32 = _reference_forward(x, torch_params, recurrent_dtype=None)
    ref_bf16 = _reference_forward(x, torch_params, recurrent_dtype=jnp.bfloat16)

    fwd = jax.jit(opera_model_forward, static_argnames=("batch_block",))

    # 1) default: single program over the whole batch (v5e/v6e path)
    out = jax.block_until_ready(fwd(x, kernel_params))
    assert out.shape == (B, OUTPUT_SIZE)
    err_t = float(jnp.max(jnp.abs(out - ref_bf16)))
    assert jnp.allclose(out, ref_bf16, atol=2e-3, rtol=2e-3), \
        f"kernel vs bf16-matched reference: max abs err {err_t}"
    err_l = float(jnp.max(jnp.abs(out - ref_f32)))
    assert jnp.allclose(out, ref_f32, atol=3e-2, rtol=3e-2), \
        f"bf16-recurrent drift vs f32 reference: max abs err {err_l}"

    # 2) batch-parallel grid (v7x megacore path): grid=(2,) over batch blocks
    out2 = jax.block_until_ready(fwd(x, kernel_params, batch_block=16))
    assert out2.shape == (B, OUTPUT_SIZE)
    assert jnp.allclose(out2, ref_bf16, atol=2e-3, rtol=2e-3)

    # 3) batch not a multiple of 8 exercises the alignment-padding guard
    out3 = jax.block_until_ready(fwd(x[:27], kernel_params))
    assert out3.shape == (27, OUTPUT_SIZE)
    assert jnp.allclose(out3, ref_bf16[:27], atol=2e-3, rtol=2e-3)

    print("KERNEL_OK")
</pallas_src>

<mosaic_0001>
module attributes {stable_mosaic.version = 11 : i64} {
  func.func @_lstm_fc_kernel(%arg0: i32, %arg1: memref<10x32x3xf32, #tpu.memory_space<vmem>>, %arg2: memref<3x512xf32, #tpu.memory_space<vmem>>, %arg3: memref<128x512xbf16, #tpu.memory_space<vmem>>, %arg4: memref<1x512xf32, #tpu.memory_space<vmem>>, %arg5: memref<128x512xbf16, #tpu.memory_space<vmem>>, %arg6: memref<128x512xbf16, #tpu.memory_space<vmem>>, %arg7: memref<1x512xf32, #tpu.memory_space<vmem>>, %arg8: memref<128x4xf32, #tpu.memory_space<vmem>>, %arg9: memref<1x4xf32, #tpu.memory_space<vmem>>, %arg10: memref<32x4xf32, #tpu.memory_space<vmem>>, %arg11: memref<320x512xf32, #tpu.memory_space<vmem>>) attributes {dimension_semantics = [#tpu.dimension_semantics<parallel>], iteration_bounds = array<i64: 1>, scalar_prefetch = 0 : i64, scratch_operands = 1 : i64, tpu.core_type = #tpu.core_type<tc>, window_params = [{transform_indices = @transform_0, window_bounds = array<i64: 10, 32, 3>}, {pipeline_mode = #tpu.pipeline_mode<synchronous>, transform_indices = @transform_1, window_bounds = array<i64: 3, 512>}, {pipeline_mode = #tpu.pipeline_mode<synchronous>, transform_indices = @transform_2, window_bounds = array<i64: 128, 512>}, {pipeline_mode = #tpu.pipeline_mode<synchronous>, transform_indices = @transform_3, window_bounds = array<i64: 1, 512>}, {pipeline_mode = #tpu.pipeline_mode<synchronous>, transform_indices = @transform_4, window_bounds = array<i64: 128, 512>}, {pipeline_mode = #tpu.pipeline_mode<synchronous>, transform_indices = @transform_5, window_bounds = array<i64: 128, 512>}, {pipeline_mode = #tpu.pipeline_mode<synchronous>, transform_indices = @transform_6, window_bounds = array<i64: 1, 512>}, {pipeline_mode = #tpu.pipeline_mode<synchronous>, transform_indices = @transform_7, window_bounds = array<i64: 128, 4>}, {pipeline_mode = #tpu.pipeline_mode<synchronous>, transform_indices = @transform_8, window_bounds = array<i64: 1, 4>}, {transform_indices = @transform_9, window_bounds = array<i64: 32, 4>}]} {
    %c0 = arith.constant 0 : index
    %c0_0 = arith.constant 0 : index
    %0 = vector.load %arg2[%c0, %c0_0] : memref<3x512xf32, #tpu.memory_space<vmem>>, vector<3x512xf32>
    %c0_1 = arith.constant 0 : index
    %c0_2 = arith.constant 0 : index
    %1 = vector.load %arg3[%c0_1, %c0_2] : memref<128x512xbf16, #tpu.memory_space<vmem>>, vector<128x512xbf16>
    %c0_3 = arith.constant 0 : index
    %c0_4 = arith.constant 0 : index
    %2 = vector.load %arg4[%c0_3, %c0_4] : memref<1x512xf32, #tpu.memory_space<vmem>>, vector<1x512xf32>
    %c0_5 = arith.constant 0 : index
    %c0_6 = arith.constant 0 : index
    %3 = vector.load %arg5[%c0_5, %c0_6] : memref<128x512xbf16, #tpu.memory_space<vmem>>, vector<128x512xbf16>
    %c0_7 = arith.constant 0 : index
    %c0_8 = arith.constant 0 : index
    %4 = vector.load %arg6[%c0_7, %c0_8] : memref<128x512xbf16, #tpu.memory_space<vmem>>, vector<128x512xbf16>
    %c0_9 = arith.constant 0 : index
    %c0_10 = arith.constant 0 : index
    %5 = vector.load %arg7[%c0_9, %c0_10] : memref<1x512xf32, #tpu.memory_space<vmem>>, vector<1x512xf32>
    %c0_11 = arith.constant 0 : index
    %c0_12 = arith.constant 0 : index
    %6 = vector.load %arg8[%c0_11, %c0_12] : memref<128x4xf32, #tpu.memory_space<vmem>>, vector<128x4xf32>
    %c0_13 = arith.constant 0 : index
    %c0_14 = arith.constant 0 : index
    %7 = vector.load %arg9[%c0_13, %c0_14] : memref<1x4xf32, #tpu.memory_space<vmem>>, vector<1x4xf32>
    %c0_15 = arith.constant 0 : index
    %c0_16 = arith.constant 0 : index
    %c0_17 = arith.constant 0 : index
    %8 = vector.load %arg1[%c0_15, %c0_16, %c0_17] : memref<10x32x3xf32, #tpu.memory_space<vmem>>, vector<10x32x3xf32>
    %9 = vector.shape_cast %8 : vector<10x32x3xf32> to vector<320x3xf32>
    %cst = arith.constant dense<0.000000e+00> : vector<320x512xf32>
    %10 = tpu.matmul %9, %0, %cst {dimension_numbers = #tpu.dot_dimension_numbers<[1], [0], [0], [1], [0, 0, 1, 1], [], []>} : vector<320x3xf32>, vector<3x512xf32>, vector<320x512xf32> -> vector<320x512xf32>
    %11 = vector.broadcast %2 : vector<1x512xf32> to vector<320x512xf32>
    %12 = arith.addf %10, %11 : vector<320x512xf32>
    %c0_18 = arith.constant 0 : index
    %c0_19 = arith.constant 0 : index
    %13 = vector.load %arg11[%c0_18, %c0_19] : memref<320x512xf32, #tpu.memory_space<vmem>>, vector<320x512xf32>
    tpu.vector_store %arg11[%c0_18, %c0_19], %12 {strides = array<i32>} : memref<320x512xf32, #tpu.memory_space<vmem>>, vector<320x512xf32>,
    %cst_20 = arith.constant 0.000000e+00 : f32
    %14 = vector.broadcast %cst_20 : f32 to vector<32x128xf32>
    %cst_21 = arith.constant 0.000000e+00 : bf16
    %15 = vector.broadcast %cst_21 : bf16 to vector<32x128xbf16>
    %cst_22 = arith.constant 0.000000e+00 : f32
    %16 = vector.broadcast %cst_22 : f32 to vector<32x512xf32>
    %c0_23 = arith.constant 0 : index
    %c0_24 = arith.constant 0 : index
    %17 = vector.load %arg11[%c0_23, %c0_24] : memref<320x512xf32, #tpu.memory_space<vmem>>, vector<32x512xf32>
    %cst_25 = arith.constant dense<0.000000e+00> : vector<32x512xf32>
    %18 = tpu.matmul %15, %1, %cst_25 {dimension_numbers = #tpu.dot_dimension_numbers<[1], [0], [0], [1], [0, 0, 1, 1], [], []>} : vector<32x128xbf16>, vector<128x512xbf16>, vector<32x512xf32> -> vector<32x512xf32>
    %19 = arith.addf %17, %18 : vector<32x512xf32>
    %20 = vector.extract_strided_slice %19 {offsets = [0, 0], sizes = [32, 384], strides = [1, 1]} : vector<32x512xf32> to vector<32x384xf32>
    %21 = arith.negf %20 : vector<32x384xf32>
    %22 = math.exp %21 : vector<32x384xf32>
    %cst_26 = arith.constant 1.000000e+00 : f32
    %23 = vector.broadcast %cst_26 : f32 to vector<32x384xf32>
    %24 = arith.addf %23, %22 : vector<32x384xf32>
    %25 = arith.divf %23, %24 : vector<32x384xf32>
    %26 = vector.extract_strided_slice %25 {offsets = [0, 0], sizes = [32, 128], strides = [1, 1]} : vector<32x384xf32> to vector<32x128xf32>
    %27 = vector.extract_strided_slice %25 {offsets = [0, 128], sizes = [32, 128], strides = [1, 1]} : vector<32x384xf32> to vector<32x128xf32>
    %28 = vector.extract_strided_slice %25 {offsets = [0, 256], sizes = [32, 128], strides = [1, 1]} : vector<32x384xf32> to vector<32x128xf32>
    %29 = vector.extract_strided_slice %19 {offsets = [0, 384], sizes = [32, 128], strides = [1, 1]} : vector<32x512xf32> to vector<32x128xf32>
    %30 = math.tanh %29 : vector<32x128xf32>
    %31 = arith.mulf %27, %14 : vector<32x128xf32>
    %32 = arith.mulf %26, %30 : vector<32x128xf32>
    %33 = arith.addf %31, %32 : vector<32x128xf32>
    %34 = math.tanh %33 : vector<32x128xf32>
    %35 = arith.mulf %28, %34 : vector<32x128xf32>
    %36 = arith.truncf %35 : vector<32x128xf32> to vector<32x128xbf16>
    %cst_27 = arith.constant dense<0.000000e+00> : vector<32x512xf32>
    %37 = tpu.matmul %36, %3, %cst_27 {dimension_numbers = #tpu.dot_dimension_numbers<[1], [0], [0], [1], [0, 0, 1, 1], [], []>} : vector<32x128xbf16>, vector<128x512xbf16>, vector<32x512xf32> -> vector<32x512xf32>
    %38 = arith.addf %37, %16 : vector<32x512xf32>
    %39 = vector.broadcast %5 : vector<1x512xf32> to vector<32x512xf32>
    %40 = arith.addf %38, %39 : vector<32x512xf32>
    %41 = vector.extract_strided_slice %40 {offsets = [0, 0], sizes = [32, 384], strides = [1, 1]} : vector<32x512xf32> to vector<32x384xf32>
    %42 = arith.negf %41 : vector<32x384xf32>
    %43 = math.exp %42 : vector<32x384xf32>
    %cst_28 = arith.constant 1.000000e+00 : f32
    %44 = vector.broadcast %cst_28 : f32 to vector<32x384xf32>
    %45 = arith.addf %44, %43 : vector<32x384xf32>
    %46 = arith.divf %44, %45 : vector<32x384xf32>
    %47 = vector.extract_strided_slice %46 {offsets = [0, 0], sizes = [32, 128], strides = [1, 1]} : vector<32x384xf32> to vector<32x128xf32>
    %48 = vector.extract_strided_slice %46 {offsets = [0, 128], sizes = [32, 128], strides = [1, 1]} : vector<32x384xf32> to vector<32x128xf32>
    %49 = vector.extract_strided_slice %46 {offsets = [0, 256], sizes = [32, 128], strides = [1, 1]} : vector<32x384xf32> to vector<32x128xf32>
    %50 = vector.extract_strided_slice %40 {offsets = [0, 384], sizes = [32, 128], strides = [1, 1]} : vector<32x512xf32> to vector<32x128xf32>
    %51 = math.tanh %50 : vector<32x128xf32>
    %52 = arith.mulf %48, %14 : vector<32x128xf32>
    %53 = arith.mulf %47, %51 : vector<32x128xf32>
    %54 = arith.addf %52, %53 : vector<32x128xf32>
    %55 = math.tanh %54 : vector<32x128xf32>
    %56 = arith.mulf %49, %55 : vector<32x128xf32>
    %57 = arith.truncf %56 : vector<32x128xf32> to vector<32x128xbf16>
    %cst_29 = arith.constant dense<0.000000e+00> : vector<32x512xf32>
    %58 = tpu.matmul %57, %4, %cst_29 {dimension_numbers = #tpu.dot_dimension_numbers<[1], [0], [0], [1], [0, 0, 1, 1], [], []>} : vector<32x128xbf16>, vector<128x512xbf16>, vector<32x512xf32> -> vector<32x512xf32>
    %c32 = arith.constant 32 : index
    %c0_30 = arith.constant 0 : index
    %59 = vector.load %arg11[%c32, %c0_30] : memref<320x512xf32, #tpu.memory_space<vmem>>, vector<32x512xf32>
    %cst_31 = arith.constant dense<0.000000e+00> : vector<32x512xf32>
    %60 = tpu.matmul %36, %1, %cst_31 {dimension_numbers = #tpu.dot_dimension_numbers<[1], [0], [0], [1], [0, 0, 1, 1], [], []>} : vector<32x128xbf16>, vector<128x512xbf16>, vector<32x512xf32> -> vector<32x512xf32>
    %61 = arith.addf %59, %60 : vector<32x512xf32>
    %62 = vector.extract_strided_slice %61 {offsets = [0, 0], sizes = [32, 384], strides = [1, 1]} : vector<32x512xf32> to vector<32x384xf32>
    %63 = arith.negf %62 : vector<32x384xf32>
    %64 = math.exp %63 : vector<32x384xf32>
    %cst_32 = arith.constant 1.000000e+00 : f32
    %65 = vector.broadcast %cst_32 : f32 to vector<32x384xf32>
    %66 = arith.addf %65, %64 : vector<32x384xf32>
    %67 = arith.divf %65, %66 : vector<32x384xf32>
    %68 = vector.extract_strided_slice %67 {offsets = [0, 0], sizes = [32, 128], strides = [1, 1]} : vector<32x384xf32> to vector<32x128xf32>
    %69 = vector.extract_strided_slice %67 {offsets = [0, 128], sizes = [32, 128], strides = [1, 1]} : vector<32x384xf32> to vector<32x128xf32>
    %70 = vector.extract_strided_slice %67 {offsets = [0, 256], sizes = [32, 128], strides = [1, 1]} : vector<32x384xf32> to vector<32x128xf32>
    %71 = vector.extract_strided_slice %61 {offsets = [0, 384], sizes = [32, 128], strides = [1, 1]} : vector<32x512xf32> to vector<32x128xf32>
    %72 = math.tanh %71 : vector<32x128xf32>
    %73 = arith.mulf %69, %33 : vector<32x128xf32>
    %74 = arith.mulf %68, %72 : vector<32x128xf32>
    %75 = arith.addf %73, %74 : vector<32x128xf32>
    %76 = math.tanh %75 : vector<32x128xf32>
    %77 = arith.mulf %70, %76 : vector<32x128xf32>
    %78 = arith.truncf %77 : vector<32x128xf32> to vector<32x128xbf16>
    %cst_33 = arith.constant dense<0.000000e+00> : vector<32x512xf32>
    %79 = tpu.matmul %78, %3, %cst_33 {dimension_numbers = #tpu.dot_dimension_numbers<[1], [0], [0], [1], [0, 0, 1, 1], [], []>} : vector<32x128xbf16>, vector<128x512xbf16>, vector<32x512xf32> -> vector<32x512xf32>
    %80 = arith.addf %79, %58 : vector<32x512xf32>
    %81 = vector.broadcast %5 : vector<1x512xf32> to vector<32x512xf32>
    %82 = arith.addf %80, %81 : vector<32x512xf32>
    %83 = vector.extract_strided_slice %82 {offsets = [0, 0], sizes = [32, 384], strides = [1, 1]} : vector<32x512xf32> to vector<32x384xf32>
    %84 = arith.negf %83 : vector<32x384xf32>
    %85 = math.exp %84 : vector<32x384xf32>
    %cst_34 = arith.constant 1.000000e+00 : f32
    %86 = vector.broadcast %cst_34 : f32 to vector<32x384xf32>
    %87 = arith.addf %86, %85 : vector<32x384xf32>
    %88 = arith.divf %86, %87 : vector<32x384xf32>
    %89 = vector.extract_strided_slice %88 {offsets = [0, 0], sizes = [32, 128], strides = [1, 1]} : vector<32x384xf32> to vector<32x128xf32>
    %90 = vector.extract_strided_slice %88 {offsets = [0, 128], sizes = [32, 128], strides = [1, 1]} : vector<32x384xf32> to vector<32x128xf32>
    %91 = vector.extract_strided_slice %88 {offsets = [0, 256], sizes = [32, 128], strides = [1, 1]} : vector<32x384xf32> to vector<32x128xf32>
    %92 = vector.extract_strided_slice %82 {offsets = [0, 384], sizes = [32, 128], strides = [1, 1]} : vector<32x512xf32> to vector<32x128xf32>
    %93 = math.tanh %92 : vector<32x128xf32>
    %94 = arith.mulf %90, %54 : vector<32x128xf32>
    %95 = arith.mulf %89, %93 : vector<32x128xf32>
    %96 = arith.addf %94, %95 : vector<32x128xf32>
    %97 = math.tanh %96 : vector<32x128xf32>
    %98 = arith.mulf %91, %97 : vector<32x128xf32>
    %99 = arith.truncf %98 : vector<32x128xf32> to vector<32x128xbf16>
    %cst_35 = arith.constant dense<0.000000e+00> : vector<32x512xf32>
    %100 = tpu.matmul %99, %4, %cst_35 {dimension_numbers = #tpu.dot_dimension_numbers<[1], [0], [0], [1], [0, 0, 1, 1], [], []>} : vector<32x128xbf16>, vector<128x512xbf16>, vector<32x512xf32> -> vector<32x512xf32>
    %c64 = arith.constant 64 : index
    %c0_36 = arith.constant 0 : index
    %101 = vector.load %arg11[%c64, %c0_36] : memref<320x512xf32, #tpu.memory_space<vmem>>, vector<32x512xf32>
    %cst_37 = arith.constant dense<0.000000e+00> : vector<32x512xf32>
    %102 = tpu.matmul %78, %1, %cst_37 {dimension_numbers = #tpu.dot_dimension_numbers<[1], [0], [0], [1], [0, 0, 1, 1], [], []>} : vector<32x128xbf16>, vector<128x512xbf16>, vector<32x512xf32> -> vector<32x512xf32>
    %103 = arith.addf %101, %102 : vector<32x512xf32>
    %104 = vector.extract_strided_slice %103 {offsets = [0, 0], sizes = [32, 384], strides = [1, 1]} : vector<32x512xf32> to vector<32x384xf32>
    %105 = arith.negf %104 : vector<32x384xf32>
    %106 = math.exp %105 : vector<32x384xf32>
    %cst_38 = arith.constant 1.000000e+00 : f32
    %107 = vector.broadcast %cst_38 : f32 to vector<32x384xf32>
    %108 = arith.addf %107, %106 : vector<32x384xf32>
    %109 = arith.divf %107, %108 : vector<32x384xf32>
    %110 = vector.extract_strided_slice %109 {offsets = [0, 0], sizes = [32, 128], strides = [1, 1]} : vector<32x384xf32> to vector<32x128xf32>
    %111 = vector.extract_strided_slice %109 {offsets = [0, 128], sizes = [32, 128], strides = [1, 1]} : vector<32x384xf32> to vector<32x128xf32>
    %112 = vector.extract_strided_slice %109 {offsets = [0, 256], sizes = [32, 128], strides = [1, 1]} : vector<32x384xf32> to vector<32x128xf32>
    %113 = vector.extract_strided_slice %103 {offsets = [0, 384], sizes = [32, 128], strides = [1, 1]} : vector<32x512xf32> to vector<32x128xf32>
    %114 = math.tanh %113 : vector<32x128xf32>
    %115 = arith.mulf %111, %75 : vector<32x128xf32>
    %116 = arith.mulf %110, %114 : vector<32x128xf32>
    %117 = arith.addf %115, %116 : vector<32x128xf32>
    %118 = math.tanh %117 : vector<32x128xf32>
    %119 = arith.mulf %112, %118 : vector<32x128xf32>
    %120 = arith.truncf %119 : vector<32x128xf32> to vector<32x128xbf16>
    %cst_39 = arith.constant dense<0.000000e+00> : vector<32x512xf32>
    %121 = tpu.matmul %120, %3, %cst_39 {dimension_numbers = #tpu.dot_dimension_numbers<[1], [0], [0], [1], [0, 0, 1, 1], [], []>} : vector<32x128xbf16>, vector<128x512xbf16>, vector<32x512xf32> -> vector<32x512xf32>
    %122 = arith.addf %121, %100 : vector<32x512xf32>
    %123 = vector.broadcast %5 : vector<1x512xf32> to vector<32x512xf32>
    %124 = arith.addf %122, %123 : vector<32x512xf32>
    %125 = vector.extract_strided_slice %124 {offsets = [0, 0], sizes = [32, 384], strides = [1, 1]} : vector<32x512xf32> to vector<32x384xf32>
    %126 = arith.negf %125 : vector<32x384xf32>
    %127 = math.exp %126 : vector<32x384xf32>
    %cst_40 = arith.constant 1.000000e+00 : f32
    %128 = vector.broadcast %cst_40 : f32 to vector<32x384xf32>
    %129 = arith.addf %128, %127 : vector<32x384xf32>
    %130 = arith.divf %128, %129 : vector<32x384xf32>
    %131 = vector.extract_strided_slice %130 {offsets = [0, 0], sizes = [32, 128], strides = [1, 1]} : vector<32x384xf32> to vector<32x128xf32>
    %132 = vector.extract_strided_slice %130 {offsets = [0, 128], sizes = [32, 128], strides = [1, 1]} : vector<32x384xf32> to vector<32x128xf32>
    %133 = vector.extract_strided_slice %130 {offsets = [0, 256], sizes = [32, 128], strides = [1, 1]} : vector<32x384xf32> to vector<32x128xf32>
    %134 = vector.extract_strided_slice %124 {offsets = [0, 384], sizes = [32, 128], strides = [1, 1]} : vector<32x512xf32> to vector<32x128xf32>
    %135 = math.tanh %134 : vector<32x128xf32>
    %136 = arith.mulf %132, %96 : vector<32x128xf32>
    %137 = arith.mulf %131, %135 : vector<32x128xf32>
    %138 = arith.addf %136, %137 : vector<32x128xf32>
    %139 = math.tanh %138 : vector<32x128xf32>
    %140 = arith.mulf %133, %139 : vector<32x128xf32>
    %141 = arith.truncf %140 : vector<32x128xf32> to vector<32x128xbf16>
    %cst_41 = arith.constant dense<0.000000e+00> : vector<32x512xf32>
    %142 = tpu.matmul %141, %4, %cst_41 {dimension_numbers = #tpu.dot_dimension_numbers<[1], [0], [0], [1], [0, 0, 1, 1], [], []>} : vector<32x128xbf16>, vector<128x512xbf16>, vector<32x512xf32> -> vector<32x512xf32>
    %c96 = arith.constant 96 : index
    %c0_42 = arith.constant 0 : index
    %143 = vector.load %arg11[%c96, %c0_42] : memref<320x512xf32, #tpu.memory_space<vmem>>, vector<32x512xf32>
    %cst_43 = arith.constant dense<0.000000e+00> : vector<32x512xf32>
    %144 = tpu.matmul %120, %1, %cst_43 {dimension_numbers = #tpu.dot_dimension_numbers<[1], [0], [0], [1], [0, 0, 1, 1], [], []>} : vector<32x128xbf16>, vector<128x512xbf16>, vector<32x512xf32> -> vector<32x512xf32>
    %145 = arith.addf %143, %144 : vector<32x512xf32>
    %146 = vector.extract_strided_slice %145 {offsets = [0, 0], sizes = [32, 384], strides = [1, 1]} : vector<32x512xf32> to vector<32x384xf32>
    %147 = arith.negf %146 : vector<32x384xf32>
    %148 = math.exp %147 : vector<32x384xf32>
    %cst_44 = arith.constant 1.000000e+00 : f32
    %149 = vector.broadcast %cst_44 : f32 to vector<32x384xf32>
    %150 = arith.addf %149, %148 : vector<32x384xf32>
    %151 = arith.divf %149, %150 : vector<32x384xf32>
    %152 = vector.extract_strided_slice %151 {offsets = [0, 0], sizes = [32, 128], strides = [1, 1]} : vector<32x384xf32> to vector<32x128xf32>
    %153 = vector.extract_strided_slice %151 {offsets = [0, 128], sizes = [32, 128], strides = [1, 1]} : vector<32x384xf32> to vector<32x128xf32>
    %154 = vector.extract_strided_slice %151 {offsets = [0, 256], sizes = [32, 128], strides = [1, 1]} : vector<32x384xf32> to vector<32x128xf32>
    %155 = vector.extract_strided_slice %145 {offsets = [0, 384], sizes = [32, 128], strides = [1, 1]} : vector<32x512xf32> to vector<32x128xf32>
    %156 = math.tanh %155 : vector<32x128xf32>
    %157 = arith.mulf %153, %117 : vector<32x128xf32>
    %158 = arith.mulf %152, %156 : vector<32x128xf32>
    %159 = arith.addf %157, %158 : vector<32x128xf32>
    %160 = math.tanh %159 : vector<32x128xf32>
    %161 = arith.mulf %154, %160 : vector<32x128xf32>
    %162 = arith.truncf %161 : vector<32x128xf32> to vector<32x128xbf16>
    %cst_45 = arith.constant dense<0.000000e+00> : vector<32x512xf32>
    %163 = tpu.matmul %162, %3, %cst_45 {dimension_numbers = #tpu.dot_dimension_numbers<[1], [0], [0], [1], [0, 0, 1, 1], [], []>} : vector<32x128xbf16>, vector<128x512xbf16>, vector<32x512xf32> -> vector<32x512xf32>
    %164 = arith.addf %163, %142 : vector<32x512xf32>
    %165 = vector.broadcast %5 : vector<1x512xf32> to vector<32x512xf32>
    %166 = arith.addf %164, %165 : vector<32x512xf32>
    %167 = vector.extract_strided_slice %166 {offsets = [0, 0], sizes = [32, 384], strides = [1, 1]} : vector<32x512xf32> to vector<32x384xf32>
    %168 = arith.negf %167 : vector<32x384xf32>
    %169 = math.exp %168 : vector<32x384xf32>
    %cst_46 = arith.constant 1.000000e+00 : f32
    %170 = vector.broadcast %cst_46 : f32 to vector<32x384xf32>
    %171 = arith.addf %170, %169 : vector<32x384xf32>
    %172 = arith.divf %170, %171 : vector<32x384xf32>
    %173 = vector.extract_strided_slice %172 {offsets = [0, 0], sizes = [32, 128], strides = [1, 1]} : vector<32x384xf32> to vector<32x128xf32>
    %174 = vector.extract_strided_slice %172 {offsets = [0, 128], sizes = [32, 128], strides = [1, 1]} : vector<32x384xf32> to vector<32x128xf32>
    %175 = vector.extract_strided_slice %172 {offsets = [0, 256], sizes = [32, 128], strides = [1, 1]} : vector<32x384xf32> to vector<32x128xf32>
    %176 = vector.extract_strided_slice %166 {offsets = [0, 384], sizes = [32, 128], strides = [1, 1]} : vector<32x512xf32> to vector<32x128xf32>
    %177 = math.tanh %176 : vector<32x128xf32>
    %178 = arith.mulf %174, %138 : vector<32x128xf32>
    %179 = arith.mulf %173, %177 : vector<32x128xf32>
    %180 = arith.addf %178, %179 : vector<32x128xf32>
    %181 = math.tanh %180 : vector<32x128xf32>
    %182 = arith.mulf %175, %181 : vector<32x128xf32>
    %183 = arith.truncf %182 : vector<32x128xf32> to vector<32x128xbf16>
    %cst_47 = arith.constant dense<0.000000e+00> : vector<32x512xf32>
    %184 = tpu.matmul %183, %4, %cst_47 {dimension_numbers = #tpu.dot_dimension_numbers<[1], [0], [0], [1], [0, 0, 1, 1], [], []>} : vector<32x128xbf16>, vector<128x512xbf16>, vector<32x512xf32> -> vector<32x512xf32>
    %c128 = arith.constant 128 : index
    %c0_48 = arith.constant 0 : index
    %185 = vector.load %arg11[%c128, %c0_48] : memref<320x512xf32, #tpu.memory_space<vmem>>, vector<32x512xf32>
    %cst_49 = arith.constant dense<0.000000e+00> : vector<32x512xf32>
    %186 = tpu.matmul %162, %1, %cst_49 {dimension_numbers = #tpu.dot_dimension_numbers<[1], [0], [0], [1], [0, 0, 1, 1], [], []>} : vector<32x128xbf16>, vector<128x512xbf16>, vector<32x512xf32> -> vector<32x512xf32>
    %187 = arith.addf %185, %186 : vector<32x512xf32>
    %188 = vector.extract_strided_slice %187 {offsets = [0, 0], sizes = [32, 384], strides = [1, 1]} : vector<32x512xf32> to vector<32x384xf32>
    %189 = arith.negf %188 : vector<32x384xf32>
    %190 = math.exp %189 : vector<32x384xf32>
    %cst_50 = arith.constant 1.000000e+00 : f32
    %191 = vector.broadcast %cst_50 : f32 to vector<32x384xf32>
    %192 = arith.addf %191, %190 : vector<32x384xf32>
    %193 = arith.divf %191, %192 : vector<32x384xf32>
    %194 = vector.extract_strided_slice %193 {offsets = [0, 0], sizes = [32, 128], strides = [1, 1]} : vector<32x384xf32> to vector<32x128xf32>
    %195 = vector.extract_strided_slice %193 {offsets = [0, 128], sizes = [32, 128], strides = [1, 1]} : vector<32x384xf32> to vector<32x128xf32>
    %196 = vector.extract_strided_slice %193 {offsets = [0, 256], sizes = [32, 128], strides = [1, 1]} : vector<32x384xf32> to vector<32x128xf32>
    %197 = vector.extract_strided_slice %187 {offsets = [0, 384], sizes = [32, 128], strides = [1, 1]} : vector<32x512xf32> to vector<32x128xf32>
    %198 = math.tanh %197 : vector<32x128xf32>
    %199 = arith.mulf %195, %159 : vector<32x128xf32>
    %200 = arith.mulf %194, %198 : vector<32x128xf32>
    %201 = arith.addf %199, %200 : vector<32x128xf32>
    %202 = math.tanh %201 : vector<32x128xf32>
    %203 = arith.mulf %196, %202 : vector<32x128xf32>
    %204 = arith.truncf %203 : vector<32x128xf32> to vector<32x128xbf16>
    %cst_51 = arith.constant dense<0.000000e+00> : vector<32x512xf32>
    %205 = tpu.matmul %204, %3, %cst_51 {dimension_numbers = #tpu.dot_dimension_numbers<[1], [0], [0], [1], [0, 0, 1, 1], [], []>} : vector<32x128xbf16>, vector<128x512xbf16>, vector<32x512xf32> -> vector<32x512xf32>
    %206 = arith.addf %205, %184 : vector<32x512xf32>
    %207 = vector.broadcast %5 : vector<1x512xf32> to vector<32x512xf32>
    %208 = arith.addf %206, %207 : vector<32x512xf32>
    %209 = vector.extract_strided_slice %208 {offsets = [0, 0], sizes = [32, 384], strides = [1, 1]} : vector<32x512xf32> to vector<32x384xf32>
    %210 = arith.negf %209 : vector<32x384xf32>
    %211 = math.exp %210 : vector<32x384xf32>
    %cst_52 = arith.constant 1.000000e+00 : f32
    %212 = vector.broadcast %cst_52 : f32 to vector<32x384xf32>
    %213 = arith.addf %212, %211 : vector<32x384xf32>
    %214 = arith.divf %212, %213 : vector<32x384xf32>
    %215 = vector.extract_strided_slice %214 {offsets = [0, 0], sizes = [32, 128], strides = [1, 1]} : vector<32x384xf32> to vector<32x128xf32>
    %216 = vector.extract_strided_slice %214 {offsets = [0, 128], sizes = [32, 128], strides = [1, 1]} : vector<32x384xf32> to vector<32x128xf32>
    %217 = vector.extract_strided_slice %214 {offsets = [0, 256], sizes = [32, 128], strides = [1, 1]} : vector<32x384xf32> to vector<32x128xf32>
    %218 = vector.extract_strided_slice %208 {offsets = [0, 384], sizes = [32, 128], strides = [1, 1]} : vector<32x512xf32> to vector<32x128xf32>
    %219 = math.tanh %218 : vector<32x128xf32>
    %220 = arith.mulf %216, %180 : vector<32x128xf32>
    %221 = arith.mulf %215, %219 : vector<32x128xf32>
    %222 = arith.addf %220, %221 : vector<32x128xf32>
    %223 = math.tanh %222 : vector<32x128xf32>
    %224 = arith.mulf %217, %223 : vector<32x128xf32>
    %225 = arith.truncf %224 : vector<32x128xf32> to vector<32x128xbf16>
    %cst_53 = arith.constant dense<0.000000e+00> : vector<32x512xf32>
    %226 = tpu.matmul %225, %4, %cst_53 {dimension_numbers = #tpu.dot_dimension_numbers<[1], [0], [0], [1], [0, 0, 1, 1], [], []>} : vector<32x128xbf16>, vector<128x512xbf16>, vector<32x512xf32> -> vector<32x512xf32>
    %c160 = arith.constant 160 : index
    %c0_54 = arith.constant 0 : index
    %227 = vector.load %arg11[%c160, %c0_54] : memref<320x512xf32, #tpu.memory_space<vmem>>, vector<32x512xf32>
    %cst_55 = arith.constant dense<0.000000e+00> : vector<32x512xf32>
    %228 = tpu.matmul %204, %1, %cst_55 {dimension_numbers = #tpu.dot_dimension_numbers<[1], [0], [0], [1], [0, 0, 1, 1], [], []>} : vector<32x128xbf16>, vector<128x512xbf16>, vector<32x512xf32> -> vector<32x512xf32>
    %229 = arith.addf %227, %228 : vector<32x512xf32>
    %230 = vector.extract_strided_slice %229 {offsets = [0, 0], sizes = [32, 384], strides = [1, 1]} : vector<32x512xf32> to vector<32x384xf32>
    %231 = arith.negf %230 : vector<32x384xf32>
    %232 = math.exp %231 : vector<32x384xf32>
    %cst_56 = arith.constant 1.000000e+00 : f32
    %233 = vector.broadcast %cst_56 : f32 to vector<32x384xf32>
    %234 = arith.addf %233, %232 : vector<32x384xf32>
    %235 = arith.divf %233, %234 : vector<32x384xf32>
    %236 = vector.extract_strided_slice %235 {offsets = [0, 0], sizes = [32, 128], strides = [1, 1]} : vector<32x384xf32> to vector<32x128xf32>
    %237 = vector.extract_strided_slice %235 {offsets = [0, 128], sizes = [32, 128], strides = [1, 1]} : vector<32x384xf32> to vector<32x128xf32>
    %238 = vector.extract_strided_slice %235 {offsets = [0, 256], sizes = [32, 128], strides = [1, 1]} : vector<32x384xf32> to vector<32x128xf32>
    %239 = vector.extract_strided_slice %229 {offsets = [0, 384], sizes = [32, 128], strides = [1, 1]} : vector<32x512xf32> to vector<32x128xf32>
    %240 = math.tanh %239 : vector<32x128xf32>
    %241 = arith.mulf %237, %201 : vector<32x128xf32>
    %242 = arith.mulf %236, %240 : vector<32x128xf32>
    %243 = arith.addf %241, %242 : vector<32x128xf32>
    %244 = math.tanh %243 : vector<32x128xf32>
    %245 = arith.mulf %238, %244 : vector<32x128xf32>
    %246 = arith.truncf %245 : vector<32x128xf32> to vector<32x128xbf16>
    %cst_57 = arith.constant dense<0.000000e+00> : vector<32x512xf32>
    %247 = tpu.matmul %246, %3, %cst_57 {dimension_numbers = #tpu.dot_dimension_numbers<[1], [0], [0], [1], [0, 0, 1, 1], [], []>} : vector<32x128xbf16>, vector<128x512xbf16>, vector<32x512xf32> -> vector<32x512xf32>
    %248 = arith.addf %247, %226 : vector<32x512xf32>
    %249 = vector.broadcast %5 : vector<1x512xf32> to vector<32x512xf32>
    %250 = arith.addf %248, %249 : vector<32x512xf32>
    %251 = vector.extract_strided_slice %250 {offsets = [0, 0], sizes = [32, 384], strides = [1, 1]} : vector<32x512xf32> to vector<32x384xf32>
    %252 = arith.negf %251 : vector<32x384xf32>
    %253 = math.exp %252 : vector<32x384xf32>
    %cst_58 = arith.constant 1.000000e+00 : f32
    %254 = vector.broadcast %cst_58 : f32 to vector<32x384xf32>
    %255 = arith.addf %254, %253 : vector<32x384xf32>
    %256 = arith.divf %254, %255 : vector<32x384xf32>
    %257 = vector.extract_strided_slice %256 {offsets = [0, 0], sizes = [32, 128], strides = [1, 1]} : vector<32x384xf32> to vector<32x128xf32>
    %258 = vector.extract_strided_slice %256 {offsets = [0, 128], sizes = [32, 128], strides = [1, 1]} : vector<32x384xf32> to vector<32x128xf32>
    %259 = vector.extract_strided_slice %256 {offsets = [0, 256], sizes = [32, 128], strides = [1, 1]} : vector<32x384xf32> to vector<32x128xf32>
    %260 = vector.extract_strided_slice %250 {offsets = [0, 384], sizes = [32, 128], strides = [1, 1]} : vector<32x512xf32> to vector<32x128xf32>
    %261 = math.tanh %260 : vector<32x128xf32>
    %262 = arith.mulf %258, %222 : vector<32x128xf32>
    %263 = arith.mulf %257, %261 : vector<32x128xf32>
    %264 = arith.addf %262, %263 : vector<32x128xf32>
    %265 = math.tanh %264 : vector<32x128xf32>
    %266 = arith.mulf %259, %265 : vector<32x128xf32>
    %267 = arith.truncf %266 : vector<32x128xf32> to vector<32x128xbf16>
    %cst_59 = arith.constant dense<0.000000e+00> : vector<32x512xf32>
    %268 = tpu.matmul %267, %4, %cst_59 {dimension_numbers = #tpu.dot_dimension_numbers<[1], [0], [0], [1], [0, 0, 1, 1], [], []>} : vector<32x128xbf16>, vector<128x512xbf16>, vector<32x512xf32> -> vector<32x512xf32>
    %c192 = arith.constant 192 : index
    %c0_60 = arith.constant 0 : index
    %269 = vector.load %arg11[%c192, %c0_60] : memref<320x512xf32, #tpu.memory_space<vmem>>, vector<32x512xf32>
    %cst_61 = arith.constant dense<0.000000e+00> : vector<32x512xf32>
    %270 = tpu.matmul %246, %1, %cst_61 {dimension_numbers = #tpu.dot_dimension_numbers<[1], [0], [0], [1], [0, 0, 1, 1], [], []>} : vector<32x128xbf16>, vector<128x512xbf16>, vector<32x512xf32> -> vector<32x512xf32>
    %271 = arith.addf %269, %270 : vector<32x512xf32>
    %272 = vector.extract_strided_slice %271 {offsets = [0, 0], sizes = [32, 384], strides = [1, 1]} : vector<32x512xf32> to vector<32x384xf32>
    %273 = arith.negf %272 : vector<32x384xf32>
    %274 = math.exp %273 : vector<32x384xf32>
    %cst_62 = arith.constant 1.000000e+00 : f32
    %275 = vector.broadcast %cst_62 : f32 to vector<32x384xf32>
    %276 = arith.addf %275, %274 : vector<32x384xf32>
    %277 = arith.divf %275, %276 : vector<32x384xf32>
    %278 = vector.extract_strided_slice %277 {offsets = [0, 0], sizes = [32, 128], strides = [1, 1]} : vector<32x384xf32> to vector<32x128xf32>
    %279 = vector.extract_strided_slice %277 {offsets = [0, 128], sizes = [32, 128], strides = [1, 1]} : vector<32x384xf32> to vector<32x128xf32>
    %280 = vector.extract_strided_slice %277 {offsets = [0, 256], sizes = [32, 128], strides = [1, 1]} : vector<32x384xf32> to vector<32x128xf32>
    %281 = vector.extract_strided_slice %271 {offsets = [0, 384], sizes = [32, 128], strides = [1, 1]} : vector<32x512xf32> to vector<32x128xf32>
    %282 = math.tanh %281 : vector<32x128xf32>
    %283 = arith.mulf %279, %243 : vector<32x128xf32>
    %284 = arith.mulf %278, %282 : vector<32x128xf32>
    %285 = arith.addf %283, %284 : vector<32x128xf32>
    %286 = math.tanh %285 : vector<32x128xf32>
    %287 = arith.mulf %280, %286 : vector<32x128xf32>
    %288 = arith.truncf %287 : vector<32x128xf32> to vector<32x128xbf16>
    %cst_63 = arith.constant dense<0.000000e+00> : vector<32x512xf32>
    %289 = tpu.matmul %288, %3, %cst_63 {dimension_numbers = #tpu.dot_dimension_numbers<[1], [0], [0], [1], [0, 0, 1, 1], [], []>} : vector<32x128xbf16>, vector<128x512xbf16>, vector<32x512xf32> -> vector<32x512xf32>
    %290 = arith.addf %289, %268 : vector<32x512xf32>
    %291 = vector.broadcast %5 : vector<1x512xf32> to vector<32x512xf32>
    %292 = arith.addf %290, %291 : vector<32x512xf32>
    %293 = vector.extract_strided_slice %292 {offsets = [0, 0], sizes = [32, 384], strides = [1, 1]} : vector<32x512xf32> to vector<32x384xf32>
    %294 = arith.negf %293 : vector<32x384xf32>
    %295 = math.exp %294 : vector<32x384xf32>
    %cst_64 = arith.constant 1.000000e+00 : f32
    %296 = vector.broadcast %cst_64 : f32 to vector<32x384xf32>
    %297 = arith.addf %296, %295 : vector<32x384xf32>
    %298 = arith.divf %296, %297 : vector<32x384xf32>
    %299 = vector.extract_strided_slice %298 {offsets = [0, 0], sizes = [32, 128], strides = [1, 1]} : vector<32x384xf32> to vector<32x128xf32>
    %300 = vector.extract_strided_slice %298 {offsets = [0, 128], sizes = [32, 128], strides = [1, 1]} : vector<32x384xf32> to vector<32x128xf32>
    %301 = vector.extract_strided_slice %298 {offsets = [0, 256], sizes = [32, 128], strides = [1, 1]} : vector<32x384xf32> to vector<32x128xf32>
    %302 = vector.extract_strided_slice %292 {offsets = [0, 384], sizes = [32, 128], strides = [1, 1]} : vector<32x512xf32> to vector<32x128xf32>
    %303 = math.tanh %302 : vector<32x128xf32>
    %304 = arith.mulf %300, %264 : vector<32x128xf32>
    %305 = arith.mulf %299, %303 : vector<32x128xf32>
    %306 = arith.addf %304, %305 : vector<32x128xf32>
    %307 = math.tanh %306 : vector<32x128xf32>
    %308 = arith.mulf %301, %307 : vector<32x128xf32>
    %309 = arith.truncf %308 : vector<32x128xf32> to vector<32x128xbf16>
    %cst_65 = arith.constant dense<0.000000e+00> : vector<32x512xf32>
    %310 = tpu.matmul %309, %4, %cst_65 {dimension_numbers = #tpu.dot_dimension_numbers<[1], [0], [0], [1], [0, 0, 1, 1], [], []>} : vector<32x128xbf16>, vector<128x512xbf16>, vector<32x512xf32> -> vector<32x512xf32>
    %c224 = arith.constant 224 : index
    %c0_66 = arith.constant 0 : index
    %311 = vector.load %arg11[%c224, %c0_66] : memref<320x512xf32, #tpu.memory_space<vmem>>, vector<32x512xf32>
    %cst_67 = arith.constant dense<0.000000e+00> : vector<32x512xf32>
    %312 = tpu.matmul %288, %1, %cst_67 {dimension_numbers = #tpu.dot_dimension_numbers<[1], [0], [0], [1], [0, 0, 1, 1], [], []>} : vector<32x128xbf16>, vector<128x512xbf16>, vector<32x512xf32> -> vector<32x512xf32>
    %313 = arith.addf %311, %312 : vector<32x512xf32>
    %314 = vector.extract_strided_slice %313 {offsets = [0, 0], sizes = [32, 384], strides = [1, 1]} : vector<32x512xf32> to vector<32x384xf32>
    %315 = arith.negf %314 : vector<32x384xf32>
    %316 = math.exp %315 : vector<32x384xf32>
    %cst_68 = arith.constant 1.000000e+00 : f32
    %317 = vector.broadcast %cst_68 : f32 to vector<32x384xf32>
    %318 = arith.addf %317, %316 : vector<32x384xf32>
    %319 = arith.divf %317, %318 : vector<32x384xf32>
    %320 = vector.extract_strided_slice %319 {offsets = [0, 0], sizes = [32, 128], strides = [1, 1]} : vector<32x384xf32> to vector<32x128xf32>
    %321 = vector.extract_strided_slice %319 {offsets = [0, 128], sizes = [32, 128], strides = [1, 1]} : vector<32x384xf32> to vector<32x128xf32>
    %322 = vector.extract_strided_slice %319 {offsets = [0, 256], sizes = [32, 128], strides = [1, 1]} : vector<32x384xf32> to vector<32x128xf32>
    %323 = vector.extract_strided_slice %313 {offsets = [0, 384], sizes = [32, 128], strides = [1, 1]} : vector<32x512xf32> to vector<32x128xf32>
    %324 = math.tanh %323 : vector<32x128xf32>
    %325 = arith.mulf %321, %285 : vector<32x128xf32>
    %326 = arith.mulf %320, %324 : vector<32x128xf32>
    %327 = arith.addf %325, %326 : vector<32x128xf32>
    %328 = math.tanh %327 : vector<32x128xf32>
    %329 = arith.mulf %322, %328 : vector<32x128xf32>
    %330 = arith.truncf %329 : vector<32x128xf32> to vector<32x128xbf16>
    %cst_69 = arith.constant dense<0.000000e+00> : vector<32x512xf32>
    %331 = tpu.matmul %330, %3, %cst_69 {dimension_numbers = #tpu.dot_dimension_numbers<[1], [0], [0], [1], [0, 0, 1, 1], [], []>} : vector<32x128xbf16>, vector<128x512xbf16>, vector<32x512xf32> -> vector<32x512xf32>
    %332 = arith.addf %331, %310 : vector<32x512xf32>
    %333 = vector.broadcast %5 : vector<1x512xf32> to vector<32x512xf32>
    %334 = arith.addf %332, %333 : vector<32x512xf32>
    %335 = vector.extract_strided_slice %334 {offsets = [0, 0], sizes = [32, 384], strides = [1, 1]} : vector<32x512xf32> to vector<32x384xf32>
    %336 = arith.negf %335 : vector<32x384xf32>
    %337 = math.exp %336 : vector<32x384xf32>
    %cst_70 = arith.constant 1.000000e+00 : f32
    %338 = vector.broadcast %cst_70 : f32 to vector<32x384xf32>
    %339 = arith.addf %338, %337 : vector<32x384xf32>
    %340 = arith.divf %338, %339 : vector<32x384xf32>
    %341 = vector.extract_strided_slice %340 {offsets = [0, 0], sizes = [32, 128], strides = [1, 1]} : vector<32x384xf32> to vector<32x128xf32>
    %342 = vector.extract_strided_slice %340 {offsets = [0, 128], sizes = [32, 128], strides = [1, 1]} : vector<32x384xf32> to vector<32x128xf32>
    %343 = vector.extract_strided_slice %340 {offsets = [0, 256], sizes = [32, 128], strides = [1, 1]} : vector<32x384xf32> to vector<32x128xf32>
    %344 = vector.extract_strided_slice %334 {offsets = [0, 384], sizes = [32, 128], strides = [1, 1]} : vector<32x512xf32> to vector<32x128xf32>
    %345 = math.tanh %344 : vector<32x128xf32>
    %346 = arith.mulf %342, %306 : vector<32x128xf32>
    %347 = arith.mulf %341, %345 : vector<32x128xf32>
    %348 = arith.addf %346, %347 : vector<32x128xf32>
    %349 = math.tanh %348 : vector<32x128xf32>
    %350 = arith.mulf %343, %349 : vector<32x128xf32>
    %351 = arith.truncf %350 : vector<32x128xf32> to vector<32x128xbf16>
    %cst_71 = arith.constant dense<0.000000e+00> : vector<32x512xf32>
    %352 = tpu.matmul %351, %4, %cst_71 {dimension_numbers = #tpu.dot_dimension_numbers<[1], [0], [0], [1], [0, 0, 1, 1], [], []>} : vector<32x128xbf16>, vector<128x512xbf16>, vector<32x512xf32> -> vector<32x512xf32>
    %c256 = arith.constant 256 : index
    %c0_72 = arith.constant 0 : index
    %353 = vector.load %arg11[%c256, %c0_72] : memref<320x512xf32, #tpu.memory_space<vmem>>, vector<32x512xf32>
    %cst_73 = arith.constant dense<0.000000e+00> : vector<32x512xf32>
    %354 = tpu.matmul %330, %1, %cst_73 {dimension_numbers = #tpu.dot_dimension_numbers<[1], [0], [0], [1], [0, 0, 1, 1], [], []>} : vector<32x128xbf16>, vector<128x512xbf16>, vector<32x512xf32> -> vector<32x512xf32>
    %355 = arith.addf %353, %354 : vector<32x512xf32>
    %356 = vector.extract_strided_slice %355 {offsets = [0, 0], sizes = [32, 384], strides = [1, 1]} : vector<32x512xf32> to vector<32x384xf32>
    %357 = arith.negf %356 : vector<32x384xf32>
    %358 = math.exp %357 : vector<32x384xf32>
    %cst_74 = arith.constant 1.000000e+00 : f32
    %359 = vector.broadcast %cst_74 : f32 to vector<32x384xf32>
    %360 = arith.addf %359, %358 : vector<32x384xf32>
    %361 = arith.divf %359, %360 : vector<32x384xf32>
    %362 = vector.extract_strided_slice %361 {offsets = [0, 0], sizes = [32, 128], strides = [1, 1]} : vector<32x384xf32> to vector<32x128xf32>
    %363 = vector.extract_strided_slice %361 {offsets = [0, 128], sizes = [32, 128], strides = [1, 1]} : vector<32x384xf32> to vector<32x128xf32>
    %364 = vector.extract_strided_slice %361 {offsets = [0, 256], sizes = [32, 128], strides = [1, 1]} : vector<32x384xf32> to vector<32x128xf32>
    %365 = vector.extract_strided_slice %355 {offsets = [0, 384], sizes = [32, 128], strides = [1, 1]} : vector<32x512xf32> to vector<32x128xf32>
    %366 = math.tanh %365 : vector<32x128xf32>
    %367 = arith.mulf %363, %327 : vector<32x128xf32>
    %368 = arith.mulf %362, %366 : vector<32x128xf32>
    %369 = arith.addf %367, %368 : vector<32x128xf32>
    %370 = math.tanh %369 : vector<32x128xf32>
    %371 = arith.mulf %364, %370 : vector<32x128xf32>
    %372 = arith.truncf %371 : vector<32x128xf32> to vector<32x128xbf16>
    %cst_75 = arith.constant dense<0.000000e+00> : vector<32x512xf32>
    %373 = tpu.matmul %372, %3, %cst_75 {dimension_numbers = #tpu.dot_dimension_numbers<[1], [0], [0], [1], [0, 0, 1, 1], [], []>} : vector<32x128xbf16>, vector<128x512xbf16>, vector<32x512xf32> -> vector<32x512xf32>
    %374 = arith.addf %373, %352 : vector<32x512xf32>
    %375 = vector.broadcast %5 : vector<1x512xf32> to vector<32x512xf32>
    %376 = arith.addf %374, %375 : vector<32x512xf32>
    %377 = vector.extract_strided_slice %376 {offsets = [0, 0], sizes = [32, 384], strides = [1, 1]} : vector<32x512xf32> to vector<32x384xf32>
    %378 = arith.negf %377 : vector<32x384xf32>
    %379 = math.exp %378 : vector<32x384xf32>
    %cst_76 = arith.constant 1.000000e+00 : f32
    %380 = vector.broadcast %cst_76 : f32 to vector<32x384xf32>
    %381 = arith.addf %380, %379 : vector<32x384xf32>
    %382 = arith.divf %380, %381 : vector<32x384xf32>
    %383 = vector.extract_strided_slice %382 {offsets = [0, 0], sizes = [32, 128], strides = [1, 1]} : vector<32x384xf32> to vector<32x128xf32>
    %384 = vector.extract_strided_slice %382 {offsets = [0, 128], sizes = [32, 128], strides = [1, 1]} : vector<32x384xf32> to vector<32x128xf32>
    %385 = vector.extract_strided_slice %382 {offsets = [0, 256], sizes = [32, 128], strides = [1, 1]} : vector<32x384xf32> to vector<32x128xf32>
    %386 = vector.extract_strided_slice %376 {offsets = [0, 384], sizes = [32, 128], strides = [1, 1]} : vector<32x512xf32> to vector<32x128xf32>
    %387 = math.tanh %386 : vector<32x128xf32>
    %388 = arith.mulf %384, %348 : vector<32x128xf32>
    %389 = arith.mulf %383, %387 : vector<32x128xf32>
    %390 = arith.addf %388, %389 : vector<32x128xf32>
    %391 = math.tanh %390 : vector<32x128xf32>
    %392 = arith.mulf %385, %391 : vector<32x128xf32>
    %393 = arith.truncf %392 : vector<32x128xf32> to vector<32x128xbf16>
    %cst_77 = arith.constant dense<0.000000e+00> : vector<32x512xf32>
    %394 = tpu.matmul %393, %4, %cst_77 {dimension_numbers = #tpu.dot_dimension_numbers<[1], [0], [0], [1], [0, 0, 1, 1], [], []>} : vector<32x128xbf16>, vector<128x512xbf16>, vector<32x512xf32> -> vector<32x512xf32>
    %c288 = arith.constant 288 : index
    %c0_78 = arith.constant 0 : index
    %395 = vector.load %arg11[%c288, %c0_78] : memref<320x512xf32, #tpu.memory_space<vmem>>, vector<32x512xf32>
    %cst_79 = arith.constant dense<0.000000e+00> : vector<32x512xf32>
    %396 = tpu.matmul %372, %1, %cst_79 {dimension_numbers = #tpu.dot_dimension_numbers<[1], [0], [0], [1], [0, 0, 1, 1], [], []>} : vector<32x128xbf16>, vector<128x512xbf16>, vector<32x512xf32> -> vector<32x512xf32>
    %397 = arith.addf %395, %396 : vector<32x512xf32>
    %398 = vector.extract_strided_slice %397 {offsets = [0, 0], sizes = [32, 384], strides = [1, 1]} : vector<32x512xf32> to vector<32x384xf32>
    %399 = arith.negf %398 : vector<32x384xf32>
    %400 = math.exp %399 : vector<32x384xf32>
    %cst_80 = arith.constant 1.000000e+00 : f32
    %401 = vector.broadcast %cst_80 : f32 to vector<32x384xf32>
    %402 = arith.addf %401, %400 : vector<32x384xf32>
    %403 = arith.divf %401, %402 : vector<32x384xf32>
    %404 = vector.extract_strided_slice %403 {offsets = [0, 0], sizes = [32, 128], strides = [1, 1]} : vector<32x384xf32> to vector<32x128xf32>
    %405 = vector.extract_strided_slice %403 {offsets = [0, 128], sizes = [32, 128], strides = [1, 1]} : vector<32x384xf32> to vector<32x128xf32>
    %406 = vector.extract_strided_slice %403 {offsets = [0, 256], sizes = [32, 128], strides = [1, 1]} : vector<32x384xf32> to vector<32x128xf32>
    %407 = vector.extract_strided_slice %397 {offsets = [0, 384], sizes = [32, 128], strides = [1, 1]} : vector<32x512xf32> to vector<32x128xf32>
    %408 = math.tanh %407 : vector<32x128xf32>
    %409 = arith.mulf %405, %369 : vector<32x128xf32>
    %410 = arith.mulf %404, %408 : vector<32x128xf32>
    %411 = arith.addf %409, %410 : vector<32x128xf32>
    %412 = math.tanh %411 : vector<32x128xf32>
    %413 = arith.mulf %406, %412 : vector<32x128xf32>
    %414 = arith.truncf %413 : vector<32x128xf32> to vector<32x128xbf16>
    %cst_81 = arith.constant dense<0.000000e+00> : vector<32x512xf32>
    %415 = tpu.matmul %414, %3, %cst_81 {dimension_numbers = #tpu.dot_dimension_numbers<[1], [0], [0], [1], [0, 0, 1, 1], [], []>} : vector<32x128xbf16>, vector<128x512xbf16>, vector<32x512xf32> -> vector<32x512xf32>
    %416 = arith.addf %415, %394 : vector<32x512xf32>
    %417 = vector.broadcast %5 : vector<1x512xf32> to vector<32x512xf32>
    %418 = arith.addf %416, %417 : vector<32x512xf32>
    %419 = vector.extract_strided_slice %418 {offsets = [0, 0], sizes = [32, 384], strides = [1, 1]} : vector<32x512xf32> to vector<32x384xf32>
    %420 = arith.negf %419 : vector<32x384xf32>
    %421 = math.exp %420 : vector<32x384xf32>
    %cst_82 = arith.constant 1.000000e+00 : f32
    %422 = vector.broadcast %cst_82 : f32 to vector<32x384xf32>
    %423 = arith.addf %422, %421 : vector<32x384xf32>
    %424 = arith.divf %422, %423 : vector<32x384xf32>
    %425 = vector.extract_strided_slice %424 {offsets = [0, 0], sizes = [32, 128], strides = [1, 1]} : vector<32x384xf32> to vector<32x128xf32>
    %426 = vector.extract_strided_slice %424 {offsets = [0, 128], sizes = [32, 128], strides = [1, 1]} : vector<32x384xf32> to vector<32x128xf32>
    %427 = vector.extract_strided_slice %424 {offsets = [0, 256], sizes = [32, 128], strides = [1, 1]} : vector<32x384xf32> to vector<32x128xf32>
    %428 = vector.extract_strided_slice %418 {offsets = [0, 384], sizes = [32, 128], strides = [1, 1]} : vector<32x512xf32> to vector<32x128xf32>
    %429 = math.tanh %428 : vector<32x128xf32>
    %430 = arith.mulf %426, %390 : vector<32x128xf32>
    %431 = arith.mulf %425, %429 : vector<32x128xf32>
    %432 = arith.addf %430, %431 : vector<32x128xf32>
    %433 = math.tanh %432 : vector<32x128xf32>
    %434 = arith.mulf %427, %433 : vector<32x128xf32>
    %cst_83 = arith.constant dense<0.000000e+00> : vector<32x4xf32>
    %435 = tpu.matmul %434, %6, %cst_83 {dimension_numbers = #tpu.dot_dimension_numbers<[1], [0], [0], [1], [0, 0, 1, 1], [], []>} : vector<32x128xf32>, vector<128x4xf32>, vector<32x4xf32> -> vector<32x4xf32>
    %436 = vector.broadcast %7 : vector<1x4xf32> to vector<32x4xf32>
    %437 = arith.addf %435, %436 : vector<32x4xf32>
    %c0_84 = arith.constant 0 : index
    %c0_85 = arith.constant 0 : index
    %438 = vector.load %arg10[%c0_84, %c0_85] : memref<32x4xf32, #tpu.memory_space<vmem>>, vector<32x4xf32>
    tpu.vector_store %arg10[%c0_84, %c0_85], %437 {strides = array<i32>} : memref<32x4xf32, #tpu.memory_space<vmem>>, vector<32x4xf32>,
    return
  }
  func.func @transform_0(%arg0: i32) -> (i32, i32, i32) {
    %c0_i32 = arith.constant 0 : i32
    %c0_i32_0 = arith.constant 0 : i32
    %c0_i32_1 = arith.constant 0 : i32
    return %c0_i32, %arg0, %c0_i32_0 : i32, i32, i32
  }
  func.func @transform_1(%arg0: i32) -> (i32, i32) {
    %c0_i32 = arith.constant 0 : i32
    %c0_i32_0 = arith.constant 0 : i32
    %c0_i32_1 = arith.constant 0 : i32
    return %c0_i32, %c0_i32_0 : i32, i32
  }
  func.func @transform_2(%arg0: i32) -> (i32, i32) {
    %c0_i32 = arith.constant 0 : i32
    %c0_i32_0 = arith.constant 0 : i32
    %c0_i32_1 = arith.constant 0 : i32
    return %c0_i32, %c0_i32_0 : i32, i32
  }
  func.func @transform_3(%arg0: i32) -> (i32, i32) {
    %c0_i32 = arith.constant 0 : i32
    %c0_i32_0 = arith.constant 0 : i32
    %c0_i32_1 = arith.constant 0 : i32
    return %c0_i32, %c0_i32_0 : i32, i32
  }
  func.func @transform_4(%arg0: i32) -> (i32, i32) {
    %c0_i32 = arith.constant 0 : i32
    %c0_i32_0 = arith.constant 0 : i32
    %c0_i32_1 = arith.constant 0 : i32
    return %c0_i32, %c0_i32_0 : i32, i32
  }
  func.func @transform_5(%arg0: i32) -> (i32, i32) {
    %c0_i32 = arith.constant 0 : i32
    %c0_i32_0 = arith.constant 0 : i32
    %c0_i32_1 = arith.constant 0 : i32
    return %c0_i32, %c0_i32_0 : i32, i32
  }
  func.func @transform_6(%arg0: i32) -> (i32, i32) {
    %c0_i32 = arith.constant 0 : i32
    %c0_i32_0 = arith.constant 0 : i32
    %c0_i32_1 = arith.constant 0 : i32
    return %c0_i32, %c0_i32_0 : i32, i32
  }
  func.func @transform_7(%arg0: i32) -> (i32, i32) {
    %c0_i32 = arith.constant 0 : i32
    %c0_i32_0 = arith.constant 0 : i32
    %c0_i32_1 = arith.constant 0 : i32
    return %c0_i32, %c0_i32_0 : i32, i32
  }
  func.func @transform_8(%arg0: i32) -> (i32, i32) {
    %c0_i32 = arith.constant 0 : i32
    %c0_i32_0 = arith.constant 0 : i32
    %c0_i32_1 = arith.constant 0 : i32
    return %c0_i32, %c0_i32_0 : i32, i32
  }
  func.func @transform_9(%arg0: i32) -> (i32, i32) {
    %c0_i32 = arith.constant 0 : i32
    %c0_i32_0 = arith.constant 0 : i32
    return %arg0, %c0_i32 : i32, i32
  }
}

</mosaic_0001>

<bundles_post_ra>
// kernel: opera_model_forward.1
= control target key start
LH: loop header
LB: loop body
LE: loop exit
PB: predicated region body
PF: predicated region fallthrough
CT: control target
= control target key end

     0   :  { %14 = vsyncpa [#allocation4], 0  ;;  %s14412_s0 = inlined_call_operand.vmem [shape: f32[10,32,3], index: 0, kind: input, shape index: {}]   ;;  %s14413_s1 = inlined_call_operand.hbm [shape: f32[3,512], index: 1, kind: input, shape index: {}]   ;;  %s14414_s2 = inlined_call_operand.vmem [shape: bf16[128,512], index: 2, kind: input, shape index: {}]   ;;  %s14415_s3 = inlined_call_operand.hbm [shape: f32[1,512], index: 3, kind: input, shape index: {}]   ;;  %s14416_s4 = inlined_call_operand.vmem [shape: bf16[128,512], index: 4, kind: input, shape index: {}]   ;;  %s14417_s5 = inlined_call_operand.hbm [shape: bf16[128,512], index: 5, kind: input, shape index: {}]   ;;  %s14418_s6 = inlined_call_operand.hbm [shape: f32[1,512], index: 6, kind: input, shape index: {}]   ;;  %s14419_s7 = inlined_call_operand.vmem [shape: f32[128,4], index: 7, kind: input, shape index: {}]   ;;  %s14420_s8 = inlined_call_operand.vmem [shape: f32[1,4], index: 8, kind: input, shape index: {}]   ;;  %s14421_s9 = inlined_call_operand.vmem [shape: f32[32,4], index: 9, kind: output, shape index: {}]  }
   0x1   :  { %15 = vsyncpa [#allocation6], 0 }
   0x2   :  { %16 = vsyncpa [#allocation9], 0  ;;  %s9897_s30 = smov [#allocation5]   ;;  %s9898_s11 = smov [#allocation3]  }
   0x3   :  { %s37_s10 = sshll.u32 %s9897_s30, 4  ;;  %s25_s12 = sshll.u32 %s9898_s11, 4  ;;  %s38_s10 = int_to_ptr.vmem [resolvable:$true] %s37_s10  ;;  %s26_s12 = int_to_ptr.vmem [resolvable:$true] %s25_s12 }
   0x4   :  { %s9803_s15 = scalar_lea.hbm %s14415_s3, 64 }
   0x5   :  { %p9804_p0 = scmp.ne.s32.totalorder %s14415_s3, %s9803_s15  ;;  %p9807_p1 = scmp.lt.u32.totalorder %s9803_s15, %s14415_s3 }
   0x7   :  { %p9809_p2 = pnand %p9807_p1, %p9804_p0 }
   0x9   :  { %9812 = shalt.err (!%p9809_p2)
}
   0xa   :  { %s9813_s20 = scalar_lea.vmem %s38_s10, 64  ;;  %p9818_p4 = scmp.lt.s32.totalorder %s38_s10, %s38_s10 }
   0xb   :  { %p9814_p3 = scmp.ne.s32.totalorder %s38_s10, %s9813_s20  ;;  %p9819_p5 = scmp.lt.s32.totalorder %s9813_s20, %s9813_s20 }
   0xd   :  { %p9820_p6 = por %p9819_p5, %p9818_p4 }
   0xf   :  { %p9821_p7 = pnand %p9820_p6, %p9814_p3 }
  0x11   :  { %9824 = shalt.err (!%p9821_p7)
}
  0x12   :  { %40 = dma.hbm_to_vmem [thread:$0]  %s14415_s3, 64, %s38_s10, [#allocation6]  }
  0x13   :  { %s9825_s25 = scalar_lea.hbm %s14413_s1, 256 }
  0x14   :  { %p9826_p8 = scmp.ne.s32.totalorder %s14413_s1, %s9825_s25  ;;  %p9829_p9 = scmp.lt.u32.totalorder %s9825_s25, %s14413_s1 }
  0x16   :  { %p9831_p10 = pnand %p9829_p9, %p9826_p8 }
  0x18   :  { %9834 = shalt.err (!%p9831_p10)
}
  0x19   :  { %s9835_s30 = scalar_lea.vmem %s26_s12, 256  ;;  %p9840_p12 = scmp.lt.s32.totalorder %s26_s12, %s26_s12 }
  0x1a   :  { %p9836_p11 = scmp.ne.s32.totalorder %s26_s12, %s9835_s30  ;;  %p9841_p13 = scmp.lt.s32.totalorder %s9835_s30, %s9835_s30 }
  0x1c   :  { %p9842_p0 = por %p9841_p13, %p9840_p12 }
  0x1e   :  { %p9843_p1 = pnand %p9842_p0, %p9836_p11 }
  0x20   :  { %9846 = shalt.err (!%p9843_p1)
}
  0x21   :  { %28 = dma.hbm_to_vmem [thread:$0]  %s14413_s1, 256, %s26_s12, [#allocation4]  }
  0x22   :  { %s9899_s11 = smov [#allocation7]   ;;  %s9847_s16 = scalar_lea.hbm %s14417_s5, 4096 }
  0x23   :  { %s48_s13 = sshll.u32 %s9899_s11, 4  ;;  %p9848_p2 = scmp.ne.s32.totalorder %s14417_s5, %s9847_s16  ;;  %s49_s13 = int_to_ptr.vmem [resolvable:$true] %s48_s13 }
  0x24   :  { %p9851_p3 = scmp.lt.u32.totalorder %s9847_s16, %s14417_s5 }
  0x26   :  { %p9853_p4 = pnand %p9851_p3, %p9848_p2 }
  0x28   :  { %9856 = shalt.err (!%p9853_p4)
}
  0x29   :  { %s9857_s21 = scalar_lea.vmem %s49_s13, 4096  ;;  %p9862_p6 = scmp.lt.s32.totalorder %s49_s13, %s49_s13 }
  0x2a   :  { %p9858_p5 = scmp.ne.s32.totalorder %s49_s13, %s9857_s21  ;;  %p9863_p7 = scmp.lt.s32.totalorder %s9857_s21, %s9857_s21 }
  0x2c   :  { %p9864_p8 = por %p9863_p7, %p9862_p6 }
  0x2e   :  { %p9865_p9 = pnand %p9864_p8, %p9858_p5 }
  0x30   :  { %9868 = shalt.err (!%p9865_p9)
}
  0x31   :  { %s9900_s1 = smov 256   ;;  %s9901_s12 = smov 16  }
  0x32   :  { %54 = dma.hbm_to_vmem [thread:$0]  %s14417_s5, 4096, %s49_s13, [#allocation6], %s9900_s1, %s9900_s1, %s9901_s12  }
  0x33   :  { %s9902_s24 = smov [#allocation8]   ;;  %s9869_s28 = scalar_lea.hbm %s14418_s6, 64 }
  0x34   :  { %s61_s25 = sshll.u32 %s9902_s24, 4  ;;  %p9870_p10 = scmp.ne.s32.totalorder %s14418_s6, %s9869_s28  ;;  %s62_s25 = int_to_ptr.vmem [resolvable:$true] %s61_s25 }
  0x35   :  { %p9873_p11 = scmp.lt.u32.totalorder %s9869_s28, %s14418_s6 }
  0x37   :  { %p9875_p12 = pnand %p9873_p11, %p9870_p10 }
  0x39   :  { %9878 = shalt.err (!%p9875_p12)
}
  0x3a   :  { %s9879_s11 = scalar_lea.vmem %s62_s25, 64  ;;  %p9884_p0 = scmp.lt.s32.totalorder %s62_s25, %s62_s25 }
  0x3b   :  { %p9880_p13 = scmp.ne.s32.totalorder %s62_s25, %s9879_s11  ;;  %p9885_p1 = scmp.lt.s32.totalorder %s9879_s11, %s9879_s11 }
  0x3d   :  { %p9886_p2 = por %p9885_p1, %p9884_p0 }
  0x3f   :  { %p9887_p3 = pnand %p9886_p2, %p9880_p13 }
  0x41   :  { %9890 = shalt.err (!%p9887_p3)
}
  0x42   :  { %64 = dma.hbm_to_vmem [thread:$0]  %s14418_s6, 64, %s62_s25, [#allocation9]  }
  0x43   :  { %9891 = dma.done.wait [#allocation4], 256  }
  0x44   :  { %9892 = vsyncadd [#allocation4], 4294967040 }
  0x45   :  { %9893 = dma.done.wait [#allocation6], 4160  }
  0x46   :  { %9894 = vsyncadd [#allocation6], 4294963136 }
  0x47   :  { %9895 = dma.done.wait [#allocation9], 64  }
  0x48   :  { %9896 = vsyncadd [#allocation9], 4294967232  ;;  %v9903_v0 = vmov 0.0   ;;  %v82_v1 = vld [vmem:[#allocation3] sm:$0x77]  ;;  %vm385_vm0 = vcmask 1042432  }
  0x49   :  { %458 = vmatprep.mubr.f32.mxu0 %v9903_v0  ;;  %680 = vmatprep.mubr.f32.mxu1 %v9903_v0  ;;  %v262_v2 = vcombine.high %v82_v1, %v82_v1  ;;  %v83_v3 = vld [vmem:[#allocation3 + $0x8] sm:$0x77]  ;;  %v199_v4 = vld [vmem:[%s14412_s0] sm:$0xff]  ;;  %vm264_vm1 = vcmask 23552   ;;  %v10034_v10 = vld [vmem:[%s14412_s0 + $0x130] sm:$0xff]  ;;  %vm7252_vm2 = vcmask 31744  }
  0x4a   :  { %v10011_v5 = vld [vmem:[%s14412_s0 + $0x128] sm:$0xff]  ;;  %v263_v6 = vcombine.high %v83_v3, %v83_v3  ;;  %v7931_v7 = vld [vmem:[%s14414_s2 + $0x4] ss:$16 sps:$4 sm:$0xff]   ;;  %v7933_v11 = vld [vmem:[%s14414_s2] ss:$16 sps:$4 sm:$0xff]  }
  0x4b   :  { %7264 = vmatprep.subr.msk.mxu0 %vm385_vm0, %v262_v2  ;;  %7775 = vmatprep.subr.msk.mxu1 %vm385_vm0, %v262_v2  ;;  %v7934_v8 = vld [vmem:[%s14414_s2 + $0xc] ss:$16 sps:$4 sm:$0xff]   ;;  %v7937_v12 = vld [vmem:[%s14414_s2 + $0x24] ss:$16 sps:$4 sm:$0xff]   ;;  %v7939_v15 = vld [vmem:[%s14414_s2 + $0x20] ss:$16 sps:$4 sm:$0xff]  }
  0x4c   :  { %7265 = vmatpush1.msk.msra.mxu0 %vm385_vm0, %v82_v1  ;;  %7776 = vmatpush1.msk.msra.mxu1 %vm385_vm0, %v82_v1  ;;  %v200_v9 = vld [vmem:[%s14412_s0 + $0x8] sm:$0xff]  ;;  %v201_v13 = vld [vmem:[%s14412_s0 + $0x10] sm:$0xff]  ;;  %v10055_v14 = vld [vmem:[%s14412_s0 + $0x138] sm:$0xff] }
  0x4d   :  { %7266 = vmatmul.mubr.msk.f32.vlgmr.msra.gmra.mrb[0].mxu0 %vm264_vm1, %v199_v4  ;;  %7303 = vmatmul.mubr.msk.f32.vlgmr.msra.gmra.mrb[0].mxu1 %vm264_vm1, %v10011_v5  ;;  %v7943_v16 = vld [vmem:[%s14414_s2 + $0x44] ss:$16 sps:$4 sm:$0xff]   ;;  %v202_v17 = vld [vmem:[%s14412_s0 + $0x18] sm:$0xff]  ;;  %v7945_v20 = vld [vmem:[%s14414_s2 + $0x40] ss:$16 sps:$4 sm:$0xff]  }
  0x4e   :  { %7306 = vmatprep.subr.msk.mxu1 %vm385_vm0, %v263_v6  ;;  %464 = vmatprep.mubr.f32.mxu0 %v9903_v0  ;;  %v7936_v18 = vld [vmem:[%s14414_s2 + $0x8] ss:$16 sps:$4 sm:$0xff]   ;;  %v7940_v19 = vld [vmem:[%s14414_s2 + $0x2c] ss:$16 sps:$4 sm:$0xff]   ;;  %v203_v21 = vld [vmem:[%s14412_s0 + $0x20] sm:$0xff] }
  0x4f   :  { %7307 = vmatpush1.msk.msra.mxu1 %vm385_vm0, %v83_v3  ;;  %686 = vmatprep.mubr.f32.mxu1 %v9903_v0  ;;  %v7942_v22 = vld [vmem:[%s14414_s2 + $0x28] ss:$16 sps:$4 sm:$0xff]   ;;  %v7949_v23 = vld [vmem:[%s14414_s2 + $0x64] ss:$16 sps:$4 sm:$0xff]   ;;  %v7946_v24 = vld [vmem:[%s14414_s2 + $0x4c] ss:$16 sps:$4 sm:$0xff]  }
  0x50   :  { %1340 = vmatprep.subr.bf16.mxu0 %v7931_v7  ;;  %1393 = vmatprep.subr.bf16.mxu1 %v7934_v8  ;;  %v7951_v25 = vld [vmem:[%s14414_s2 + $0x60] ss:$16 sps:$4 sm:$0xff]   ;;  %v204_v26 = vld [vmem:[%s14412_s0 + $0x28] sm:$0xff]  ;;  %v7955_v28 = vld [vmem:[%s14414_s2 + $0x84] ss:$16 sps:$4 sm:$0xff]  }
  0x51   :  { %7267 = vmatmul.mubr.msk.f32.gmra.mrb[2].mxu0 %vm264_vm1, %v200_v9  ;;  %7304 = vmatmul.mubr.msk.f32.gmra.mrb[2].mxu1 %vm264_vm1, %v10034_v10  ;;  %v7948_v27 = vld [vmem:[%s14414_s2 + $0x48] ss:$16 sps:$4 sm:$0xff]   ;;  %v7952_v29 = vld [vmem:[%s14414_s2 + $0x6c] ss:$16 sps:$4 sm:$0xff]   ;;  %v7957_v30 = vld [vmem:[%s14414_s2 + $0x80] ss:$16 sps:$4 sm:$0xff]  }
  0x52   :  { %470 = vmatprep.mubr.f32.mxu0 %v9903_v0  ;;  %692 = vmatprep.mubr.f32.mxu1 %v9903_v0  ;;  %v205_v31 = vld [vmem:[%s14412_s0 + $0x30] sm:$0xff]  ;;  %v7954_v32 = vld [vmem:[%s14414_s2 + $0x68] ss:$16 sps:$4 sm:$0xff]   ;;  %v7958_v33 = vld [vmem:[%s14414_s2 + $0x8c] ss:$16 sps:$4 sm:$0xff]  }
  0x53   :  { %1341 = vmatpush1.bf16.msra.mxu0 %v7933_v11  ;;  %v7961_v34 = vld [vmem:[%s14414_s2 + $0xa4] ss:$16 sps:$4 sm:$0xff]   ;;  %v7963_v35 = vld [vmem:[%s14414_s2 + $0xa0] ss:$16 sps:$4 sm:$0xff]   ;;  %v206_v36 = vld [vmem:[%s14412_s0 + $0x38] sm:$0xff] }
  0x54   :  { %1342 = vmatprep.subr.bf16.mxu0 %v7937_v12  ;;  %v7960_v37 = vld [vmem:[%s14414_s2 + $0x88] ss:$16 sps:$4 sm:$0xff]   ;;  %v7964_v38 = vld [vmem:[%s14414_s2 + $0xac] ss:$16 sps:$4 sm:$0xff]   ;;  %v7967_v39 = vld [vmem:[%s14414_s2 + $0xc4] ss:$16 sps:$4 sm:$0xff]  }
  0x55   :  { %7268 = vmatmul.mubr.msk.f32.gmra.mrb[4].mxu0 %vm264_vm1, %v201_v13  ;;  %7305 = vmatmul.mubr.msk.f32.gmra.mrb[4].mxu1 %vm264_vm1, %v10055_v14  ;;  %v7969_v40 = vld [vmem:[%s14414_s2 + $0xc0] ss:$16 sps:$4 sm:$0xff]   ;;  %v7966_v42 = vld [vmem:[%s14414_s2 + $0xa8] ss:$16 sps:$4 sm:$0xff]   ;;  %v7970_v43 = vld [vmem:[%s14414_s2 + $0xcc] ss:$16 sps:$4 sm:$0xff]  }
  0x56   :  { %476 = vmatprep.mubr.f32.mxu0 %v9903_v0  ;;  %763 = vmatprep.mubr.f32.mxu1 %v9903_v0  ;;  %v207_v41 = vld [vmem:[%s14412_s0 + $0x40] sm:$0xff]  ;;  %v208_v46 = vld [vmem:[%s14412_s0 + $0x48] sm:$0xff]  ;;  %v209_v49 = vld [vmem:[%s14412_s0 + $0x50] sm:$0xff] }
  0x57   :  { %1343 = vmatpush1.bf16.msra.mxu0 %v7939_v15  ;;  %v7973_v44 = vld [vmem:[%s14414_s2 + $0xe4] ss:$16 sps:$4 sm:$0xff]   ;;  %v7975_v45 = vld [vmem:[%s14414_s2 + $0xe0] ss:$16 sps:$4 sm:$0xff]   ;;  %v7972_v47 = vld [vmem:[%s14414_s2 + $0xc8] ss:$16 sps:$4 sm:$0xff]  }
  0x58   :  { %1344 = vmatprep.subr.bf16.mxu0 %v7943_v16  ;;  %v7976_v48 = vld [vmem:[%s14414_s2 + $0xec] ss:$16 sps:$4 sm:$0xff]   ;;  %v7978_v50 = vld [vmem:[%s14414_s2 + $0xe8] ss:$16 sps:$4 sm:$0xff]   ;;  %v211_v52 = vld [vmem:[%s14412_s0 + $0x60] sm:$0xff] }
  0x59   :  { %7269 = vmatmul.mubr.msk.f32.gmra.mrb[6].mxu0 %vm264_vm1, %v202_v17  ;;  %7308 = vmatmul.mubr.msk.f32.vlgmr.msra.gmra.mrb[6].mxu1 %vm264_vm1, %v199_v4  ;;  %v210_v51 = vld [vmem:[%s14412_s0 + $0x58] sm:$0xff]  ;;  %v212_v53 = vld [vmem:[%s14412_s0 + $0x68] sm:$0xff]  ;;  %v213_v54 = vld [vmem:[%s14412_s0 + $0x70] sm:$0xff] }
  0x5a   :  { %1394 = vmatpush1.bf16.msra.mxu1 %v7936_v18  ;;  %482 = vmatprep.mubr.f32.mxu0 %v9903_v0  ;;  %v214_v55 = vld [vmem:[%s14412_s0 + $0x78] sm:$0xff]  ;;  %v215_v56 = vld [vmem:[%s14412_s0 + $0x80] sm:$0xff]  ;;  %v216_v57 = vld [vmem:[%s14412_s0 + $0x88] sm:$0xff] }
  0x5b   :  { %769 = vmatprep.mubr.f32.mxu1 %v9903_v0  ;;  %1395 = vmatprep.subr.bf16.mxu1 %v7940_v19  ;;  %v217_v58 = vld [vmem:[%s14412_s0 + $0x90] sm:$0xff]  ;;  %v218_v59 = vld [vmem:[%s14412_s0 + $0x98] sm:$0xff]  ;;  %v219_v60 = vld [vmem:[%s14412_s0 + $0xa0] sm:$0xff] }
  0x5c   :  { %1345 = vmatpush1.bf16.msra.mxu0 %v7945_v20  ;;  %v220_v61 = vld [vmem:[%s14412_s0 + $0xa8] sm:$0xff]  ;;  %v221_v62 = vld [vmem:[%s14412_s0 + $0xb0] sm:$0xff]  ;;  %v222_v63 = vld [vmem:[%s14412_s0 + $0xb8] sm:$0xff] }
  0x5d   :  { %7270 = vmatmul.mubr.msk.f32.gmra.mrb[8].mxu0 %vm264_vm1, %v203_v21  ;;  %7309 = vmatmul.mubr.msk.f32.gmra.mrb[8].mxu1 %vm264_vm1, %v200_v9  ;;  %v223_v1 = vld [vmem:[%s14412_s0 + $0xc0] sm:$0xff]  ;;  %v224_v2 = vld [vmem:[%s14412_s0 + $0xc8] sm:$0xff]  ;;  %v225_v3 = vld [vmem:[%s14412_s0 + $0xd0] sm:$0xff] }
  0x5e   :  { %488 = vmatprep.mubr.f32.mxu0 %v9903_v0  ;;  %775 = vmatprep.mubr.f32.mxu1 %v9903_v0  ;;  %v226_v4 = vld [vmem:[%s14412_s0 + $0xd8] sm:$0xff]  ;;  %v227_v6 = vld [vmem:[%s14412_s0 + $0xe0] sm:$0xff]  ;;  %v228_v7 = vld [vmem:[%s14412_s0 + $0xe8] sm:$0xff] }
  0x5f   :  { %1396 = vmatpush1.bf16.msra.mxu1 %v7942_v22  ;;  %1346 = vmatprep.subr.bf16.mxu0 %v7949_v23  ;;  %v229_v8 = vld [vmem:[%s14412_s0 + $0xf0] sm:$0xff]  ;;  %v230_v9 = vld [vmem:[%s14412_s0 + $0xf8] sm:$0xff]  ;;  %v231_v11 = vld [vmem:[%s14412_s0 + $0x100] sm:$0xff] }
  0x60   :  { %1397 = vmatprep.subr.bf16.mxu1 %v7946_v24  ;;  %1347 = vmatpush1.bf16.msra.mxu0 %v7951_v25  ;;  %v232_v12 = vld [vmem:[%s14412_s0 + $0x108] sm:$0xff]  ;;  %v234_v15 = vld [vmem:[%s14412_s0 + $0x118] sm:$0xff]  ;;  %v235_v16 = vld [vmem:[%s14412_s0 + $0x120] sm:$0xff] }
  0x61   :  { %7271 = vmatmul.mubr.msk.f32.gmra.mrb[10].mxu0 %vm264_vm1, %v204_v26  ;;  %7310 = vmatmul.mubr.msk.f32.gmra.mrb[10].mxu1 %vm264_vm1, %v201_v13  ;;  %v233_v13 = vld [vmem:[%s14412_s0 + $0x110] sm:$0xff] }
  0x62   :  { %494 = vmatprep.mubr.f32.mxu0 %v9903_v0  ;;  %781 = vmatprep.mubr.f32.mxu1 %v9903_v0 }
  0x63   :  { %1398 = vmatpush1.bf16.msra.mxu1 %v7948_v27  ;;  %1348 = vmatprep.subr.bf16.mxu0 %v7955_v28 }
  0x64   :  { %1399 = vmatprep.subr.bf16.mxu1 %v7952_v29  ;;  %1349 = vmatpush1.bf16.msra.mxu0 %v7957_v30 }
  0x65   :  { %7272 = vmatmul.mubr.msk.f32.gmra.mrb[12].mxu0 %vm264_vm1, %v205_v31  ;;  %7311 = vmatmul.mubr.msk.f32.gmra.mrb[12].mxu1 %vm264_vm1, %v202_v17  ;;  %v14422_v17 = vmov 0  }
  0x66   :  { %500 = vmatprep.mubr.f32.mxu0 %v9903_v0  ;;  %787 = vmatprep.mubr.f32.mxu1 %v9903_v0 }
  0x67   :  { %1400 = vmatpush1.bf16.msra.mxu1 %v7954_v32  ;;  %1350 = vmatprep.subr.bf16.mxu0 %v7961_v34 }
  0x68   :  { %1401 = vmatprep.subr.bf16.mxu1 %v7958_v33  ;;  %1351 = vmatpush1.bf16.msra.mxu0 %v7963_v35 }
  0x69   :  { %7273 = vmatmul.mubr.msk.f32.gmra.mrb[14].mxu0 %vm264_vm1, %v206_v36  ;;  %7312 = vmatmul.mubr.msk.f32.gmra.mrb[14].mxu1 %vm264_vm1, %v203_v21 }
  0x6a   :  { %506 = vmatprep.mubr.f32.mxu0 %v9903_v0  ;;  %793 = vmatprep.mubr.f32.mxu1 %v9903_v0 }
  0x6b   :  { %1402 = vmatpush1.bf16.msra.mxu1 %v7960_v37  ;;  %1352 = vmatprep.subr.bf16.mxu0 %v7967_v39 }
  0x6c   :  { %1403 = vmatprep.subr.bf16.mxu1 %v7964_v38  ;;  %1353 = vmatpush1.bf16.msra.mxu0 %v7969_v40 }
  0x6d   :  { %7274 = vmatmul.mubr.msk.f32.gmra.mrb[16].mxu0 %vm264_vm1, %v207_v41  ;;  %7313 = vmatmul.mubr.msk.f32.gmra.mrb[16].mxu1 %vm264_vm1, %v204_v26 }
  0x6e   :  { %512 = vmatprep.mubr.f32.mxu0 %v9903_v0  ;;  %799 = vmatprep.mubr.f32.mxu1 %v9903_v0 }
  0x6f   :  { %1404 = vmatpush1.bf16.msra.mxu1 %v7966_v42  ;;  %1354 = vmatprep.subr.bf16.mxu0 %v7973_v44 }
  0x70   :  { %1405 = vmatprep.subr.bf16.mxu1 %v7970_v43  ;;  %1355 = vmatpush1.bf16.msra.mxu0 %v7975_v45 }
  0x71   :  { %7275 = vmatmul.mubr.msk.f32.gmra.mrb[18].mxu0 %vm264_vm1, %v208_v46  ;;  %7314 = vmatmul.mubr.msk.f32.gmra.mrb[18].mxu1 %vm264_vm1, %v205_v31 }
  0x72   :  { %518 = vmatprep.mubr.f32.mxu0 %v9903_v0  ;;  %805 = vmatprep.mubr.f32.mxu1 %v9903_v0 }
  0x73   :  { %1406 = vmatpush1.bf16.msra.mxu1 %v7972_v47 }
  0x74   :  { %1407 = vmatprep.subr.bf16.mxu1 %v7976_v48 }
  0x75   :  { %7276 = vmatmul.mubr.msk.f32.gmra.mrb[20].mxu0 %vm264_vm1, %v209_v49  ;;  %7315 = vmatmul.mubr.msk.f32.gmra.mrb[20].mxu1 %vm264_vm1, %v206_v36 }
  0x76   :  { %524 = vmatprep.mubr.f32.mxu0 %v9903_v0  ;;  %811 = vmatprep.mubr.f32.mxu1 %v9903_v0 }
  0x77   :  { %1408 = vmatpush1.bf16.msra.mxu1 %v7978_v50 }
  0x79   :  { %7277 = vmatmul.mubr.msk.f32.gmra.mrb[22].mxu0 %vm264_vm1, %v210_v51  ;;  %7316 = vmatmul.mubr.msk.f32.gmra.mrb[22].mxu1 %vm264_vm1, %v207_v41 }
  0x7a   :  { %530 = vmatprep.mubr.f32.mxu0 %v9903_v0  ;;  %817 = vmatprep.mubr.f32.mxu1 %v9903_v0 }
  0x7d   :  { %7278 = vmatmul.mubr.msk.f32.gmra.mrb[24].mxu0 %vm264_vm1, %v211_v52  ;;  %7317 = vmatmul.mubr.msk.f32.gmra.mrb[24].mxu1 %vm264_vm1, %v208_v46 }
  0x7e   :  { %536 = vmatprep.mubr.f32.mxu0 %v9903_v0  ;;  %823 = vmatprep.mubr.f32.mxu1 %v9903_v0 }
  0x81   :  { %7279 = vmatmul.mubr.msk.f32.gmra.mrb[26].mxu0 %vm264_vm1, %v212_v53  ;;  %7318 = vmatmul.mubr.msk.f32.gmra.mrb[26].mxu1 %vm264_vm1, %v209_v49 }
  0x82   :  { %542 = vmatprep.mubr.f32.mxu0 %v9903_v0  ;;  %829 = vmatprep.mubr.f32.mxu1 %v9903_v0 }
  0x85   :  { %7280 = vmatmul.mubr.msk.f32.gmra.mrb[28].mxu0 %vm264_vm1, %v213_v54  ;;  %7319 = vmatmul.mubr.msk.f32.gmra.mrb[28].mxu1 %vm264_vm1, %v210_v51 }
  0x86   :  { %548 = vmatprep.mubr.f32.mxu0 %v9903_v0  ;;  %835 = vmatprep.mubr.f32.mxu1 %v9903_v0 }
  0x89   :  { %7281 = vmatmul.mubr.msk.f32.gmra.mrb[30].mxu0 %vm264_vm1, %v214_v55  ;;  %7320 = vmatmul.mubr.msk.f32.gmra.mrb[30].mxu1 %vm264_vm1, %v211_v52 }
  0x8a   :  { %554 = vmatprep.mubr.f32.mxu0 %v9903_v0  ;;  %841 = vmatprep.mubr.f32.mxu1 %v9903_v0 }
  0x8d   :  { %7282 = vmatmul.mubr.msk.f32.gmra.mrb[32].mxu0 %vm264_vm1, %v215_v56  ;;  %7321 = vmatmul.mubr.msk.f32.gmra.mrb[32].mxu1 %vm264_vm1, %v212_v53 }
  0x8e   :  { %560 = vmatprep.mubr.f32.mxu0 %v9903_v0  ;;  %847 = vmatprep.mubr.f32.mxu1 %v9903_v0 }
  0x91   :  { %7283 = vmatmul.mubr.msk.f32.gmra.mrb[34].mxu0 %vm264_vm1, %v216_v57  ;;  %7322 = vmatmul.mubr.msk.f32.gmra.mrb[34].mxu1 %vm264_vm1, %v213_v54 }
  0x92   :  { %566 = vmatprep.mubr.f32.mxu0 %v9903_v0  ;;  %853 = vmatprep.mubr.f32.mxu1 %v9903_v0 }
  0x95   :  { %7284 = vmatmul.mubr.msk.f32.gmra.mrb[36].mxu0 %vm264_vm1, %v217_v58  ;;  %7323 = vmatmul.mubr.msk.f32.gmra.mrb[36].mxu1 %vm264_vm1, %v214_v55 }
  0x96   :  { %572 = vmatprep.mubr.f32.mxu0 %v9903_v0  ;;  %859 = vmatprep.mubr.f32.mxu1 %v9903_v0 }
  0x99   :  { %7285 = vmatmul.mubr.msk.f32.gmra.mrb[38].mxu0 %vm264_vm1, %v218_v59  ;;  %7324 = vmatmul.mubr.msk.f32.gmra.mrb[38].mxu1 %vm264_vm1, %v215_v56 }
  0x9a   :  { %578 = vmatprep.mubr.f32.mxu0 %v9903_v0  ;;  %865 = vmatprep.mubr.f32.mxu1 %v9903_v0 }
  0x9d   :  { %7286 = vmatmul.mubr.msk.f32.gmra.mrb[40].mxu0 %vm264_vm1, %v219_v60  ;;  %7325 = vmatmul.mubr.msk.f32.gmra.mrb[40].mxu1 %vm264_vm1, %v216_v57 }
  0x9e   :  { %584 = vmatprep.mubr.f32.mxu0 %v9903_v0  ;;  %871 = vmatprep.mubr.f32.mxu1 %v9903_v0 }
  0xa1   :  { %7287 = vmatmul.mubr.msk.f32.gmra.mrb[42].mxu0 %vm264_vm1, %v220_v61  ;;  %7326 = vmatmul.mubr.msk.f32.gmra.mrb[42].mxu1 %vm264_vm1, %v217_v58 }
  0xa2   :  { %590 = vmatprep.mubr.f32.mxu0 %v9903_v0  ;;  %877 = vmatprep.mubr.f32.mxu1 %v9903_v0 }
  0xa5   :  { %7288 = vmatmul.mubr.msk.f32.gmra.mrb[44].mxu0 %vm264_vm1, %v221_v62  ;;  %7327 = vmatmul.mubr.msk.f32.gmra.mrb[44].mxu1 %vm264_vm1, %v218_v59 }
  0xa6   :  { %596 = vmatprep.mubr.f32.mxu0 %v9903_v0  ;;  %883 = vmatprep.mubr.f32.mxu1 %v9903_v0 }
  0xa9   :  { %7289 = vmatmul.mubr.msk.f32.gmra.mrb[46].mxu0 %vm264_vm1, %v222_v63  ;;  %7328 = vmatmul.mubr.msk.f32.gmra.mrb[46].mxu1 %vm264_vm1, %v219_v60 }
  0xaa   :  { %602 = vmatprep.mubr.f32.mxu0 %v9903_v0  ;;  %889 = vmatprep.mubr.f32.mxu1 %v9903_v0 }
  0xad   :  { %7290 = vmatmul.mubr.msk.f32.gmra.mrb[48].mxu0 %vm264_vm1, %v223_v1  ;;  %7329 = vmatmul.mubr.msk.f32.gmra.mrb[48].mxu1 %vm264_vm1, %v220_v61 }
  0xae   :  { %608 = vmatprep.mubr.f32.mxu0 %v9903_v0  ;;  %895 = vmatprep.mubr.f32.mxu1 %v9903_v0 }
  0xb1   :  { %7291 = vmatmul.mubr.msk.f32.gmra.mrb[50].mxu0 %vm264_vm1, %v224_v2  ;;  %7330 = vmatmul.mubr.msk.f32.gmra.mrb[50].mxu1 %vm264_vm1, %v221_v62 }
  0xb2   :  { %614 = vmatprep.mubr.f32.mxu0 %v9903_v0  ;;  %901 = vmatprep.mubr.f32.mxu1 %v9903_v0 }
  0xb5   :  { %7292 = vmatmul.mubr.msk.f32.gmra.mrb[52].mxu0 %vm264_vm1, %v225_v3  ;;  %7331 = vmatmul.mubr.msk.f32.gmra.mrb[52].mxu1 %vm264_vm1, %v222_v63 }
  0xb6   :  { %620 = vmatprep.mubr.f32.mxu0 %v9903_v0  ;;  %907 = vmatprep.mubr.f32.mxu1 %v9903_v0 }
  0xb9   :  { %7293 = vmatmul.mubr.msk.f32.gmra.mrb[54].mxu0 %vm264_vm1, %v226_v4  ;;  %7332 = vmatmul.mubr.msk.f32.gmra.mrb[54].mxu1 %vm264_vm1, %v223_v1 }
  0xba   :  { %626 = vmatprep.mubr.f32.mxu0 %v9903_v0  ;;  %913 = vmatprep.mubr.f32.mxu1 %v9903_v0 }
  0xbd   :  { %7294 = vmatmul.mubr.msk.f32.gmra.mrb[56].mxu0 %vm264_vm1, %v227_v6  ;;  %7333 = vmatmul.mubr.msk.f32.gmra.mrb[56].mxu1 %vm264_vm1, %v224_v2 }
  0xbe   :  { %632 = vmatprep.mubr.f32.mxu0 %v9903_v0  ;;  %919 = vmatprep.mubr.f32.mxu1 %v9903_v0 }
  0xc1   :  { %7295 = vmatmul.mubr.msk.f32.gmra.mrb[58].mxu0 %vm264_vm1, %v228_v7  ;;  %7334 = vmatmul.mubr.msk.f32.gmra.mrb[58].mxu1 %vm264_vm1, %v225_v3  ;;  %v7979_v3 = vld [vmem:[%s14416_s4 + $0x4] ss:$16 sps:$4 sm:$0xff]  }
  0xc2   :  { %638 = vmatprep.mubr.f32.mxu0 %v9903_v0  ;;  %925 = vmatprep.mubr.f32.mxu1 %v9903_v0 }
  0xc3   :  { %1741 = vmatprep.subr.bf16.mxu0 %v7979_v3  ;;  %v7990_v3 = vld [vmem:[%s14416_s4 + $0x28] ss:$16 sps:$4 sm:$0xff]  }
  0xc5   :  { %7296 = vmatmul.mubr.msk.f32.gmra.mrb[60].mxu0 %vm264_vm1, %v229_v8  ;;  %7335 = vmatmul.mubr.msk.f32.gmra.mrb[60].mxu1 %vm264_vm1, %v226_v4  ;;  %v7981_v4 = vld [vmem:[%s14416_s4 + $0xc] ss:$16 sps:$4 sm:$0xff]  }
  0xc6   :  { %644 = vmatprep.mubr.f32.mxu0 %v9903_v0  ;;  %931 = vmatprep.mubr.f32.mxu1 %v9903_v0 }
  0xc7   :  { %1794 = vmatprep.subr.bf16.mxu1 %v7981_v4 }
  0xc9   :  { %7297 = vmatmul.mubr.msk.f32.gmra.mrb[62].mxu0 %vm264_vm1, %v230_v9  ;;  %7336 = vmatmul.mubr.msk.f32.gmra.mrb[62].mxu1 %vm264_vm1, %v227_v6  ;;  %v7983_v6 = vld [vmem:[%s14416_s4] ss:$16 sps:$4 sm:$0xff]  }
  0xca   :  { %650 = vmatprep.mubr.f32.mxu0 %v9903_v0  ;;  %937 = vmatprep.mubr.f32.mxu1 %v9903_v0 }
  0xcd   :  { %7298 = vmatmul.mubr.msk.f32.gmra.mrb[64].mxu0 %vm264_vm1, %v231_v11  ;;  %7337 = vmatmul.mubr.msk.f32.gmra.mrb[64].mxu1 %vm264_vm1, %v228_v7  ;;  %v7984_v7 = vld [vmem:[%s14416_s4 + $0x8] ss:$16 sps:$4 sm:$0xff]  }
  0xce   :  { %656 = vmatprep.mubr.f32.mxu0 %v9903_v0  ;;  %943 = vmatprep.mubr.f32.mxu1 %v9903_v0 }
  0xd1   :  { %7299 = vmatmul.mubr.msk.f32.gmra.mrb[66].mxu0 %vm264_vm1, %v232_v12  ;;  %7338 = vmatmul.mubr.msk.f32.gmra.mrb[66].mxu1 %vm264_vm1, %v229_v8 }
  0xd2   :  { %662 = vmatprep.mubr.f32.mxu0 %v9903_v0  ;;  %949 = vmatprep.mubr.f32.mxu1 %v9903_v0 }
  0xd5   :  { %7300 = vmatmul.mubr.msk.f32.gmra.mrb[68].mxu0 %vm264_vm1, %v233_v13  ;;  %7339 = vmatmul.mubr.msk.f32.gmra.mrb[68].mxu1 %vm264_vm1, %v230_v9 }
  0xd6   :  { %668 = vmatprep.mubr.f32.mxu0 %v9903_v0  ;;  %955 = vmatprep.mubr.f32.mxu1 %v9903_v0 }
  0xd9   :  { %7301 = vmatmul.mubr.msk.f32.gmra.mrb[70].mxu0 %vm264_vm1, %v234_v15  ;;  %7340 = vmatmul.mubr.msk.f32.gmra.mrb[70].mxu1 %vm264_vm1, %v231_v11 }
  0xda   :  { %674 = vmatprep.mubr.f32.mxu0 %v9903_v0  ;;  %961 = vmatprep.mubr.f32.mxu1 %v9903_v0 }
  0xdd   :  { %7302 = vmatmul.mubr.msk.f32.gmra.mrb[72].mxu0 %vm264_vm1, %v235_v16  ;;  %7341 = vmatmul.mubr.msk.f32.gmra.mrb[72].mxu1 %vm264_vm1, %v232_v12 }
  0xde   :  { %967 = vmatprep.mubr.f32.mxu1 %v9903_v0  ;;  %1372 = vmatprep.mubr.bf16.mxu0 %v14422_v17 }
  0xe1   :  { %7342 = vmatmul.mubr.msk.f32.gmra.mrb[74].mxu1 %vm264_vm1, %v233_v13  ;;  %1373 = vmatmul.mubr.bf16.vlgmr.msra.gmra.mrb[76].mxu0 %v14422_v17  ;;  %v7985_v13 = vld [vmem:[%s14416_s4 + $0x24] ss:$16 sps:$4 sm:$0xff]  }
  0xe2   :  { %973 = vmatprep.mubr.f32.mxu1 %v9903_v0  ;;  %1382 = vmatprep.mubr.bf16.mxu0 %v14422_v17 }
  0xe3   :  { %1742 = vmatpush1.bf16.msra.mxu0 %v7983_v6 }
  0xe4   :  { %1743 = vmatprep.subr.bf16.mxu0 %v7985_v13  ;;  %v7995_v13 = vld [vmem:[%s14416_s4 + $0x40] ss:$16 sps:$4 sm:$0xff]  }
  0xe5   :  { %7343 = vmatmul.mubr.msk.f32.gmra.mrb[76].mxu1 %vm264_vm1, %v234_v15  ;;  %v7987_v15 = vld [vmem:[%s14416_s4 + $0x2c] ss:$16 sps:$4 sm:$0xff]  }
  0xe6   :  { %979 = vmatprep.mubr.f32.mxu1 %v9903_v0 }
  0xe9   :  { %7344 = vmatmul.mubr.msk.f32.gmra.mrb[78].mxu1 %vm264_vm1, %v235_v16  ;;  %1383 = vmatmul.mubr.bf16.gmra.mrb[80].mxu0 %v14422_v17  ;;  %v7989_v16 = vld [vmem:[%s14416_s4 + $0x20] ss:$16 sps:$4 sm:$0xff]  }
  0xea   :  { %985 = vmatprep.mubr.f32.mxu1 %v9903_v0  ;;  %1773 = vmatprep.mubr.bf16.mxu0 %v14422_v17 }
  0xeb   :  { %1744 = vmatpush1.bf16.msra.mxu0 %v7989_v16 }
  0xed   :  { %7345 = vmatmul.mubr.msk.f32.gmra.mrb[80].mxu1 %vm264_vm1, %v10011_v5 }
  0xee   :  { %991 = vmatprep.mubr.f32.mxu1 %v9903_v0 }
  0xf1   :  { %7346 = vmatmul.mubr.msk.f32.gmra.mrb[82].mxu1 %vm264_vm1, %v10034_v10 }
  0xf2   :  { %997 = vmatprep.mubr.f32.mxu1 %v9903_v0 }
  0xf5   :  { %7347 = vmatmul.mubr.msk.f32.gmra.mrb[84].mxu1 %vm264_vm1, %v10055_v14 }
  0xf6   :  { %1425 = vmatprep.mubr.bf16.mxu1 %v14422_v17 }
  0xf9   :  { %1426 = vmatmul.mubr.bf16.vlgmr.msra.gmra.mrb[88].mxu1 %v14422_v17 }
  0xfa   :  { %1435 = vmatprep.mubr.bf16.mxu1 %v14422_v17  ;;  %1795 = vmatpush1.bf16.msra.mxu1 %v7984_v7 }
  0xfb   :  { %1796 = vmatprep.subr.bf16.mxu1 %v7987_v15  ;;  %v7996_v15 = vld [vmem:[%s14416_s4 + $0x48] ss:$16 sps:$4 sm:$0xff]  }
  0xfe   :  { %1797 = vmatpush1.bf16.msra.mxu1 %v7990_v3 }
 0x101   :  { %1436 = vmatmul.mubr.bf16.gmra.mrb[92].mxu1 %v14422_v17 }
 0x102   :  { %1826 = vmatprep.mubr.bf16.mxu1 %v14422_v17 }
 0x120   :  { %v10407_v5 = vpop.f32.mrb[0].mxu1  ;;  %v10409_v18 = vpop.f32.mrb[0].mxu0 }
 0x121   :  { %14746 = vst [vmem:[#allocation13_spill] sm:$0xff] %v10407_v5  ;;  %v10411_v10 = vpop.f32.mrb[1].mxu1  ;;  %v10413_v0 = vpop.f32.mrb[1].mxu0  ;;  %v7999_v5 = vld [vmem:[%s14416_s4 + $0x6c] ss:$16 sps:$4 sm:$0xff]  }
 0x122   :  { %14747 = vst [vmem:[#allocation14_spill] sm:$0xff] %v10411_v10  ;;  %v7997_v10 = vld [vmem:[%s14416_s4 + $0x64] ss:$16 sps:$4 sm:$0xff]  }
 0x124   :  { %v10415_v19 = vpop.f32.mrb[2].mxu1  ;;  %v10417_v14 = vpop.f32.mrb[2].mxu0 }
 0x125   :  { %14748 = vst [vmem:[#allocation15_spill] sm:$0xff] %v10415_v19  ;;  %v10419_v20 = vpop.f32.mrb[3].mxu1  ;;  %v10421_v21 = vpop.f32.mrb[3].mxu0 }
 0x126   :  { %14749 = vst [vmem:[#allocation16_spill] sm:$0xff] %v10419_v20 }
 0x128   :  { %v10423_v22 = vpop.f32.mrb[4].mxu1  ;;  %v10425_v23 = vpop.f32.mrb[4].mxu0 }
 0x129   :  { %14750 = vst [vmem:[#allocation17_spill] sm:$0xff] %v10423_v22  ;;  %v10427_v24 = vpop.f32.mrb[5].mxu1  ;;  %v10429_v25 = vpop.f32.mrb[5].mxu0  ;;  %v7993_v22 = vld [vmem:[%s14416_s4 + $0x4c] ss:$16 sps:$4 sm:$0xff]  }
 0x12a   :  { %14751 = vst [vmem:[#allocation18_spill] sm:$0xff] %v10427_v24  ;;  %v7991_v24 = vld [vmem:[%s14416_s4 + $0x44] ss:$16 sps:$4 sm:$0xff]   ;;  %1798 = vmatprep.subr.bf16.mxu1 %v7993_v22  ;;  %v8001_v22 = vld [vmem:[%s14416_s4 + $0x60] ss:$16 sps:$4 sm:$0xff]  }
 0x12b   :  { %1745 = vmatprep.subr.bf16.mxu0 %v7991_v24  ;;  %1799 = vmatpush1.bf16.msra.mxu1 %v7996_v15  ;;  %v8002_v24 = vld [vmem:[%s14416_s4 + $0x68] ss:$16 sps:$4 sm:$0xff]  }
 0x12c   :  { %v10431_v26 = vpop.f32.mrb[6].mxu1  ;;  %v10433_v27 = vpop.f32.mrb[6].mxu0  ;;  %1746 = vmatpush1.bf16.msra.mxu0 %v7995_v13  ;;  %1800 = vmatprep.subr.bf16.mxu1 %v7999_v5  ;;  %v8007_v5 = vld [vmem:[%s14416_s4 + $0x80] ss:$16 sps:$4 sm:$0xff]  }
 0x12d   :  { %v10435_v28 = vpop.f32.mrb[7].mxu1  ;;  %v10437_v29 = vpop.f32.mrb[7].mxu0  ;;  %1747 = vmatprep.subr.bf16.mxu0 %v7997_v10  ;;  %v8008_v10 = vld [vmem:[%s14416_s4 + $0x88] ss:$16 sps:$4 sm:$0xff]  }
 0x12f   :  { %1801 = vmatpush1.bf16.msra.mxu1 %v8002_v24 }
 0x130   :  { %v10439_v30 = vpop.f32.mrb[8].mxu1  ;;  %v10441_v31 = vpop.f32.mrb[8].mxu0  ;;  %1748 = vmatpush1.bf16.msra.mxu0 %v8001_v22 }
 0x131   :  { %v10443_v32 = vpop.f32.mrb[9].mxu1  ;;  %v10445_v33 = vpop.f32.mrb[9].mxu0 }
 0x134   :  { %v10447_v34 = vpop.f32.mrb[10].mxu1  ;;  %v10449_v35 = vpop.f32.mrb[10].mxu0 }
 0x135   :  { %v10451_v36 = vpop.f32.mrb[11].mxu1  ;;  %v10453_v37 = vpop.f32.mrb[11].mxu0 }
 0x138   :  { %v10455_v38 = vpop.f32.mrb[12].mxu1  ;;  %v10457_v39 = vpop.f32.mrb[12].mxu0 }
 0x139   :  { %v10459_v40 = vpop.f32.mrb[13].mxu1  ;;  %v10461_v41 = vpop.f32.mrb[13].mxu0 }
 0x13c   :  { %v10463_v42 = vpop.f32.mrb[14].mxu1  ;;  %v10465_v43 = vpop.f32.mrb[14].mxu0 }
 0x13d   :  { %v10467_v44 = vpop.f32.mrb[15].mxu1  ;;  %v10469_v45 = vpop.f32.mrb[15].mxu0 }
 0x140   :  { %v10471_v46 = vpop.f32.mrb[16].mxu1  ;;  %v10473_v47 = vpop.f32.mrb[16].mxu0 }
 0x141   :  { %14752 = vst [vmem:[#allocation19_spill] sm:$0xff] %v10473_v47  ;;  %v10475_v48 = vpop.f32.mrb[17].mxu1  ;;  %v10477_v49 = vpop.f32.mrb[17].mxu0 }
 0x142   :  { %14753 = vst [vmem:[#allocation20_spill] sm:$0xff] %v10477_v49  ;;  %v11012_v49 = vld [vmem:[%s14414_s2 + $0xc] ss:$16 sps:$4 sm:$0xff]  }
 0x143   :  { %14899 = vst [vmem:[#allocation165_spill] sm:$0xff] %v11012_v49 }
 0x144   :  { %v10479_v50 = vpop.f32.mrb[18].mxu1  ;;  %v10481_v51 = vpop.f32.mrb[18].mxu0 }
 0x145   :  { %14754 = vst [vmem:[#allocation21_spill] sm:$0xff] %v10481_v51  ;;  %v10483_v52 = vpop.f32.mrb[19].mxu1  ;;  %v10485_v53 = vpop.f32.mrb[19].mxu0  ;;  %v10997_v51 = vld [vmem:[#allocation7 + $0xe8] ss:$16 sps:$4 sm:$0xff]  }
 0x146   :  { %14755 = vst [vmem:[#allocation22_spill] sm:$0xff] %v10485_v53  ;;  %v10991_v53 = vld [vmem:[#allocation7 + $0xec] ss:$16 sps:$4 sm:$0xff]   ;;  %14897 = vst [vmem:[#allocation163_spill] sm:$0xff] %v10997_v51 }
 0x147   :  { %14895 = vst [vmem:[#allocation161_spill] sm:$0xff] %v10991_v53 }
 0x148   :  { %v10487_v54 = vpop.f32.mrb[20].mxu1  ;;  %v10489_v55 = vpop.f32.mrb[20].mxu0 }
 0x149   :  { %14756 = vst [vmem:[#allocation23_spill] sm:$0xff] %v10489_v55  ;;  %v10491_v56 = vpop.f32.mrb[21].mxu1  ;;  %v10493_v57 = vpop.f32.mrb[21].mxu0  ;;  %v10985_v55 = vld [vmem:[#allocation7 + $0xc8] ss:$16 sps:$4 sm:$0xff]  }
 0x14a   :  { %14757 = vst [vmem:[#allocation24_spill] sm:$0xff] %v10493_v57  ;;  %v10981_v57 = vld [vmem:[#allocation7 + $0xcc] ss:$16 sps:$4 sm:$0xff]   ;;  %14893 = vst [vmem:[#allocation159_spill] sm:$0xff] %v10985_v55 }
 0x14b   :  { %14891 = vst [vmem:[#allocation157_spill] sm:$0xff] %v10981_v57 }
 0x14c   :  { %v10495_v58 = vpop.f32.mrb[22].mxu1  ;;  %v10497_v59 = vpop.f32.mrb[22].mxu0 }
 0x14d   :  { %14758 = vst [vmem:[#allocation25_spill] sm:$0xff] %v10495_v58  ;;  %14759 = vst [vmem:[#allocation26_spill] sm:$0xff] %v10497_v59  ;;  %v10499_v60 = vpop.f32.mrb[23].mxu1  ;;  %v10501_v61 = vpop.f32.mrb[23].mxu0  ;;  %v10979_v59 = vld [vmem:[#allocation7 + $0xc4] ss:$16 sps:$4 sm:$0xff]  }
 0x14e   :  { %14760 = vst [vmem:[#allocation27_spill] sm:$0xff] %v10499_v60  ;;  %14761 = vst [vmem:[#allocation28_spill] sm:$0xff] %v10501_v61  ;;  %v11006_v60 = vld [vmem:[%s14414_s2 + $0x4] ss:$16 sps:$4 sm:$0xff]  }
 0x14f   :  { %14890 = vst [vmem:[#allocation156_spill] sm:$0xff] %v10979_v59  ;;  %14898 = vst [vmem:[#allocation164_spill] sm:$0xff] %v11006_v60  ;;  %v181_v58 = vld [vmem:[#allocation8] sm:$0xf] }
 0x150   :  { %v10503_v62 = vpop.f32.mrb[24].mxu1  ;;  %v10505_v63 = vpop.f32.mrb[24].mxu0 }
 0x151   :  { %14762 = vst [vmem:[#allocation29_spill] sm:$0xff] %v10503_v62  ;;  %14763 = vst [vmem:[#allocation30_spill] sm:$0xff] %v10505_v63  ;;  %v10507_v1 = vpop.f32.mrb[25].mxu1  ;;  %v10509_v2 = vpop.f32.mrb[25].mxu0  ;;  %v10995_v62 = vld [vmem:[#allocation7 + $0xe0] ss:$16 sps:$4 sm:$0xff]  }
 0x152   :  { %14764 = vst [vmem:[#allocation31_spill] sm:$0xff] %v10507_v1  ;;  %14765 = vst [vmem:[#allocation32_spill] sm:$0xff] %v10509_v2  ;;  %v10987_v1 = vld [vmem:[#allocation7 + $0xe4] ss:$16 sps:$4 sm:$0xff]  }
 0x153   :  { %14894 = vst [vmem:[#allocation160_spill] sm:$0xff] %v10987_v1  ;;  %14896 = vst [vmem:[#allocation162_spill] sm:$0xff] %v10995_v62 }
 0x154   :  { %v10523_v8 = vpop.f32.mrb[26].mxu1  ;;  %v10525_v9 = vpop.f32.mrb[26].mxu0 }
 0x155   :  { %14766 = vst [vmem:[#allocation33_spill] sm:$0xff] %v10523_v8  ;;  %14767 = vst [vmem:[#allocation34_spill] sm:$0xff] %v10525_v9  ;;  %v10527_v11 = vpop.f32.mrb[27].mxu1  ;;  %v10529_v12 = vpop.f32.mrb[27].mxu0  ;;  %v10983_v8 = vld [vmem:[#allocation7 + $0xc0] ss:$16 sps:$4 sm:$0xff]  }
 0x156   :  { %14768 = vst [vmem:[#allocation35_spill] sm:$0xff] %v10527_v11  ;;  %14769 = vst [vmem:[#allocation36_spill] sm:$0xff] %v10529_v12  ;;  %v8011_v12 = vld [vmem:[%s14416_s4 + $0xac] ss:$16 sps:$4 sm:$0xff]  }
 0x157   :  { %14892 = vst [vmem:[#allocation158_spill] sm:$0xff] %v10983_v8 }
 0x158   :  { %v10543_v4 = vpop.f32.mrb[28].mxu1  ;;  %v10545_v6 = vpop.f32.mrb[28].mxu0 }
 0x159   :  { %14770 = vst [vmem:[#allocation37_spill] sm:$0xff] %v10543_v4  ;;  %14771 = vst [vmem:[#allocation38_spill] sm:$0xff] %v10545_v6  ;;  %v10547_v7 = vpop.f32.mrb[29].mxu1  ;;  %v10549_v17 = vpop.f32.mrb[29].mxu0  ;;  %v8005_v6 = vld [vmem:[%s14416_s4 + $0x8c] ss:$16 sps:$4 sm:$0xff]  }
 0x15a   :  { %14772 = vst [vmem:[#allocation39_spill] sm:$0xff] %v10547_v7  ;;  %14773 = vst [vmem:[#allocation40_spill] sm:$0xff] %v10549_v17  ;;  %v8003_v17 = vld [vmem:[%s14416_s4 + $0x84] ss:$16 sps:$4 sm:$0xff]   ;;  %1802 = vmatprep.subr.bf16.mxu1 %v8005_v6  ;;  %v8014_v6 = vld [vmem:[%s14416_s4 + $0xa8] ss:$16 sps:$4 sm:$0xff]  }
 0x15b   :  { %1749 = vmatprep.subr.bf16.mxu0 %v8003_v17  ;;  %1803 = vmatpush1.bf16.msra.mxu1 %v8008_v10  ;;  %v8013_v17 = vld [vmem:[%s14416_s4 + $0xa0] ss:$16 sps:$4 sm:$0xff]  }
 0x15c   :  { %v10563_v16 = vpop.f32.mrb[30].mxu1  ;;  %v10565_v3 = vpop.f32.mrb[30].mxu0  ;;  %1750 = vmatpush1.bf16.msra.mxu0 %v8007_v5  ;;  %1804 = vmatprep.subr.bf16.mxu1 %v8011_v12  ;;  %v8020_v12 = vld [vmem:[%s14416_s4 + $0xc8] ss:$16 sps:$4 sm:$0xff]  }
 0x15d   :  { %14774 = vst [vmem:[#allocation41_spill] sm:$0xff] %v10563_v16  ;;  %14775 = vst [vmem:[#allocation42_spill] sm:$0xff] %v10565_v3  ;;  %v10567_v20 = vpop.f32.mrb[31].mxu1  ;;  %v10569_v19 = vpop.f32.mrb[31].mxu0 }
 0x15e   :  { %14776 = vst [vmem:[#allocation43_spill] sm:$0xff] %v10567_v20  ;;  %14777 = vst [vmem:[#allocation44_spill] sm:$0xff] %v10569_v19 }
 0x15f   :  { %1805 = vmatpush1.bf16.msra.mxu1 %v8014_v6  ;;  %v8023_v6 = vld [vmem:[%s14416_s4 + $0xec] ss:$16 sps:$4 sm:$0xff]  }
 0x160   :  { %v10583_v13 = vpop.f32.mrb[32].mxu1  ;;  %v10585_v15 = vpop.f32.mrb[32].mxu0 }
 0x161   :  { %14778 = vst [vmem:[#allocation45_spill] sm:$0xff] %v10583_v13  ;;  %14779 = vst [vmem:[#allocation46_spill] sm:$0xff] %v10585_v15  ;;  %v10587_v19 = vpop.f32.mrb[33].mxu1  ;;  %v10589_v3 = vpop.f32.mrb[33].mxu0 }
 0x162   :  { %14780 = vst [vmem:[#allocation47_spill] sm:$0xff] %v10587_v19  ;;  %14781 = vst [vmem:[#allocation48_spill] sm:$0xff] %v10589_v3  ;;  %v8009_v19 = vld [vmem:[%s14416_s4 + $0xa4] ss:$16 sps:$4 sm:$0xff]  }
 0x163   :  { %1751 = vmatprep.subr.bf16.mxu0 %v8009_v19  ;;  %v8019_v19 = vld [vmem:[%s14416_s4 + $0xc0] ss:$16 sps:$4 sm:$0xff]  }
 0x164   :  { %v10603_v22 = vpop.f32.mrb[34].mxu1  ;;  %v10605_v24 = vpop.f32.mrb[34].mxu0  ;;  %1752 = vmatpush1.bf16.msra.mxu0 %v8013_v17  ;;  %v8021_v17 = vld [vmem:[%s14416_s4 + $0xe4] ss:$16 sps:$4 sm:$0xff]  }
 0x165   :  { %14782 = vst [vmem:[#allocation49_spill] sm:$0xff] %v10603_v22  ;;  %14783 = vst [vmem:[#allocation50_spill] sm:$0xff] %v10605_v24  ;;  %v10607_v3 = vpop.f32.mrb[35].mxu1  ;;  %v10609_v15 = vpop.f32.mrb[35].mxu0  ;;  %v8017_v22 = vld [vmem:[%s14416_s4 + $0xcc] ss:$16 sps:$4 sm:$0xff]  }
 0x166   :  { %14784 = vst [vmem:[#allocation51_spill] sm:$0xff] %v10607_v3  ;;  %14785 = vst [vmem:[#allocation52_spill] sm:$0xff] %v10609_v15  ;;  %v8015_v3 = vld [vmem:[%s14416_s4 + $0xc4] ss:$16 sps:$4 sm:$0xff]   ;;  %1806 = vmatprep.subr.bf16.mxu1 %v8017_v22 }
 0x167   :  { %1753 = vmatprep.subr.bf16.mxu0 %v8015_v3  ;;  %1807 = vmatpush1.bf16.msra.mxu1 %v8020_v12 }
 0x168   :  { %v10623_v5 = vpop.f32.mrb[36].mxu1  ;;  %v10625_v10 = vpop.f32.mrb[36].mxu0  ;;  %1754 = vmatpush1.bf16.msra.mxu0 %v8019_v19  ;;  %1808 = vmatprep.subr.bf16.mxu1 %v8023_v6 }
 0x169   :  { %14786 = vst [vmem:[#allocation53_spill] sm:$0xff] %v10623_v5  ;;  %14787 = vst [vmem:[#allocation54_spill] sm:$0xff] %v10625_v10  ;;  %v10627_v15 = vpop.f32.mrb[37].mxu1  ;;  %v10629_v24 = vpop.f32.mrb[37].mxu0  ;;  %v8026_v5 = vld [vmem:[%s14416_s4 + $0xe8] ss:$16 sps:$4 sm:$0xff]   ;;  %1755 = vmatprep.subr.bf16.mxu0 %v8021_v17 }
 0x16a   :  { %14788 = vst [vmem:[#allocation55_spill] sm:$0xff] %v10627_v15  ;;  %14789 = vst [vmem:[#allocation56_spill] sm:$0xff] %v10629_v24  ;;  %v8025_v15 = vld [vmem:[%s14416_s4 + $0xe0] ss:$16 sps:$4 sm:$0xff]  }
 0x16b   :  { %1809 = vmatpush1.bf16.msra.mxu1 %v8026_v5 }
 0x16c   :  { %v10649_v24 = vpop.f32.mrb[38].mxu1  ;;  %v10651_v10 = vpop.f32.mrb[38].mxu0  ;;  %1756 = vmatpush1.bf16.msra.mxu0 %v8025_v15 }
 0x16d   :  { %14790 = vst [vmem:[#allocation57_spill] sm:$0xff] %v10649_v24  ;;  %14791 = vst [vmem:[#allocation58_spill] sm:$0xff] %v10651_v10  ;;  %v10659_v3 = vpop.f32.mrb[39].mxu1  ;;  %v10661_v22 = vpop.f32.mrb[39].mxu0 }
 0x16e   :  { %14792 = vst [vmem:[#allocation59_spill] sm:$0xff] %v10659_v3  ;;  %14793 = vst [vmem:[#allocation60_spill] sm:$0xff] %v10661_v22 }
 0x170   :  { %v10663_v13 = vpop.f32.mrb[40].mxu1  ;;  %v10665_v24 = vpop.f32.mrb[40].mxu0 }
 0x171   :  { %14794 = vst [vmem:[#allocation61_spill] sm:$0xff] %v10663_v13  ;;  %14795 = vst [vmem:[#allocation62_spill] sm:$0xff] %v10665_v24  ;;  %v10667_v19 = vpop.f32.mrb[41].mxu1  ;;  %v10669_v12 = vpop.f32.mrb[41].mxu0 }
 0x172   :  { %14796 = vst [vmem:[#allocation63_spill] sm:$0xff] %v10667_v19  ;;  %14797 = vst [vmem:[#allocation64_spill] sm:$0xff] %v10669_v12 }
 0x174   :  { %v10671_v10 = vpop.f32.mrb[42].mxu1  ;;  %v10673_v9 = vpop.f32.mrb[42].mxu0 }
 0x175   :  { %14798 = vst [vmem:[#allocation65_spill] sm:$0xff] %v10671_v10  ;;  %14799 = vst [vmem:[#allocation66_spill] sm:$0xff] %v10673_v9  ;;  %v10675_v20 = vpop.f32.mrb[43].mxu1  ;;  %v10677_v3 = vpop.f32.mrb[43].mxu0 }
 0x176   :  { %14800 = vst [vmem:[#allocation67_spill] sm:$0xff] %v10675_v20  ;;  %14801 = vst [vmem:[#allocation68_spill] sm:$0xff] %v10677_v3 }
 0x178   :  { %v10679_v17 = vpop.f32.mrb[44].mxu1  ;;  %v10681_v6 = vpop.f32.mrb[44].mxu0 }
 0x179   :  { %14802 = vst [vmem:[#allocation69_spill] sm:$0xff] %v10679_v17  ;;  %14803 = vst [vmem:[#allocation70_spill] sm:$0xff] %v10681_v6  ;;  %v10683_v22 = vpop.f32.mrb[45].mxu1  ;;  %v10685_v15 = vpop.f32.mrb[45].mxu0 }
 0x17a   :  { %14804 = vst [vmem:[#allocation71_spill] sm:$0xff] %v10683_v22  ;;  %14805 = vst [vmem:[#allocation72_spill] sm:$0xff] %v10685_v15 }
 0x17c   :  { %v10687_v5 = vpop.f32.mrb[46].mxu1  ;;  %v10689_v24 = vpop.f32.mrb[46].mxu0 }
 0x17d   :  { %14806 = vst [vmem:[#allocation73_spill] sm:$0xff] %v10687_v5  ;;  %14807 = vst [vmem:[#allocation74_spill] sm:$0xff] %v10689_v24  ;;  %v10691_v12 = vpop.f32.mrb[47].mxu1  ;;  %v10693_v10 = vpop.f32.mrb[47].mxu0 }
 0x17e   :  { %14808 = vst [vmem:[#allocation75_spill] sm:$0xff] %v10691_v12  ;;  %14809 = vst [vmem:[#allocation76_spill] sm:$0xff] %v10693_v10 }
 0x180   :  { %v10695_v9 = vpop.f32.mrb[48].mxu1  ;;  %v10697_v20 = vpop.f32.mrb[48].mxu0 }
 0x181   :  { %14810 = vst [vmem:[#allocation77_spill] sm:$0xff] %v10695_v9  ;;  %14811 = vst [vmem:[#allocation78_spill] sm:$0xff] %v10697_v20  ;;  %v10699_v3 = vpop.f32.mrb[49].mxu1  ;;  %v10701_v17 = vpop.f32.mrb[49].mxu0 }
 0x182   :  { %14812 = vst [vmem:[#allocation79_spill] sm:$0xff] %v10699_v3  ;;  %14813 = vst [vmem:[#allocation80_spill] sm:$0xff] %v10701_v17 }
 0x184   :  { %v10703_v6 = vpop.f32.mrb[50].mxu1  ;;  %v10705_v22 = vpop.f32.mrb[50].mxu0 }
 0x185   :  { %14814 = vst [vmem:[#allocation81_spill] sm:$0xff] %v10703_v6  ;;  %14815 = vst [vmem:[#allocation82_spill] sm:$0xff] %v10705_v22  ;;  %v10707_v15 = vpop.f32.mrb[51].mxu1  ;;  %v10709_v5 = vpop.f32.mrb[51].mxu0 }
 0x186   :  { %14816 = vst [vmem:[#allocation83_spill] sm:$0xff] %v10707_v15  ;;  %14817 = vst [vmem:[#allocation84_spill] sm:$0xff] %v10709_v5 }
 0x188   :  { %v10711_v24 = vpop.f32.mrb[52].mxu1  ;;  %v10713_v12 = vpop.f32.mrb[52].mxu0 }
 0x189   :  { %14818 = vst [vmem:[#allocation85_spill] sm:$0xff] %v10711_v24  ;;  %14819 = vst [vmem:[#allocation86_spill] sm:$0xff] %v10713_v12  ;;  %v10715_v10 = vpop.f32.mrb[53].mxu1  ;;  %v10717_v9 = vpop.f32.mrb[53].mxu0 }
 0x18a   :  { %14820 = vst [vmem:[#allocation87_spill] sm:$0xff] %v10715_v10  ;;  %14821 = vst [vmem:[#allocation88_spill] sm:$0xff] %v10717_v9 }
 0x18c   :  { %v10719_v20 = vpop.f32.mrb[54].mxu1  ;;  %v10721_v3 = vpop.f32.mrb[54].mxu0 }
 0x18d   :  { %14822 = vst [vmem:[#allocation89_spill] sm:$0xff] %v10719_v20  ;;  %14823 = vst [vmem:[#allocation90_spill] sm:$0xff] %v10721_v3  ;;  %v10723_v17 = vpop.f32.mrb[55].mxu1  ;;  %v10725_v6 = vpop.f32.mrb[55].mxu0 }
 0x18e   :  { %14824 = vst [vmem:[#allocation91_spill] sm:$0xff] %v10723_v17  ;;  %14825 = vst [vmem:[#allocation92_spill] sm:$0xff] %v10725_v6 }
 0x190   :  { %v10727_v22 = vpop.f32.mrb[56].mxu1  ;;  %v10729_v15 = vpop.f32.mrb[56].mxu0 }
 0x191   :  { %14826 = vst [vmem:[#allocation93_spill] sm:$0xff] %v10727_v22  ;;  %14827 = vst [vmem:[#allocation94_spill] sm:$0xff] %v10729_v15  ;;  %v10731_v5 = vpop.f32.mrb[57].mxu1  ;;  %v10733_v24 = vpop.f32.mrb[57].mxu0 }
 0x192   :  { %14828 = vst [vmem:[#allocation95_spill] sm:$0xff] %v10731_v5  ;;  %14829 = vst [vmem:[#allocation96_spill] sm:$0xff] %v10733_v24 }
 0x194   :  { %v10735_v12 = vpop.f32.mrb[58].mxu1  ;;  %v10737_v10 = vpop.f32.mrb[58].mxu0 }
 0x195   :  { %14830 = vst [vmem:[#allocation97_spill] sm:$0xff] %v10735_v12  ;;  %14831 = vst [vmem:[#allocation98_spill] sm:$0xff] %v10737_v10  ;;  %v10739_v9 = vpop.f32.mrb[59].mxu1  ;;  %v10741_v20 = vpop.f32.mrb[59].mxu0 }
 0x196   :  { %14832 = vst [vmem:[#allocation99_spill] sm:$0xff] %v10739_v9  ;;  %14833 = vst [vmem:[#allocation100_spill] sm:$0xff] %v10741_v20 }
 0x198   :  { %v10743_v3 = vpop.f32.mrb[60].mxu1  ;;  %v10745_v17 = vpop.f32.mrb[60].mxu0 }
 0x199   :  { %14834 = vst [vmem:[#allocation101_spill] sm:$0xff] %v10743_v3  ;;  %14835 = vst [vmem:[#allocation102_spill] sm:$0xff] %v10745_v17  ;;  %v10747_v6 = vpop.f32.mrb[61].mxu1  ;;  %v10749_v22 = vpop.f32.mrb[61].mxu0 }
 0x19a   :  { %14836 = vst [vmem:[#allocation103_spill] sm:$0xff] %v10747_v6  ;;  %14837 = vst [vmem:[#allocation104_spill] sm:$0xff] %v10749_v22  ;;  %v240_v22 = vlaneseq }
 0x19c   :  { %v10751_v15 = vpop.f32.mrb[62].mxu1  ;;  %v10753_v5 = vpop.f32.mrb[62].mxu0 }
 0x19d   :  { %14838 = vst [vmem:[#allocation105_spill] sm:$0xff] %v10751_v15  ;;  %14839 = vst [vmem:[#allocation106_spill] sm:$0xff] %v10753_v5  ;;  %v10755_v24 = vpop.f32.mrb[63].mxu1  ;;  %v10757_v12 = vpop.f32.mrb[63].mxu0 }
 0x19e   :  { %14840 = vst [vmem:[#allocation107_spill] sm:$0xff] %v10755_v24  ;;  %14841 = vst [vmem:[#allocation108_spill] sm:$0xff] %v10757_v12 }
 0x1a0   :  { %v10759_v10 = vpop.f32.mrb[64].mxu1  ;;  %v10761_v9 = vpop.f32.mrb[64].mxu0 }
 0x1a1   :  { %14842 = vst [vmem:[#allocation109_spill] sm:$0xff] %v10759_v10  ;;  %14843 = vst [vmem:[#allocation110_spill] sm:$0xff] %v10761_v9  ;;  %v10763_v20 = vpop.f32.mrb[65].mxu1  ;;  %v10765_v3 = vpop.f32.mrb[65].mxu0  ;;  %v10779_v10 = vshrl.u32 %v240_v22, 7 }
 0x1a2   :  { %14844 = vst [vmem:[#allocation111_spill] sm:$0xff] %v10763_v20  ;;  %14845 = vst [vmem:[#allocation112_spill] sm:$0xff] %v10765_v3 }
 0x1a3   :  { %v14900_v47 = vsub.s32 0, %v10779_v10 }
 0x1a4   :  { %v10767_v17 = vpop.f32.mrb[66].mxu1  ;;  %v10769_v6 = vpop.f32.mrb[66].mxu0 }
 0x1a5   :  { %14846 = vst [vmem:[#allocation113_spill] sm:$0xff] %v10767_v17  ;;  %14847 = vst [vmem:[#allocation114_spill] sm:$0xff] %v10769_v6  ;;  %v10771_v15 = vpop.f32.mrb[67].mxu1  ;;  %v10773_v5 = vpop.f32.mrb[67].mxu0  ;;  %v14424_v6 = vsub.s32 0, %v10779_v10 }
 0x1a6   :  { %14848 = vst [vmem:[#allocation115_spill] sm:$0xff] %v10771_v15  ;;  %14849 = vst [vmem:[#allocation116_spill] sm:$0xff] %v10773_v5  ;;  %v10794_v5 = vld [vmem:[#allocation5] sm:$0xf] }
 0x1a8   :  { %v10775_v24 = vpop.f32.mrb[68].mxu1  ;;  %v10777_v12 = vpop.f32.mrb[68].mxu0 }
 0x1a9   :  { %14850 = vst [vmem:[#allocation117_spill] sm:$0xff] %v10775_v24  ;;  %14851 = vst [vmem:[#allocation118_spill] sm:$0xff] %v10777_v12  ;;  %v10781_v9 = vpop.f32.mrb[69].mxu1  ;;  %v10783_v20 = vpop.f32.mrb[69].mxu0  ;;  %v14425_v12 = vsub.s32 1, %v10779_v10 }
 0x1aa   :  { %14852 = vst [vmem:[#allocation119_spill] sm:$0xff] %v10781_v9  ;;  %14853 = vst [vmem:[#allocation120_spill] sm:$0xff] %v10783_v20  ;;  %v10804_v20 = vrot.slane %v10794_v5, %v14424_v6 }
 0x1ac   :  { %v10785_v3 = vpop.f32.mrb[70].mxu1  ;;  %v10787_v17 = vpop.f32.mrb[70].mxu0  ;;  %14860 = vst [vmem:[#allocation127_spill] sm:$0xff] %v10804_v20  ;;  %v467_v6 = vadd.f32 %v10417_v14, %v10804_v20 }
 0x1ad   :  { %14854 = vst [vmem:[#allocation121_spill] sm:$0xff] %v10785_v3  ;;  %14855 = vst [vmem:[#allocation122_spill] sm:$0xff] %v10787_v17  ;;  %v10790_v19 = vpop.f32.mrb[71].mxu1  ;;  %v10792_v15 = vpop.f32.mrb[71].mxu0 }
 0x1ae   :  { %14856 = vst [vmem:[#allocation123_spill] sm:$0xff] %v10790_v19  ;;  %14857 = vst [vmem:[#allocation124_spill] sm:$0xff] %v10792_v15  ;;  %v10813_v15 = vrot.slane %v10794_v5, %v14425_v12  ;;  %v461_v19 = vadd.f32 %v10409_v18, %v10804_v20 }
 0x1b0   :  { %v10797_v22 = vpop.f32.mrb[72].mxu1  ;;  %v10799_v24 = vpop.f32.mrb[72].mxu0  ;;  %14863 = vst [vmem:[#allocation130_spill] sm:$0xff] %v10813_v15  ;;  %v469_v12 = vadd.f32 %v10421_v21, %v10813_v15  ;;  %v475_v21 = vadd.f32 %v10429_v25, %v10813_v15 }
 0x1b1   :  { %14858 = vst [vmem:[#allocation125_spill] sm:$0xff] %v10797_v22  ;;  %14859 = vst [vmem:[#allocation126_spill] sm:$0xff] %v10799_v24  ;;  %v10806_v17 = vpop.f32.mrb[73].mxu1  ;;  %v10808_v3 = vpop.f32.mrb[73].mxu0  ;;  %v463_v24 = vadd.f32 %v10413_v0, %v10813_v15 }
 0x1b2   :  { %14861 = vst [vmem:[#allocation128_spill] sm:$0xff] %v10806_v17  ;;  %14862 = vst [vmem:[#allocation129_spill] sm:$0xff] %v10808_v3 }
 0x1b4   :  { %v10819_v22 = vpop.f32.mrb[74].mxu1  ;;  %v1374_v9 = vpop.f32.mrb[76].mxu0 }
 0x1b5   :  { %14864 = vst [vmem:[#allocation131_spill] sm:$0xff] %v10819_v22  ;;  %v1446_v17 = vadd.f32 %v1374_v9, %v461_v19  ;;  %v10823_v13 = vpop.f32.mrb[75].mxu1  ;;  %v1376_v3 = vpop.f32.mrb[77].mxu0  ;;  %v473_v9 = vadd.f32 %v10425_v23, %v10804_v20 }
 0x1b6   :  { %14865 = vst [vmem:[#allocation132_spill] sm:$0xff] %v10823_v13  ;;  %v1447_v2 = vadd.f32 %v1376_v3, %v463_v24  ;;  %v1378_v16 = vpop.f32.mrb[78].mxu0  ;;  %v10973_v13 = vld [vmem:[#allocation7 + $0xa8] ss:$16 sps:$4 sm:$0xff]  }
 0x1b7   :  { %v7380_v63 = vmul.f32 -1.442695, %v1446_v17  ;;  %v1450_v18 = vadd.f32 %v1378_v16, %v467_v6  ;;  %v1380_v7 = vpop.f32.mrb[79].mxu0  ;;  %14889 = vst [vmem:[#allocation155_spill] sm:$0xff] %v10973_v13 }
 0x1b8   :  { %v7381_v4 = vmul.f32 -1.442695, %v1447_v2  ;;  %v1451_v0 = vadd.f32 %v1380_v7, %v469_v12  ;;  %v10827_v61 = vpop.f32.mrb[76].mxu1  ;;  %v479_v2 = vadd.f32 %v10433_v27, %v10804_v20  ;;  %v481_v12 = vadd.f32 %v10437_v29, %v10813_v15 }
 0x1b9   :  { %14866 = vst [vmem:[#allocation133_spill] sm:$0xff] %v10827_v61  ;;  %v7383_v22 = vmul.f32 -1.442695, %v1450_v18  ;;  %v10829_v11 = vpop.f32.mrb[77].mxu1  ;;  %8075 = vpow2.f32 %v7380_v63  ;;  %v14427_v29 = vsub.s32 3, %v10779_v10 }
 0x1ba   :  { %14867 = vst [vmem:[#allocation134_spill] sm:$0xff] %v10829_v11  ;;  %v7384_v14 = vmul.f32 -1.442695, %v1451_v0  ;;  %8077 = vpow2.f32 %v7381_v4  ;;  %v10969_v11 = vld [vmem:[#allocation7 + $0xac] ss:$16 sps:$4 sm:$0xff]  }
 0x1bb   :  { %8079 = vpow2.f32 %v7383_v22  ;;  %14887 = vst [vmem:[#allocation153_spill] sm:$0xff] %v10969_v11  ;;  %v10971_v61 = vld [vmem:[#allocation7 + $0xa0] ss:$16 sps:$4 sm:$0xff]  }
 0x1bc   :  { %v10835_v24 = vpop.f32.mrb[78].mxu1  ;;  %v1384_v16 = vpop.f32.mrb[80].mxu0  ;;  %8081 = vpow2.f32 %v7384_v14  ;;  %14888 = vst [vmem:[#allocation154_spill] sm:$0xff] %v10971_v61 }
 0x1bd   :  { %14868 = vst [vmem:[#allocation135_spill] sm:$0xff] %v10835_v24  ;;  %v1454_v7 = vadd.f32 %v1384_v16, %v473_v9  ;;  %v10839_v3 = vpop.f32.mrb[79].mxu1  ;;  %v1386_v19 = vpop.f32.mrb[81].mxu0  ;;  %v14426_v16 = vsub.s32 2, %v10779_v10  ;;  %v10967_v24 = vld [vmem:[#allocation7 + $0xa4] ss:$16 sps:$4 sm:$0xff]  }
 0x1be   :  { %14869 = vst [vmem:[#allocation136_spill] sm:$0xff] %v10839_v3  ;;  %v1455_v23 = vadd.f32 %v1386_v19, %v475_v21  ;;  %v1388_v63 = vpop.f32.mrb[82].mxu0  ;;  %14886 = vst [vmem:[#allocation152_spill] sm:$0xff] %v10967_v24 }
 0x1bf   :  { %v7386_v17 = vmul.f32 -1.442695, %v1454_v7  ;;  %v1458_v25 = vadd.f32 %v1388_v63, %v479_v2  ;;  %v1390_v4 = vpop.f32.mrb[83].mxu0  ;;  %v10861_v63 = vrot.slane %v10794_v5, %v14427_v29 }
 0x1c0   :  { %v7387_v6 = vmul.f32 -1.442695, %v1455_v23  ;;  %v1459_v18 = vadd.f32 %v1390_v4, %v481_v12  ;;  %v10843_v0 = vpop.f32.mrb[80].mxu1  ;;  %v10856_v12 = vrot.slane %v10794_v5, %v14426_v16 }
 0x1c1   :  { %14870 = vst [vmem:[#allocation137_spill] sm:$0xff] %v10843_v0  ;;  %8083 = vpow2.f32 %v7386_v17  ;;  %v7389_v27 = vmul.f32 -1.442695, %v1458_v25  ;;  %v10845_v22 = vpop.f32.mrb[81].mxu1 }
 0x1c2   :  { %14871 = vst [vmem:[#allocation138_spill] sm:$0xff] %v10845_v22  ;;  %8085 = vpow2.f32 %v7387_v6  ;;  %v7390_v9 = vmul.f32 -1.442695, %v1459_v18 }
 0x1c3   :  { %v8076_v21 = vpop.eup %8075  ;;  %8087 = vpow2.f32 %v7389_v27 }
 0x1c4   :  { %v10849_v14 = vpop.f32.mrb[82].mxu1  ;;  %v8078_v7 = vpop.eup %8077  ;;  %8089 = vpow2.f32 %v7390_v9  ;;  %v1498_v17 = vadd.f32 1.0, %v8076_v21  ;;  %v766_v9 = vadd.f32 %v10431_v26, %v10856_v12  ;;  %v772_v21 = vadd.f32 %v10439_v30, %v10856_v12 }
 0x1c5   :  { %14872 = vst [vmem:[#allocation139_spill] sm:$0xff] %v10849_v14  ;;  %v10851_v2 = vpop.f32.mrb[83].mxu1  ;;  %v8080_v19 = vpop.eup %8079  ;;  %v1499_v4 = vadd.f32 1.0, %v8078_v7  ;;  %v768_v14 = vadd.f32 %v10435_v28, %v10861_v63 }
 0x1c6   :  { %14873 = vst [vmem:[#allocation140_spill] sm:$0xff] %v10851_v2  ;;  %v8082_v23 = vpop.eup %8081  ;;  %v1501_v18 = vadd.f32 1.0, %v8080_v19  ;;  %8091 = vrcp.f32 %v1498_v17  ;;  %v774_v19 = vadd.f32 %v10443_v32, %v10861_v63  ;;  %v780_v32 = vadd.f32 %v10451_v36, %v10861_v63 }
 0x1c7   :  { %v1502_v2 = vadd.f32 1.0, %v8082_v23  ;;  %8093 = vrcp.f32 %v1499_v4 }
 0x1c8   :  { %v10863_v25 = vpop.f32.mrb[84].mxu1  ;;  %8095 = vrcp.f32 %v1501_v18 }
 0x1c9   :  { %14874 = vst [vmem:[#allocation141_spill] sm:$0xff] %v10863_v25  ;;  %v10865_v6 = vpop.f32.mrb[85].mxu1  ;;  %8097 = vrcp.f32 %v1502_v2 }
 0x1ca   :  { %14875 = vst [vmem:[#allocation142_spill] sm:$0xff] %v10865_v6 }
 0x1cb   :  { %v8084_v27 = vpop.eup %8083 }
 0x1cc   :  { %v8086_v16 = vpop.eup %8085  ;;  %v1504_v22 = vadd.f32 1.0, %v8084_v27  ;;  %v1427_v5 = vpop.f32.mrb[88].mxu1 }
 0x1cd   :  { %v1505_v7 = vadd.f32 1.0, %v8086_v16  ;;  %v1448_v29 = vadd.f32 %v1427_v5, %v766_v9  ;;  %v1429_v6 = vpop.f32.mrb[89].mxu1  ;;  %v8088_v25 = vpop.eup %8087  ;;  %v778_v16 = vadd.f32 %v10447_v34, %v10856_v12 }
 0x1ce   :  { %v1449_v26 = vadd.f32 %v1429_v6, %v768_v14  ;;  %v1431_v23 = vpop.f32.mrb[90].mxu1  ;;  %v8090_v27 = vpop.eup %8089  ;;  %8099 = vrcp.f32 %v1504_v22  ;;  %v1507_v4 = vadd.f32 1.0, %v8088_v25 }
 0x1cf   :  { %v7382_v0 = vmul.f32 -1.442695, %v1448_v29  ;;  %v1452_v28 = vadd.f32 %v1431_v23, %v772_v21  ;;  %v1433_v17 = vpop.f32.mrb[91].mxu1  ;;  %8101 = vrcp.f32 %v1505_v7  ;;  %v1508_v9 = vadd.f32 1.0, %v8090_v27 }
 0x1d0   :  { %v1453_v3 = vadd.f32 %v1433_v17, %v774_v19  ;;  %v784_v29 = vadd.f32 %v10455_v38, %v10856_v12  ;;  %v8092_v6 = vpop.eup %8091 }
 0x1d1   :  { %v7385_v30 = vmul.f32 -1.442695, %v1452_v28  ;;  %8103 = vpow2.f32 %v7382_v0  ;;  %v786_v0 = vadd.f32 %v10459_v40, %v10861_v63  ;;  %v8094_v18 = vpop.eup %8093 }
 0x1d2   :  { %8105 = vtanh.f32 %v1449_v26  ;;  %v8096_v7 = vpop.eup %8095 }
 0x1d3   :  { %8107 = vpow2.f32 %v7385_v30  ;;  %v8098_v26 = vpop.eup %8097  ;;  %v1538_v30 = vmul.f32 0.0, %v8094_v18 }
 0x1d4   :  { %v1437_v14 = vpop.f32.mrb[92].mxu1  ;;  %8109 = vtanh.f32 %v1453_v3 }
 0x1d5   :  { %v1456_v22 = vadd.f32 %v1437_v14, %v778_v16  ;;  %v1439_v2 = vpop.f32.mrb[93].mxu1  ;;  %8111 = vrcp.f32 %v1507_v4  ;;  %v1539_v14 = vmul.f32 0.0, %v8098_v26 }
 0x1d6   :  { %v1457_v25 = vadd.f32 %v1439_v2, %v780_v32  ;;  %v1441_v34 = vpop.f32.mrb[94].mxu1  ;;  %8113 = vrcp.f32 %v1508_v9 }
 0x1d7   :  { %v7388_v5 = vmul.f32 -1.442695, %v1456_v22  ;;  %v1460_v21 = vadd.f32 %v1441_v34, %v784_v29  ;;  %v1443_v36 = vpop.f32.mrb[95].mxu1 }
 0x1d8   :  { %8115 = vtanh.f32 %v1457_v25  ;;  %v1461_v19 = vadd.f32 %v1443_v36, %v786_v0  ;;  %v8100_v3 = vpop.eup %8099 }
 0x1d9   :  { %8117 = vpow2.f32 %v7388_v5  ;;  %v7391_v38 = vmul.f32 -1.442695, %v1460_v21  ;;  %v8102_v23 = vpop.eup %8101 }
 0x1da   :  { %8119 = vtanh.f32 %v1461_v19  ;;  %v1540_v5 = vmul.f32 0.0, %v8102_v23 }
 0x1db   :  { %8121 = vpow2.f32 %v7391_v38  ;;  %v8104_v28 = vpop.eup %8103 }
 0x1dc   :  { %v8106_v40 = vpop.eup %8105  ;;  %v1500_v17 = vadd.f32 1.0, %v8104_v28 }
 0x1dd   :  { %v8108_v27 = vpop.eup %8107  ;;  %v1542_v4 = vmul.f32 %v8106_v40, %v8092_v6 }
 0x1de   :  { %v8110_v16 = vpop.eup %8109  ;;  %v1503_v9 = vadd.f32 1.0, %v8108_v27  ;;  %8123 = vrcp.f32 %v1500_v17 }
 0x1df   :  { %v8112_v32 = vpop.eup %8111  ;;  %v10883_v29 = vadd.f32 %v1542_v4, %v1538_v30  ;;  %v1543_v22 = vmul.f32 %v8110_v16, %v8096_v7 }
 0x1e0   :  { %v8114_v2 = vpop.eup %8113  ;;  %8125 = vrcp.f32 %v1503_v9 }
 0x1e1   :  { %8127 = vtanh.f32 %v10883_v29  ;;  %v10886_v25 = vadd.f32 %v1543_v22, %v1539_v14  ;;  %v1541_v19 = vmul.f32 0.0, %v8114_v2  ;;  %v14876_v22 = vmov 0  }
 0x1e2   :  { %v8116_v0 = vpop.eup %8115 }
 0x1e3   :  { %v8118_v34 = vpop.eup %8117  ;;  %v1544_v21 = vmul.f32 %v8116_v0, %v8100_v3  ;;  %8129 = vtanh.f32 %v10886_v25 }
 0x1e4   :  { %v8120_v18 = vpop.eup %8119  ;;  %v1506_v6 = vadd.f32 1.0, %v8118_v34 }
 0x1e5   :  { %v8122_v36 = vpop.eup %8121  ;;  %v10889_v26 = vadd.f32 %v1544_v21, %v1540_v5  ;;  %v1545_v38 = vmul.f32 %v8120_v18, %v8112_v32  ;;  %v10907_v5 = vld [vmem:[#allocation7 + $0x4] ss:$16 sps:$4 sm:$0xff]   ;;  %v10909_v21 = vld [vmem:[#allocation7 + $0xc] ss:$16 sps:$4 sm:$0xff]   ;;  %v10911_v18 = vld [vmem:[#allocation7] ss:$16 sps:$4 sm:$0xff]  }
 0x1e6   :  { %8131 = vrcp.f32 %v1506_v6  ;;  %v1509_v7 = vadd.f32 1.0, %v8122_v36  ;;  %v10913_v6 = vld [vmem:[#allocation7 + $0x8] ss:$16 sps:$4 sm:$0xff]   ;;  %2105 = vmatprep.subr.bf16.mxu0 %v10907_v5  ;;  %2158 = vmatprep.subr.bf16.mxu1 %v10909_v21  ;;  %v10919_v36 = vld [vmem:[#allocation7 + $0x24] ss:$16 sps:$4 sm:$0xff]  }
 0x1e7   :  { %8133 = vtanh.f32 %v10889_v26  ;;  %v10892_v28 = vadd.f32 %v1545_v38, %v1541_v19  ;;  %v10921_v19 = vld [vmem:[#allocation7 + $0x2c] ss:$16 sps:$4 sm:$0xff]   ;;  %v10923_v38 = vld [vmem:[#allocation7 + $0x20] ss:$16 sps:$4 sm:$0xff]  }
 0x1e8   :  { %8135 = vrcp.f32 %v1509_v7  ;;  %v8124_v23 = vpop.eup %8123  ;;  %v10925_v7 = vld [vmem:[#allocation7 + $0x28] ss:$16 sps:$4 sm:$0xff]  }
 0x1e9   :  { %8137 = vtanh.f32 %v10892_v28 }
 0x1ea   :  { %v8126_v3 = vpop.eup %8125 }
 0x1eb   :  { %v8128_v40 = vpop.eup %8127 }
 0x1ec   :  { %v1554_v27 = vmul.f32 %v8128_v40, %v8124_v23  ;;  %v10931_v23 = vld [vmem:[#allocation7 + $0x44] ss:$16 sps:$4 sm:$0xff]   ;;  %v10935_v40 = vld [vmem:[#allocation7 + $0x40] ss:$16 sps:$4 sm:$0xff]  }
 0x1ed   :  { %v8130_v17 = vpop.eup %8129 }
 0x1ee   :  { %v1555_v30 = vmul.f32 %v8130_v17, %v8126_v3  ;;  %v10933_v3 = vld [vmem:[#allocation7 + $0x4c] ss:$16 sps:$4 sm:$0xff]   ;;  %v10937_v17 = vld [vmem:[#allocation7 + $0x48] ss:$16 sps:$4 sm:$0xff]  }
 0x1ef   :  { %14877 = vst [vmem:[#allocation143_spill] sm:$0xff] %v10937_v17 }
 0x1f0   :  { %v8132_v4 = vpop.eup %8131  ;;  %v10895_v9 = vpack.c.bf16 %v1555_v30, %v1554_v27  ;;  %v10943_v27 = vld [vmem:[#allocation7 + $0x64] ss:$16 sps:$4 sm:$0xff]   ;;  %v10945_v30 = vld [vmem:[#allocation7 + $0x6c] ss:$16 sps:$4 sm:$0xff]  }
 0x1f1   :  { %v8134_v16 = vpop.eup %8133  ;;  %14878 = vst [vmem:[#allocation144_spill] sm:$0xff] %v10943_v27  ;;  %14879 = vst [vmem:[#allocation145_spill] sm:$0xff] %v10945_v30 }
 0x1f2   :  { %v8136_v32 = vpop.eup %8135  ;;  %1774 = vmatmul.mubr.bf16.vlgmr.msra.gmra.mrb[84].mxu0 %v10895_v9  ;;  %1827 = vmatmul.mubr.bf16.vlgmr.msra.gmra.mrb[96].mxu1 %v10895_v9  ;;  %v1556_v2 = vmul.f32 %v8134_v16, %v8132_v4  ;;  %v10947_v4 = vld [vmem:[#allocation7 + $0x60] ss:$16 sps:$4 sm:$0xff]   ;;  %v10949_v16 = vld [vmem:[#allocation7 + $0x68] ss:$16 sps:$4 sm:$0xff]  }
 0x1f3   :  { %v8138_v14 = vpop.eup %8137  ;;  %1783 = vmatprep.mubr.bf16.mxu0 %v14876_v22  ;;  %1836 = vmatprep.mubr.bf16.mxu1 %v14876_v22  ;;  %14880 = vst [vmem:[#allocation146_spill] sm:$0xff] %v10947_v4  ;;  %14881 = vst [vmem:[#allocation147_spill] sm:$0xff] %v10949_v16 }
 0x1f4   :  { %v1557_v0 = vmul.f32 %v8138_v14, %v8136_v32  ;;  %2106 = vmatpush1.bf16.msra.mxu0 %v10911_v18  ;;  %2159 = vmatpush1.bf16.msra.mxu1 %v10913_v6  ;;  %v10955_v32 = vld [vmem:[#allocation7 + $0x84] ss:$16 sps:$4 sm:$0xff]   ;;  %v10957_v14 = vld [vmem:[#allocation7 + $0x8c] ss:$16 sps:$4 sm:$0xff]  }
 0x1f5   :  { %2107 = vmatprep.subr.bf16.mxu0 %v10919_v36  ;;  %2160 = vmatprep.subr.bf16.mxu1 %v10921_v19  ;;  %14882 = vst [vmem:[#allocation148_spill] sm:$0xff] %v10955_v32  ;;  %14883 = vst [vmem:[#allocation149_spill] sm:$0xff] %v10957_v14 }
 0x1f6   :  { %v10901_v34 = vpack.c.bf16 %v1557_v0, %v1556_v2  ;;  %v10959_v2 = vld [vmem:[#allocation7 + $0x80] ss:$16 sps:$4 sm:$0xff]   ;;  %v10961_v0 = vld [vmem:[#allocation7 + $0x88] ss:$16 sps:$4 sm:$0xff]  }
 0x1f7   :  { %14884 = vst [vmem:[#allocation150_spill] sm:$0xff] %v10959_v2  ;;  %14885 = vst [vmem:[#allocation151_spill] sm:$0xff] %v10961_v0 }
 0x1f8   :  { %2108 = vmatpush1.bf16.msra.mxu0 %v10923_v38  ;;  %2161 = vmatpush1.bf16.msra.mxu1 %v10925_v7 }
 0x1f9   :  { %2109 = vmatprep.subr.bf16.mxu0 %v10931_v23  ;;  %2162 = vmatprep.subr.bf16.mxu1 %v10933_v3 }
 0x1fa   :  { %1784 = vmatmul.mubr.bf16.gmra.mrb[88].mxu0 %v10901_v34  ;;  %1837 = vmatmul.mubr.bf16.gmra.mrb[100].mxu1 %v10901_v34 }
 0x1fb   :  { %2137 = vmatprep.mubr.bf16.mxu0 %v14876_v22  ;;  %2190 = vmatprep.mubr.bf16.mxu1 %v14876_v22 }
 0x1fc   :  { %2110 = vmatpush1.bf16.msra.mxu0 %v10935_v40  ;;  %2163 = vmatpush1.bf16.msra.mxu1 %v10937_v17 }
 0x1fd   :  { %2111 = vmatprep.subr.bf16.mxu0 %v10943_v27  ;;  %2164 = vmatprep.subr.bf16.mxu1 %v10945_v30 }
 0x200   :  { %2112 = vmatpush1.bf16.msra.mxu0 %v10947_v4  ;;  %2165 = vmatpush1.bf16.msra.mxu1 %v10949_v16 }
 0x201   :  { %2113 = vmatprep.subr.bf16.mxu0 %v10955_v32  ;;  %2166 = vmatprep.subr.bf16.mxu1 %v10957_v14  ;;  %v14904_v14 = vsub.s32 3, %v10779_v10 }
 0x203   :  { %v11032_v32 = vrot.slane %v181_v58, %v14904_v14 }
 0x204   :  { %2114 = vmatpush1.bf16.msra.mxu0 %v10959_v2  ;;  %2167 = vmatpush1.bf16.msra.mxu1 %v10961_v0 }
 0x205   :  { %2115 = vmatprep.subr.bf16.mxu0 %v10967_v24  ;;  %2168 = vmatprep.subr.bf16.mxu1 %v10969_v11 }
 0x208   :  { %2116 = vmatpush1.bf16.msra.mxu0 %v10971_v61  ;;  %2169 = vmatpush1.bf16.msra.mxu1 %v10973_v13 }
 0x209   :  { %2117 = vmatprep.subr.bf16.mxu0 %v10979_v59  ;;  %2170 = vmatprep.subr.bf16.mxu1 %v10981_v57  ;;  %v14903_v59 = vsub.s32 2, %v10779_v10 }
 0x20b   :  { %v11026_v13 = vrot.slane %v181_v58, %v14903_v59 }
 0x20c   :  { %2118 = vmatpush1.bf16.msra.mxu0 %v10983_v8  ;;  %2171 = vmatpush1.bf16.msra.mxu1 %v10985_v55 }
 0x20d   :  { %2119 = vmatprep.subr.bf16.mxu0 %v10987_v1  ;;  %2172 = vmatprep.subr.bf16.mxu1 %v10991_v53 }
 0x210   :  { %2120 = vmatpush1.bf16.msra.mxu0 %v10995_v62  ;;  %2173 = vmatpush1.bf16.msra.mxu1 %v10997_v51  ;;  %v11017_v62 = vrot.slane %v181_v58, %v14900_v47  ;;  %v14902_v51 = vsub.s32 1, %v10779_v10 }
 0x211   :  { %2227 = vmatprep.subr.bf16.mxu0 %v11006_v60  ;;  %2280 = vmatprep.subr.bf16.mxu1 %v11012_v49 }
 0x212   :  { %14901 = vst [vmem:[#allocation166_spill] sm:$0xff] %v11017_v62  ;;  %v11021_v53 = vrot.slane %v181_v58, %v14902_v51 }
 0x2c5   :  { %v1775_v1 = vpop.f32.mrb[84].mxu0  ;;  %v1828_v55 = vpop.f32.mrb[96].mxu1 }
 0x2c6   :  { %v1776_v60 = vadd.f32 %v1775_v1, %v11017_v62  ;;  %v1777_v8 = vpop.f32.mrb[85].mxu0  ;;  %v1830_v57 = vpop.f32.mrb[97].mxu1  ;;  %v1829_v59 = vadd.f32 %v1828_v55, %v11026_v13 }
 0x2c7   :  { %v1778_v49 = vadd.f32 %v1777_v8, %v11021_v53  ;;  %v1779_v61 = vpop.f32.mrb[86].mxu0  ;;  %v1832_v11 = vpop.f32.mrb[98].mxu1  ;;  %v1831_v8 = vadd.f32 %v1830_v57, %v11032_v32 }
 0x2c8   :  { %v7424_v47 = vmul.f32 -1.442695, %v1776_v60  ;;  %v1780_v24 = vadd.f32 %v1779_v61, %v11017_v62  ;;  %v1781_v0 = vpop.f32.mrb[87].mxu0  ;;  %v1834_v51 = vpop.f32.mrb[99].mxu1  ;;  %v1833_v30 = vadd.f32 %v1832_v11, %v11026_v13  ;;  %v7426_v14 = vmul.f32 -1.442695, %v1829_v59 }
 0x2c9   :  { %v7425_v2 = vmul.f32 -1.442695, %v1778_v49  ;;  %v1782_v1 = vadd.f32 %v1781_v0, %v11021_v53  ;;  %v1835_v17 = vadd.f32 %v1834_v51, %v11032_v32 }
 0x2ca   :  { %8139 = vpow2.f32 %v7424_v47  ;;  %v7427_v16 = vmul.f32 -1.442695, %v1780_v24  ;;  %v7429_v27 = vmul.f32 -1.442695, %v1833_v30 }
 0x2cb   :  { %v7428_v4 = vmul.f32 -1.442695, %v1782_v1  ;;  %8141 = vpow2.f32 %v7425_v2 }
 0x2cc   :  { %8143 = vpow2.f32 %v7427_v16 }
 0x2cd   :  { %v1785_v60 = vpop.f32.mrb[88].mxu0  ;;  %v1838_v61 = vpop.f32.mrb[100].mxu1  ;;  %8145 = vpow2.f32 %v7428_v4 }
 0x2ce   :  { %v1786_v49 = vadd.f32 %v1785_v60, %v11017_v62  ;;  %v1787_v10 = vpop.f32.mrb[89].mxu0  ;;  %v1840_v58 = vpop.f32.mrb[101].mxu1  ;;  %8147 = vtanh.f32 %v1831_v8 }
 0x2cf   :  { %v1788_v0 = vadd.f32 %v1787_v10, %v11021_v53  ;;  %v1789_v24 = vpop.f32.mrb[90].mxu0  ;;  %v1842_v47 = vpop.f32.mrb[102].mxu1 }
 0x2d0   :  { %v7430_v55 = vmul.f32 -1.442695, %v1786_v49  ;;  %v1790_v2 = vadd.f32 %v1789_v24, %v11017_v62  ;;  %v1791_v1 = vpop.f32.mrb[91].mxu0  ;;  %v1844_v57 = vpop.f32.mrb[103].mxu1 }
 0x2d1   :  { %v7431_v16 = vmul.f32 -1.442695, %v1788_v0  ;;  %v1792_v59 = vadd.f32 %v1791_v1, %v11021_v53  ;;  %v1841_v0 = vadd.f32 %v1840_v58, %v11032_v32 }
 0x2d2   :  { %8149 = vpow2.f32 %v7430_v55  ;;  %v7433_v11 = vmul.f32 -1.442695, %v1790_v2  ;;  %v1845_v2 = vadd.f32 %v1844_v57, %v11032_v32 }
 0x2d3   :  { %8151 = vpow2.f32 %v7426_v14  ;;  %v7434_v30 = vmul.f32 -1.442695, %v1792_v59 }
 0x2d4   :  { %v8140_v60 = vpop.eup %8139  ;;  %8153 = vpow2.f32 %v7431_v16 }
 0x2d5   :  { %v1883_v4 = vadd.f32 1.0, %v8140_v60  ;;  %8155 = vpow2.f32 %v7433_v11  ;;  %v8142_v10 = vpop.eup %8141 }
 0x2d6   :  { %8157 = vpow2.f32 %v7429_v27  ;;  %v8144_v49 = vpop.eup %8143  ;;  %v1884_v24 = vadd.f32 1.0, %v8142_v10  ;;  %v1839_v27 = vadd.f32 %v1838_v61, %v11026_v13 }
 0x2d7   :  { %8159 = vrcp.f32 %v1883_v4  ;;  %v1886_v62 = vadd.f32 1.0, %v8144_v49  ;;  %v8146_v8 = vpop.eup %8145 }
 0x2d8   :  { %8161 = vtanh.f32 %v1835_v17  ;;  %v1887_v14 = vadd.f32 1.0, %v8146_v8  ;;  %v8148_v51 = vpop.eup %8147  ;;  %v1843_v17 = vadd.f32 %v1842_v47, %v11026_v13  ;;  %v7432_v10 = vmul.f32 -1.442695, %v1839_v27 }
 0x2d9   :  { %8163 = vrcp.f32 %v1884_v24 }
 0x2da   :  { %8165 = vrcp.f32 %v1886_v62  ;;  %v7435_v24 = vmul.f32 -1.442695, %v1843_v17 }
 0x2db   :  { %8167 = vrcp.f32 %v1887_v14 }
 0x2dc   :  { %v8150_v55 = vpop.eup %8149  ;;  %8169 = vpow2.f32 %v7434_v30 }
 0x2dd   :  { %v8152_v1 = vpop.eup %8151  ;;  %v1889_v16 = vadd.f32 1.0, %v8150_v55  ;;  %8171 = vtanh.f32 %v1841_v0 }
 0x2de   :  { %v8154_v11 = vpop.eup %8153  ;;  %v1885_v61 = vadd.f32 1.0, %v8152_v1 }
 0x2df   :  { %v8156_v60 = vpop.eup %8155  ;;  %8173 = vrcp.f32 %v1889_v16  ;;  %v1890_v62 = vadd.f32 1.0, %v8154_v11 }
 0x2e0   :  { %v8158_v4 = vpop.eup %8157  ;;  %v1892_v59 = vadd.f32 1.0, %v8156_v60  ;;  %8175 = vtanh.f32 %v1845_v2 }
 0x2e1   :  { %v8160_v58 = vpop.eup %8159  ;;  %8177 = vrcp.f32 %v1890_v62  ;;  %v1888_v0 = vadd.f32 1.0, %v8158_v4 }
 0x2e2   :  { %v8162_v49 = vpop.eup %8161  ;;  %v1927_v57 = vmul.f32 %v8160_v58, %v8148_v51  ;;  %8179 = vrcp.f32 %v1892_v59 }
 0x2e3   :  { %v8164_v8 = vpop.eup %8163  ;;  %8181 = vpow2.f32 %v7432_v10 }
 0x2e4   :  { %v8166_v30 = vpop.eup %8165  ;;  %v1923_v14 = vmul.f32 0.0, %v8164_v8  ;;  %8183 = vpow2.f32 %v7435_v24 }
 0x2e5   :  { %v1928_v55 = vmul.f32 %v8166_v30, %v8162_v49  ;;  %v8168_v47 = vpop.eup %8167  ;;  %8185 = vrcp.f32 %v1885_v61 }
 0x2e6   :  { %v11047_v16 = vadd.f32 %v1927_v57, %v1923_v14  ;;  %v8170_v11 = vpop.eup %8169  ;;  %v1924_v2 = vmul.f32 0.0, %v8168_v47  ;;  %8187 = vrcp.f32 %v1888_v0 }
 0x2e7   :  { %v8172_v27 = vpop.eup %8171  ;;  %v1893_v60 = vadd.f32 1.0, %v8170_v11 }
 0x2e8   :  { %8189 = vtanh.f32 %v11047_v16  ;;  %v11050_v17 = vadd.f32 %v1928_v55, %v1924_v2 }
 0x2e9   :  { %v8174_v51 = vpop.eup %8173  ;;  %8191 = vrcp.f32 %v1893_v60 }
 0x2ea   :  { %v8176_v1 = vpop.eup %8175  ;;  %v1929_v62 = vmul.f32 %v8174_v51, %v8172_v27  ;;  %8193 = vtanh.f32 %v11050_v17 }
 0x2eb   :  { %v8178_v4 = vpop.eup %8177 }
 0x2ec   :  { %v8180_v59 = vpop.eup %8179  ;;  %v1925_v58 = vmul.f32 0.0, %v8178_v4  ;;  %v11074_v4 = vld [vmem:[%s14414_s2 + $0x24] ss:$16 sps:$4 sm:$0xff]  }
 0x2ed   :  { %v1930_v10 = vmul.f32 %v8180_v59, %v8176_v1  ;;  %v8182_v57 = vpop.eup %8181  ;;  %v11062_v1 = vld [vmem:[%s14414_s2] ss:$16 sps:$4 sm:$0xff]   ;;  %v11080_v59 = vld [vmem:[%s14414_s2 + $0x2c] ss:$16 sps:$4 sm:$0xff]  }
 0x2ee   :  { %v11053_v49 = vadd.f32 %v1929_v62, %v1925_v58  ;;  %v8184_v24 = vpop.eup %8183  ;;  %v1891_v30 = vadd.f32 1.0, %v8182_v57  ;;  %v11068_v62 = vld [vmem:[%s14414_s2 + $0x8] ss:$16 sps:$4 sm:$0xff]   ;;  %v11088_v58 = vld [vmem:[%s14414_s2 + $0x20] ss:$16 sps:$4 sm:$0xff]  }
 0x2ef   :  { %v8186_v8 = vpop.eup %8185  ;;  %v1894_v55 = vadd.f32 1.0, %v8184_v24  ;;  %v11100_v24 = vld [vmem:[%s14414_s2 + $0x44] ss:$16 sps:$4 sm:$0xff]  }
 0x2f0   :  { %v8188_v61 = vpop.eup %8187  ;;  %8195 = vrcp.f32 %v1891_v30  ;;  %14906 = vst [vmem:[#allocation168_spill] sm:$0xff] %v11100_v24 }
 0x2f1   :  { %8197 = vtanh.f32 %v11053_v49 }
 0x2f2   :  { %v8190_v14 = vpop.eup %8189  ;;  %8199 = vrcp.f32 %v1894_v55  ;;  %v11118_v55 = vld [vmem:[%s14414_s2 + $0x48] ss:$16 sps:$4 sm:$0xff]  }
 0x2f3   :  { %v8192_v0 = vpop.eup %8191  ;;  %v1939_v2 = vmul.f32 %v8190_v14, %v8186_v8  ;;  %v11106_v8 = vld [vmem:[%s14414_s2 + $0x4c] ss:$16 sps:$4 sm:$0xff]   ;;  %14909 = vst [vmem:[#allocation171_spill] sm:$0xff] %v11118_v55 }
 0x2f4   :  { %v8194_v47 = vpop.eup %8193  ;;  %v1926_v11 = vmul.f32 0.0, %v8192_v0  ;;  %14907 = vst [vmem:[#allocation169_spill] sm:$0xff] %v11106_v8  ;;  %v11112_v0 = vld [vmem:[%s14414_s2 + $0x40] ss:$16 sps:$4 sm:$0xff]  }
 0x2f5   :  { %v1940_v27 = vmul.f32 %v8194_v47, %v8188_v61  ;;  %14908 = vst [vmem:[#allocation170_spill] sm:$0xff] %v11112_v0 }
 0x2f6   :  { %v11056_v60 = vadd.f32 %v1930_v10, %v1926_v11  ;;  %v11094_v10 = vld [vmem:[%s14414_s2 + $0x28] ss:$16 sps:$4 sm:$0xff]  }
 0x2f7   :  { %v1943_v51 = vpack.c.bf16 %v1940_v27, %v1939_v2  ;;  %14905 = vst [vmem:[#allocation167_spill] sm:$0xff] %v11094_v10  ;;  %v11124_v2 = vld [vmem:[%s14414_s2 + $0x64] ss:$16 sps:$4 sm:$0xff]   ;;  %v11130_v27 = vld [vmem:[%s14414_s2 + $0x6c] ss:$16 sps:$4 sm:$0xff]  }
 0x2f8   :  { %8201 = vtanh.f32 %v11056_v60  ;;  %14910 = vst [vmem:[#allocation172_spill] sm:$0xff] %v11124_v2  ;;  %14911 = vst [vmem:[#allocation173_spill] sm:$0xff] %v11130_v27 }
 0x2f9   :  { %2138 = vmatmul.mubr.bf16.vlgmr.msra.gmra.mrb[92].mxu0 %v1943_v51  ;;  %2191 = vmatmul.mubr.bf16.vlgmr.msra.gmra.mrb[104].mxu1 %v1943_v51 }
 0x2fa   :  { %2228 = vmatpush1.bf16.msra.mxu0 %v11062_v1  ;;  %2281 = vmatpush1.bf16.msra.mxu1 %v11068_v62  ;;  %v8196_v57 = vpop.eup %8195 }
 0x2fb   :  { %2229 = vmatprep.subr.bf16.mxu0 %v11074_v4  ;;  %2282 = vmatprep.subr.bf16.mxu1 %v11080_v59  ;;  %v8198_v61 = vpop.eup %8197 }
 0x2fc   :  { %2147 = vmatprep.mubr.bf16.mxu0 %v14876_v22  ;;  %2200 = vmatprep.mubr.bf16.mxu1 %v14876_v22  ;;  %v8200_v30 = vpop.eup %8199  ;;  %v1941_v47 = vmul.f32 %v8198_v61, %v8196_v57  ;;  %v11136_v57 = vld [vmem:[%s14414_s2 + $0x60] ss:$16 sps:$4 sm:$0xff]   ;;  %v11142_v61 = vld [vmem:[%s14414_s2 + $0x68] ss:$16 sps:$4 sm:$0xff]  }
 0x2fd   :  { %14912 = vst [vmem:[#allocation174_spill] sm:$0xff] %v11136_v57  ;;  %14913 = vst [vmem:[#allocation175_spill] sm:$0xff] %v11142_v61 }
 0x2fe   :  { %2230 = vmatpush1.bf16.msra.mxu0 %v11088_v58  ;;  %2283 = vmatpush1.bf16.msra.mxu1 %v11094_v10 }
 0x2ff   :  { %2231 = vmatprep.subr.bf16.mxu0 %v11100_v24  ;;  %2284 = vmatprep.subr.bf16.mxu1 %v11106_v8 }
 0x302   :  { %v8202_v14 = vpop.eup %8201  ;;  %2232 = vmatpush1.bf16.msra.mxu0 %v11112_v0  ;;  %2285 = vmatpush1.bf16.msra.mxu1 %v11118_v55 }
 0x303   :  { %v1942_v11 = vmul.f32 %v8202_v14, %v8200_v30  ;;  %2233 = vmatprep.subr.bf16.mxu0 %v11124_v2  ;;  %2286 = vmatprep.subr.bf16.mxu1 %v11130_v27  ;;  %v11148_v30 = vld [vmem:[%s14414_s2 + $0x84] ss:$16 sps:$4 sm:$0xff]   ;;  %v11154_v14 = vld [vmem:[%s14414_s2 + $0x8c] ss:$16 sps:$4 sm:$0xff]  }
 0x304   :  { %14914 = vst [vmem:[#allocation176_spill] sm:$0xff] %v11148_v30  ;;  %14915 = vst [vmem:[#allocation177_spill] sm:$0xff] %v11154_v14 }
 0x305   :  { %v1944_v51 = vpack.c.bf16 %v1942_v11, %v1941_v47  ;;  %v11162_v47 = vld [vmem:[%s14414_s2 + $0x80] ss:$16 sps:$4 sm:$0xff]   ;;  %v11168_v11 = vld [vmem:[%s14414_s2 + $0x88] ss:$16 sps:$4 sm:$0xff]  }
 0x306   :  { %2234 = vmatpush1.bf16.msra.mxu0 %v11136_v57  ;;  %2287 = vmatpush1.bf16.msra.mxu1 %v11142_v61  ;;  %14916 = vst [vmem:[#allocation178_spill] sm:$0xff] %v11162_v47  ;;  %14917 = vst [vmem:[#allocation179_spill] sm:$0xff] %v11168_v11 }
 0x307   :  { %2148 = vmatmul.mubr.bf16.gmra.mrb[96].mxu0 %v1944_v51  ;;  %2201 = vmatmul.mubr.bf16.gmra.mrb[108].mxu1 %v1944_v51  ;;  %v11174_v51 = vld [vmem:[%s14414_s2 + $0xa4] ss:$16 sps:$4 sm:$0xff]  }
 0x308   :  { %2235 = vmatprep.subr.bf16.mxu0 %v11148_v30  ;;  %2288 = vmatprep.subr.bf16.mxu1 %v11154_v14  ;;  %14918 = vst [vmem:[#allocation180_spill] sm:$0xff] %v11174_v51  ;;  %v11180_v14 = vld [vmem:[%s14414_s2 + $0xac] ss:$16 sps:$4 sm:$0xff]  }
 0x309   :  { %2259 = vmatprep.mubr.bf16.mxu0 %v14876_v22  ;;  %2312 = vmatprep.mubr.bf16.mxu1 %v14876_v22  ;;  %14919 = vst [vmem:[#allocation181_spill] sm:$0xff] %v11180_v14 }
 0x30a   :  { %2236 = vmatpush1.bf16.msra.mxu0 %v11162_v47  ;;  %2289 = vmatpush1.bf16.msra.mxu1 %v11168_v11  ;;  %v11186_v47 = vld [vmem:[%s14414_s2 + $0xa0] ss:$16 sps:$4 sm:$0xff]   ;;  %v11192_v11 = vld [vmem:[%s14414_s2 + $0xa8] ss:$16 sps:$4 sm:$0xff]  }
 0x30b   :  { %2237 = vmatprep.subr.bf16.mxu0 %v11174_v51  ;;  %2290 = vmatprep.subr.bf16.mxu1 %v11180_v14  ;;  %14920 = vst [vmem:[#allocation182_spill] sm:$0xff] %v11186_v47  ;;  %14921 = vst [vmem:[#allocation183_spill] sm:$0xff] %v11192_v11  ;;  %v11198_v51 = vld [vmem:[%s14414_s2 + $0xc4] ss:$16 sps:$4 sm:$0xff]   ;;  %v11204_v14 = vld [vmem:[%s14414_s2 + $0xcc] ss:$16 sps:$4 sm:$0xff]  }
 0x30c   :  { %14922 = vst [vmem:[#allocation184_spill] sm:$0xff] %v11198_v51  ;;  %14923 = vst [vmem:[#allocation185_spill] sm:$0xff] %v11204_v14 }
 0x30e   :  { %2238 = vmatpush1.bf16.msra.mxu0 %v11186_v47  ;;  %2291 = vmatpush1.bf16.msra.mxu1 %v11192_v11  ;;  %v11210_v47 = vld [vmem:[%s14414_s2 + $0xc0] ss:$16 sps:$4 sm:$0xff]   ;;  %v11216_v11 = vld [vmem:[%s14414_s2 + $0xc8] ss:$16 sps:$4 sm:$0xff]  }
 0x30f   :  { %2239 = vmatprep.subr.bf16.mxu0 %v11198_v51  ;;  %2292 = vmatprep.subr.bf16.mxu1 %v11204_v14  ;;  %14924 = vst [vmem:[#allocation186_spill] sm:$0xff] %v11210_v47  ;;  %14925 = vst [vmem:[#allocation187_spill] sm:$0xff] %v11216_v11  ;;  %v11222_v51 = vld [vmem:[%s14414_s2 + $0xe4] ss:$16 sps:$4 sm:$0xff]   ;;  %v11228_v14 = vld [vmem:[%s14414_s2 + $0xec] ss:$16 sps:$4 sm:$0xff]  }
 0x310   :  { %14926 = vst [vmem:[#allocation188_spill] sm:$0xff] %v11222_v51  ;;  %14927 = vst [vmem:[#allocation189_spill] sm:$0xff] %v11228_v14 }
 0x312   :  { %2240 = vmatpush1.bf16.msra.mxu0 %v11210_v47  ;;  %2293 = vmatpush1.bf16.msra.mxu1 %v11216_v11  ;;  %v11234_v47 = vld [vmem:[%s14414_s2 + $0xe0] ss:$16 sps:$4 sm:$0xff]   ;;  %v11240_v11 = vld [vmem:[%s14414_s2 + $0xe8] ss:$16 sps:$4 sm:$0xff]  }
 0x313   :  { %2241 = vmatprep.subr.bf16.mxu0 %v11222_v51  ;;  %2294 = vmatprep.subr.bf16.mxu1 %v11228_v14  ;;  %14928 = vst [vmem:[#allocation190_spill] sm:$0xff] %v11234_v47  ;;  %14929 = vst [vmem:[#allocation191_spill] sm:$0xff] %v11240_v11  ;;  %v11246_v51 = vld [vmem:[%s14416_s4 + $0x4] ss:$16 sps:$4 sm:$0xff]   ;;  %v11252_v14 = vld [vmem:[%s14416_s4 + $0xc] ss:$16 sps:$4 sm:$0xff]  }
 0x314   :  { %14930 = vst [vmem:[#allocation192_spill] sm:$0xff] %v11246_v51  ;;  %14931 = vst [vmem:[#allocation193_spill] sm:$0xff] %v11252_v14 }
 0x316   :  { %2242 = vmatpush1.bf16.msra.mxu0 %v11234_v47  ;;  %2295 = vmatpush1.bf16.msra.mxu1 %v11240_v11  ;;  %v11262_v11 = vld [vmem:[%s14416_s4] ss:$16 sps:$4 sm:$0xff]  }
 0x317   :  { %2447 = vmatprep.subr.bf16.mxu0 %v11246_v51  ;;  %2500 = vmatprep.subr.bf16.mxu1 %v11252_v14  ;;  %14932 = vst [vmem:[#allocation194_spill] sm:$0xff] %v11262_v11  ;;  %v11268_v51 = vld [vmem:[%s14416_s4 + $0x8] ss:$16 sps:$4 sm:$0xff]   ;;  %v11280_v14 = vld [vmem:[%s14416_s4 + $0x2c] ss:$16 sps:$4 sm:$0xff]  }
 0x318   :  { %14933 = vst [vmem:[#allocation195_spill] sm:$0xff] %v11268_v51  ;;  %14935 = vst [vmem:[#allocation197_spill] sm:$0xff] %v11280_v14 }
 0x319   :  { %2260 = vmatmul.mubr.bf16.vlgmr.msra.gmra.mrb[100].mxu0 %v10895_v9  ;;  %2313 = vmatmul.mubr.bf16.vlgmr.msra.gmra.mrb[112].mxu1 %v10895_v9  ;;  %v11274_v9 = vld [vmem:[%s14416_s4 + $0x24] ss:$16 sps:$4 sm:$0xff]  }
 0x31a   :  { %2269 = vmatprep.mubr.bf16.mxu0 %v14876_v22  ;;  %2322 = vmatprep.mubr.bf16.mxu1 %v14876_v22  ;;  %14934 = vst [vmem:[#allocation196_spill] sm:$0xff] %v11274_v9 }
 0x31b   :  { %2448 = vmatpush1.bf16.msra.mxu0 %v11262_v11  ;;  %2501 = vmatpush1.bf16.msra.mxu1 %v11268_v51  ;;  %v11286_v11 = vld [vmem:[%s14416_s4 + $0x20] ss:$16 sps:$4 sm:$0xff]   ;;  %v11292_v51 = vld [vmem:[%s14416_s4 + $0x28] ss:$16 sps:$4 sm:$0xff]  }
 0x31c   :  { %2449 = vmatprep.subr.bf16.mxu0 %v11274_v9  ;;  %2502 = vmatprep.subr.bf16.mxu1 %v11280_v14  ;;  %14936 = vst [vmem:[#allocation198_spill] sm:$0xff] %v11286_v11  ;;  %14937 = vst [vmem:[#allocation199_spill] sm:$0xff] %v11292_v51  ;;  %v11298_v9 = vld [vmem:[%s14416_s4 + $0x44] ss:$16 sps:$4 sm:$0xff]   ;;  %v11304_v14 = vld [vmem:[%s14416_s4 + $0x4c] ss:$16 sps:$4 sm:$0xff]  }
 0x31d   :  { %14938 = vst [vmem:[#allocation200_spill] sm:$0xff] %v11298_v9  ;;  %14939 = vst [vmem:[#allocation201_spill] sm:$0xff] %v11304_v14 }
 0x31f   :  { %2450 = vmatpush1.bf16.msra.mxu0 %v11286_v11  ;;  %2503 = vmatpush1.bf16.msra.mxu1 %v11292_v51  ;;  %v11314_v51 = vld [vmem:[%s14416_s4 + $0x40] ss:$16 sps:$4 sm:$0xff]   ;;  %v792_v11 = vadd.f32 %v10467_v44, %v10861_v63 }
 0x320   :  { %2451 = vmatprep.subr.bf16.mxu0 %v11298_v9  ;;  %2504 = vmatprep.subr.bf16.mxu1 %v11304_v14  ;;  %14940 = vst [vmem:[#allocation202_spill] sm:$0xff] %v11314_v51  ;;  %v11320_v9 = vld [vmem:[%s14416_s4 + $0x48] ss:$16 sps:$4 sm:$0xff]   ;;  %v11332_v14 = vld [vmem:[%s14416_s4 + $0x6c] ss:$16 sps:$4 sm:$0xff]  }
 0x321   :  { %2270 = vmatmul.mubr.bf16.gmra.mrb[104].mxu0 %v10901_v34  ;;  %2323 = vmatmul.mubr.bf16.gmra.mrb[116].mxu1 %v10901_v34  ;;  %14941 = vst [vmem:[#allocation203_spill] sm:$0xff] %v11320_v9  ;;  %v11326_v34 = vld [vmem:[%s14416_s4 + $0x64] ss:$16 sps:$4 sm:$0xff]   ;;  %14943 = vst [vmem:[#allocation205_spill] sm:$0xff] %v11332_v14 }
 0x322   :  { %2479 = vmatprep.mubr.bf16.mxu0 %v14876_v22  ;;  %2532 = vmatprep.mubr.bf16.mxu1 %v14876_v22  ;;  %14942 = vst [vmem:[#allocation204_spill] sm:$0xff] %v11326_v34 }
 0x323   :  { %2452 = vmatpush1.bf16.msra.mxu0 %v11314_v51  ;;  %2505 = vmatpush1.bf16.msra.mxu1 %v11320_v9  ;;  %v11338_v51 = vld [vmem:[%s14416_s4 + $0x60] ss:$16 sps:$4 sm:$0xff]   ;;  %v11344_v9 = vld [vmem:[%s14416_s4 + $0x68] ss:$16 sps:$4 sm:$0xff]  }
 0x324   :  { %2453 = vmatprep.subr.bf16.mxu0 %v11326_v34  ;;  %2506 = vmatprep.subr.bf16.mxu1 %v11332_v14  ;;  %14944 = vst [vmem:[#allocation206_spill] sm:$0xff] %v11338_v51  ;;  %14945 = vst [vmem:[#allocation207_spill] sm:$0xff] %v11344_v9  ;;  %v11350_v34 = vld [vmem:[%s14416_s4 + $0x84] ss:$16 sps:$4 sm:$0xff]   ;;  %v11356_v14 = vld [vmem:[%s14416_s4 + $0x8c] ss:$16 sps:$4 sm:$0xff]  }
 0x325   :  { %14946 = vst [vmem:[#allocation208_spill] sm:$0xff] %v11350_v34  ;;  %14947 = vst [vmem:[#allocation209_spill] sm:$0xff] %v11356_v14 }
 0x327   :  { %2454 = vmatpush1.bf16.msra.mxu0 %v11338_v51  ;;  %2507 = vmatpush1.bf16.msra.mxu1 %v11344_v9  ;;  %v11362_v51 = vld [vmem:[%s14416_s4 + $0x80] ss:$16 sps:$4 sm:$0xff]   ;;  %v11368_v9 = vld [vmem:[%s14416_s4 + $0x88] ss:$16 sps:$4 sm:$0xff]  }
 0x328   :  { %2455 = vmatprep.subr.bf16.mxu0 %v11350_v34  ;;  %2508 = vmatprep.subr.bf16.mxu1 %v11356_v14  ;;  %14948 = vst [vmem:[#allocation210_spill] sm:$0xff] %v11362_v51  ;;  %14949 = vst [vmem:[#allocation211_spill] sm:$0xff] %v11368_v9  ;;  %v11374_v34 = vld [vmem:[%s14416_s4 + $0xa4] ss:$16 sps:$4 sm:$0xff]   ;;  %v11380_v14 = vld [vmem:[%s14416_s4 + $0xac] ss:$16 sps:$4 sm:$0xff]  }
 0x329   :  { %14950 = vst [vmem:[#allocation212_spill] sm:$0xff] %v11374_v34  ;;  %14951 = vst [vmem:[#allocation213_spill] sm:$0xff] %v11380_v14 }
 0x32b   :  { %2456 = vmatpush1.bf16.msra.mxu0 %v11362_v51  ;;  %2509 = vmatpush1.bf16.msra.mxu1 %v11368_v9  ;;  %v11386_v51 = vld [vmem:[%s14416_s4 + $0xa0] ss:$16 sps:$4 sm:$0xff]   ;;  %v11392_v9 = vld [vmem:[%s14416_s4 + $0xa8] ss:$16 sps:$4 sm:$0xff]  }
 0x32c   :  { %2457 = vmatprep.subr.bf16.mxu0 %v11374_v34  ;;  %2510 = vmatprep.subr.bf16.mxu1 %v11380_v14  ;;  %14952 = vst [vmem:[#allocation214_spill] sm:$0xff] %v11386_v51  ;;  %14953 = vst [vmem:[#allocation215_spill] sm:$0xff] %v11392_v9  ;;  %v11398_v34 = vld [vmem:[%s14416_s4 + $0xc4] ss:$16 sps:$4 sm:$0xff]   ;;  %v11404_v14 = vld [vmem:[%s14416_s4 + $0xcc] ss:$16 sps:$4 sm:$0xff]  }
 0x32d   :  { %14954 = vst [vmem:[#allocation216_spill] sm:$0xff] %v11398_v34  ;;  %14955 = vst [vmem:[#allocation217_spill] sm:$0xff] %v11404_v14 }
 0x32f   :  { %2458 = vmatpush1.bf16.msra.mxu0 %v11386_v51  ;;  %2511 = vmatpush1.bf16.msra.mxu1 %v11392_v9  ;;  %v11410_v51 = vld [vmem:[%s14416_s4 + $0xc0] ss:$16 sps:$4 sm:$0xff]   ;;  %v11416_v9 = vld [vmem:[%s14416_s4 + $0xc8] ss:$16 sps:$4 sm:$0xff]  }
 0x330   :  { %2459 = vmatprep.subr.bf16.mxu0 %v11398_v34  ;;  %2512 = vmatprep.subr.bf16.mxu1 %v11404_v14  ;;  %14956 = vst [vmem:[#allocation218_spill] sm:$0xff] %v11410_v51  ;;  %14957 = vst [vmem:[#allocation219_spill] sm:$0xff] %v11416_v9  ;;  %v11422_v34 = vld [vmem:[%s14416_s4 + $0xe4] ss:$16 sps:$4 sm:$0xff]   ;;  %v11428_v14 = vld [vmem:[%s14416_s4 + $0xec] ss:$16 sps:$4 sm:$0xff]  }
 0x331   :  { %14958 = vst [vmem:[#allocation220_spill] sm:$0xff] %v11422_v34  ;;  %14959 = vst [vmem:[#allocation221_spill] sm:$0xff] %v11428_v14 }
 0x333   :  { %2460 = vmatpush1.bf16.msra.mxu0 %v11410_v51  ;;  %2513 = vmatpush1.bf16.msra.mxu1 %v11416_v9  ;;  %v11434_v51 = vld [vmem:[%s14416_s4 + $0xe0] ss:$16 sps:$4 sm:$0xff]   ;;  %v11440_v9 = vld [vmem:[%s14416_s4 + $0xe8] ss:$16 sps:$4 sm:$0xff]  }
 0x334   :  { %2461 = vmatprep.subr.bf16.mxu0 %v11422_v34  ;;  %2514 = vmatprep.subr.bf16.mxu1 %v11428_v14  ;;  %14960 = vst [vmem:[#allocation222_spill] sm:$0xff] %v11434_v51  ;;  %14961 = vst [vmem:[#allocation223_spill] sm:$0xff] %v11440_v9  ;;  %v485_v14 = vadd.f32 %v10441_v31, %v10804_v20  ;;  %v790_v34 = vadd.f32 %v10463_v42, %v10856_v12 }
 0x335   :  { %v493_v42 = vadd.f32 %v10453_v37, %v10813_v15  ;;  %v497_v37 = vadd.f32 %v10457_v39, %v10804_v20  ;;  %v808_v39 = vadd.f32 %v10487_v54, %v10856_v12 }
 0x337   :  { %2462 = vmatpush1.bf16.msra.mxu0 %v11434_v51  ;;  %2515 = vmatpush1.bf16.msra.mxu1 %v11440_v9  ;;  %v487_v51 = vadd.f32 %v10445_v33, %v10813_v15  ;;  %v491_v9 = vadd.f32 %v10449_v35, %v10804_v20  ;;  %v798_v33 = vadd.f32 %v10475_v48, %v10861_v63 }
 0x338   :  { %2667 = vmatprep.subr.bf16.mxu0 %v10907_v5  ;;  %2720 = vmatprep.subr.bf16.mxu1 %v10909_v21  ;;  %v796_v5 = vadd.f32 %v10471_v46, %v10856_v12  ;;  %v802_v48 = vadd.f32 %v10479_v50, %v10856_v12 }
 0x3ec   :  { %v2261_v47 = vpop.f32.mrb[100].mxu0  ;;  %v2314_v30 = vpop.f32.mrb[112].mxu1 }
 0x3ed   :  { %v2333_v21 = vadd.f32 %v2261_v47, %v485_v14  ;;  %v2335_v61 = vadd.f32 %v2314_v30, %v790_v34  ;;  %v2263_v31 = vpop.f32.mrb[101].mxu0  ;;  %v2316_v57 = vpop.f32.mrb[113].mxu1 }
 0x3ee   :  { %v2334_v27 = vadd.f32 %v2263_v31, %v487_v51  ;;  %v2336_v44 = vadd.f32 %v2316_v57, %v792_v11  ;;  %v2265_v2 = vpop.f32.mrb[102].mxu0  ;;  %v2318_v55 = vpop.f32.mrb[114].mxu1  ;;  %v499_v57 = vadd.f32 %v10461_v41, %v10813_v15 }
 0x3ef   :  { %v7468_v0 = vmul.f32 -1.442695, %v2333_v21  ;;  %v2337_v8 = vadd.f32 %v2265_v2, %v491_v9  ;;  %v2339_v35 = vadd.f32 %v2318_v55, %v796_v5  ;;  %v2267_v24 = vpop.f32.mrb[103].mxu0  ;;  %v2320_v10 = vpop.f32.mrb[115].mxu1  ;;  %v503_v55 = vadd.f32 %v10465_v43, %v10804_v20 }
 0x3f0   :  { %v7469_v46 = vmul.f32 -1.442695, %v2334_v27  ;;  %v2338_v14 = vadd.f32 %v2267_v24, %v493_v42  ;;  %v2340_v30 = vadd.f32 %v2320_v10, %v798_v33  ;;  %v804_v24 = vadd.f32 %v10483_v52, %v10861_v63 }
 0x3f1   :  { %8203 = vpow2.f32 %v7468_v0  ;;  %v7471_v47 = vmul.f32 -1.442695, %v2337_v8  ;;  %v505_v0 = vadd.f32 %v10469_v45, %v10813_v15  ;;  %v7470_v41 = vmul.f32 -1.442695, %v2335_v61 }
 0x3f2   :  { %v7472_v34 = vmul.f32 -1.442695, %v2338_v14  ;;  %8205 = vpow2.f32 %v7469_v46  ;;  %v810_v52 = vadd.f32 %v10491_v56, %v10861_v63  ;;  %v7473_v14 = vmul.f32 -1.442695, %v2339_v35 }
 0x3f3   :  { %8207 = vpow2.f32 %v7471_v47 }
 0x3f4   :  { %v2271_v10 = vpop.f32.mrb[104].mxu0  ;;  %v2324_v8 = vpop.f32.mrb[116].mxu1  ;;  %8209 = vpow2.f32 %v7472_v34 }
 0x3f5   :  { %v2341_v50 = vadd.f32 %v2271_v10, %v497_v37  ;;  %v2343_v2 = vadd.f32 %v2324_v8, %v802_v48  ;;  %v2273_v27 = vpop.f32.mrb[105].mxu0  ;;  %v2326_v11 = vpop.f32.mrb[117].mxu1  ;;  %8211 = vtanh.f32 %v2336_v44 }
 0x3f6   :  { %v2342_v51 = vadd.f32 %v2273_v27, %v499_v57  ;;  %v2344_v43 = vadd.f32 %v2326_v11, %v804_v24  ;;  %v2275_v9 = vpop.f32.mrb[106].mxu0  ;;  %v2328_v5 = vpop.f32.mrb[118].mxu1 }
 0x3f7   :  { %v7474_v21 = vmul.f32 -1.442695, %v2341_v50  ;;  %v2345_v31 = vadd.f32 %v2275_v9, %v503_v55  ;;  %v2277_v42 = vpop.f32.mrb[107].mxu0  ;;  %v2330_v45 = vpop.f32.mrb[119].mxu1  ;;  %v2347_v54 = vadd.f32 %v2328_v5, %v808_v39  ;;  %v7476_v9 = vmul.f32 -1.442695, %v2343_v2 }
 0x3f8   :  { %v7475_v33 = vmul.f32 -1.442695, %v2342_v51  ;;  %v2346_v46 = vadd.f32 %v2277_v42, %v505_v0  ;;  %v2348_v61 = vadd.f32 %v2330_v45, %v810_v52 }
 0x3f9   :  { %8213 = vpow2.f32 %v7474_v21  ;;  %v7477_v47 = vmul.f32 -1.442695, %v2345_v31  ;;  %v7479_v21 = vmul.f32 -1.442695, %v2347_v54 }
 0x3fa   :  { %8215 = vpow2.f32 %v7470_v41  ;;  %v7478_v24 = vmul.f32 -1.442695, %v2346_v46 }
 0x3fb   :  { %v8204_v34 = vpop.eup %8203  ;;  %8217 = vpow2.f32 %v7475_v33 }
 0x3fc   :  { %v2385_v37 = vadd.f32 1.0, %v8204_v34  ;;  %8219 = vpow2.f32 %v7477_v47  ;;  %v8206_v48 = vpop.eup %8205 }
 0x3fd   :  { %8221 = vpow2.f32 %v7473_v14  ;;  %v8208_v56 = vpop.eup %8207  ;;  %v2386_v57 = vadd.f32 1.0, %v8206_v48 }
 0x3fe   :  { %8223 = vrcp.f32 %v2385_v37  ;;  %v2388_v55 = vadd.f32 1.0, %v8208_v56  ;;  %v8210_v44 = vpop.eup %8209 }
 0x3ff   :  { %8225 = vtanh.f32 %v2340_v30  ;;  %v2389_v35 = vadd.f32 1.0, %v8210_v44  ;;  %v8212_v10 = vpop.eup %8211 }
 0x400   :  { %8227 = vrcp.f32 %v2386_v57 }
 0x401   :  { %8229 = vrcp.f32 %v2388_v55 }
 0x402   :  { %8231 = vrcp.f32 %v2389_v35 }
 0x403   :  { %v8214_v8 = vpop.eup %8213  ;;  %8233 = vpow2.f32 %v7478_v24 }
 0x404   :  { %v8216_v0 = vpop.eup %8215  ;;  %v2391_v39 = vadd.f32 1.0, %v8214_v8  ;;  %8235 = vtanh.f32 %v2344_v43 }
 0x405   :  { %v8218_v50 = vpop.eup %8217  ;;  %v2387_v42 = vadd.f32 1.0, %v8216_v0 }
 0x406   :  { %v8220_v27 = vpop.eup %8219  ;;  %8237 = vrcp.f32 %v2391_v39  ;;  %v2392_v11 = vadd.f32 1.0, %v8218_v50 }
 0x407   :  { %v8222_v41 = vpop.eup %8221  ;;  %v2394_v51 = vadd.f32 1.0, %v8220_v27  ;;  %8239 = vtanh.f32 %v2348_v61 }
 0x408   :  { %v8224_v30 = vpop.eup %8223  ;;  %8241 = vrcp.f32 %v2392_v11  ;;  %v2390_v46 = vadd.f32 1.0, %v8222_v41 }
 0x409   :  { %v8226_v5 = vpop.eup %8225  ;;  %v2429_v52 = vmul.f32 %v8224_v30, %v8212_v10  ;;  %8243 = vrcp.f32 %v2394_v51 }
 0x40a   :  { %v8228_v31 = vpop.eup %8227  ;;  %8245 = vpow2.f32 %v7476_v9 }
 0x40b   :  { %v8230_v45 = vpop.eup %8229  ;;  %v2425_v33 = vmul.f32 %v8228_v31, %v10883_v29  ;;  %8247 = vpow2.f32 %v7479_v21 }
 0x40c   :  { %v2430_v43 = vmul.f32 %v8230_v45, %v8226_v5  ;;  %v8232_v14 = vpop.eup %8231  ;;  %8249 = vrcp.f32 %v2387_v42  ;;  %v14968_v45 = vld [vmem:[#allocation149_spill] sm:$0xff] }
 0x40d   :  { %v11478_v47 = vadd.f32 %v2429_v52, %v2425_v33  ;;  %v8234_v61 = vpop.eup %8233  ;;  %v2426_v2 = vmul.f32 %v8232_v14, %v10886_v25  ;;  %8251 = vrcp.f32 %v2390_v46  ;;  %v14970_v33 = vld [vmem:[#allocation151_spill] sm:$0xff]  ;;  %v14971_v46 = vld [vmem:[#allocation152_spill] sm:$0xff]  ;;  %v14973_v14 = vld [vmem:[#allocation154_spill] sm:$0xff] }
 0x40e   :  { %v8236_v34 = vpop.eup %8235  ;;  %v2395_v37 = vadd.f32 1.0, %v8234_v61  ;;  %v14974_v61 = vld [vmem:[#allocation155_spill] sm:$0xff] }
 0x40f   :  { %8253 = vtanh.f32 %v11478_v47  ;;  %v11482_v48 = vadd.f32 %v2430_v43, %v2426_v2  ;;  %v14972_v43 = vld [vmem:[#allocation153_spill] sm:$0xff]  ;;  %v14975_v2 = vld [vmem:[#allocation156_spill] sm:$0xff] }
 0x410   :  { %v8238_v54 = vpop.eup %8237  ;;  %8255 = vrcp.f32 %v2395_v37  ;;  %v14977_v37 = vld [vmem:[#allocation158_spill] sm:$0xff] }
 0x411   :  { %v8240_v29 = vpop.eup %8239  ;;  %v2431_v56 = vmul.f32 %v8238_v54, %v8236_v34  ;;  %8257 = vtanh.f32 %v11482_v48  ;;  %v14976_v34 = vld [vmem:[#allocation157_spill] sm:$0xff]  ;;  %v14978_v54 = vld [vmem:[#allocation159_spill] sm:$0xff] }
 0x412   :  { %v8242_v57 = vpop.eup %8241 }
 0x413   :  { %v8244_v55 = vpop.eup %8243  ;;  %v2427_v44 = vmul.f32 %v8242_v57, %v10889_v26  ;;  %v14981_v57 = vld [vmem:[#allocation162_spill] sm:$0xff] }
 0x414   :  { %v2432_v24 = vmul.f32 %v8244_v55, %v8240_v29  ;;  %v8246_v25 = vpop.eup %8245  ;;  %v14979_v29 = vld [vmem:[#allocation160_spill] sm:$0xff]  ;;  %v14982_v55 = vld [vmem:[#allocation163_spill] sm:$0xff] }
 0x415   :  { %v11486_v35 = vadd.f32 %v2431_v56, %v2427_v44  ;;  %v8248_v10 = vpop.eup %8247  ;;  %v2393_v39 = vadd.f32 1.0, %v8246_v25  ;;  %v14980_v56 = vld [vmem:[#allocation161_spill] sm:$0xff]  ;;  %v14983_v44 = vld [vmem:[#allocation164_spill] sm:$0xff] }
 0x416   :  { %v8250_v8 = vpop.eup %8249  ;;  %v2396_v11 = vadd.f32 1.0, %v8248_v10 }
 0x417   :  { %v8252_v0 = vpop.eup %8251  ;;  %8259 = vrcp.f32 %v2393_v39 }
 0x418   :  { %8261 = vtanh.f32 %v11486_v35 }
 0x419   :  { %v8254_v50 = vpop.eup %8253  ;;  %8263 = vrcp.f32 %v2396_v11 }
 0x41a   :  { %v8256_v27 = vpop.eup %8255  ;;  %v2441_v30 = vmul.f32 %v8254_v50, %v8250_v8  ;;  %v14985_v8 = vld [vmem:[#allocation166_spill] sm:$0xff] }
 0x41b   :  { %v8258_v41 = vpop.eup %8257  ;;  %v2428_v51 = vmul.f32 %v8256_v27, %v10892_v28 }
 0x41c   :  { %v2442_v9 = vmul.f32 %v8258_v41, %v8252_v0 }
 0x41d   :  { %v11490_v26 = vadd.f32 %v2432_v24, %v2428_v51  ;;  %v14984_v24 = vld [vmem:[#allocation165_spill] sm:$0xff] }
 0x41e   :  { %v11492_v5 = vpack.c.bf16 %v2442_v9, %v2441_v30 }
 0x41f   :  { %8265 = vtanh.f32 %v11490_v26 }
 0x420   :  { %2480 = vmatmul.mubr.bf16.vlgmr.msra.gmra.mrb[92].mxu0 %v11492_v5  ;;  %2533 = vmatmul.mubr.bf16.vlgmr.msra.gmra.mrb[104].mxu1 %v11492_v5 }
 0x421   :  { %2489 = vmatprep.mubr.bf16.mxu0 %v14876_v22  ;;  %2542 = vmatprep.mubr.bf16.mxu1 %v14876_v22  ;;  %v8260_v28 = vpop.eup %8259 }
 0x422   :  { %2668 = vmatpush1.bf16.msra.mxu0 %v10911_v18  ;;  %2721 = vmatpush1.bf16.msra.mxu1 %v10913_v6  ;;  %v8262_v52 = vpop.eup %8261  ;;  %v14962_v6 = vld [vmem:[#allocation143_spill] sm:$0xff] }
 0x423   :  { %2669 = vmatprep.subr.bf16.mxu0 %v10919_v36  ;;  %2722 = vmatprep.subr.bf16.mxu1 %v10921_v19  ;;  %v8264_v21 = vpop.eup %8263  ;;  %v2443_v42 = vmul.f32 %v8262_v52, %v8260_v28  ;;  %v14963_v36 = vld [vmem:[#allocation144_spill] sm:$0xff]  ;;  %v14964_v19 = vld [vmem:[#allocation145_spill] sm:$0xff] }
 0x426   :  { %2670 = vmatpush1.bf16.msra.mxu0 %v10923_v38  ;;  %2723 = vmatpush1.bf16.msra.mxu1 %v10925_v7  ;;  %v14965_v7 = vld [vmem:[#allocation146_spill] sm:$0xff] }
 0x427   :  { %2671 = vmatprep.subr.bf16.mxu0 %v10931_v23  ;;  %2724 = vmatprep.subr.bf16.mxu1 %v10933_v3  ;;  %v14966_v23 = vld [vmem:[#allocation147_spill] sm:$0xff]  ;;  %v14967_v3 = vld [vmem:[#allocation148_spill] sm:$0xff] }
 0x429   :  { %v8266_v31 = vpop.eup %8265 }
 0x42a   :  { %v2444_v18 = vmul.f32 %v8266_v31, %v8264_v21  ;;  %2672 = vmatpush1.bf16.msra.mxu0 %v10935_v40  ;;  %2725 = vmatpush1.bf16.msra.mxu1 %v14962_v6  ;;  %v14969_v40 = vld [vmem:[#allocation150_spill] sm:$0xff] }
 0x42b   :  { %2673 = vmatprep.subr.bf16.mxu0 %v14963_v36  ;;  %2726 = vmatprep.subr.bf16.mxu1 %v14964_v19 }
 0x42c   :  { %v11511_v38 = vpack.c.bf16 %v2444_v18, %v2443_v42 }
 0x42e   :  { %2490 = vmatmul.mubr.bf16.gmra.mrb[96].mxu0 %v11511_v38  ;;  %2543 = vmatmul.mubr.bf16.gmra.mrb[108].mxu1 %v11511_v38 }
 0x42f   :  { %2674 = vmatpush1.bf16.msra.mxu0 %v14965_v7  ;;  %2727 = vmatpush1.bf16.msra.mxu1 %v14966_v23 }
 0x430   :  { %2675 = vmatprep.subr.bf16.mxu0 %v14967_v3  ;;  %2728 = vmatprep.subr.bf16.mxu1 %v14968_v45 }
 0x431   :  { %2699 = vmatprep.mubr.bf16.mxu0 %v14876_v22  ;;  %2752 = vmatprep.mubr.bf16.mxu1 %v14876_v22 }
 0x433   :  { %2676 = vmatpush1.bf16.msra.mxu0 %v14969_v40  ;;  %2729 = vmatpush1.bf16.msra.mxu1 %v14970_v33 }
 0x434   :  { %2677 = vmatprep.subr.bf16.mxu0 %v14971_v46  ;;  %2730 = vmatprep.subr.bf16.mxu1 %v14972_v43 }
 0x437   :  { %2678 = vmatpush1.bf16.msra.mxu0 %v14973_v14  ;;  %2731 = vmatpush1.bf16.msra.mxu1 %v14974_v61 }
 0x438   :  { %2679 = vmatprep.subr.bf16.mxu0 %v14975_v2  ;;  %2732 = vmatprep.subr.bf16.mxu1 %v14976_v34 }
 0x43b   :  { %2680 = vmatpush1.bf16.msra.mxu0 %v14977_v37  ;;  %2733 = vmatpush1.bf16.msra.mxu1 %v14978_v54 }
 0x43c   :  { %2681 = vmatprep.subr.bf16.mxu0 %v14979_v29  ;;  %2734 = vmatprep.subr.bf16.mxu1 %v14980_v56 }
 0x43f   :  { %2682 = vmatpush1.bf16.msra.mxu0 %v14981_v57  ;;  %2735 = vmatpush1.bf16.msra.mxu1 %v14982_v55 }
 0x440   :  { %2789 = vmatprep.subr.bf16.mxu0 %v14983_v44  ;;  %2842 = vmatprep.subr.bf16.mxu1 %v14984_v24 }
 0x4f3   :  { %v2481_v25 = vpop.f32.mrb[92].mxu0  ;;  %v2534_v10 = vpop.f32.mrb[104].mxu1 }
 0x4f4   :  { %v2553_v0 = vadd.f32 %v2481_v25, %v14985_v8  ;;  %v2483_v39 = vpop.f32.mrb[93].mxu0  ;;  %v2536_v50 = vpop.f32.mrb[105].mxu1  ;;  %v2555_v42 = vadd.f32 %v2534_v10, %v11026_v13 }
 0x4f5   :  { %v2554_v27 = vadd.f32 %v2483_v39, %v11021_v53  ;;  %v2485_v11 = vpop.f32.mrb[94].mxu0  ;;  %v2538_v41 = vpop.f32.mrb[106].mxu1  ;;  %v2556_v7 = vadd.f32 %v2536_v50, %v11032_v32 }
 0x4f6   :  { %v7480_v51 = vmul.f32 -1.442695, %v2553_v0  ;;  %v2557_v30 = vadd.f32 %v2485_v11, %v14985_v8  ;;  %v2487_v9 = vpop.f32.mrb[95].mxu0  ;;  %v2540_v28 = vpop.f32.mrb[107].mxu1  ;;  %v2559_v6 = vadd.f32 %v2538_v41, %v11026_v13  ;;  %v7482_v36 = vmul.f32 -1.442695, %v2555_v42 }
 0x4f7   :  { %v7481_v52 = vmul.f32 -1.442695, %v2554_v27  ;;  %v2558_v21 = vadd.f32 %v2487_v9, %v11021_v53  ;;  %v2560_v40 = vadd.f32 %v2540_v28, %v11032_v32 }
 0x4f8   :  { %8267 = vpow2.f32 %v7480_v51  ;;  %v7483_v31 = vmul.f32 -1.442695, %v2557_v30  ;;  %v7485_v19 = vmul.f32 -1.442695, %v2559_v6 }
 0x4f9   :  { %v7484_v18 = vmul.f32 -1.442695, %v2558_v21  ;;  %8269 = vpow2.f32 %v7481_v52 }
 0x4fa   :  { %8271 = vpow2.f32 %v7483_v31 }
 0x4fb   :  { %8273 = vpow2.f32 %v7484_v18 }
 0x4fc   :  { %8275 = vpow2.f32 %v7482_v36 }
 0x4fd   :  { %8277 = vpow2.f32 %v7485_v19 }
 0x4fe   :  { %8279 = vtanh.f32 %v2556_v7 }
 0x501   :  { %v2491_v23 = vpop.f32.mrb[96].mxu0  ;;  %v2544_v3 = vpop.f32.mrb[108].mxu1 }
 0x502   :  { %v8268_v45 = vpop.eup %8267  ;;  %v2493_v33 = vpop.f32.mrb[97].mxu0  ;;  %v2561_v14 = vadd.f32 %v2491_v23, %v14985_v8  ;;  %v2563_v41 = vadd.f32 %v2544_v3, %v11026_v13 }
 0x503   :  { %v2546_v46 = vpop.f32.mrb[109].mxu1  ;;  %v2605_v43 = vadd.f32 1.0, %v8268_v45  ;;  %v2495_v61 = vpop.f32.mrb[98].mxu0  ;;  %v2562_v56 = vadd.f32 %v2493_v33, %v11021_v53 }
 0x504   :  { %v2548_v2 = vpop.f32.mrb[110].mxu1  ;;  %v8270_v34 = vpop.eup %8269  ;;  %v7486_v24 = vmul.f32 -1.442695, %v2561_v14  ;;  %v2565_v25 = vadd.f32 %v2495_v61, %v14985_v8  ;;  %v7488_v18 = vmul.f32 -1.442695, %v2563_v41  ;;  %v2564_v36 = vadd.f32 %v2546_v46, %v11032_v32 }
 0x505   :  { %v2497_v37 = vpop.f32.mrb[99].mxu0  ;;  %v8272_v54 = vpop.eup %8271  ;;  %8281 = vrcp.f32 %v2605_v43  ;;  %v2606_v29 = vadd.f32 1.0, %v8270_v34  ;;  %v7487_v0 = vmul.f32 -1.442695, %v2562_v56  ;;  %v2567_v28 = vadd.f32 %v2548_v2, %v11026_v13 }
 0x506   :  { %v2550_v57 = vpop.f32.mrb[111].mxu1  ;;  %v2608_v55 = vadd.f32 1.0, %v8272_v54  ;;  %8283 = vtanh.f32 %v2560_v40  ;;  %v8274_v44 = vpop.eup %8273  ;;  %v2566_v39 = vadd.f32 %v2497_v37, %v11021_v53  ;;  %v7489_v27 = vmul.f32 -1.442695, %v2565_v25 }
 0x507   :  { %8285 = vrcp.f32 %v2606_v29  ;;  %v2609_v10 = vadd.f32 1.0, %v8274_v44  ;;  %v8276_v50 = vpop.eup %8275  ;;  %v7491_v23 = vmul.f32 -1.442695, %v2567_v28  ;;  %v2568_v46 = vadd.f32 %v2550_v57, %v11032_v32 }
 0x508   :  { %8287 = vrcp.f32 %v2608_v55  ;;  %v8278_v11 = vpop.eup %8277  ;;  %v7490_v51 = vmul.f32 -1.442695, %v2566_v39  ;;  %v2607_v9 = vadd.f32 1.0, %v8276_v50 }
 0x509   :  { %8289 = vrcp.f32 %v2609_v10  ;;  %v8280_v30 = vpop.eup %8279  ;;  %v2610_v21 = vadd.f32 1.0, %v8278_v11 }
 0x50a   :  { %8291 = vpow2.f32 %v7486_v24 }
 0x50b   :  { %8293 = vpow2.f32 %v7487_v0 }
 0x50c   :  { %8295 = vpow2.f32 %v7489_v27 }
 0x50d   :  { %8297 = vpow2.f32 %v7490_v51 }
 0x50e   :  { %8299 = vrcp.f32 %v2607_v9 }
 0x50f   :  { %v8282_v52 = vpop.eup %8281  ;;  %8301 = vrcp.f32 %v2610_v21 }
 0x510   :  { %v8284_v31 = vpop.eup %8283  ;;  %v2649_v42 = vmul.f32 %v8282_v52, %v8280_v30  ;;  %8303 = vpow2.f32 %v7488_v18  ;;  %v14991_v18 = vld [vmem:[#allocation172_spill] sm:$0xff] }
 0x511   :  { %v8286_v6 = vpop.eup %8285  ;;  %8305 = vtanh.f32 %v2564_v36 }
 0x512   :  { %v8288_v19 = vpop.eup %8287  ;;  %v2645_v7 = vmul.f32 %v8286_v6, %v11047_v16  ;;  %8307 = vpow2.f32 %v7491_v23  ;;  %v14992_v6 = vld [vmem:[#allocation173_spill] sm:$0xff]  ;;  %v14994_v23 = vld [vmem:[#allocation175_spill] sm:$0xff] }
 0x513   :  { %v2650_v3 = vmul.f32 %v8288_v19, %v8284_v31  ;;  %v8290_v45 = vpop.eup %8289 }
 0x514   :  { %v11553_v40 = vadd.f32 %v2649_v42, %v2645_v7  ;;  %v8292_v33 = vpop.eup %8291  ;;  %v2646_v43 = vmul.f32 %v8290_v45, %v11050_v17  ;;  %v14993_v7 = vld [vmem:[#allocation174_spill] sm:$0xff]  ;;  %v14996_v45 = vld [vmem:[#allocation177_spill] sm:$0xff] }
 0x515   :  { %v2611_v14 = vadd.f32 1.0, %v8292_v33  ;;  %v8294_v61 = vpop.eup %8293 }
 0x516   :  { %8309 = vtanh.f32 %v11553_v40  ;;  %v11558_v2 = vadd.f32 %v2650_v3, %v2646_v43  ;;  %v2612_v16 = vadd.f32 1.0, %v8294_v61  ;;  %v8296_v34 = vpop.eup %8295  ;;  %v14995_v3 = vld [vmem:[#allocation176_spill] sm:$0xff]  ;;  %v14998_v61 = vld [vmem:[#allocation179_spill] sm:$0xff] }
 0x517   :  { %8311 = vrcp.f32 %v2611_v14  ;;  %v2614_v37 = vadd.f32 1.0, %v8296_v34  ;;  %v8298_v54 = vpop.eup %8297  ;;  %v14999_v34 = vld [vmem:[#allocation180_spill] sm:$0xff] }
 0x518   :  { %8313 = vtanh.f32 %v11558_v2  ;;  %v8300_v17 = vpop.eup %8299  ;;  %v2615_v29 = vadd.f32 1.0, %v8298_v54  ;;  %v15001_v54 = vld [vmem:[#allocation182_spill] sm:$0xff] }
 0x519   :  { %8315 = vtanh.f32 %v2568_v46  ;;  %v8302_v56 = vpop.eup %8301  ;;  %v14997_v46 = vld [vmem:[#allocation178_spill] sm:$0xff] }
 0x51a   :  { %8317 = vrcp.f32 %v2612_v16  ;;  %v8304_v55 = vpop.eup %8303 }
 0x51b   :  { %8319 = vrcp.f32 %v2614_v37  ;;  %v8306_v57 = vpop.eup %8305  ;;  %v2613_v51 = vadd.f32 1.0, %v8304_v55  ;;  %v15000_v37 = vld [vmem:[#allocation181_spill] sm:$0xff]  ;;  %v15005_v55 = vld [vmem:[#allocation186_spill] sm:$0xff] }
 0x51c   :  { %8321 = vrcp.f32 %v2615_v29  ;;  %v8308_v44 = vpop.eup %8307  ;;  %v15003_v29 = vld [vmem:[#allocation184_spill] sm:$0xff] }
 0x51d   :  { %v2616_v31 = vadd.f32 1.0, %v8308_v44  ;;  %8323 = vrcp.f32 %v2613_v51  ;;  %v15007_v44 = vld [vmem:[#allocation188_spill] sm:$0xff]  ;;  %v15017_v51 = vld [vmem:[#allocation198_spill] sm:$0xff] }
 0x520   :  { %v8310_v24 = vpop.eup %8309 }
 0x521   :  { %v8312_v25 = vpop.eup %8311  ;;  %v2661_v50 = vmul.f32 %v8310_v24, %v8300_v17  ;;  %v15002_v17 = vld [vmem:[#allocation183_spill] sm:$0xff]  ;;  %v15008_v24 = vld [vmem:[#allocation189_spill] sm:$0xff] }
 0x522   :  { %v8314_v10 = vpop.eup %8313  ;;  %v2651_v0 = vmul.f32 %v8312_v25, %v8306_v57  ;;  %v15006_v57 = vld [vmem:[#allocation187_spill] sm:$0xff]  ;;  %v15009_v25 = vld [vmem:[#allocation190_spill] sm:$0xff] }
 0x523   :  { %v8316_v39 = vpop.eup %8315  ;;  %v2662_v27 = vmul.f32 %v8314_v10, %v8302_v56  ;;  %v15004_v56 = vld [vmem:[#allocation185_spill] sm:$0xff]  ;;  %v15010_v10 = vld [vmem:[#allocation191_spill] sm:$0xff] }
 0x524   :  { %v8318_v11 = vpop.eup %8317 }
 0x525   :  { %v8320_v41 = vpop.eup %8319  ;;  %v2647_v30 = vmul.f32 %v8318_v11, %v11053_v49  ;;  %v2665_v9 = vpack.c.bf16 %v2662_v27, %v2661_v50  ;;  %v15013_v50 = vld [vmem:[#allocation194_spill] sm:$0xff]  ;;  %v15014_v27 = vld [vmem:[#allocation195_spill] sm:$0xff]  ;;  %v15015_v11 = vld [vmem:[#allocation196_spill] sm:$0xff] }
 0x526   :  { %v2652_v28 = vmul.f32 %v8320_v41, %v8316_v39  ;;  %v8322_v52 = vpop.eup %8321  ;;  %v15012_v39 = vld [vmem:[#allocation193_spill] sm:$0xff] }
 0x527   :  { %v11562_v21 = vadd.f32 %v2651_v0, %v2647_v30  ;;  %2700 = vmatmul.mubr.bf16.vlgmr.msra.gmra.mrb[108].mxu0 %v2665_v9  ;;  %2753 = vmatmul.mubr.bf16.vlgmr.msra.gmra.mrb[120].mxu1 %v2665_v9  ;;  %v2648_v42 = vmul.f32 %v8322_v52, %v11056_v60  ;;  %v14986_v60 = vld [vmem:[#allocation167_spill] sm:$0xff]  ;;  %v8324_v36 = vpop.eup %8323  ;;  %v15011_v0 = vld [vmem:[#allocation192_spill] sm:$0xff]  ;;  %v15016_v41 = vld [vmem:[#allocation197_spill] sm:$0xff] }
 0x528   :  { %2790 = vmatpush1.bf16.msra.mxu0 %v11062_v1  ;;  %2843 = vmatpush1.bf16.msra.mxu1 %v11068_v62  ;;  %v14987_v1 = vld [vmem:[#allocation168_spill] sm:$0xff]  ;;  %v14988_v62 = vld [vmem:[#allocation169_spill] sm:$0xff]  ;;  %v15018_v30 = vld [vmem:[#allocation199_spill] sm:$0xff] }
 0x529   :  { %2791 = vmatprep.subr.bf16.mxu0 %v11074_v4  ;;  %2844 = vmatprep.subr.bf16.mxu1 %v11080_v59  ;;  %8325 = vtanh.f32 %v11562_v21  ;;  %v11570_v49 = vadd.f32 %v2652_v28, %v2648_v42  ;;  %v14989_v4 = vld [vmem:[#allocation170_spill] sm:$0xff]  ;;  %v14990_v59 = vld [vmem:[#allocation171_spill] sm:$0xff]  ;;  %v15019_v9 = vld [vmem:[#allocation200_spill] sm:$0xff] }
 0x52a   :  { %2709 = vmatprep.mubr.bf16.mxu0 %v14876_v22  ;;  %2762 = vmatprep.mubr.bf16.mxu1 %v14876_v22  ;;  %8327 = vrcp.f32 %v2616_v31  ;;  %v15020_v28 = vld [vmem:[#allocation201_spill] sm:$0xff]  ;;  %v15022_v52 = vld [vmem:[#allocation203_spill] sm:$0xff]  ;;  %v15023_v31 = vld [vmem:[#allocation204_spill] sm:$0xff] }
 0x52b   :  { %8329 = vtanh.f32 %v11570_v49  ;;  %v15024_v42 = vld [vmem:[#allocation205_spill] sm:$0xff] }
 0x52c   :  { %2792 = vmatpush1.bf16.msra.mxu0 %v11088_v58  ;;  %2845 = vmatpush1.bf16.msra.mxu1 %v14986_v60  ;;  %v15025_v60 = vld [vmem:[#allocation206_spill] sm:$0xff] }
 0x52d   :  { %2793 = vmatprep.subr.bf16.mxu0 %v14987_v1  ;;  %2846 = vmatprep.subr.bf16.mxu1 %v14988_v62  ;;  %v15026_v1 = vld [vmem:[#allocation207_spill] sm:$0xff]  ;;  %v15027_v62 = vld [vmem:[#allocation208_spill] sm:$0xff] }
 0x530   :  { %2794 = vmatpush1.bf16.msra.mxu0 %v14989_v4  ;;  %2847 = vmatpush1.bf16.msra.mxu1 %v14990_v59  ;;  %v15028_v4 = vld [vmem:[#allocation209_spill] sm:$0xff]  ;;  %v15030_v59 = vld [vmem:[#allocation211_spill] sm:$0xff] }
 0x531   :  { %2795 = vmatprep.subr.bf16.mxu0 %v14991_v18  ;;  %2848 = vmatprep.subr.bf16.mxu1 %v14992_v6  ;;  %v15031_v18 = vld [vmem:[#allocation212_spill] sm:$0xff]  ;;  %v15032_v6 = vld [vmem:[#allocation213_spill] sm:$0xff] }
 0x533   :  { %v8326_v19 = vpop.eup %8325 }
 0x534   :  { %2796 = vmatpush1.bf16.msra.mxu0 %v14993_v7  ;;  %2849 = vmatpush1.bf16.msra.mxu1 %v14994_v23  ;;  %v8328_v58 = vpop.eup %8327  ;;  %v2663_v43 = vmul.f32 %v8326_v19, %v8324_v36  ;;  %v15033_v36 = vld [vmem:[#allocation214_spill] sm:$0xff]  ;;  %v15034_v19 = vld [vmem:[#allocation215_spill] sm:$0xff]  ;;  %v15035_v7 = vld [vmem:[#allocation216_spill] sm:$0xff] }
 0x535   :  { %2797 = vmatprep.subr.bf16.mxu0 %v14995_v3  ;;  %2850 = vmatprep.subr.bf16.mxu1 %v14996_v45  ;;  %v8330_v33 = vpop.eup %8329  ;;  %v15036_v23 = vld [vmem:[#allocation217_spill] sm:$0xff]  ;;  %v15038_v3 = vld [vmem:[#allocation219_spill] sm:$0xff]  ;;  %v15039_v45 = vld [vmem:[#allocation220_spill] sm:$0xff] }
 0x536   :  { %v2664_v14 = vmul.f32 %v8330_v33, %v8328_v58  ;;  %v15037_v58 = vld [vmem:[#allocation218_spill] sm:$0xff]  ;;  %v15040_v33 = vld [vmem:[#allocation221_spill] sm:$0xff] }
 0x538   :  { %2798 = vmatpush1.bf16.msra.mxu0 %v14997_v46  ;;  %2851 = vmatpush1.bf16.msra.mxu1 %v14998_v61  ;;  %v2666_v16 = vpack.c.bf16 %v2664_v14, %v2663_v43  ;;  %v15041_v43 = vld [vmem:[#allocation222_spill] sm:$0xff]  ;;  %v15042_v14 = vld [vmem:[#allocation223_spill] sm:$0xff] }
 0x539   :  { %2799 = vmatprep.subr.bf16.mxu0 %v14999_v34  ;;  %2852 = vmatprep.subr.bf16.mxu1 %v15000_v37  ;;  %v11643_v46 = vld [vmem:[#allocation7 + $0x4] ss:$16 sps:$4 sm:$0xff]   ;;  %v11646_v61 = vld [vmem:[#allocation7 + $0xc] ss:$16 sps:$4 sm:$0xff]  }
 0x53a   :  { %2710 = vmatmul.mubr.bf16.gmra.mrb[112].mxu0 %v2666_v16  ;;  %2763 = vmatmul.mubr.bf16.gmra.mrb[124].mxu1 %v2666_v16  ;;  %v15043_v16 = vld [vmem:[#allocation19_spill] sm:$0xff]  ;;  %v15044_v37 = vld [vmem:[#allocation25_spill] sm:$0xff] }
 0x53b   :  { %2821 = vmatprep.mubr.bf16.mxu0 %v14876_v22  ;;  %2874 = vmatprep.mubr.bf16.mxu1 %v14876_v22  ;;  %v509_v34 = vadd.f32 %v15043_v16, %v10804_v20 }
 0x53c   :  { %2800 = vmatpush1.bf16.msra.mxu0 %v15001_v54  ;;  %2853 = vmatpush1.bf16.msra.mxu1 %v15002_v17  ;;  %v814_v54 = vadd.f32 %v15044_v37, %v10856_v12  ;;  %v15045_v17 = vld [vmem:[#allocation20_spill] sm:$0xff] }
 0x53d   :  { %2801 = vmatprep.subr.bf16.mxu0 %v15003_v29  ;;  %2854 = vmatprep.subr.bf16.mxu1 %v15004_v56  ;;  %v511_v29 = vadd.f32 %v15045_v17, %v10813_v15  ;;  %v15046_v56 = vld [vmem:[#allocation27_spill] sm:$0xff] }
 0x540   :  { %2802 = vmatpush1.bf16.msra.mxu0 %v15005_v55  ;;  %2855 = vmatpush1.bf16.msra.mxu1 %v15006_v57  ;;  %v816_v55 = vadd.f32 %v15046_v56, %v10861_v63 }
 0x541   :  { %2803 = vmatprep.subr.bf16.mxu0 %v15007_v44  ;;  %2856 = vmatprep.subr.bf16.mxu1 %v15008_v24  ;;  %v15047_v24 = vld [vmem:[#allocation21_spill] sm:$0xff] }
 0x544   :  { %2804 = vmatpush1.bf16.msra.mxu0 %v15009_v25  ;;  %2857 = vmatpush1.bf16.msra.mxu1 %v15010_v10  ;;  %v515_v25 = vadd.f32 %v15047_v24, %v10804_v20  ;;  %v15048_v10 = vld [vmem:[#allocation29_spill] sm:$0xff] }
 0x545   :  { %3009 = vmatprep.subr.bf16.mxu0 %v15011_v0  ;;  %3062 = vmatprep.subr.bf16.mxu1 %v15012_v39  ;;  %v820_v0 = vadd.f32 %v15048_v10, %v10856_v12 }
 0x547   :  { %2822 = vmatmul.mubr.bf16.vlgmr.msra.gmra.mrb[116].mxu0 %v11492_v5  ;;  %2875 = vmatmul.mubr.bf16.vlgmr.msra.gmra.mrb[128].mxu1 %v11492_v5  ;;  %v15021_v5 = vld [vmem:[#allocation202_spill] sm:$0xff] }
 0x548   :  { %2831 = vmatprep.mubr.bf16.mxu0 %v14876_v22  ;;  %2884 = vmatprep.mubr.bf16.mxu1 %v14876_v22 }
 0x549   :  { %3010 = vmatpush1.bf16.msra.mxu0 %v15013_v50  ;;  %3063 = vmatpush1.bf16.msra.mxu1 %v15014_v27 }
 0x54a   :  { %3011 = vmatprep.subr.bf16.mxu0 %v15015_v11  ;;  %3064 = vmatprep.subr.bf16.mxu1 %v15016_v41  ;;  %v15049_v41 = vld [vmem:[#allocation22_spill] sm:$0xff] }
 0x54d   :  { %3012 = vmatpush1.bf16.msra.mxu0 %v15017_v51  ;;  %3065 = vmatpush1.bf16.msra.mxu1 %v15018_v30  ;;  %v517_v51 = vadd.f32 %v15049_v41, %v10813_v15  ;;  %v15050_v30 = vld [vmem:[#allocation31_spill] sm:$0xff] }
 0x54e   :  { %3013 = vmatprep.subr.bf16.mxu0 %v15019_v9  ;;  %3066 = vmatprep.subr.bf16.mxu1 %v15020_v28  ;;  %v822_v9 = vadd.f32 %v15050_v30, %v10861_v63 }
 0x54f   :  { %2832 = vmatmul.mubr.bf16.gmra.mrb[120].mxu0 %v11511_v38  ;;  %2885 = vmatmul.mubr.bf16.gmra.mrb[132].mxu1 %v11511_v38  ;;  %v15029_v38 = vld [vmem:[#allocation210_spill] sm:$0xff] }
 0x550   :  { %3041 = vmatprep.mubr.bf16.mxu0 %v14876_v22  ;;  %3094 = vmatprep.mubr.bf16.mxu1 %v14876_v22 }
 0x551   :  { %3014 = vmatpush1.bf16.msra.mxu0 %v15021_v5  ;;  %3067 = vmatpush1.bf16.msra.mxu1 %v15022_v52 }
 0x552   :  { %3015 = vmatprep.subr.bf16.mxu0 %v15023_v31  ;;  %3068 = vmatprep.subr.bf16.mxu1 %v15024_v42 }
 0x555   :  { %3016 = vmatpush1.bf16.msra.mxu0 %v15025_v60  ;;  %3069 = vmatpush1.bf16.msra.mxu1 %v15026_v1 }
 0x556   :  { %3017 = vmatprep.subr.bf16.mxu0 %v15027_v62  ;;  %3070 = vmatprep.subr.bf16.mxu1 %v15028_v4 }
 0x559   :  { %3018 = vmatpush1.bf16.msra.mxu0 %v15029_v38  ;;  %3071 = vmatpush1.bf16.msra.mxu1 %v15030_v59 }
 0x55a   :  { %3019 = vmatprep.subr.bf16.mxu0 %v15031_v18  ;;  %3072 = vmatprep.subr.bf16.mxu1 %v15032_v6 }
 0x55d   :  { %3020 = vmatpush1.bf16.msra.mxu0 %v15033_v36  ;;  %3073 = vmatpush1.bf16.msra.mxu1 %v15034_v19  ;;  %v15051_v19 = vld [vmem:[#allocation23_spill] sm:$0xff] }
 0x55e   :  { %3021 = vmatprep.subr.bf16.mxu0 %v15035_v7  ;;  %3074 = vmatprep.subr.bf16.mxu1 %v15036_v23  ;;  %v521_v7 = vadd.f32 %v15051_v19, %v10804_v20  ;;  %v15052_v23 = vld [vmem:[#allocation33_spill] sm:$0xff] }
 0x561   :  { %3022 = vmatpush1.bf16.msra.mxu0 %v15037_v58  ;;  %3075 = vmatpush1.bf16.msra.mxu1 %v15038_v3  ;;  %v826_v58 = vadd.f32 %v15052_v23, %v10856_v12  ;;  %v15053_v3 = vld [vmem:[#allocation24_spill] sm:$0xff] }
 0x562   :  { %3023 = vmatprep.subr.bf16.mxu0 %v15039_v45  ;;  %3076 = vmatprep.subr.bf16.mxu1 %v15040_v33  ;;  %v523_v45 = vadd.f32 %v15053_v3, %v10813_v15  ;;  %v15054_v33 = vld [vmem:[#allocation26_spill] sm:$0xff] }
 0x565   :  { %3024 = vmatpush1.bf16.msra.mxu0 %v15041_v43  ;;  %3077 = vmatpush1.bf16.msra.mxu1 %v15042_v14  ;;  %v527_v43 = vadd.f32 %v15054_v33, %v10804_v20  ;;  %v15055_v14 = vld [vmem:[#allocation35_spill] sm:$0xff] }
 0x566   :  { %3229 = vmatprep.subr.bf16.mxu0 %v11643_v46  ;;  %3282 = vmatprep.subr.bf16.mxu1 %v11646_v61  ;;  %v828_v16 = vadd.f32 %v15055_v14, %v10861_v63 }
 0x61a   :  { %v2823_v57 = vpop.f32.mrb[116].mxu0  ;;  %v2876_v44 = vpop.f32.mrb[128].mxu1 }
 0x61b   :  { %v2895_v39 = vadd.f32 %v2823_v57, %v509_v34  ;;  %v2897_v50 = vadd.f32 %v2876_v44, %v814_v54  ;;  %v2825_v27 = vpop.f32.mrb[117].mxu0  ;;  %v2878_v11 = vpop.f32.mrb[129].mxu1  ;;  %v15056_v54 = vld [vmem:[#allocation28_spill] sm:$0xff] }
 0x61c   :  { %v2896_v28 = vadd.f32 %v2825_v27, %v511_v29  ;;  %v2898_v5 = vadd.f32 %v2878_v11, %v816_v55  ;;  %v2827_v52 = vpop.f32.mrb[118].mxu0  ;;  %v2880_v31 = vpop.f32.mrb[130].mxu1  ;;  %v529_v17 = vadd.f32 %v15056_v54, %v10813_v15  ;;  %v15057_v29 = vld [vmem:[#allocation37_spill] sm:$0xff]  ;;  %v15058_v11 = vld [vmem:[#allocation39_spill] sm:$0xff] }
 0x61d   :  { %v7492_v42 = vmul.f32 -1.442695, %v2895_v39  ;;  %v2899_v60 = vadd.f32 %v2827_v52, %v515_v25  ;;  %v2901_v1 = vadd.f32 %v2880_v31, %v820_v0  ;;  %v2829_v62 = vpop.f32.mrb[119].mxu0  ;;  %v2882_v4 = vpop.f32.mrb[131].mxu1  ;;  %v832_v56 = vadd.f32 %v15057_v29, %v10856_v12 }
 0x61e   :  { %v7493_v38 = vmul.f32 -1.442695, %v2896_v28  ;;  %v2900_v59 = vadd.f32 %v2829_v62, %v517_v51  ;;  %v2902_v18 = vadd.f32 %v2882_v4, %v822_v9  ;;  %v7494_v25 = vmul.f32 -1.442695, %v2897_v50 }
 0x61f   :  { %8331 = vpow2.f32 %v7492_v42  ;;  %v7495_v6 = vmul.f32 -1.442695, %v2899_v60  ;;  %v834_v41 = vadd.f32 %v15058_v11, %v10861_v63  ;;  %v7497_v60 = vmul.f32 -1.442695, %v2901_v1 }
 0x620   :  { %v7496_v36 = vmul.f32 -1.442695, %v2900_v59  ;;  %8333 = vpow2.f32 %v7493_v38 }
 0x621   :  { %8335 = vpow2.f32 %v7495_v6 }
 0x622   :  { %v2833_v34 = vpop.f32.mrb[120].mxu0  ;;  %v2886_v37 = vpop.f32.mrb[132].mxu1  ;;  %8337 = vpow2.f32 %v7496_v36 }
 0x623   :  { %v2903_v55 = vadd.f32 %v2833_v34, %v521_v7  ;;  %v2905_v57 = vadd.f32 %v2886_v37, %v826_v58  ;;  %v2835_v44 = vpop.f32.mrb[121].mxu0  ;;  %v2888_v24 = vpop.f32.mrb[133].mxu1  ;;  %8339 = vtanh.f32 %v2898_v5 }
 0x624   :  { %v2904_v10 = vadd.f32 %v2835_v44, %v523_v45  ;;  %v2906_v0 = vadd.f32 %v2888_v24, %v828_v16  ;;  %v2837_v39 = vpop.f32.mrb[122].mxu0  ;;  %v2890_v27 = vpop.f32.mrb[134].mxu1 }
 0x625   :  { %v7498_v51 = vmul.f32 -1.442695, %v2903_v55  ;;  %v2907_v30 = vadd.f32 %v2837_v39, %v527_v43  ;;  %v2839_v9 = vpop.f32.mrb[123].mxu0  ;;  %v2892_v28 = vpop.f32.mrb[135].mxu1  ;;  %v2909_v31 = vadd.f32 %v2890_v27, %v832_v56  ;;  %v7500_v37 = vmul.f32 -1.442695, %v2905_v57 }
 0x626   :  { %v7499_v52 = vmul.f32 -1.442695, %v2904_v10  ;;  %v2908_v42 = vadd.f32 %v2839_v9, %v529_v17  ;;  %v2910_v50 = vadd.f32 %v2892_v28, %v834_v41 }
 0x627   :  { %8341 = vpow2.f32 %v7498_v51  ;;  %v7501_v62 = vmul.f32 -1.442695, %v2907_v30  ;;  %v7503_v29 = vmul.f32 -1.442695, %v2909_v31 }
 0x628   :  { %8343 = vpow2.f32 %v7494_v25  ;;  %v7502_v7 = vmul.f32 -1.442695, %v2908_v42 }
 0x629   :  { %v8332_v4 = vpop.eup %8331  ;;  %8345 = vpow2.f32 %v7499_v52 }
 0x62a   :  { %v2947_v38 = vadd.f32 1.0, %v8332_v4  ;;  %8347 = vpow2.f32 %v7501_v62  ;;  %v8334_v59 = vpop.eup %8333 }
 0x62b   :  { %8349 = vpow2.f32 %v7497_v60  ;;  %v8336_v6 = vpop.eup %8335  ;;  %v2948_v36 = vadd.f32 1.0, %v8334_v59 }
 0x62c   :  { %8351 = vrcp.f32 %v2947_v38  ;;  %v2950_v19 = vadd.f32 1.0, %v8336_v6  ;;  %v8338_v5 = vpop.eup %8337 }
 0x62d   :  { %8353 = vtanh.f32 %v2902_v18  ;;  %v2951_v1 = vadd.f32 1.0, %v8338_v5  ;;  %v8340_v23 = vpop.eup %8339 }
 0x62e   :  { %8355 = vrcp.f32 %v2948_v36 }
 0x62f   :  { %8357 = vrcp.f32 %v2950_v19 }
 0x630   :  { %8359 = vrcp.f32 %v2951_v1 }
 0x631   :  { %v8342_v58 = vpop.eup %8341  ;;  %8361 = vpow2.f32 %v7502_v7 }
 0x632   :  { %v8344_v3 = vpop.eup %8343  ;;  %v2953_v45 = vadd.f32 1.0, %v8342_v58  ;;  %8363 = vtanh.f32 %v2906_v0  ;;  %v11706_v58 = vld [vmem:[#allocation7 + $0x8] ss:$16 sps:$4 sm:$0xff]  }
 0x633   :  { %v8346_v33 = vpop.eup %8345  ;;  %v2949_v55 = vadd.f32 1.0, %v8344_v3  ;;  %v11709_v3 = vld [vmem:[#allocation7 + $0x24] ss:$16 sps:$4 sm:$0xff]  }
 0x634   :  { %v8348_v43 = vpop.eup %8347  ;;  %8365 = vrcp.f32 %v2953_v45  ;;  %v2954_v14 = vadd.f32 1.0, %v8346_v33  ;;  %v11712_v45 = vld [vmem:[#allocation7 + $0x2c] ss:$16 sps:$4 sm:$0xff]  }
 0x635   :  { %v8350_v16 = vpop.eup %8349  ;;  %v2956_v34 = vadd.f32 1.0, %v8348_v43  ;;  %8367 = vtanh.f32 %v2910_v50  ;;  %v11715_v43 = vld [vmem:[#allocation7 + $0x20] ss:$16 sps:$4 sm:$0xff]  }
 0x636   :  { %v8352_v18 = vpop.eup %8351  ;;  %8369 = vrcp.f32 %v2954_v14  ;;  %v2952_v25 = vadd.f32 1.0, %v8350_v16  ;;  %v11718_v14 = vld [vmem:[#allocation7 + $0x28] ss:$16 sps:$4 sm:$0xff]  }
 0x637   :  { %v8354_v54 = vpop.eup %8353  ;;  %v2991_v17 = vmul.f32 %v8352_v18, %v8340_v23  ;;  %8371 = vrcp.f32 %v2956_v34  ;;  %v11721_v34 = vld [vmem:[#allocation7 + $0x44] ss:$16 sps:$4 sm:$0xff]   ;;  %v11724_v18 = vld [vmem:[#allocation7 + $0x4c] ss:$16 sps:$4 sm:$0xff]  }
 0x638   :  { %v8356_v56 = vpop.eup %8355  ;;  %8373 = vpow2.f32 %v7500_v37 }
 0x639   :  { %v8358_v44 = vpop.eup %8357  ;;  %v2987_v24 = vmul.f32 %v8356_v56, %v11478_v47  ;;  %8375 = vpow2.f32 %v7503_v29  ;;  %v11727_v56 = vld [vmem:[#allocation7 + $0x40] ss:$16 sps:$4 sm:$0xff]  }
 0x63a   :  { %v2992_v10 = vmul.f32 %v8358_v44, %v8354_v54  ;;  %v8360_v0 = vpop.eup %8359  ;;  %8377 = vrcp.f32 %v2949_v55  ;;  %v11730_v55 = vld [vmem:[#allocation7 + $0x48] ss:$16 sps:$4 sm:$0xff]   ;;  %v11733_v44 = vld [vmem:[#allocation7 + $0x64] ss:$16 sps:$4 sm:$0xff]  }
 0x63b   :  { %v11682_v39 = vadd.f32 %v2991_v17, %v2987_v24  ;;  %v8362_v27 = vpop.eup %8361  ;;  %v2988_v57 = vmul.f32 %v8360_v0, %v11482_v48  ;;  %8379 = vrcp.f32 %v2952_v25  ;;  %v11736_v24 = vld [vmem:[#allocation7 + $0x6c] ss:$16 sps:$4 sm:$0xff]   ;;  %v11746_v0 = vld [vmem:[#allocation7 + $0x68] ss:$16 sps:$4 sm:$0xff]  }
 0x63c   :  { %v8364_v11 = vpop.eup %8363  ;;  %v2957_v41 = vadd.f32 1.0, %v8362_v27  ;;  %v11749_v27 = vld [vmem:[#allocation7 + $0x84] ss:$16 sps:$4 sm:$0xff]  }
 0x63d   :  { %8381 = vtanh.f32 %v11682_v39  ;;  %v11686_v30 = vadd.f32 %v2992_v10, %v2988_v57  ;;  %v11743_v10 = vld [vmem:[#allocation7 + $0x60] ss:$16 sps:$4 sm:$0xff]   ;;  %v11752_v57 = vld [vmem:[#allocation7 + $0x8c] ss:$16 sps:$4 sm:$0xff]  }
 0x63e   :  { %v8366_v51 = vpop.eup %8365  ;;  %8383 = vrcp.f32 %v2957_v41  ;;  %v11760_v41 = vld [vmem:[#allocation7 + $0x88] ss:$16 sps:$4 sm:$0xff]  }
 0x63f   :  { %v8368_v47 = vpop.eup %8367  ;;  %v2993_v9 = vmul.f32 %v8366_v51, %v8364_v11  ;;  %8385 = vtanh.f32 %v11686_v30  ;;  %v11757_v11 = vld [vmem:[#allocation7 + $0x80] ss:$16 sps:$4 sm:$0xff]   ;;  %v11763_v51 = vld [vmem:[#allocation7 + $0xa4] ss:$16 sps:$4 sm:$0xff]  }
 0x640   :  { %v8370_v28 = vpop.eup %8369 }
 0x641   :  { %v8372_v52 = vpop.eup %8371  ;;  %v2989_v31 = vmul.f32 %v8370_v28, %v11486_v35  ;;  %v11772_v28 = vld [vmem:[#allocation7 + $0xa8] ss:$16 sps:$4 sm:$0xff]  }
 0x642   :  { %v2994_v42 = vmul.f32 %v8372_v52, %v8368_v47  ;;  %v8374_v48 = vpop.eup %8373  ;;  %v11766_v47 = vld [vmem:[#allocation7 + $0xac] ss:$16 sps:$4 sm:$0xff]   ;;  %15060 = vst [vmem:[#allocation144_spill] sm:$0xff] %v11772_v28  ;;  %v11775_v52 = vld [vmem:[#allocation7 + $0xc4] ss:$16 sps:$4 sm:$0xff]  }
 0x643   :  { %v11690_v60 = vadd.f32 %v2993_v9, %v2989_v31  ;;  %v8376_v62 = vpop.eup %8375  ;;  %v2955_v38 = vadd.f32 1.0, %v8374_v48  ;;  %v11769_v9 = vld [vmem:[#allocation7 + $0xa0] ss:$16 sps:$4 sm:$0xff]   ;;  %15061 = vst [vmem:[#allocation145_spill] sm:$0xff] %v11775_v52  ;;  %v11778_v31 = vld [vmem:[#allocation7 + $0xcc] ss:$16 sps:$4 sm:$0xff]  }
 0x644   :  { %v8378_v50 = vpop.eup %8377  ;;  %v2958_v36 = vadd.f32 1.0, %v8376_v62  ;;  %15059 = vst [vmem:[#allocation143_spill] sm:$0xff] %v11769_v9  ;;  %15062 = vst [vmem:[#allocation146_spill] sm:$0xff] %v11778_v31  ;;  %v11784_v48 = vld [vmem:[#allocation7 + $0xc8] ss:$16 sps:$4 sm:$0xff]  }
 0x645   :  { %v8380_v4 = vpop.eup %8379  ;;  %8387 = vrcp.f32 %v2955_v38  ;;  %15064 = vst [vmem:[#allocation148_spill] sm:$0xff] %v11784_v48  ;;  %v11787_v62 = vld [vmem:[#allocation7 + $0xe4] ss:$16 sps:$4 sm:$0xff]   ;;  %v11796_v38 = vld [vmem:[#allocation7 + $0xe8] ss:$16 sps:$4 sm:$0xff]  }
 0x646   :  { %8389 = vtanh.f32 %v11690_v60  ;;  %15065 = vst [vmem:[#allocation149_spill] sm:$0xff] %v11787_v62  ;;  %15068 = vst [vmem:[#allocation152_spill] sm:$0xff] %v11796_v38 }
 0x647   :  { %v8382_v59 = vpop.eup %8381  ;;  %8391 = vrcp.f32 %v2958_v36 }
 0x648   :  { %v8384_v6 = vpop.eup %8383  ;;  %v3003_v7 = vmul.f32 %v8382_v59, %v8378_v50  ;;  %v11790_v50 = vld [vmem:[#allocation7 + $0xec] ss:$16 sps:$4 sm:$0xff]   ;;  %v11802_v59 = vld [vmem:[%s14414_s2 + $0x4] ss:$16 sps:$4 sm:$0xff]  }
 0x649   :  { %v8386_v19 = vpop.eup %8385  ;;  %v2990_v5 = vmul.f32 %v8384_v6, %v11490_v26  ;;  %v11703_v26 = vld [vmem:[#allocation7] ss:$16 sps:$4 sm:$0xff]   ;;  %15066 = vst [vmem:[#allocation150_spill] sm:$0xff] %v11790_v50  ;;  %15069 = vst [vmem:[#allocation153_spill] sm:$0xff] %v11802_v59  ;;  %v11808_v6 = vld [vmem:[%s14414_s2 + $0xc] ss:$16 sps:$4 sm:$0xff]  }
 0x64a   :  { %v3004_v1 = vmul.f32 %v8386_v19, %v8380_v4  ;;  %v11793_v4 = vld [vmem:[#allocation7 + $0xe0] ss:$16 sps:$4 sm:$0xff]   ;;  %15070 = vst [vmem:[#allocation154_spill] sm:$0xff] %v11808_v6 }
 0x64b   :  { %v11694_v35 = vadd.f32 %v2994_v42, %v2990_v5  ;;  %v11781_v42 = vld [vmem:[#allocation7 + $0xc0] ss:$16 sps:$4 sm:$0xff]   ;;  %15067 = vst [vmem:[#allocation151_spill] sm:$0xff] %v11793_v4 }
 0x64c   :  { %v11696_v23 = vpack.c.bf16 %v3004_v1, %v3003_v7  ;;  %15063 = vst [vmem:[#allocation147_spill] sm:$0xff] %v11781_v42 }
 0x64d   :  { %8393 = vtanh.f32 %v11694_v35 }
 0x64e   :  { %3042 = vmatmul.mubr.bf16.vlgmr.msra.gmra.mrb[108].mxu0 %v11696_v23  ;;  %3095 = vmatmul.mubr.bf16.vlgmr.msra.gmra.mrb[120].mxu1 %v11696_v23 }
 0x64f   :  { %3051 = vmatprep.mubr.bf16.mxu0 %v14876_v22  ;;  %3104 = vmatprep.mubr.bf16.mxu1 %v14876_v22  ;;  %v8388_v33 = vpop.eup %8387 }
 0x650   :  { %3230 = vmatpush1.bf16.msra.mxu0 %v11703_v26  ;;  %3283 = vmatpush1.bf16.msra.mxu1 %v11706_v58  ;;  %v8390_v16 = vpop.eup %8389 }
 0x651   :  { %3231 = vmatprep.subr.bf16.mxu0 %v11709_v3  ;;  %3284 = vmatprep.subr.bf16.mxu1 %v11712_v45  ;;  %v8392_v37 = vpop.eup %8391  ;;  %v3005_v17 = vmul.f32 %v8390_v16, %v8388_v33 }
 0x654   :  { %3232 = vmatpush1.bf16.msra.mxu0 %v11715_v43  ;;  %3285 = vmatpush1.bf16.msra.mxu1 %v11718_v14 }
 0x655   :  { %3233 = vmatprep.subr.bf16.mxu0 %v11721_v34  ;;  %3286 = vmatprep.subr.bf16.mxu1 %v11724_v18 }
 0x657   :  { %v8394_v54 = vpop.eup %8393 }
 0x658   :  { %v3006_v29 = vmul.f32 %v8394_v54, %v8392_v37  ;;  %3234 = vmatpush1.bf16.msra.mxu0 %v11727_v56  ;;  %3287 = vmatpush1.bf16.msra.mxu1 %v11730_v55 }
 0x659   :  { %3235 = vmatprep.subr.bf16.mxu0 %v11733_v44  ;;  %3288 = vmatprep.subr.bf16.mxu1 %v11736_v24 }
 0x65a   :  { %v11739_v25 = vpack.c.bf16 %v3006_v29, %v3005_v17 }
 0x65c   :  { %3052 = vmatmul.mubr.bf16.gmra.mrb[112].mxu0 %v11739_v25  ;;  %3105 = vmatmul.mubr.bf16.gmra.mrb[124].mxu1 %v11739_v25 }
 0x65d   :  { %3236 = vmatpush1.bf16.msra.mxu0 %v11743_v10  ;;  %3289 = vmatpush1.bf16.msra.mxu1 %v11746_v0 }
 0x65e   :  { %3237 = vmatprep.subr.bf16.mxu0 %v11749_v27  ;;  %3290 = vmatprep.subr.bf16.mxu1 %v11752_v57 }
 0x65f   :  { %3261 = vmatprep.mubr.bf16.mxu0 %v14876_v22  ;;  %3314 = vmatprep.mubr.bf16.mxu1 %v14876_v22 }
 0x661   :  { %3238 = vmatpush1.bf16.msra.mxu0 %v11757_v11  ;;  %3291 = vmatpush1.bf16.msra.mxu1 %v11760_v41 }
 0x662   :  { %3239 = vmatprep.subr.bf16.mxu0 %v11763_v51  ;;  %3292 = vmatprep.subr.bf16.mxu1 %v11766_v47 }
 0x665   :  { %3240 = vmatpush1.bf16.msra.mxu0 %v11769_v9  ;;  %3293 = vmatpush1.bf16.msra.mxu1 %v11772_v28 }
 0x666   :  { %3241 = vmatprep.subr.bf16.mxu0 %v11775_v52  ;;  %3294 = vmatprep.subr.bf16.mxu1 %v11778_v31 }
 0x669   :  { %3242 = vmatpush1.bf16.msra.mxu0 %v11781_v42  ;;  %3295 = vmatpush1.bf16.msra.mxu1 %v11784_v48 }
 0x66a   :  { %3243 = vmatprep.subr.bf16.mxu0 %v11787_v62  ;;  %3296 = vmatprep.subr.bf16.mxu1 %v11790_v50 }
 0x66d   :  { %3244 = vmatpush1.bf16.msra.mxu0 %v11793_v4  ;;  %3297 = vmatpush1.bf16.msra.mxu1 %v11796_v38 }
 0x66e   :  { %3351 = vmatprep.subr.bf16.mxu0 %v11802_v59  ;;  %3404 = vmatprep.subr.bf16.mxu1 %v11808_v6 }
 0x721   :  { %v3043_v36 = vpop.f32.mrb[108].mxu0  ;;  %v3096_v19 = vpop.f32.mrb[120].mxu1 }
 0x722   :  { %v3115_v5 = vadd.f32 %v3043_v36, %v14985_v8  ;;  %v3045_v7 = vpop.f32.mrb[109].mxu0  ;;  %v3098_v1 = vpop.f32.mrb[121].mxu1  ;;  %v3117_v50 = vadd.f32 %v3096_v19, %v11026_v13 }
 0x723   :  { %v3116_v33 = vadd.f32 %v3045_v7, %v11021_v53  ;;  %v3047_v16 = vpop.f32.mrb[110].mxu0  ;;  %v3100_v37 = vpop.f32.mrb[122].mxu1 }
 0x724   :  { %v7504_v54 = vmul.f32 -1.442695, %v3115_v5  ;;  %v3119_v17 = vadd.f32 %v3047_v16, %v14985_v8  ;;  %v3049_v29 = vpop.f32.mrb[111].mxu0  ;;  %v3102_v59 = vpop.f32.mrb[123].mxu1  ;;  %v3121_v36 = vadd.f32 %v3100_v37, %v11026_v13  ;;  %v7506_v7 = vmul.f32 -1.442695, %v3117_v50 }
 0x725   :  { %v7505_v38 = vmul.f32 -1.442695, %v3116_v33  ;;  %v3120_v4 = vadd.f32 %v3049_v29, %v11021_v53  ;;  %v3118_v5 = vadd.f32 %v3098_v1, %v11032_v32 }
 0x726   :  { %8395 = vpow2.f32 %v7504_v54  ;;  %v7507_v6 = vmul.f32 -1.442695, %v3119_v17  ;;  %v7509_v48 = vmul.f32 -1.442695, %v3121_v36  ;;  %v3122_v54 = vadd.f32 %v3102_v59, %v11032_v32 }
 0x727   :  { %v7508_v62 = vmul.f32 -1.442695, %v3120_v4  ;;  %8397 = vpow2.f32 %v7505_v38 }
 0x728   :  { %8399 = vpow2.f32 %v7507_v6 }
 0x729   :  { %8401 = vpow2.f32 %v7508_v62 }
 0x72a   :  { %8403 = vpow2.f32 %v7506_v7 }
 0x72b   :  { %8405 = vpow2.f32 %v7509_v48 }
 0x72c   :  { %8407 = vtanh.f32 %v3118_v5 }
 0x72f   :  { %v3053_v16 = vpop.f32.mrb[112].mxu0  ;;  %v3106_v42 = vpop.f32.mrb[124].mxu1 }
 0x730   :  { %v8396_v33 = vpop.eup %8395  ;;  %v3055_v17 = vpop.f32.mrb[113].mxu0  ;;  %v3123_v4 = vadd.f32 %v3053_v16, %v14985_v8 }
 0x731   :  { %v3108_v29 = vpop.f32.mrb[125].mxu1  ;;  %v3167_v19 = vadd.f32 1.0, %v8396_v33  ;;  %v3057_v38 = vpop.f32.mrb[114].mxu0  ;;  %v3124_v36 = vadd.f32 %v3055_v17, %v11021_v53  ;;  %v3125_v17 = vadd.f32 %v3106_v42, %v11026_v13 }
 0x732   :  { %v3110_v37 = vpop.f32.mrb[126].mxu1  ;;  %v8398_v6 = vpop.eup %8397  ;;  %v7510_v59 = vmul.f32 -1.442695, %v3123_v4  ;;  %v3127_v33 = vadd.f32 %v3057_v38, %v14985_v8 }
 0x733   :  { %v3059_v62 = vpop.f32.mrb[115].mxu0  ;;  %v8400_v50 = vpop.eup %8399  ;;  %8409 = vrcp.f32 %v3167_v19  ;;  %v3168_v1 = vadd.f32 1.0, %v8398_v6  ;;  %v7511_v52 = vmul.f32 -1.442695, %v3124_v36  ;;  %v3129_v4 = vadd.f32 %v3110_v37, %v11026_v13 }
 0x734   :  { %v3112_v7 = vpop.f32.mrb[127].mxu1  ;;  %v3170_v31 = vadd.f32 1.0, %v8400_v50  ;;  %8411 = vtanh.f32 %v3122_v54  ;;  %v8402_v48 = vpop.eup %8401  ;;  %v3128_v28 = vadd.f32 %v3059_v62, %v11021_v53  ;;  %v7513_v19 = vmul.f32 -1.442695, %v3127_v33 }
 0x735   :  { %8413 = vrcp.f32 %v3168_v1  ;;  %v3171_v16 = vadd.f32 1.0, %v8402_v48  ;;  %v8404_v5 = vpop.eup %8403  ;;  %v7512_v48 = vmul.f32 -1.442695, %v3125_v17 }
 0x736   :  { %8415 = vrcp.f32 %v3170_v31  ;;  %v8406_v6 = vpop.eup %8405  ;;  %v7514_v50 = vmul.f32 -1.442695, %v3128_v28  ;;  %v3169_v9 = vadd.f32 1.0, %v8404_v5 }
 0x737   :  { %8417 = vrcp.f32 %v3171_v16  ;;  %v8408_v54 = vpop.eup %8407  ;;  %v3172_v38 = vadd.f32 1.0, %v8406_v6  ;;  %v3126_v16 = vadd.f32 %v3108_v29, %v11032_v32  ;;  %v3130_v29 = vadd.f32 %v3112_v7, %v11032_v32 }
 0x738   :  { %8419 = vpow2.f32 %v7510_v59 }
 0x739   :  { %8421 = vpow2.f32 %v7511_v52  ;;  %v7515_v52 = vmul.f32 -1.442695, %v3129_v4 }
 0x73a   :  { %8423 = vpow2.f32 %v7513_v19 }
 0x73b   :  { %8425 = vpow2.f32 %v7514_v50 }
 0x73c   :  { %8427 = vrcp.f32 %v3169_v9 }
 0x73d   :  { %v8410_v1 = vpop.eup %8409  ;;  %8429 = vrcp.f32 %v3172_v38 }
 0x73e   :  { %v8412_v31 = vpop.eup %8411  ;;  %v3211_v36 = vmul.f32 %v8410_v1, %v8408_v54  ;;  %8431 = vpow2.f32 %v7512_v48 }
 0x73f   :  { %v8414_v62 = vpop.eup %8413  ;;  %8433 = vtanh.f32 %v3126_v16 }
 0x740   :  { %v8416_v59 = vpop.eup %8415  ;;  %v3207_v42 = vmul.f32 %v8414_v62, %v11553_v40  ;;  %8435 = vpow2.f32 %v7515_v52 }
 0x741   :  { %v3212_v28 = vmul.f32 %v8416_v59, %v8412_v31  ;;  %v8418_v33 = vpop.eup %8417 }
 0x742   :  { %v11827_v5 = vadd.f32 %v3211_v36, %v3207_v42  ;;  %v8420_v37 = vpop.eup %8419  ;;  %v3208_v19 = vmul.f32 %v8418_v33, %v11558_v2 }
 0x743   :  { %v3173_v6 = vadd.f32 1.0, %v8420_v37  ;;  %v8422_v17 = vpop.eup %8421 }
 0x744   :  { %8437 = vtanh.f32 %v11827_v5  ;;  %v11832_v9 = vadd.f32 %v3212_v28, %v3208_v19  ;;  %v3174_v40 = vadd.f32 1.0, %v8422_v17  ;;  %v8424_v50 = vpop.eup %8423 }
 0x745   :  { %8439 = vrcp.f32 %v3173_v6  ;;  %v3176_v54 = vadd.f32 1.0, %v8424_v50  ;;  %v8426_v4 = vpop.eup %8425 }
 0x746   :  { %8441 = vtanh.f32 %v11832_v9  ;;  %v8428_v2 = vpop.eup %8427  ;;  %v3177_v1 = vadd.f32 1.0, %v8426_v4 }
 0x747   :  { %8443 = vtanh.f32 %v3130_v29  ;;  %v8430_v38 = vpop.eup %8429 }
 0x748   :  { %8445 = vrcp.f32 %v3174_v40  ;;  %v8432_v31 = vpop.eup %8431 }
 0x749   :  { %8447 = vrcp.f32 %v3176_v54  ;;  %v8434_v7 = vpop.eup %8433  ;;  %v3175_v19 = vadd.f32 1.0, %v8432_v31  ;;  %v11872_v31 = vld [vmem:[%s14414_s2 + $0x20] ss:$16 sps:$4 sm:$0xff]  }
 0x74a   :  { %8449 = vrcp.f32 %v3177_v1  ;;  %v8436_v36 = vpop.eup %8435  ;;  %v11854_v1 = vld [vmem:[%s14414_s2 + $0x24] ss:$16 sps:$4 sm:$0xff]   ;;  %15077 = vst [vmem:[#allocation161_spill] sm:$0xff] %v11872_v31 }
 0x74b   :  { %v3178_v54 = vadd.f32 1.0, %v8436_v36  ;;  %8451 = vrcp.f32 %v3175_v19  ;;  %15074 = vst [vmem:[#allocation158_spill] sm:$0xff] %v11854_v1  ;;  %v11884_v36 = vld [vmem:[%s14414_s2 + $0x44] ss:$16 sps:$4 sm:$0xff]  }
 0x74c   :  { %15079 = vst [vmem:[#allocation163_spill] sm:$0xff] %v11884_v36 }
 0x74e   :  { %v8438_v48 = vpop.eup %8437 }
 0x74f   :  { %v8440_v62 = vpop.eup %8439  ;;  %v3223_v52 = vmul.f32 %v8438_v48, %v8428_v2  ;;  %v11842_v2 = vld [vmem:[%s14414_s2] ss:$16 sps:$4 sm:$0xff]   ;;  %v11890_v48 = vld [vmem:[%s14414_s2 + $0x4c] ss:$16 sps:$4 sm:$0xff]  }
 0x750   :  { %v8442_v16 = vpop.eup %8441  ;;  %v3213_v59 = vmul.f32 %v8440_v62, %v8434_v7  ;;  %15072 = vst [vmem:[#allocation156_spill] sm:$0xff] %v11842_v2  ;;  %v11878_v7 = vld [vmem:[%s14414_s2 + $0x28] ss:$16 sps:$4 sm:$0xff]   ;;  %15080 = vst [vmem:[#allocation164_spill] sm:$0xff] %v11890_v48  ;;  %v11896_v62 = vld [vmem:[%s14414_s2 + $0x40] ss:$16 sps:$4 sm:$0xff]  }
 0x751   :  { %v8444_v42 = vpop.eup %8443  ;;  %v3224_v28 = vmul.f32 %v8442_v16, %v8430_v38  ;;  %15078 = vst [vmem:[#allocation162_spill] sm:$0xff] %v11878_v7  ;;  %15081 = vst [vmem:[#allocation165_spill] sm:$0xff] %v11896_v62  ;;  %v11902_v16 = vld [vmem:[%s14414_s2 + $0x48] ss:$16 sps:$4 sm:$0xff]  }
 0x752   :  { %v8446_v33 = vpop.eup %8445  ;;  %15082 = vst [vmem:[#allocation166_spill] sm:$0xff] %v11902_v16 }
 0x753   :  { %v8448_v37 = vpop.eup %8447  ;;  %v3209_v6 = vmul.f32 %v8446_v33, %v11562_v21  ;;  %v3227_v29 = vpack.c.bf16 %v3224_v28, %v3223_v52  ;;  %v11848_v21 = vld [vmem:[%s14414_s2 + $0x8] ss:$16 sps:$4 sm:$0xff]   ;;  %v11920_v33 = vld [vmem:[%s14414_s2 + $0x60] ss:$16 sps:$4 sm:$0xff]  }
 0x754   :  { %v3214_v17 = vmul.f32 %v8448_v37, %v8444_v42  ;;  %v8450_v40 = vpop.eup %8449  ;;  %15073 = vst [vmem:[#allocation157_spill] sm:$0xff] %v11848_v21  ;;  %v11914_v42 = vld [vmem:[%s14414_s2 + $0x6c] ss:$16 sps:$4 sm:$0xff]   ;;  %15085 = vst [vmem:[#allocation169_spill] sm:$0xff] %v11920_v33  ;;  %v11926_v37 = vld [vmem:[%s14414_s2 + $0x68] ss:$16 sps:$4 sm:$0xff]  }
 0x755   :  { %v11836_v50 = vadd.f32 %v3213_v59, %v3209_v6  ;;  %3262 = vmatmul.mubr.bf16.vlgmr.msra.gmra.mrb[124].mxu0 %v3227_v29  ;;  %3315 = vmatmul.mubr.bf16.vlgmr.msra.gmra.mrb[136].mxu1 %v3227_v29  ;;  %v3210_v4 = vmul.f32 %v8450_v40, %v11570_v49  ;;  %v11860_v49 = vld [vmem:[%s14414_s2 + $0x2c] ss:$16 sps:$4 sm:$0xff]   ;;  %v11908_v59 = vld [vmem:[%s14414_s2 + $0x64] ss:$16 sps:$4 sm:$0xff]   ;;  %15084 = vst [vmem:[#allocation168_spill] sm:$0xff] %v11914_v42  ;;  %v8452_v52 = vpop.eup %8451  ;;  %15086 = vst [vmem:[#allocation170_spill] sm:$0xff] %v11926_v37 }
 0x756   :  { %3352 = vmatpush1.bf16.msra.mxu0 %v11842_v2  ;;  %3405 = vmatpush1.bf16.msra.mxu1 %v11848_v21  ;;  %15075 = vst [vmem:[#allocation159_spill] sm:$0xff] %v11860_v49  ;;  %15083 = vst [vmem:[#allocation167_spill] sm:$0xff] %v11908_v59  ;;  %v11932_v6 = vld [vmem:[%s14414_s2 + $0x84] ss:$16 sps:$4 sm:$0xff]   ;;  %v11938_v29 = vld [vmem:[%s14414_s2 + $0x8c] ss:$16 sps:$4 sm:$0xff]  }
 0x757   :  { %15071 = vst [vmem:[#allocation155_spill] sm:$0xff] %v11836_v50  ;;  %3353 = vmatprep.subr.bf16.mxu0 %v11854_v1  ;;  %3406 = vmatprep.subr.bf16.mxu1 %v11860_v49  ;;  %8453 = vtanh.f32 %v11836_v50  ;;  %v11864_v38 = vadd.f32 %v3214_v17, %v3210_v4  ;;  %15087 = vst [vmem:[#allocation171_spill] sm:$0xff] %v11932_v6  ;;  %v11944_v4 = vld [vmem:[%s14414_s2 + $0x80] ss:$16 sps:$4 sm:$0xff]  }
 0x758   :  { %3271 = vmatprep.mubr.bf16.mxu0 %v14876_v22  ;;  %3324 = vmatprep.mubr.bf16.mxu1 %v14876_v22  ;;  %8455 = vrcp.f32 %v3178_v54  ;;  %15088 = vst [vmem:[#allocation172_spill] sm:$0xff] %v11938_v29  ;;  %15089 = vst [vmem:[#allocation173_spill] sm:$0xff] %v11944_v4 }
 0x759   :  { %15076 = vst [vmem:[#allocation160_spill] sm:$0xff] %v11864_v38  ;;  %8457 = vtanh.f32 %v11864_v38 }
 0x75a   :  { %3354 = vmatpush1.bf16.msra.mxu0 %v11872_v31  ;;  %3407 = vmatpush1.bf16.msra.mxu1 %v11878_v7 }
 0x75b   :  { %3355 = vmatprep.subr.bf16.mxu0 %v11884_v36  ;;  %3408 = vmatprep.subr.bf16.mxu1 %v11890_v48 }
 0x75e   :  { %3356 = vmatpush1.bf16.msra.mxu0 %v11896_v62  ;;  %3409 = vmatpush1.bf16.msra.mxu1 %v11902_v16 }
 0x75f   :  { %3357 = vmatprep.subr.bf16.mxu0 %v11908_v59  ;;  %3410 = vmatprep.subr.bf16.mxu1 %v11914_v42 }
 0x761   :  { %v8454_v28 = vpop.eup %8453 }
 0x762   :  { %3358 = vmatpush1.bf16.msra.mxu0 %v11920_v33  ;;  %3411 = vmatpush1.bf16.msra.mxu1 %v11926_v37  ;;  %v8456_v19 = vpop.eup %8455  ;;  %v3225_v40 = vmul.f32 %v8454_v28, %v8452_v52  ;;  %v11956_v52 = vld [vmem:[%s14414_s2 + $0xa4] ss:$16 sps:$4 sm:$0xff]   ;;  %v11962_v28 = vld [vmem:[%s14414_s2 + $0xac] ss:$16 sps:$4 sm:$0xff]  }
 0x763   :  { %3359 = vmatprep.subr.bf16.mxu0 %v11932_v6  ;;  %3412 = vmatprep.subr.bf16.mxu1 %v11938_v29  ;;  %v8458_v17 = vpop.eup %8457  ;;  %v11950_v6 = vld [vmem:[%s14414_s2 + $0x88] ss:$16 sps:$4 sm:$0xff]   ;;  %15091 = vst [vmem:[#allocation175_spill] sm:$0xff] %v11956_v52  ;;  %15092 = vst [vmem:[#allocation176_spill] sm:$0xff] %v11962_v28 }
 0x764   :  { %v3226_v54 = vmul.f32 %v8458_v17, %v8456_v19  ;;  %15090 = vst [vmem:[#allocation174_spill] sm:$0xff] %v11950_v6  ;;  %v11968_v19 = vld [vmem:[%s14414_s2 + $0xa0] ss:$16 sps:$4 sm:$0xff]   ;;  %v11974_v17 = vld [vmem:[%s14414_s2 + $0xa8] ss:$16 sps:$4 sm:$0xff]  }
 0x765   :  { %15093 = vst [vmem:[#allocation177_spill] sm:$0xff] %v11968_v19  ;;  %15094 = vst [vmem:[#allocation178_spill] sm:$0xff] %v11974_v17 }
 0x766   :  { %3360 = vmatpush1.bf16.msra.mxu0 %v11944_v4  ;;  %3413 = vmatpush1.bf16.msra.mxu1 %v11950_v6  ;;  %v3228_v37 = vpack.c.bf16 %v3226_v54, %v3225_v40  ;;  %v11980_v40 = vld [vmem:[%s14414_s2 + $0xc4] ss:$16 sps:$4 sm:$0xff]   ;;  %v11994_v54 = vld [vmem:[%s14414_s2 + $0xc0] ss:$16 sps:$4 sm:$0xff]  }
 0x767   :  { %3361 = vmatprep.subr.bf16.mxu0 %v11956_v52  ;;  %3414 = vmatprep.subr.bf16.mxu1 %v11962_v28  ;;  %15095 = vst [vmem:[#allocation179_spill] sm:$0xff] %v11980_v40  ;;  %15097 = vst [vmem:[#allocation181_spill] sm:$0xff] %v11994_v54  ;;  %v15138_v28 = vld [vmem:[#allocation43_spill] sm:$0xff] }
 0x768   :  { %3272 = vmatmul.mubr.bf16.gmra.mrb[128].mxu0 %v3228_v37  ;;  %3325 = vmatmul.mubr.bf16.gmra.mrb[140].mxu1 %v3228_v37  ;;  %v11986_v37 = vld [vmem:[%s14414_s2 + $0xcc] ss:$16 sps:$4 sm:$0xff]   ;;  %v840_v52 = vadd.f32 %v15138_v28, %v10861_v63 }
 0x769   :  { %15096 = vst [vmem:[#allocation180_spill] sm:$0xff] %v11986_v37  ;;  %3383 = vmatprep.mubr.bf16.mxu0 %v14876_v22  ;;  %3436 = vmatprep.mubr.bf16.mxu1 %v14876_v22 }
 0x76a   :  { %3362 = vmatpush1.bf16.msra.mxu0 %v11968_v19  ;;  %3415 = vmatpush1.bf16.msra.mxu1 %v11974_v17  ;;  %v12012_v17 = vld [vmem:[%s14414_s2 + $0xec] ss:$16 sps:$4 sm:$0xff]   ;;  %v15137_v19 = vld [vmem:[#allocation32_spill] sm:$0xff] }
 0x76b   :  { %3363 = vmatprep.subr.bf16.mxu0 %v11980_v40  ;;  %3416 = vmatprep.subr.bf16.mxu1 %v11986_v37  ;;  %v12000_v40 = vld [vmem:[%s14414_s2 + $0xc8] ss:$16 sps:$4 sm:$0xff]   ;;  %v12006_v37 = vld [vmem:[%s14414_s2 + $0xe4] ss:$16 sps:$4 sm:$0xff]   ;;  %15100 = vst [vmem:[#allocation184_spill] sm:$0xff] %v12012_v17 }
 0x76c   :  { %15098 = vst [vmem:[#allocation182_spill] sm:$0xff] %v12000_v40  ;;  %15099 = vst [vmem:[#allocation183_spill] sm:$0xff] %v12006_v37 }
 0x76e   :  { %3364 = vmatpush1.bf16.msra.mxu0 %v11994_v54  ;;  %3417 = vmatpush1.bf16.msra.mxu1 %v12000_v40  ;;  %v12018_v54 = vld [vmem:[%s14414_s2 + $0xe0] ss:$16 sps:$4 sm:$0xff]   ;;  %v12024_v40 = vld [vmem:[%s14414_s2 + $0xe8] ss:$16 sps:$4 sm:$0xff]  }
 0x76f   :  { %3365 = vmatprep.subr.bf16.mxu0 %v12006_v37  ;;  %3418 = vmatprep.subr.bf16.mxu1 %v12012_v17  ;;  %15101 = vst [vmem:[#allocation185_spill] sm:$0xff] %v12018_v54  ;;  %15102 = vst [vmem:[#allocation186_spill] sm:$0xff] %v12024_v40  ;;  %v12030_v37 = vld [vmem:[%s14416_s4 + $0x4] ss:$16 sps:$4 sm:$0xff]   ;;  %v12036_v17 = vld [vmem:[%s14416_s4 + $0xc] ss:$16 sps:$4 sm:$0xff]  }
 0x770   :  { %15103 = vst [vmem:[#allocation187_spill] sm:$0xff] %v12030_v37  ;;  %15104 = vst [vmem:[#allocation188_spill] sm:$0xff] %v12036_v17 }
 0x772   :  { %3366 = vmatpush1.bf16.msra.mxu0 %v12018_v54  ;;  %3419 = vmatpush1.bf16.msra.mxu1 %v12024_v40  ;;  %v12046_v40 = vld [vmem:[%s14416_s4] ss:$16 sps:$4 sm:$0xff]  }
 0x773   :  { %3571 = vmatprep.subr.bf16.mxu0 %v12030_v37  ;;  %3624 = vmatprep.subr.bf16.mxu1 %v12036_v17  ;;  %15105 = vst [vmem:[#allocation189_spill] sm:$0xff] %v12046_v40  ;;  %v12052_v37 = vld [vmem:[%s14416_s4 + $0x8] ss:$16 sps:$4 sm:$0xff]   ;;  %v12064_v17 = vld [vmem:[%s14416_s4 + $0x2c] ss:$16 sps:$4 sm:$0xff]  }
 0x774   :  { %15106 = vst [vmem:[#allocation190_spill] sm:$0xff] %v12052_v37  ;;  %15108 = vst [vmem:[#allocation192_spill] sm:$0xff] %v12064_v17 }
 0x775   :  { %3384 = vmatmul.mubr.bf16.vlgmr.msra.gmra.mrb[132].mxu0 %v11696_v23  ;;  %3437 = vmatmul.mubr.bf16.vlgmr.msra.gmra.mrb[144].mxu1 %v11696_v23  ;;  %v12058_v23 = vld [vmem:[%s14416_s4 + $0x24] ss:$16 sps:$4 sm:$0xff]  }
 0x776   :  { %3393 = vmatprep.mubr.bf16.mxu0 %v14876_v22  ;;  %3446 = vmatprep.mubr.bf16.mxu1 %v14876_v22  ;;  %15107 = vst [vmem:[#allocation191_spill] sm:$0xff] %v12058_v23 }
 0x777   :  { %3572 = vmatpush1.bf16.msra.mxu0 %v12046_v40  ;;  %3625 = vmatpush1.bf16.msra.mxu1 %v12052_v37  ;;  %v12070_v40 = vld [vmem:[%s14416_s4 + $0x20] ss:$16 sps:$4 sm:$0xff]   ;;  %v12076_v37 = vld [vmem:[%s14416_s4 + $0x28] ss:$16 sps:$4 sm:$0xff]  }
 0x778   :  { %3573 = vmatprep.subr.bf16.mxu0 %v12058_v23  ;;  %3626 = vmatprep.subr.bf16.mxu1 %v12064_v17  ;;  %15109 = vst [vmem:[#allocation193_spill] sm:$0xff] %v12070_v40  ;;  %15110 = vst [vmem:[#allocation194_spill] sm:$0xff] %v12076_v37  ;;  %v12082_v23 = vld [vmem:[%s14416_s4 + $0x44] ss:$16 sps:$4 sm:$0xff]   ;;  %v12088_v17 = vld [vmem:[%s14416_s4 + $0x4c] ss:$16 sps:$4 sm:$0xff]  }
 0x779   :  { %15111 = vst [vmem:[#allocation195_spill] sm:$0xff] %v12082_v23  ;;  %15112 = vst [vmem:[#allocation196_spill] sm:$0xff] %v12088_v17 }
 0x77b   :  { %3574 = vmatpush1.bf16.msra.mxu0 %v12070_v40  ;;  %3627 = vmatpush1.bf16.msra.mxu1 %v12076_v37  ;;  %v12098_v37 = vld [vmem:[%s14416_s4 + $0x40] ss:$16 sps:$4 sm:$0xff]   ;;  %v15136_v40 = vld [vmem:[#allocation41_spill] sm:$0xff] }
 0x77c   :  { %3575 = vmatprep.subr.bf16.mxu0 %v12082_v23  ;;  %3628 = vmatprep.subr.bf16.mxu1 %v12088_v17  ;;  %15113 = vst [vmem:[#allocation197_spill] sm:$0xff] %v12098_v37  ;;  %v12104_v23 = vld [vmem:[%s14416_s4 + $0x48] ss:$16 sps:$4 sm:$0xff]   ;;  %v12116_v17 = vld [vmem:[%s14416_s4 + $0x6c] ss:$16 sps:$4 sm:$0xff]   ;;  %v838_v54 = vadd.f32 %v15136_v40, %v10856_v12  ;;  %v15141_v40 = vld [vmem:[#allocation36_spill] sm:$0xff] }
 0x77d   :  { %3394 = vmatmul.mubr.bf16.gmra.mrb[136].mxu0 %v11739_v25  ;;  %3447 = vmatmul.mubr.bf16.gmra.mrb[148].mxu1 %v11739_v25  ;;  %15114 = vst [vmem:[#allocation198_spill] sm:$0xff] %v12104_v23  ;;  %v12110_v25 = vld [vmem:[%s14416_s4 + $0x64] ss:$16 sps:$4 sm:$0xff]   ;;  %15116 = vst [vmem:[#allocation200_spill] sm:$0xff] %v12116_v17  ;;  %v541_v16 = vadd.f32 %v15141_v40, %v10813_v15 }
 0x77e   :  { %3603 = vmatprep.mubr.bf16.mxu0 %v14876_v22  ;;  %3656 = vmatprep.mubr.bf16.mxu1 %v14876_v22  ;;  %15115 = vst [vmem:[#allocation199_spill] sm:$0xff] %v12110_v25  ;;  %v15143_v40 = vld [vmem:[#allocation38_spill] sm:$0xff] }
 0x77f   :  { %3576 = vmatpush1.bf16.msra.mxu0 %v12098_v37  ;;  %3629 = vmatpush1.bf16.msra.mxu1 %v12104_v23  ;;  %v12122_v37 = vld [vmem:[%s14416_s4 + $0x60] ss:$16 sps:$4 sm:$0xff]   ;;  %v12128_v23 = vld [vmem:[%s14416_s4 + $0x68] ss:$16 sps:$4 sm:$0xff]   ;;  %v545_v2 = vadd.f32 %v15143_v40, %v10804_v20 }
 0x780   :  { %3577 = vmatprep.subr.bf16.mxu0 %v12110_v25  ;;  %3630 = vmatprep.subr.bf16.mxu1 %v12116_v17  ;;  %15117 = vst [vmem:[#allocation201_spill] sm:$0xff] %v12122_v37  ;;  %15118 = vst [vmem:[#allocation202_spill] sm:$0xff] %v12128_v23  ;;  %v12134_v25 = vld [vmem:[%s14416_s4 + $0x84] ss:$16 sps:$4 sm:$0xff]   ;;  %v12140_v17 = vld [vmem:[%s14416_s4 + $0x8c] ss:$16 sps:$4 sm:$0xff]  }
 0x781   :  { %15119 = vst [vmem:[#allocation203_spill] sm:$0xff] %v12134_v25  ;;  %15120 = vst [vmem:[#allocation204_spill] sm:$0xff] %v12140_v17 }
 0x783   :  { %3578 = vmatpush1.bf16.msra.mxu0 %v12122_v37  ;;  %3631 = vmatpush1.bf16.msra.mxu1 %v12128_v23  ;;  %v12146_v37 = vld [vmem:[%s14416_s4 + $0x80] ss:$16 sps:$4 sm:$0xff]   ;;  %v12152_v23 = vld [vmem:[%s14416_s4 + $0x88] ss:$16 sps:$4 sm:$0xff]  }
 0x784   :  { %3579 = vmatprep.subr.bf16.mxu0 %v12134_v25  ;;  %3632 = vmatprep.subr.bf16.mxu1 %v12140_v17  ;;  %15121 = vst [vmem:[#allocation205_spill] sm:$0xff] %v12146_v37  ;;  %15122 = vst [vmem:[#allocation206_spill] sm:$0xff] %v12152_v23  ;;  %v12158_v25 = vld [vmem:[%s14416_s4 + $0xa4] ss:$16 sps:$4 sm:$0xff]   ;;  %v12164_v17 = vld [vmem:[%s14416_s4 + $0xac] ss:$16 sps:$4 sm:$0xff]  }
 0x785   :  { %15123 = vst [vmem:[#allocation207_spill] sm:$0xff] %v12158_v25  ;;  %15124 = vst [vmem:[#allocation208_spill] sm:$0xff] %v12164_v17 }
 0x787   :  { %3580 = vmatpush1.bf16.msra.mxu0 %v12146_v37  ;;  %3633 = vmatpush1.bf16.msra.mxu1 %v12152_v23  ;;  %v12170_v37 = vld [vmem:[%s14416_s4 + $0xa0] ss:$16 sps:$4 sm:$0xff]   ;;  %v12176_v23 = vld [vmem:[%s14416_s4 + $0xa8] ss:$16 sps:$4 sm:$0xff]  }
 0x788   :  { %3581 = vmatprep.subr.bf16.mxu0 %v12158_v25  ;;  %3634 = vmatprep.subr.bf16.mxu1 %v12164_v17  ;;  %15125 = vst [vmem:[#allocation209_spill] sm:$0xff] %v12170_v37  ;;  %15126 = vst [vmem:[#allocation210_spill] sm:$0xff] %v12176_v23  ;;  %v12182_v25 = vld [vmem:[%s14416_s4 + $0xc4] ss:$16 sps:$4 sm:$0xff]   ;;  %v12188_v17 = vld [vmem:[%s14416_s4 + $0xcc] ss:$16 sps:$4 sm:$0xff]  }
 0x789   :  { %15127 = vst [vmem:[#allocation211_spill] sm:$0xff] %v12182_v25  ;;  %15128 = vst [vmem:[#allocation212_spill] sm:$0xff] %v12188_v17 }
 0x78b   :  { %3582 = vmatpush1.bf16.msra.mxu0 %v12170_v37  ;;  %3635 = vmatpush1.bf16.msra.mxu1 %v12176_v23  ;;  %v12194_v37 = vld [vmem:[%s14416_s4 + $0xc0] ss:$16 sps:$4 sm:$0xff]   ;;  %v12200_v23 = vld [vmem:[%s14416_s4 + $0xc8] ss:$16 sps:$4 sm:$0xff]  }
 0x78c   :  { %3583 = vmatprep.subr.bf16.mxu0 %v12182_v25  ;;  %3636 = vmatprep.subr.bf16.mxu1 %v12188_v17  ;;  %15129 = vst [vmem:[#allocation213_spill] sm:$0xff] %v12194_v37  ;;  %15130 = vst [vmem:[#allocation214_spill] sm:$0xff] %v12200_v23  ;;  %v12206_v25 = vld [vmem:[%s14416_s4 + $0xe4] ss:$16 sps:$4 sm:$0xff]   ;;  %v12212_v17 = vld [vmem:[%s14416_s4 + $0xec] ss:$16 sps:$4 sm:$0xff]  }
 0x78d   :  { %15131 = vst [vmem:[#allocation215_spill] sm:$0xff] %v12206_v25  ;;  %15132 = vst [vmem:[#allocation216_spill] sm:$0xff] %v12212_v17 }
 0x78f   :  { %3584 = vmatpush1.bf16.msra.mxu0 %v12194_v37  ;;  %3637 = vmatpush1.bf16.msra.mxu1 %v12200_v23  ;;  %v12218_v37 = vld [vmem:[%s14416_s4 + $0xe0] ss:$16 sps:$4 sm:$0xff]   ;;  %v12224_v23 = vld [vmem:[%s14416_s4 + $0xe8] ss:$16 sps:$4 sm:$0xff]  }
 0x790   :  { %3585 = vmatprep.subr.bf16.mxu0 %v12206_v25  ;;  %3638 = vmatprep.subr.bf16.mxu1 %v12212_v17  ;;  %15133 = vst [vmem:[#allocation217_spill] sm:$0xff] %v12218_v37  ;;  %15134 = vst [vmem:[#allocation218_spill] sm:$0xff] %v12224_v23  ;;  %v15135_v17 = vld [vmem:[#allocation30_spill] sm:$0xff] }
 0x791   :  { %v533_v25 = vadd.f32 %v15135_v17, %v10804_v20 }
 0x793   :  { %3586 = vmatpush1.bf16.msra.mxu0 %v12218_v37  ;;  %3639 = vmatpush1.bf16.msra.mxu1 %v12224_v23  ;;  %v535_v37 = vadd.f32 %v15137_v19, %v10813_v15  ;;  %v15139_v23 = vld [vmem:[#allocation34_spill] sm:$0xff]  ;;  %v15142_v19 = vld [vmem:[#allocation47_spill] sm:$0xff] }
 0x794   :  { %3791 = vmatprep.subr.bf16.mxu0 %v11643_v46  ;;  %3844 = vmatprep.subr.bf16.mxu1 %v11646_v61  ;;  %v539_v29 = vadd.f32 %v15139_v23, %v10804_v20  ;;  %v15140_v46 = vld [vmem:[#allocation45_spill] sm:$0xff]  ;;  %v846_v62 = vadd.f32 %v15142_v19, %v10861_v63 }
 0x795   :  { %v844_v61 = vadd.f32 %v15140_v46, %v10856_v12  ;;  %v15144_v19 = vld [vmem:[#allocation49_spill] sm:$0xff] }
 0x848   :  { %v3385_v6 = vpop.f32.mrb[132].mxu0  ;;  %v3438_v4 = vpop.f32.mrb[144].mxu1 }
 0x849   :  { %v3457_v33 = vadd.f32 %v3385_v6, %v533_v25  ;;  %v3459_v42 = vadd.f32 %v3438_v4, %v838_v54  ;;  %v3387_v17 = vpop.f32.mrb[133].mxu0  ;;  %v3440_v59 = vpop.f32.mrb[145].mxu1 }
 0x84a   :  { %v3458_v48 = vadd.f32 %v3387_v17, %v535_v37  ;;  %v3460_v28 = vadd.f32 %v3440_v59, %v840_v52  ;;  %v3389_v36 = vpop.f32.mrb[134].mxu0  ;;  %v3442_v7 = vpop.f32.mrb[146].mxu1  ;;  %v850_v37 = vadd.f32 %v15144_v19, %v10856_v12  ;;  %v15145_v59 = vld [vmem:[#allocation40_spill] sm:$0xff] }
 0x84b   :  { %v7516_v31 = vmul.f32 -1.442695, %v3457_v33  ;;  %v3461_v49 = vadd.f32 %v3389_v36, %v539_v29  ;;  %v3463_v23 = vadd.f32 %v3442_v7, %v844_v61  ;;  %v3391_v1 = vpop.f32.mrb[135].mxu0  ;;  %v3444_v21 = vpop.f32.mrb[147].mxu1  ;;  %v547_v33 = vadd.f32 %v15145_v59, %v10813_v15  ;;  %v15146_v7 = vld [vmem:[#allocation42_spill] sm:$0xff] }
 0x84c   :  { %v7517_v46 = vmul.f32 -1.442695, %v3458_v48  ;;  %v3462_v6 = vadd.f32 %v3391_v1, %v541_v16  ;;  %v3464_v4 = vadd.f32 %v3444_v21, %v846_v62  ;;  %v551_v36 = vadd.f32 %v15146_v7, %v10804_v20  ;;  %v15147_v48 = vld [vmem:[#allocation51_spill] sm:$0xff]  ;;  %v15149_v16 = vld [vmem:[#allocation53_spill] sm:$0xff] }
 0x84d   :  { %8459 = vpow2.f32 %v7516_v31  ;;  %v7519_v54 = vmul.f32 -1.442695, %v3461_v49  ;;  %v852_v1 = vadd.f32 %v15147_v48, %v10861_v63  ;;  %v15148_v31 = vld [vmem:[#allocation44_spill] sm:$0xff]  ;;  %v856_v29 = vadd.f32 %v15149_v16, %v10856_v12 }
 0x84e   :  { %v7520_v25 = vmul.f32 -1.442695, %v3462_v6  ;;  %8461 = vpow2.f32 %v7517_v46  ;;  %v553_v62 = vadd.f32 %v15148_v31, %v10813_v15  ;;  %v7518_v6 = vmul.f32 -1.442695, %v3459_v42 }
 0x84f   :  { %8463 = vpow2.f32 %v7519_v54  ;;  %v15150_v54 = vld [vmem:[#allocation55_spill] sm:$0xff] }
 0x850   :  { %v3395_v21 = vpop.f32.mrb[136].mxu0  ;;  %v3448_v49 = vpop.f32.mrb[148].mxu1  ;;  %8465 = vpow2.f32 %v7520_v25  ;;  %v858_v48 = vadd.f32 %v15150_v54, %v10861_v63 }
 0x851   :  { %v3465_v52 = vadd.f32 %v3395_v21, %v545_v2  ;;  %v3467_v61 = vadd.f32 %v3448_v49, %v850_v37  ;;  %v3397_v17 = vpop.f32.mrb[137].mxu0  ;;  %v3450_v46 = vpop.f32.mrb[149].mxu1  ;;  %8467 = vtanh.f32 %v3460_v28  ;;  %v7521_v37 = vmul.f32 -1.442695, %v3463_v23 }
 0x852   :  { %v3466_v40 = vadd.f32 %v3397_v17, %v547_v33  ;;  %v3468_v19 = vadd.f32 %v3450_v46, %v852_v1  ;;  %v3399_v59 = vpop.f32.mrb[138].mxu0  ;;  %v3452_v7 = vpop.f32.mrb[150].mxu1 }
 0x853   :  { %v7522_v20 = vmul.f32 -1.442695, %v3465_v52  ;;  %v3469_v38 = vadd.f32 %v3399_v59, %v551_v36  ;;  %v3401_v50 = vpop.f32.mrb[139].mxu0  ;;  %v3454_v31 = vpop.f32.mrb[151].mxu1  ;;  %v3471_v16 = vadd.f32 %v3452_v7, %v856_v29  ;;  %v7524_v59 = vmul.f32 -1.442695, %v3467_v61 }
 0x854   :  { %v7523_v15 = vmul.f32 -1.442695, %v3466_v40  ;;  %v3470_v2 = vadd.f32 %v3401_v50, %v553_v62  ;;  %v3472_v42 = vadd.f32 %v3454_v31, %v858_v48 }
 0x855   :  { %8469 = vpow2.f32 %v7522_v20  ;;  %v7525_v21 = vmul.f32 -1.442695, %v3469_v38  ;;  %v7527_v48 = vmul.f32 -1.442695, %v3471_v16 }
 0x856   :  { %8471 = vpow2.f32 %v7518_v6  ;;  %v7526_v29 = vmul.f32 -1.442695, %v3470_v2 }
 0x857   :  { %v8460_v25 = vpop.eup %8459  ;;  %8473 = vpow2.f32 %v7523_v15 }
 0x858   :  { %v3509_v33 = vadd.f32 1.0, %v8460_v25  ;;  %8475 = vpow2.f32 %v7525_v21  ;;  %v8462_v1 = vpop.eup %8461 }
 0x859   :  { %8477 = vpow2.f32 %v7521_v37  ;;  %v8464_v49 = vpop.eup %8463  ;;  %v3510_v36 = vadd.f32 1.0, %v8462_v1 }
 0x85a   :  { %8479 = vrcp.f32 %v3509_v33  ;;  %v3512_v52 = vadd.f32 1.0, %v8464_v49  ;;  %v8466_v28 = vpop.eup %8465 }
 0x85b   :  { %8481 = vtanh.f32 %v3464_v4  ;;  %v3513_v50 = vadd.f32 1.0, %v8466_v28  ;;  %v8468_v20 = vpop.eup %8467 }
 0x85c   :  { %8483 = vrcp.f32 %v3510_v36 }
 0x85d   :  { %8485 = vrcp.f32 %v3512_v52 }
 0x85e   :  { %8487 = vrcp.f32 %v3513_v50 }
 0x85f   :  { %v8470_v38 = vpop.eup %8469  ;;  %8489 = vpow2.f32 %v7526_v29 }
 0x860   :  { %v8472_v23 = vpop.eup %8471  ;;  %v3515_v62 = vadd.f32 1.0, %v8470_v38  ;;  %8491 = vtanh.f32 %v3468_v19 }
 0x861   :  { %v8474_v15 = vpop.eup %8473  ;;  %v3511_v2 = vadd.f32 1.0, %v8472_v23 }
 0x862   :  { %v8476_v17 = vpop.eup %8475  ;;  %8493 = vrcp.f32 %v3515_v62  ;;  %v3516_v46 = vadd.f32 1.0, %v8474_v15 }
 0x863   :  { %v8478_v6 = vpop.eup %8477  ;;  %v3518_v40 = vadd.f32 1.0, %v8476_v17  ;;  %8495 = vtanh.f32 %v3472_v42 }
 0x864   :  { %v8480_v4 = vpop.eup %8479  ;;  %8497 = vrcp.f32 %v3516_v46  ;;  %v3514_v25 = vadd.f32 1.0, %v8478_v6 }
 0x865   :  { %v8482_v7 = vpop.eup %8481  ;;  %v3553_v54 = vmul.f32 %v8480_v4, %v8468_v20  ;;  %8499 = vrcp.f32 %v3518_v40 }
 0x866   :  { %v8484_v31 = vpop.eup %8483  ;;  %8501 = vpow2.f32 %v7524_v59 }
 0x867   :  { %v8486_v37 = vpop.eup %8485  ;;  %v3549_v21 = vmul.f32 %v8484_v31, %v11682_v39  ;;  %8503 = vpow2.f32 %v7527_v48 }
 0x868   :  { %v3554_v19 = vmul.f32 %v8486_v37, %v8482_v7  ;;  %v8488_v33 = vpop.eup %8487  ;;  %8505 = vrcp.f32 %v3511_v2 }
 0x869   :  { %v12262_v1 = vadd.f32 %v3553_v54, %v3549_v21  ;;  %v8490_v42 = vpop.eup %8489  ;;  %v3550_v61 = vmul.f32 %v8488_v33, %v11686_v30  ;;  %8507 = vrcp.f32 %v3514_v25 }
 0x86a   :  { %v8492_v49 = vpop.eup %8491  ;;  %v3519_v36 = vadd.f32 1.0, %v8490_v42 }
 0x86b   :  { %8509 = vtanh.f32 %v12262_v1  ;;  %v12266_v52 = vadd.f32 %v3554_v19, %v3550_v61 }
 0x86c   :  { %v8494_v16 = vpop.eup %8493  ;;  %8511 = vrcp.f32 %v3519_v36 }
 0x86d   :  { %v8496_v39 = vpop.eup %8495  ;;  %v3555_v28 = vmul.f32 %v8494_v16, %v8492_v49  ;;  %8513 = vtanh.f32 %v12266_v52 }
 0x86e   :  { %v8498_v29 = vpop.eup %8497 }
 0x86f   :  { %v8500_v50 = vpop.eup %8499  ;;  %v3551_v20 = vmul.f32 %v8498_v29, %v11690_v60 }
 0x870   :  { %v3556_v38 = vmul.f32 %v8500_v50, %v8496_v39  ;;  %v8502_v30 = vpop.eup %8501 }
 0x871   :  { %v12270_v23 = vadd.f32 %v3555_v28, %v3551_v20  ;;  %v8504_v62 = vpop.eup %8503  ;;  %v3517_v46 = vadd.f32 1.0, %v8502_v30 }
 0x872   :  { %v8506_v15 = vpop.eup %8505  ;;  %v3520_v4 = vadd.f32 1.0, %v8504_v62 }
 0x873   :  { %v8508_v17 = vpop.eup %8507  ;;  %8515 = vrcp.f32 %v3517_v46 }
 0x874   :  { %8517 = vtanh.f32 %v12270_v23 }
 0x875   :  { %v8510_v6 = vpop.eup %8509  ;;  %8519 = vrcp.f32 %v3520_v4 }
 0x876   :  { %v8512_v40 = vpop.eup %8511  ;;  %v3565_v54 = vmul.f32 %v8510_v6, %v8506_v15 }
 0x877   :  { %v8514_v59 = vpop.eup %8513  ;;  %v3552_v7 = vmul.f32 %v8512_v40, %v11694_v35 }
 0x878   :  { %v3566_v48 = vmul.f32 %v8514_v59, %v8508_v17 }
 0x879   :  { %v12274_v60 = vadd.f32 %v3556_v38, %v3552_v7 }
 0x87a   :  { %v12276_v31 = vpack.c.bf16 %v3566_v48, %v3565_v54 }
 0x87b   :  { %8521 = vtanh.f32 %v12274_v60 }
 0x87c   :  { %3604 = vmatmul.mubr.bf16.vlgmr.msra.gmra.mrb[124].mxu0 %v12276_v31  ;;  %3657 = vmatmul.mubr.bf16.vlgmr.msra.gmra.mrb[136].mxu1 %v12276_v31 }
 0x87d   :  { %3613 = vmatprep.mubr.bf16.mxu0 %v14876_v22  ;;  %3666 = vmatprep.mubr.bf16.mxu1 %v14876_v22  ;;  %v8516_v35 = vpop.eup %8515 }
 0x87e   :  { %3792 = vmatpush1.bf16.msra.mxu0 %v11703_v26  ;;  %3845 = vmatpush1.bf16.msra.mxu1 %v11706_v58  ;;  %v8518_v2 = vpop.eup %8517 }
 0x87f   :  { %3793 = vmatprep.subr.bf16.mxu0 %v11709_v3  ;;  %3846 = vmatprep.subr.bf16.mxu1 %v11712_v45  ;;  %v8520_v37 = vpop.eup %8519  ;;  %v3567_v25 = vmul.f32 %v8518_v2, %v8516_v35  ;;  %v15151_v3 = vld [vmem:[#allocation143_spill] sm:$0xff]  ;;  %v15152_v45 = vld [vmem:[#allocation144_spill] sm:$0xff] }
 0x882   :  { %3794 = vmatpush1.bf16.msra.mxu0 %v11715_v43  ;;  %3847 = vmatpush1.bf16.msra.mxu1 %v11718_v14  ;;  %v15153_v43 = vld [vmem:[#allocation145_spill] sm:$0xff]  ;;  %v15154_v14 = vld [vmem:[#allocation146_spill] sm:$0xff] }
 0x883   :  { %3795 = vmatprep.subr.bf16.mxu0 %v11721_v34  ;;  %3848 = vmatprep.subr.bf16.mxu1 %v11724_v18  ;;  %v15155_v34 = vld [vmem:[#allocation147_spill] sm:$0xff]  ;;  %v15156_v18 = vld [vmem:[#allocation148_spill] sm:$0xff] }
 0x885   :  { %v8522_v21 = vpop.eup %8521 }
 0x886   :  { %v3568_v26 = vmul.f32 %v8522_v21, %v8520_v37  ;;  %3796 = vmatpush1.bf16.msra.mxu0 %v11727_v56  ;;  %3849 = vmatpush1.bf16.msra.mxu1 %v11730_v55  ;;  %v15157_v56 = vld [vmem:[#allocation149_spill] sm:$0xff]  ;;  %v15158_v55 = vld [vmem:[#allocation150_spill] sm:$0xff] }
 0x887   :  { %3797 = vmatprep.subr.bf16.mxu0 %v11733_v44  ;;  %3850 = vmatprep.subr.bf16.mxu1 %v11736_v24  ;;  %v15159_v44 = vld [vmem:[#allocation151_spill] sm:$0xff]  ;;  %v15160_v24 = vld [vmem:[#allocation152_spill] sm:$0xff] }
 0x888   :  { %v12295_v58 = vpack.c.bf16 %v3568_v26, %v3567_v25 }
 0x88a   :  { %3614 = vmatmul.mubr.bf16.gmra.mrb[128].mxu0 %v12295_v58  ;;  %3667 = vmatmul.mubr.bf16.gmra.mrb[140].mxu1 %v12295_v58 }
 0x88b   :  { %3798 = vmatpush1.bf16.msra.mxu0 %v11743_v10  ;;  %3851 = vmatpush1.bf16.msra.mxu1 %v11746_v0  ;;  %v15161_v10 = vld [vmem:[#allocation153_spill] sm:$0xff]  ;;  %v15162_v0 = vld [vmem:[#allocation154_spill] sm:$0xff] }
 0x88c   :  { %3799 = vmatprep.subr.bf16.mxu0 %v11749_v27  ;;  %3852 = vmatprep.subr.bf16.mxu1 %v11752_v57 }
 0x88d   :  { %3823 = vmatprep.mubr.bf16.mxu0 %v14876_v22  ;;  %3876 = vmatprep.mubr.bf16.mxu1 %v14876_v22 }
 0x88f   :  { %3800 = vmatpush1.bf16.msra.mxu0 %v11757_v11  ;;  %3853 = vmatpush1.bf16.msra.mxu1 %v11760_v41 }
 0x890   :  { %3801 = vmatprep.subr.bf16.mxu0 %v11763_v51  ;;  %3854 = vmatprep.subr.bf16.mxu1 %v11766_v47 }
 0x893   :  { %3802 = vmatpush1.bf16.msra.mxu0 %v15151_v3  ;;  %3855 = vmatpush1.bf16.msra.mxu1 %v15152_v45 }
 0x894   :  { %3803 = vmatprep.subr.bf16.mxu0 %v15153_v43  ;;  %3856 = vmatprep.subr.bf16.mxu1 %v15154_v14 }
 0x897   :  { %3804 = vmatpush1.bf16.msra.mxu0 %v15155_v34  ;;  %3857 = vmatpush1.bf16.msra.mxu1 %v15156_v18 }
 0x898   :  { %3805 = vmatprep.subr.bf16.mxu0 %v15157_v56  ;;  %3858 = vmatprep.subr.bf16.mxu1 %v15158_v55 }
 0x89b   :  { %3806 = vmatpush1.bf16.msra.mxu0 %v15159_v44  ;;  %3859 = vmatpush1.bf16.msra.mxu1 %v15160_v24 }
 0x89c   :  { %3913 = vmatprep.subr.bf16.mxu0 %v15161_v10  ;;  %3966 = vmatprep.subr.bf16.mxu1 %v15162_v0 }
 0x94f   :  { %v3605_v27 = vpop.f32.mrb[124].mxu0  ;;  %v3658_v57 = vpop.f32.mrb[136].mxu1 }
 0x950   :  { %v3677_v11 = vadd.f32 %v3605_v27, %v14985_v8  ;;  %v3607_v41 = vpop.f32.mrb[125].mxu0  ;;  %v3660_v51 = vpop.f32.mrb[137].mxu1  ;;  %v3679_v29 = vadd.f32 %v3658_v57, %v11026_v13 }
 0x951   :  { %v3678_v47 = vadd.f32 %v3607_v41, %v11021_v53  ;;  %v3609_v19 = vpop.f32.mrb[126].mxu0  ;;  %v3662_v33 = vpop.f32.mrb[138].mxu1  ;;  %v3680_v62 = vadd.f32 %v3660_v51, %v11032_v32 }
 0x952   :  { %v7528_v42 = vmul.f32 -1.442695, %v3677_v11  ;;  %v3681_v61 = vadd.f32 %v3609_v19, %v14985_v8  ;;  %v3611_v49 = vpop.f32.mrb[127].mxu0  ;;  %v3664_v36 = vpop.f32.mrb[139].mxu1  ;;  %v3683_v20 = vadd.f32 %v3662_v33, %v11026_v13  ;;  %v7530_v38 = vmul.f32 -1.442695, %v3679_v29 }
 0x953   :  { %v7529_v16 = vmul.f32 -1.442695, %v3678_v47  ;;  %v3682_v39 = vadd.f32 %v3611_v49, %v11021_v53  ;;  %v3684_v6 = vadd.f32 %v3664_v36, %v11032_v32 }
 0x954   :  { %8523 = vpow2.f32 %v7528_v42  ;;  %v7531_v28 = vmul.f32 -1.442695, %v3681_v61  ;;  %v7533_v30 = vmul.f32 -1.442695, %v3683_v20 }
 0x955   :  { %v7532_v50 = vmul.f32 -1.442695, %v3682_v39  ;;  %8525 = vpow2.f32 %v7529_v16 }
 0x956   :  { %8527 = vpow2.f32 %v7531_v28 }
 0x957   :  { %8529 = vpow2.f32 %v7532_v50 }
 0x958   :  { %8531 = vpow2.f32 %v7530_v38 }
 0x959   :  { %8533 = vpow2.f32 %v7533_v30 }
 0x95a   :  { %8535 = vtanh.f32 %v3680_v62 }
 0x95d   :  { %v3615_v15 = vpop.f32.mrb[128].mxu0  ;;  %v3668_v17 = vpop.f32.mrb[140].mxu1 }
 0x95e   :  { %v8524_v46 = vpop.eup %8523  ;;  %v3617_v40 = vpop.f32.mrb[129].mxu0  ;;  %v3685_v7 = vadd.f32 %v3615_v15, %v14985_v8  ;;  %v3687_v10 = vadd.f32 %v3668_v17, %v11026_v13 }
 0x95f   :  { %v3670_v4 = vpop.f32.mrb[141].mxu1  ;;  %v3729_v59 = vadd.f32 1.0, %v8524_v46  ;;  %v3619_v54 = vpop.f32.mrb[130].mxu0  ;;  %v3686_v25 = vadd.f32 %v3617_v40, %v11021_v53 }
 0x960   :  { %v3672_v48 = vpop.f32.mrb[142].mxu1  ;;  %v8526_v35 = vpop.eup %8525  ;;  %v7534_v43 = vmul.f32 -1.442695, %v3685_v7  ;;  %v3689_v14 = vadd.f32 %v3619_v54, %v14985_v8  ;;  %v7536_v33 = vmul.f32 -1.442695, %v3687_v10  ;;  %v3688_v61 = vadd.f32 %v3670_v4, %v11032_v32  ;;  %v15164_v10 = vld [vmem:[#allocation160_spill] sm:$0xff] }
 0x961   :  { %v3621_v2 = vpop.f32.mrb[131].mxu0  ;;  %v8528_v37 = vpop.eup %8527  ;;  %8537 = vrcp.f32 %v3729_v59  ;;  %v3730_v21 = vadd.f32 1.0, %v8526_v35  ;;  %v7535_v18 = vmul.f32 -1.442695, %v3686_v25  ;;  %v3691_v11 = vadd.f32 %v3672_v48, %v11026_v13 }
 0x962   :  { %v3674_v26 = vpop.f32.mrb[143].mxu1  ;;  %v3732_v3 = vadd.f32 1.0, %v8528_v37  ;;  %8539 = vtanh.f32 %v3684_v6  ;;  %v8530_v45 = vpop.eup %8529  ;;  %v3690_v56 = vadd.f32 %v3621_v2, %v11021_v53  ;;  %v7537_v44 = vmul.f32 -1.442695, %v3689_v14  ;;  %v15163_v14 = vld [vmem:[#allocation155_spill] sm:$0xff] }
 0x963   :  { %8541 = vrcp.f32 %v3730_v21  ;;  %v3733_v34 = vadd.f32 1.0, %v8530_v45  ;;  %v8532_v55 = vpop.eup %8531  ;;  %v7539_v16 = vmul.f32 -1.442695, %v3691_v11  ;;  %v3692_v30 = vadd.f32 %v3674_v26, %v11032_v32  ;;  %v15167_v11 = vld [vmem:[#allocation158_spill] sm:$0xff] }
 0x964   :  { %8543 = vrcp.f32 %v3732_v3  ;;  %v8534_v24 = vpop.eup %8533  ;;  %v7538_v0 = vmul.f32 -1.442695, %v3690_v56  ;;  %v3731_v57 = vadd.f32 1.0, %v8532_v55 }
 0x965   :  { %8545 = vrcp.f32 %v3733_v34  ;;  %v8536_v27 = vpop.eup %8535  ;;  %v3734_v51 = vadd.f32 1.0, %v8534_v24 }
 0x966   :  { %8547 = vpow2.f32 %v7534_v43 }
 0x967   :  { %8549 = vpow2.f32 %v7535_v18 }
 0x968   :  { %8551 = vpow2.f32 %v7537_v44 }
 0x969   :  { %8553 = vpow2.f32 %v7538_v0 }
 0x96a   :  { %8555 = vrcp.f32 %v3731_v57  ;;  %v15166_v57 = vld [vmem:[#allocation157_spill] sm:$0xff] }
 0x96b   :  { %v8538_v41 = vpop.eup %8537  ;;  %8557 = vrcp.f32 %v3734_v51 }
 0x96c   :  { %v8540_v47 = vpop.eup %8539  ;;  %v3773_v19 = vmul.f32 %v8538_v41, %v8536_v27  ;;  %8559 = vpow2.f32 %v7536_v33  ;;  %v15165_v27 = vld [vmem:[#allocation156_spill] sm:$0xff]  ;;  %v15168_v41 = vld [vmem:[#allocation159_spill] sm:$0xff] }
 0x96d   :  { %v8542_v42 = vpop.eup %8541  ;;  %8561 = vtanh.f32 %v3688_v61  ;;  %v15171_v33 = vld [vmem:[#allocation163_spill] sm:$0xff]  ;;  %v15173_v61 = vld [vmem:[#allocation165_spill] sm:$0xff] }
 0x96e   :  { %v8544_v49 = vpop.eup %8543  ;;  %v3769_v36 = vmul.f32 %v8542_v42, %v11827_v5  ;;  %8563 = vpow2.f32 %v7539_v16  ;;  %v15172_v42 = vld [vmem:[#allocation164_spill] sm:$0xff] }
 0x96f   :  { %v3774_v39 = vmul.f32 %v8544_v49, %v8540_v47  ;;  %v8546_v28 = vpop.eup %8545  ;;  %v15169_v47 = vld [vmem:[#allocation161_spill] sm:$0xff]  ;;  %v15174_v49 = vld [vmem:[#allocation166_spill] sm:$0xff]  ;;  %v15176_v16 = vld [vmem:[#allocation168_spill] sm:$0xff] }
 0x970   :  { %v12337_v29 = vadd.f32 %v3773_v19, %v3769_v36  ;;  %v8548_v50 = vpop.eup %8547  ;;  %v3770_v20 = vmul.f32 %v8546_v28, %v11832_v9  ;;  %v15170_v19 = vld [vmem:[#allocation162_spill] sm:$0xff]  ;;  %v15175_v36 = vld [vmem:[#allocation167_spill] sm:$0xff] }
 0x971   :  { %v3735_v38 = vadd.f32 1.0, %v8548_v50  ;;  %v8550_v62 = vpop.eup %8549  ;;  %v15177_v50 = vld [vmem:[#allocation169_spill] sm:$0xff] }
 0x972   :  { %8565 = vtanh.f32 %v12337_v29  ;;  %v12342_v15 = vadd.f32 %v3774_v39, %v3770_v20  ;;  %v3736_v5 = vadd.f32 1.0, %v8550_v62  ;;  %v8552_v17 = vpop.eup %8551  ;;  %v15178_v20 = vld [vmem:[#allocation170_spill] sm:$0xff]  ;;  %v15180_v62 = vld [vmem:[#allocation172_spill] sm:$0xff] }
 0x973   :  { %8567 = vrcp.f32 %v3735_v38  ;;  %v3738_v46 = vadd.f32 1.0, %v8552_v17  ;;  %v8554_v6 = vpop.eup %8553 }
 0x974   :  { %8569 = vtanh.f32 %v12342_v15  ;;  %v8556_v9 = vpop.eup %8555  ;;  %v3739_v40 = vadd.f32 1.0, %v8554_v6  ;;  %v15181_v6 = vld [vmem:[#allocation173_spill] sm:$0xff] }
 0x975   :  { %8571 = vtanh.f32 %v3692_v30  ;;  %v8558_v4 = vpop.eup %8557  ;;  %v15179_v30 = vld [vmem:[#allocation171_spill] sm:$0xff] }
 0x976   :  { %8573 = vrcp.f32 %v3736_v5  ;;  %v8560_v59 = vpop.eup %8559 }
 0x977   :  { %8575 = vrcp.f32 %v3738_v46  ;;  %v8562_v7 = vpop.eup %8561  ;;  %v3737_v43 = vadd.f32 1.0, %v8560_v59  ;;  %v15184_v59 = vld [vmem:[#allocation176_spill] sm:$0xff] }
 0x978   :  { %8577 = vrcp.f32 %v3739_v40  ;;  %v8564_v54 = vpop.eup %8563 }
 0x979   :  { %v3740_v24 = vadd.f32 1.0, %v8564_v54  ;;  %8579 = vrcp.f32 %v3737_v43  ;;  %v15186_v54 = vld [vmem:[#allocation178_spill] sm:$0xff]  ;;  %v15196_v43 = vld [vmem:[#allocation188_spill] sm:$0xff] }
 0x97c   :  { %v8566_v48 = vpop.eup %8565 }
 0x97d   :  { %v8568_v35 = vpop.eup %8567  ;;  %v3785_v25 = vmul.f32 %v8566_v48, %v8556_v9  ;;  %v15182_v9 = vld [vmem:[#allocation174_spill] sm:$0xff]  ;;  %v15187_v48 = vld [vmem:[#allocation179_spill] sm:$0xff] }
 0x97e   :  { %v8570_v2 = vpop.eup %8569  ;;  %v3775_v37 = vmul.f32 %v8568_v35, %v8562_v7  ;;  %v15185_v7 = vld [vmem:[#allocation177_spill] sm:$0xff]  ;;  %v15188_v35 = vld [vmem:[#allocation180_spill] sm:$0xff] }
 0x97f   :  { %v8572_v21 = vpop.eup %8571  ;;  %v3786_v26 = vmul.f32 %v8570_v2, %v8558_v4  ;;  %v15183_v4 = vld [vmem:[#allocation175_spill] sm:$0xff]  ;;  %v15189_v2 = vld [vmem:[#allocation181_spill] sm:$0xff] }
 0x980   :  { %v8574_v3 = vpop.eup %8573 }
 0x981   :  { %v8576_v45 = vpop.eup %8575  ;;  %v3771_v34 = vmul.f32 %v8574_v3, %v15163_v14  ;;  %v3789_v18 = vpack.c.bf16 %v3786_v26, %v3785_v25  ;;  %v15192_v25 = vld [vmem:[#allocation184_spill] sm:$0xff]  ;;  %v15193_v26 = vld [vmem:[#allocation185_spill] sm:$0xff]  ;;  %v15194_v3 = vld [vmem:[#allocation186_spill] sm:$0xff] }
 0x982   :  { %v3776_v56 = vmul.f32 %v8576_v45, %v8572_v21  ;;  %v8578_v55 = vpop.eup %8577  ;;  %v15191_v21 = vld [vmem:[#allocation183_spill] sm:$0xff]  ;;  %v15197_v14 = vld [vmem:[#allocation189_spill] sm:$0xff] }
 0x983   :  { %v12346_v44 = vadd.f32 %v3775_v37, %v3771_v34  ;;  %3824 = vmatmul.mubr.bf16.vlgmr.msra.gmra.mrb[140].mxu0 %v3789_v18  ;;  %3877 = vmatmul.mubr.bf16.vlgmr.msra.gmra.mrb[152].mxu1 %v3789_v18  ;;  %v3772_v0 = vmul.f32 %v8578_v55, %v15164_v10  ;;  %v8580_v39 = vpop.eup %8579  ;;  %v15190_v37 = vld [vmem:[#allocation182_spill] sm:$0xff]  ;;  %v15195_v45 = vld [vmem:[#allocation187_spill] sm:$0xff]  ;;  %v15201_v55 = vld [vmem:[#allocation193_spill] sm:$0xff] }
 0x984   :  { %3914 = vmatpush1.bf16.msra.mxu0 %v15165_v27  ;;  %3967 = vmatpush1.bf16.msra.mxu1 %v15166_v57  ;;  %v15198_v34 = vld [vmem:[#allocation190_spill] sm:$0xff]  ;;  %v15199_v18 = vld [vmem:[#allocation191_spill] sm:$0xff] }
 0x985   :  { %3915 = vmatprep.subr.bf16.mxu0 %v15167_v11  ;;  %3968 = vmatprep.subr.bf16.mxu1 %v15168_v41  ;;  %8581 = vtanh.f32 %v12346_v44  ;;  %v12354_v51 = vadd.f32 %v3776_v56, %v3772_v0  ;;  %v15200_v56 = vld [vmem:[#allocation192_spill] sm:$0xff]  ;;  %v15203_v10 = vld [vmem:[#allocation195_spill] sm:$0xff]  ;;  %v15206_v27 = vld [vmem:[#allocation198_spill] sm:$0xff] }
 0x986   :  { %3833 = vmatprep.mubr.bf16.mxu0 %v14876_v22  ;;  %3886 = vmatprep.mubr.bf16.mxu1 %v14876_v22  ;;  %8583 = vrcp.f32 %v3740_v24  ;;  %v15202_v24 = vld [vmem:[#allocation194_spill] sm:$0xff]  ;;  %v15204_v0 = vld [vmem:[#allocation196_spill] sm:$0xff]  ;;  %v15207_v57 = vld [vmem:[#allocation199_spill] sm:$0xff] }
 0x987   :  { %8585 = vtanh.f32 %v12354_v51  ;;  %v15208_v11 = vld [vmem:[#allocation200_spill] sm:$0xff]  ;;  %v15209_v41 = vld [vmem:[#allocation201_spill] sm:$0xff] }
 0x988   :  { %3916 = vmatpush1.bf16.msra.mxu0 %v15169_v47  ;;  %3969 = vmatpush1.bf16.msra.mxu1 %v15170_v19  ;;  %v15210_v47 = vld [vmem:[#allocation202_spill] sm:$0xff]  ;;  %v15211_v19 = vld [vmem:[#allocation203_spill] sm:$0xff] }
 0x989   :  { %3917 = vmatprep.subr.bf16.mxu0 %v15171_v33  ;;  %3970 = vmatprep.subr.bf16.mxu1 %v15172_v42  ;;  %v15212_v33 = vld [vmem:[#allocation204_spill] sm:$0xff]  ;;  %v15214_v42 = vld [vmem:[#allocation206_spill] sm:$0xff] }
 0x98c   :  { %3918 = vmatpush1.bf16.msra.mxu0 %v15173_v61  ;;  %3971 = vmatpush1.bf16.msra.mxu1 %v15174_v49  ;;  %v15215_v61 = vld [vmem:[#allocation207_spill] sm:$0xff]  ;;  %v15216_v49 = vld [vmem:[#allocation208_spill] sm:$0xff] }
 0x98d   :  { %3919 = vmatprep.subr.bf16.mxu0 %v15175_v36  ;;  %3972 = vmatprep.subr.bf16.mxu1 %v15176_v16  ;;  %v15217_v36 = vld [vmem:[#allocation209_spill] sm:$0xff]  ;;  %v15218_v16 = vld [vmem:[#allocation210_spill] sm:$0xff] }
 0x98f   :  { %v8582_v28 = vpop.eup %8581 }
 0x990   :  { %3920 = vmatpush1.bf16.msra.mxu0 %v15177_v50  ;;  %3973 = vmatpush1.bf16.msra.mxu1 %v15178_v20  ;;  %v8584_v38 = vpop.eup %8583  ;;  %v3787_v17 = vmul.f32 %v8582_v28, %v8580_v39  ;;  %v15219_v39 = vld [vmem:[#allocation211_spill] sm:$0xff]  ;;  %v15220_v28 = vld [vmem:[#allocation212_spill] sm:$0xff]  ;;  %v15221_v50 = vld [vmem:[#allocation213_spill] sm:$0xff] }
 0x991   :  { %3921 = vmatprep.subr.bf16.mxu0 %v15179_v30  ;;  %3974 = vmatprep.subr.bf16.mxu1 %v15180_v62  ;;  %v8586_v5 = vpop.eup %8585  ;;  %v15222_v20 = vld [vmem:[#allocation214_spill] sm:$0xff]  ;;  %v15224_v30 = vld [vmem:[#allocation216_spill] sm:$0xff]  ;;  %v15225_v62 = vld [vmem:[#allocation217_spill] sm:$0xff] }
 0x992   :  { %v3788_v46 = vmul.f32 %v8586_v5, %v8584_v38  ;;  %v15223_v38 = vld [vmem:[#allocation215_spill] sm:$0xff]  ;;  %v15226_v5 = vld [vmem:[#allocation218_spill] sm:$0xff] }
 0x994   :  { %3922 = vmatpush1.bf16.msra.mxu0 %v15181_v6  ;;  %3975 = vmatpush1.bf16.msra.mxu1 %v15182_v9  ;;  %v3790_v40 = vpack.c.bf16 %v3788_v46, %v3787_v17  ;;  %v12427_v17 = vld [vmem:[#allocation7 + $0x4] ss:$16 sps:$4 sm:$0xff]   ;;  %v12430_v46 = vld [vmem:[#allocation7 + $0xc] ss:$16 sps:$4 sm:$0xff]  }
 0x995   :  { %3923 = vmatprep.subr.bf16.mxu0 %v15183_v4  ;;  %3976 = vmatprep.subr.bf16.mxu1 %v15184_v59  ;;  %v15227_v6 = vld [vmem:[#allocation127_spill] sm:$0xff]  ;;  %v15228_v9 = vld [vmem:[#allocation46_spill] sm:$0xff]  ;;  %v15229_v4 = vld [vmem:[#allocation57_spill] sm:$0xff] }
 0x996   :  { %3834 = vmatmul.mubr.bf16.gmra.mrb[144].mxu0 %v3790_v40  ;;  %3887 = vmatmul.mubr.bf16.gmra.mrb[156].mxu1 %v3790_v40  ;;  %v557_v40 = vadd.f32 %v15228_v9, %v15227_v6  ;;  %v862_v59 = vadd.f32 %v15229_v4, %v10856_v12 }
 0x997   :  { %3945 = vmatprep.mubr.bf16.mxu0 %v14876_v22  ;;  %3998 = vmatprep.mubr.bf16.mxu1 %v14876_v22 }
 0x998   :  { %3924 = vmatpush1.bf16.msra.mxu0 %v15185_v7  ;;  %3977 = vmatpush1.bf16.msra.mxu1 %v15186_v54  ;;  %v15230_v7 = vld [vmem:[#allocation130_spill] sm:$0xff]  ;;  %v15231_v54 = vld [vmem:[#allocation48_spill] sm:$0xff] }
 0x999   :  { %3925 = vmatprep.subr.bf16.mxu0 %v15187_v48  ;;  %3978 = vmatprep.subr.bf16.mxu1 %v15188_v35  ;;  %v559_v48 = vadd.f32 %v15231_v54, %v15230_v7  ;;  %v15232_v35 = vld [vmem:[#allocation59_spill] sm:$0xff] }
 0x99c   :  { %3926 = vmatpush1.bf16.msra.mxu0 %v15189_v2  ;;  %3979 = vmatpush1.bf16.msra.mxu1 %v15190_v37  ;;  %v864_v2 = vadd.f32 %v15232_v35, %v10861_v63 }
 0x99d   :  { %3927 = vmatprep.subr.bf16.mxu0 %v15191_v21  ;;  %3980 = vmatprep.subr.bf16.mxu1 %v15192_v25  ;;  %v15233_v25 = vld [vmem:[#allocation50_spill] sm:$0xff] }
 0x9a0   :  { %3928 = vmatpush1.bf16.msra.mxu0 %v15193_v26  ;;  %3981 = vmatpush1.bf16.msra.mxu1 %v15194_v3  ;;  %v563_v26 = vadd.f32 %v15233_v25, %v15227_v6  ;;  %v15234_v3 = vld [vmem:[#allocation61_spill] sm:$0xff] }
 0x9a1   :  { %4133 = vmatprep.subr.bf16.mxu0 %v15195_v45  ;;  %4186 = vmatprep.subr.bf16.mxu1 %v15196_v43  ;;  %v868_v45 = vadd.f32 %v15234_v3, %v10856_v12 }
 0x9a3   :  { %3946 = vmatmul.mubr.bf16.vlgmr.msra.gmra.mrb[148].mxu0 %v12276_v31  ;;  %3999 = vmatmul.mubr.bf16.vlgmr.msra.gmra.mrb[160].mxu1 %v12276_v31  ;;  %v15205_v31 = vld [vmem:[#allocation197_spill] sm:$0xff] }
 0x9a4   :  { %3955 = vmatprep.mubr.bf16.mxu0 %v14876_v22  ;;  %4008 = vmatprep.mubr.bf16.mxu1 %v14876_v22 }
 0x9a5   :  { %4134 = vmatpush1.bf16.msra.mxu0 %v15197_v14  ;;  %4187 = vmatpush1.bf16.msra.mxu1 %v15198_v34 }
 0x9a6   :  { %4135 = vmatprep.subr.bf16.mxu0 %v15199_v18  ;;  %4188 = vmatprep.subr.bf16.mxu1 %v15200_v56  ;;  %v15235_v56 = vld [vmem:[#allocation52_spill] sm:$0xff] }
 0x9a9   :  { %4136 = vmatpush1.bf16.msra.mxu0 %v15201_v55  ;;  %4189 = vmatpush1.bf16.msra.mxu1 %v15202_v24  ;;  %v565_v55 = vadd.f32 %v15235_v56, %v15230_v7  ;;  %v15236_v24 = vld [vmem:[#allocation63_spill] sm:$0xff] }
 0x9aa   :  { %4137 = vmatprep.subr.bf16.mxu0 %v15203_v10  ;;  %4190 = vmatprep.subr.bf16.mxu1 %v15204_v0  ;;  %v870_v10 = vadd.f32 %v15236_v24, %v10861_v63 }
 0x9ab   :  { %3956 = vmatmul.mubr.bf16.gmra.mrb[152].mxu0 %v12295_v58  ;;  %4009 = vmatmul.mubr.bf16.gmra.mrb[164].mxu1 %v12295_v58  ;;  %v15213_v58 = vld [vmem:[#allocation205_spill] sm:$0xff] }
 0x9ac   :  { %4165 = vmatprep.mubr.bf16.mxu0 %v14876_v22  ;;  %4218 = vmatprep.mubr.bf16.mxu1 %v14876_v22 }
 0x9ad   :  { %4138 = vmatpush1.bf16.msra.mxu0 %v15205_v31  ;;  %4191 = vmatpush1.bf16.msra.mxu1 %v15206_v27 }
 0x9ae   :  { %4139 = vmatprep.subr.bf16.mxu0 %v15207_v57  ;;  %4192 = vmatprep.subr.bf16.mxu1 %v15208_v11 }
 0x9b1   :  { %4140 = vmatpush1.bf16.msra.mxu0 %v15209_v41  ;;  %4193 = vmatpush1.bf16.msra.mxu1 %v15210_v47 }
 0x9b2   :  { %4141 = vmatprep.subr.bf16.mxu0 %v15211_v19  ;;  %4194 = vmatprep.subr.bf16.mxu1 %v15212_v33 }
 0x9b5   :  { %4142 = vmatpush1.bf16.msra.mxu0 %v15213_v58  ;;  %4195 = vmatpush1.bf16.msra.mxu1 %v15214_v42 }
 0x9b6   :  { %4143 = vmatprep.subr.bf16.mxu0 %v15215_v61  ;;  %4196 = vmatprep.subr.bf16.mxu1 %v15216_v49 }
 0x9b9   :  { %4144 = vmatpush1.bf16.msra.mxu0 %v15217_v36  ;;  %4197 = vmatpush1.bf16.msra.mxu1 %v15218_v16  ;;  %v15237_v16 = vld [vmem:[#allocation54_spill] sm:$0xff] }
 0x9ba   :  { %4145 = vmatprep.subr.bf16.mxu0 %v15219_v39  ;;  %4198 = vmatprep.subr.bf16.mxu1 %v15220_v28  ;;  %v569_v39 = vadd.f32 %v15237_v16, %v15227_v6  ;;  %v15238_v28 = vld [vmem:[#allocation65_spill] sm:$0xff] }
 0x9bd   :  { %4146 = vmatpush1.bf16.msra.mxu0 %v15221_v50  ;;  %4199 = vmatpush1.bf16.msra.mxu1 %v15222_v20  ;;  %v874_v50 = vadd.f32 %v15238_v28, %v10856_v12  ;;  %v15239_v20 = vld [vmem:[#allocation56_spill] sm:$0xff] }
 0x9be   :  { %4147 = vmatprep.subr.bf16.mxu0 %v15223_v38  ;;  %4200 = vmatprep.subr.bf16.mxu1 %v15224_v30  ;;  %v571_v38 = vadd.f32 %v15239_v20, %v15230_v7  ;;  %v15240_v30 = vld [vmem:[#allocation58_spill] sm:$0xff] }
 0x9c1   :  { %4148 = vmatpush1.bf16.msra.mxu0 %v15225_v62  ;;  %4201 = vmatpush1.bf16.msra.mxu1 %v15226_v5  ;;  %v575_v62 = vadd.f32 %v15240_v30, %v15227_v6  ;;  %v15241_v5 = vld [vmem:[#allocation67_spill] sm:$0xff] }
 0x9c2   :  { %4353 = vmatprep.subr.bf16.mxu0 %v12427_v17  ;;  %4406 = vmatprep.subr.bf16.mxu1 %v12430_v46  ;;  %v876_v9 = vadd.f32 %v15241_v5, %v10861_v63 }
 0xa76   :  { %v3947_v37 = vpop.f32.mrb[148].mxu0  ;;  %v4000_v21 = vpop.f32.mrb[160].mxu1 }
 0xa77   :  { %v4019_v43 = vadd.f32 %v3947_v37, %v557_v40  ;;  %v4021_v14 = vadd.f32 %v4000_v21, %v862_v59  ;;  %v3949_v34 = vpop.f32.mrb[149].mxu0  ;;  %v4002_v18 = vpop.f32.mrb[161].mxu1  ;;  %v15242_v59 = vld [vmem:[#allocation60_spill] sm:$0xff] }
 0xa78   :  { %v4020_v0 = vadd.f32 %v3949_v34, %v559_v48  ;;  %v4022_v31 = vadd.f32 %v4002_v18, %v864_v2  ;;  %v3951_v27 = vpop.f32.mrb[150].mxu0  ;;  %v4004_v57 = vpop.f32.mrb[162].mxu1  ;;  %v577_v54 = vadd.f32 %v15242_v59, %v15230_v7  ;;  %v15243_v48 = vld [vmem:[#allocation69_spill] sm:$0xff]  ;;  %v15244_v18 = vld [vmem:[#allocation71_spill] sm:$0xff] }
 0xa79   :  { %v7540_v11 = vmul.f32 -1.442695, %v4019_v43  ;;  %v4023_v41 = vadd.f32 %v3951_v27, %v563_v26  ;;  %v4025_v47 = vadd.f32 %v4004_v57, %v868_v45  ;;  %v3953_v19 = vpop.f32.mrb[151].mxu0  ;;  %v4006_v33 = vpop.f32.mrb[163].mxu1  ;;  %v880_v35 = vadd.f32 %v15243_v48, %v10856_v12 }
 0xa7a   :  { %v7541_v58 = vmul.f32 -1.442695, %v4020_v0  ;;  %v4024_v42 = vadd.f32 %v3953_v19, %v565_v55  ;;  %v4026_v61 = vadd.f32 %v4006_v33, %v870_v10  ;;  %v7542_v26 = vmul.f32 -1.442695, %v4021_v14 }
 0xa7b   :  { %8587 = vpow2.f32 %v7540_v11  ;;  %v7543_v49 = vmul.f32 -1.442695, %v4023_v41  ;;  %v882_v56 = vadd.f32 %v15244_v18, %v10861_v63  ;;  %v7545_v41 = vmul.f32 -1.442695, %v4025_v47 }
 0xa7c   :  { %v7544_v36 = vmul.f32 -1.442695, %v4024_v42  ;;  %8589 = vpow2.f32 %v7541_v58 }
 0xa7d   :  { %8591 = vpow2.f32 %v7543_v49 }
 0xa7e   :  { %v3957_v40 = vpop.f32.mrb[152].mxu0  ;;  %v4010_v4 = vpop.f32.mrb[164].mxu1  ;;  %8593 = vpow2.f32 %v7544_v36 }
 0xa7f   :  { %v4027_v2 = vadd.f32 %v3957_v40, %v569_v39  ;;  %v4029_v37 = vadd.f32 %v4010_v4, %v874_v50  ;;  %v3959_v21 = vpop.f32.mrb[153].mxu0  ;;  %v4012_v25 = vpop.f32.mrb[165].mxu1  ;;  %8595 = vtanh.f32 %v4022_v31 }
 0xa80   :  { %v4028_v3 = vadd.f32 %v3959_v21, %v571_v38  ;;  %v4030_v45 = vadd.f32 %v4012_v25, %v876_v9  ;;  %v3961_v43 = vpop.f32.mrb[154].mxu0  ;;  %v4014_v34 = vpop.f32.mrb[166].mxu1 }
 0xa81   :  { %v7546_v55 = vmul.f32 -1.442695, %v4027_v2  ;;  %v4031_v24 = vadd.f32 %v3961_v43, %v575_v62  ;;  %v3963_v10 = vpop.f32.mrb[155].mxu0  ;;  %v4016_v0 = vpop.f32.mrb[167].mxu1  ;;  %v4033_v57 = vadd.f32 %v4014_v34, %v880_v35  ;;  %v7548_v4 = vmul.f32 -1.442695, %v4029_v37 }
 0xa82   :  { %v7547_v27 = vmul.f32 -1.442695, %v4028_v3  ;;  %v4032_v11 = vadd.f32 %v3963_v10, %v577_v54  ;;  %v4034_v14 = vadd.f32 %v4016_v0, %v882_v56 }
 0xa83   :  { %8597 = vpow2.f32 %v7546_v55  ;;  %v7549_v19 = vmul.f32 -1.442695, %v4031_v24  ;;  %v7551_v48 = vmul.f32 -1.442695, %v4033_v57 }
 0xa84   :  { %8599 = vpow2.f32 %v7542_v26  ;;  %v7550_v39 = vmul.f32 -1.442695, %v4032_v11 }
 0xa85   :  { %v8588_v33 = vpop.eup %8587  ;;  %8601 = vpow2.f32 %v7547_v27 }
 0xa86   :  { %v4071_v58 = vadd.f32 1.0, %v8588_v33  ;;  %8603 = vpow2.f32 %v7549_v19  ;;  %v8590_v42 = vpop.eup %8589 }
 0xa87   :  { %8605 = vpow2.f32 %v7545_v41  ;;  %v8592_v49 = vpop.eup %8591  ;;  %v4072_v36 = vadd.f32 1.0, %v8590_v42 }
 0xa88   :  { %8607 = vrcp.f32 %v4071_v58  ;;  %v4074_v16 = vadd.f32 1.0, %v8592_v49  ;;  %v8594_v31 = vpop.eup %8593 }
 0xa89   :  { %8609 = vtanh.f32 %v4026_v61  ;;  %v4075_v47 = vadd.f32 1.0, %v8594_v31  ;;  %v8596_v28 = vpop.eup %8595 }
 0xa8a   :  { %8611 = vrcp.f32 %v4072_v36 }
 0xa8b   :  { %8613 = vrcp.f32 %v4074_v16 }
 0xa8c   :  { %8615 = vrcp.f32 %v4075_v47 }
 0xa8d   :  { %v8598_v50 = vpop.eup %8597  ;;  %8617 = vpow2.f32 %v7550_v39 }
 0xa8e   :  { %v8600_v20 = vpop.eup %8599  ;;  %v4077_v38 = vadd.f32 1.0, %v8598_v50  ;;  %8619 = vtanh.f32 %v4030_v45  ;;  %v12490_v50 = vld [vmem:[#allocation7 + $0x8] ss:$16 sps:$4 sm:$0xff]  }
 0xa8f   :  { %v8602_v30 = vpop.eup %8601  ;;  %v4073_v2 = vadd.f32 1.0, %v8600_v20  ;;  %v12493_v20 = vld [vmem:[#allocation7 + $0x24] ss:$16 sps:$4 sm:$0xff]  }
 0xa90   :  { %v8604_v62 = vpop.eup %8603  ;;  %8621 = vrcp.f32 %v4077_v38  ;;  %v4078_v5 = vadd.f32 1.0, %v8602_v30  ;;  %v12496_v38 = vld [vmem:[#allocation7 + $0x2c] ss:$16 sps:$4 sm:$0xff]  }
 0xa91   :  { %v8606_v9 = vpop.eup %8605  ;;  %v4080_v40 = vadd.f32 1.0, %v8604_v62  ;;  %8623 = vtanh.f32 %v4034_v14  ;;  %v12499_v62 = vld [vmem:[#allocation7 + $0x20] ss:$16 sps:$4 sm:$0xff]  }
 0xa92   :  { %v8608_v61 = vpop.eup %8607  ;;  %8625 = vrcp.f32 %v4078_v5  ;;  %v4076_v26 = vadd.f32 1.0, %v8606_v9  ;;  %v12502_v5 = vld [vmem:[#allocation7 + $0x28] ss:$16 sps:$4 sm:$0xff]  }
 0xa93   :  { %v8610_v59 = vpop.eup %8609  ;;  %v4115_v54 = vmul.f32 %v8608_v61, %v8596_v28  ;;  %8627 = vrcp.f32 %v4080_v40  ;;  %v12505_v40 = vld [vmem:[#allocation7 + $0x44] ss:$16 sps:$4 sm:$0xff]   ;;  %v12508_v61 = vld [vmem:[#allocation7 + $0x4c] ss:$16 sps:$4 sm:$0xff]  }
 0xa94   :  { %v8612_v35 = vpop.eup %8611  ;;  %8629 = vpow2.f32 %v7548_v4 }
 0xa95   :  { %v8614_v21 = vpop.eup %8613  ;;  %v4111_v25 = vmul.f32 %v8612_v35, %v12262_v1  ;;  %8631 = vpow2.f32 %v7551_v48  ;;  %v12511_v35 = vld [vmem:[#allocation7 + $0x40] ss:$16 sps:$4 sm:$0xff]  }
 0xa96   :  { %v4116_v3 = vmul.f32 %v8614_v21, %v8610_v59  ;;  %v8616_v45 = vpop.eup %8615  ;;  %8633 = vrcp.f32 %v4073_v2  ;;  %v12514_v2 = vld [vmem:[#allocation7 + $0x48] ss:$16 sps:$4 sm:$0xff]   ;;  %v12517_v21 = vld [vmem:[#allocation7 + $0x64] ss:$16 sps:$4 sm:$0xff]  }
 0xa97   :  { %v12466_v43 = vadd.f32 %v4115_v54, %v4111_v25  ;;  %v8618_v34 = vpop.eup %8617  ;;  %v4112_v37 = vmul.f32 %v8616_v45, %v12266_v52  ;;  %8635 = vrcp.f32 %v4076_v26  ;;  %v12520_v25 = vld [vmem:[#allocation7 + $0x6c] ss:$16 sps:$4 sm:$0xff]   ;;  %v12530_v45 = vld [vmem:[#allocation7 + $0x68] ss:$16 sps:$4 sm:$0xff]  }
 0xa98   :  { %v8620_v18 = vpop.eup %8619  ;;  %v4081_v56 = vadd.f32 1.0, %v8618_v34  ;;  %v12533_v34 = vld [vmem:[#allocation7 + $0x84] ss:$16 sps:$4 sm:$0xff]  }
 0xa99   :  { %8637 = vtanh.f32 %v12466_v43  ;;  %v12470_v24 = vadd.f32 %v4116_v3, %v4112_v37  ;;  %v12527_v3 = vld [vmem:[#allocation7 + $0x60] ss:$16 sps:$4 sm:$0xff]   ;;  %v12536_v37 = vld [vmem:[#allocation7 + $0x8c] ss:$16 sps:$4 sm:$0xff]  }
 0xa9a   :  { %v8622_v55 = vpop.eup %8621  ;;  %8639 = vrcp.f32 %v4081_v56  ;;  %v12544_v56 = vld [vmem:[#allocation7 + $0x88] ss:$16 sps:$4 sm:$0xff]  }
 0xa9b   :  { %v8624_v1 = vpop.eup %8623  ;;  %v4117_v10 = vmul.f32 %v8622_v55, %v8620_v18  ;;  %8641 = vtanh.f32 %v12470_v24  ;;  %v12541_v18 = vld [vmem:[#allocation7 + $0x80] ss:$16 sps:$4 sm:$0xff]   ;;  %v12547_v55 = vld [vmem:[#allocation7 + $0xa4] ss:$16 sps:$4 sm:$0xff]  }
 0xa9c   :  { %v8626_v0 = vpop.eup %8625 }
 0xa9d   :  { %v8628_v27 = vpop.eup %8627  ;;  %v4113_v57 = vmul.f32 %v8626_v0, %v12270_v23  ;;  %v12556_v0 = vld [vmem:[#allocation7 + $0xa8] ss:$16 sps:$4 sm:$0xff]  }
 0xa9e   :  { %v4118_v11 = vmul.f32 %v8628_v27, %v8624_v1  ;;  %v8630_v52 = vpop.eup %8629  ;;  %v12550_v1 = vld [vmem:[#allocation7 + $0xac] ss:$16 sps:$4 sm:$0xff]   ;;  %15246 = vst [vmem:[#allocation220_spill] sm:$0xff] %v12556_v0  ;;  %v12559_v27 = vld [vmem:[#allocation7 + $0xc4] ss:$16 sps:$4 sm:$0xff]  }
 0xa9f   :  { %v12474_v41 = vadd.f32 %v4117_v10, %v4113_v57  ;;  %v8632_v19 = vpop.eup %8631  ;;  %v4079_v58 = vadd.f32 1.0, %v8630_v52  ;;  %v12553_v10 = vld [vmem:[#allocation7 + $0xa0] ss:$16 sps:$4 sm:$0xff]   ;;  %15247 = vst [vmem:[#allocation221_spill] sm:$0xff] %v12559_v27  ;;  %v12562_v57 = vld [vmem:[#allocation7 + $0xcc] ss:$16 sps:$4 sm:$0xff]  }
 0xaa0   :  { %v8634_v14 = vpop.eup %8633  ;;  %v4082_v36 = vadd.f32 1.0, %v8632_v19  ;;  %15245 = vst [vmem:[#allocation219_spill] sm:$0xff] %v12553_v10  ;;  %15248 = vst [vmem:[#allocation222_spill] sm:$0xff] %v12562_v57  ;;  %v12568_v52 = vld [vmem:[#allocation7 + $0xc8] ss:$16 sps:$4 sm:$0xff]  }
 0xaa1   :  { %v8636_v33 = vpop.eup %8635  ;;  %8643 = vrcp.f32 %v4079_v58  ;;  %15250 = vst [vmem:[#allocation19_spill] sm:$0xff] %v12568_v52  ;;  %v12571_v19 = vld [vmem:[#allocation7 + $0xe4] ss:$16 sps:$4 sm:$0xff]   ;;  %v12580_v58 = vld [vmem:[#allocation7 + $0xe8] ss:$16 sps:$4 sm:$0xff]  }
 0xaa2   :  { %8645 = vtanh.f32 %v12474_v41  ;;  %15251 = vst [vmem:[#allocation25_spill] sm:$0xff] %v12571_v19  ;;  %15254 = vst [vmem:[#allocation21_spill] sm:$0xff] %v12580_v58 }
 0xaa3   :  { %v8638_v42 = vpop.eup %8637  ;;  %8647 = vrcp.f32 %v4082_v36 }
 0xaa4   :  { %v8640_v49 = vpop.eup %8639  ;;  %v4127_v39 = vmul.f32 %v8638_v42, %v8634_v14  ;;  %v12574_v14 = vld [vmem:[#allocation7 + $0xec] ss:$16 sps:$4 sm:$0xff]   ;;  %v12586_v42 = vld [vmem:[%s14414_s2 + $0x4] ss:$16 sps:$4 sm:$0xff]  }
 0xaa5   :  { %v8642_v16 = vpop.eup %8641  ;;  %v4114_v31 = vmul.f32 %v8640_v49, %v12274_v60  ;;  %v12487_v60 = vld [vmem:[#allocation7] ss:$16 sps:$4 sm:$0xff]   ;;  %15252 = vst [vmem:[#allocation20_spill] sm:$0xff] %v12574_v14  ;;  %15255 = vst [vmem:[#allocation29_spill] sm:$0xff] %v12586_v42  ;;  %v12592_v49 = vld [vmem:[%s14414_s2 + $0xc] ss:$16 sps:$4 sm:$0xff]  }
 0xaa6   :  { %v4128_v47 = vmul.f32 %v8642_v16, %v8636_v33  ;;  %v12577_v33 = vld [vmem:[#allocation7 + $0xe0] ss:$16 sps:$4 sm:$0xff]   ;;  %15256 = vst [vmem:[#allocation22_spill] sm:$0xff] %v12592_v49 }
 0xaa7   :  { %v12478_v23 = vadd.f32 %v4118_v11, %v4114_v31  ;;  %v12565_v11 = vld [vmem:[#allocation7 + $0xc0] ss:$16 sps:$4 sm:$0xff]   ;;  %15253 = vst [vmem:[#allocation27_spill] sm:$0xff] %v12577_v33 }
 0xaa8   :  { %v12480_v28 = vpack.c.bf16 %v4128_v47, %v4127_v39  ;;  %15249 = vst [vmem:[#allocation223_spill] sm:$0xff] %v12565_v11 }
 0xaa9   :  { %8649 = vtanh.f32 %v12478_v23 }
 0xaaa   :  { %4166 = vmatmul.mubr.bf16.vlgmr.msra.gmra.mrb[140].mxu0 %v12480_v28  ;;  %4219 = vmatmul.mubr.bf16.vlgmr.msra.gmra.mrb[152].mxu1 %v12480_v28 }
 0xaab   :  { %4175 = vmatprep.mubr.bf16.mxu0 %v14876_v22  ;;  %4228 = vmatprep.mubr.bf16.mxu1 %v14876_v22  ;;  %v8644_v30 = vpop.eup %8643 }
 0xaac   :  { %4354 = vmatpush1.bf16.msra.mxu0 %v12487_v60  ;;  %4407 = vmatpush1.bf16.msra.mxu1 %v12490_v50  ;;  %v8646_v9 = vpop.eup %8645 }
 0xaad   :  { %4355 = vmatprep.subr.bf16.mxu0 %v12493_v20  ;;  %4408 = vmatprep.subr.bf16.mxu1 %v12496_v38  ;;  %v8648_v4 = vpop.eup %8647  ;;  %v4129_v54 = vmul.f32 %v8646_v9, %v8644_v30 }
 0xab0   :  { %4356 = vmatpush1.bf16.msra.mxu0 %v12499_v62  ;;  %4409 = vmatpush1.bf16.msra.mxu1 %v12502_v5 }
 0xab1   :  { %4357 = vmatprep.subr.bf16.mxu0 %v12505_v40  ;;  %4410 = vmatprep.subr.bf16.mxu1 %v12508_v61 }
 0xab3   :  { %v8650_v59 = vpop.eup %8649 }
 0xab4   :  { %v4130_v48 = vmul.f32 %v8650_v59, %v8648_v4  ;;  %4358 = vmatpush1.bf16.msra.mxu0 %v12511_v35  ;;  %4411 = vmatpush1.bf16.msra.mxu1 %v12514_v2 }
 0xab5   :  { %4359 = vmatprep.subr.bf16.mxu0 %v12517_v21  ;;  %4412 = vmatprep.subr.bf16.mxu1 %v12520_v25 }
 0xab6   :  { %v12523_v26 = vpack.c.bf16 %v4130_v48, %v4129_v54 }
 0xab8   :  { %4176 = vmatmul.mubr.bf16.gmra.mrb[144].mxu0 %v12523_v26  ;;  %4229 = vmatmul.mubr.bf16.gmra.mrb[156].mxu1 %v12523_v26 }
 0xab9   :  { %4360 = vmatpush1.bf16.msra.mxu0 %v12527_v3  ;;  %4413 = vmatpush1.bf16.msra.mxu1 %v12530_v45 }
 0xaba   :  { %4361 = vmatprep.subr.bf16.mxu0 %v12533_v34  ;;  %4414 = vmatprep.subr.bf16.mxu1 %v12536_v37 }
 0xabb   :  { %4385 = vmatprep.mubr.bf16.mxu0 %v14876_v22  ;;  %4438 = vmatprep.mubr.bf16.mxu1 %v14876_v22 }
 0xabd   :  { %4362 = vmatpush1.bf16.msra.mxu0 %v12541_v18  ;;  %4415 = vmatpush1.bf16.msra.mxu1 %v12544_v56 }
 0xabe   :  { %4363 = vmatprep.subr.bf16.mxu0 %v12547_v55  ;;  %4416 = vmatprep.subr.bf16.mxu1 %v12550_v1 }
 0xac1   :  { %4364 = vmatpush1.bf16.msra.mxu0 %v12553_v10  ;;  %4417 = vmatpush1.bf16.msra.mxu1 %v12556_v0 }
 0xac2   :  { %4365 = vmatprep.subr.bf16.mxu0 %v12559_v27  ;;  %4418 = vmatprep.subr.bf16.mxu1 %v12562_v57 }
 0xac5   :  { %4366 = vmatpush1.bf16.msra.mxu0 %v12565_v11  ;;  %4419 = vmatpush1.bf16.msra.mxu1 %v12568_v52 }
 0xac6   :  { %4367 = vmatprep.subr.bf16.mxu0 %v12571_v19  ;;  %4420 = vmatprep.subr.bf16.mxu1 %v12574_v14 }
 0xac9   :  { %4368 = vmatpush1.bf16.msra.mxu0 %v12577_v33  ;;  %4421 = vmatpush1.bf16.msra.mxu1 %v12580_v58 }
 0xaca   :  { %4475 = vmatprep.subr.bf16.mxu0 %v12586_v42  ;;  %4528 = vmatprep.subr.bf16.mxu1 %v12592_v49 }
 0xb7d   :  { %v4167_v36 = vpop.f32.mrb[140].mxu0  ;;  %v4220_v16 = vpop.f32.mrb[152].mxu1 }
 0xb7e   :  { %v4239_v31 = vadd.f32 %v4167_v36, %v14985_v8  ;;  %v4169_v39 = vpop.f32.mrb[141].mxu0  ;;  %v4222_v47 = vpop.f32.mrb[153].mxu1  ;;  %v4241_v14 = vadd.f32 %v4220_v16, %v11026_v13 }
 0xb7f   :  { %v4240_v30 = vadd.f32 %v4169_v39, %v11021_v53  ;;  %v4171_v9 = vpop.f32.mrb[142].mxu0  ;;  %v4224_v4 = vpop.f32.mrb[154].mxu1 }
 0xb80   :  { %v7552_v59 = vmul.f32 -1.442695, %v4239_v31  ;;  %v4243_v54 = vadd.f32 %v4171_v9, %v14985_v8  ;;  %v4173_v48 = vpop.f32.mrb[143].mxu0  ;;  %v4226_v42 = vpop.f32.mrb[155].mxu1  ;;  %v4245_v36 = vadd.f32 %v4224_v4, %v11026_v13  ;;  %v7554_v39 = vmul.f32 -1.442695, %v4241_v14 }
 0xb81   :  { %v7553_v58 = vmul.f32 -1.442695, %v4240_v30  ;;  %v4244_v33 = vadd.f32 %v4173_v48, %v11021_v53  ;;  %v4242_v31 = vadd.f32 %v4222_v47, %v11032_v32 }
 0xb82   :  { %8651 = vpow2.f32 %v7552_v59  ;;  %v7555_v49 = vmul.f32 -1.442695, %v4243_v54  ;;  %v7557_v52 = vmul.f32 -1.442695, %v4245_v36  ;;  %v4246_v59 = vadd.f32 %v4226_v42, %v11032_v32 }
 0xb83   :  { %v7556_v19 = vmul.f32 -1.442695, %v4244_v33  ;;  %8653 = vpow2.f32 %v7553_v58 }
 0xb84   :  { %8655 = vpow2.f32 %v7555_v49 }
 0xb85   :  { %8657 = vpow2.f32 %v7556_v19 }
 0xb86   :  { %8659 = vpow2.f32 %v7554_v39 }
 0xb87   :  { %8661 = vpow2.f32 %v7557_v52 }
 0xb88   :  { %8663 = vtanh.f32 %v4242_v31 }
 0xb8b   :  { %v4177_v9 = vpop.f32.mrb[144].mxu0  ;;  %v4230_v11 = vpop.f32.mrb[156].mxu1 }
 0xb8c   :  { %v8652_v30 = vpop.eup %8651  ;;  %v4179_v54 = vpop.f32.mrb[145].mxu0  ;;  %v4247_v33 = vadd.f32 %v4177_v9, %v14985_v8 }
 0xb8d   :  { %v4232_v48 = vpop.f32.mrb[157].mxu1  ;;  %v4291_v16 = vadd.f32 1.0, %v8652_v30  ;;  %v4181_v58 = vpop.f32.mrb[146].mxu0  ;;  %v4248_v36 = vadd.f32 %v4179_v54, %v11021_v53  ;;  %v4249_v54 = vadd.f32 %v4230_v11, %v11026_v13 }
 0xb8e   :  { %v4234_v4 = vpop.f32.mrb[158].mxu1  ;;  %v8654_v49 = vpop.eup %8653  ;;  %v7558_v42 = vmul.f32 -1.442695, %v4247_v33  ;;  %v4251_v30 = vadd.f32 %v4181_v58, %v14985_v8 }
 0xb8f   :  { %v4183_v19 = vpop.f32.mrb[147].mxu0  ;;  %v8656_v14 = vpop.eup %8655  ;;  %8665 = vrcp.f32 %v4291_v16  ;;  %v4292_v47 = vadd.f32 1.0, %v8654_v49  ;;  %v7559_v27 = vmul.f32 -1.442695, %v4248_v36  ;;  %v4253_v33 = vadd.f32 %v4234_v4, %v11026_v13 }
 0xb90   :  { %v4236_v39 = vpop.f32.mrb[159].mxu1  ;;  %v4294_v57 = vadd.f32 1.0, %v8656_v14  ;;  %8667 = vtanh.f32 %v4246_v59  ;;  %v8658_v52 = vpop.eup %8657  ;;  %v4252_v0 = vadd.f32 %v4183_v19, %v11021_v53  ;;  %v7561_v16 = vmul.f32 -1.442695, %v4251_v30 }
 0xb91   :  { %8669 = vrcp.f32 %v4292_v47  ;;  %v4295_v9 = vadd.f32 1.0, %v8658_v52  ;;  %v8660_v31 = vpop.eup %8659  ;;  %v7560_v52 = vmul.f32 -1.442695, %v4249_v54 }
 0xb92   :  { %8671 = vrcp.f32 %v4294_v57  ;;  %v8662_v49 = vpop.eup %8661  ;;  %v7562_v14 = vmul.f32 -1.442695, %v4252_v0  ;;  %v4293_v10 = vadd.f32 1.0, %v8660_v31 }
 0xb93   :  { %8673 = vrcp.f32 %v4295_v9  ;;  %v8664_v59 = vpop.eup %8663  ;;  %v4296_v58 = vadd.f32 1.0, %v8662_v49  ;;  %v4250_v9 = vadd.f32 %v4232_v48, %v11032_v32  ;;  %v4254_v48 = vadd.f32 %v4236_v39, %v11032_v32 }
 0xb94   :  { %8675 = vpow2.f32 %v7558_v42 }
 0xb95   :  { %8677 = vpow2.f32 %v7559_v27  ;;  %v7563_v27 = vmul.f32 -1.442695, %v4253_v33 }
 0xb96   :  { %8679 = vpow2.f32 %v7561_v16 }
 0xb97   :  { %8681 = vpow2.f32 %v7562_v14 }
 0xb98   :  { %8683 = vrcp.f32 %v4293_v10 }
 0xb99   :  { %v8666_v47 = vpop.eup %8665  ;;  %8685 = vrcp.f32 %v4296_v58 }
 0xb9a   :  { %v8668_v57 = vpop.eup %8667  ;;  %v4335_v36 = vmul.f32 %v8666_v47, %v8664_v59  ;;  %8687 = vpow2.f32 %v7560_v52 }
 0xb9b   :  { %v8670_v19 = vpop.eup %8669  ;;  %8689 = vtanh.f32 %v4250_v9 }
 0xb9c   :  { %v8672_v42 = vpop.eup %8671  ;;  %v4331_v11 = vmul.f32 %v8670_v19, %v12337_v29  ;;  %8691 = vpow2.f32 %v7563_v27 }
 0xb9d   :  { %v4336_v0 = vmul.f32 %v8672_v42, %v8668_v57  ;;  %v8674_v30 = vpop.eup %8673 }
 0xb9e   :  { %v12611_v31 = vadd.f32 %v4335_v36, %v4331_v11  ;;  %v8676_v4 = vpop.eup %8675  ;;  %v4332_v16 = vmul.f32 %v8674_v30, %v12342_v15 }
 0xb9f   :  { %v4297_v49 = vadd.f32 1.0, %v8676_v4  ;;  %v8678_v54 = vpop.eup %8677 }
 0xba0   :  { %8693 = vtanh.f32 %v12611_v31  ;;  %v12616_v10 = vadd.f32 %v4336_v0, %v4332_v16  ;;  %v4298_v29 = vadd.f32 1.0, %v8678_v54  ;;  %v8680_v14 = vpop.eup %8679 }
 0xba1   :  { %8695 = vrcp.f32 %v4297_v49  ;;  %v4300_v59 = vadd.f32 1.0, %v8680_v14  ;;  %v8682_v33 = vpop.eup %8681 }
 0xba2   :  { %8697 = vtanh.f32 %v12616_v10  ;;  %v8684_v15 = vpop.eup %8683  ;;  %v4301_v47 = vadd.f32 1.0, %v8682_v33 }
 0xba3   :  { %8699 = vtanh.f32 %v4254_v48  ;;  %v8686_v58 = vpop.eup %8685 }
 0xba4   :  { %8701 = vrcp.f32 %v4298_v29  ;;  %v8688_v57 = vpop.eup %8687 }
 0xba5   :  { %8703 = vrcp.f32 %v4300_v59  ;;  %v8690_v39 = vpop.eup %8689  ;;  %v4299_v16 = vadd.f32 1.0, %v8688_v57  ;;  %v12656_v57 = vld [vmem:[%s14414_s2 + $0x20] ss:$16 sps:$4 sm:$0xff]  }
 0xba6   :  { %8705 = vrcp.f32 %v4301_v47  ;;  %v8692_v36 = vpop.eup %8691  ;;  %v12638_v47 = vld [vmem:[%s14414_s2 + $0x24] ss:$16 sps:$4 sm:$0xff]   ;;  %15263 = vst [vmem:[#allocation28_spill] sm:$0xff] %v12656_v57 }
 0xba7   :  { %v4302_v59 = vadd.f32 1.0, %v8692_v36  ;;  %8707 = vrcp.f32 %v4299_v16  ;;  %15260 = vst [vmem:[#allocation24_spill] sm:$0xff] %v12638_v47  ;;  %v12668_v36 = vld [vmem:[%s14414_s2 + $0x44] ss:$16 sps:$4 sm:$0xff]  }
 0xba8   :  { %15265 = vst [vmem:[#allocation39_spill] sm:$0xff] %v12668_v36 }
 0xbaa   :  { %v8694_v52 = vpop.eup %8693 }
 0xbab   :  { %v8696_v19 = vpop.eup %8695  ;;  %v4347_v27 = vmul.f32 %v8694_v52, %v8684_v15  ;;  %v12626_v15 = vld [vmem:[%s14414_s2] ss:$16 sps:$4 sm:$0xff]   ;;  %v12674_v52 = vld [vmem:[%s14414_s2 + $0x4c] ss:$16 sps:$4 sm:$0xff]  }
 0xbac   :  { %v8698_v9 = vpop.eup %8697  ;;  %v4337_v42 = vmul.f32 %v8696_v19, %v8690_v39  ;;  %15258 = vst [vmem:[#allocation23_spill] sm:$0xff] %v12626_v15  ;;  %v12662_v39 = vld [vmem:[%s14414_s2 + $0x28] ss:$16 sps:$4 sm:$0xff]   ;;  %15266 = vst [vmem:[#allocation30_spill] sm:$0xff] %v12674_v52  ;;  %v12680_v19 = vld [vmem:[%s14414_s2 + $0x40] ss:$16 sps:$4 sm:$0xff]  }
 0xbad   :  { %v8700_v11 = vpop.eup %8699  ;;  %v4348_v0 = vmul.f32 %v8698_v9, %v8686_v58  ;;  %15264 = vst [vmem:[#allocation37_spill] sm:$0xff] %v12662_v39  ;;  %15267 = vst [vmem:[#allocation41_spill] sm:$0xff] %v12680_v19  ;;  %v12686_v9 = vld [vmem:[%s14414_s2 + $0x48] ss:$16 sps:$4 sm:$0xff]  }
 0xbae   :  { %v8702_v30 = vpop.eup %8701  ;;  %15268 = vst [vmem:[#allocation32_spill] sm:$0xff] %v12686_v9 }
 0xbaf   :  { %v8704_v4 = vpop.eup %8703  ;;  %v4333_v49 = vmul.f32 %v8702_v30, %v12346_v44  ;;  %v4351_v48 = vpack.c.bf16 %v4348_v0, %v4347_v27  ;;  %v12632_v44 = vld [vmem:[%s14414_s2 + $0x8] ss:$16 sps:$4 sm:$0xff]   ;;  %v12704_v30 = vld [vmem:[%s14414_s2 + $0x60] ss:$16 sps:$4 sm:$0xff]  }
 0xbb0   :  { %v4338_v54 = vmul.f32 %v8704_v4, %v8700_v11  ;;  %v8706_v29 = vpop.eup %8705  ;;  %15259 = vst [vmem:[#allocation33_spill] sm:$0xff] %v12632_v44  ;;  %v12698_v11 = vld [vmem:[%s14414_s2 + $0x6c] ss:$16 sps:$4 sm:$0xff]   ;;  %15271 = vst [vmem:[#allocation45_spill] sm:$0xff] %v12704_v30  ;;  %v12710_v4 = vld [vmem:[%s14414_s2 + $0x68] ss:$16 sps:$4 sm:$0xff]  }
 0xbb1   :  { %v12620_v14 = vadd.f32 %v4337_v42, %v4333_v49  ;;  %4386 = vmatmul.mubr.bf16.vlgmr.msra.gmra.mrb[156].mxu0 %v4351_v48  ;;  %4439 = vmatmul.mubr.bf16.vlgmr.msra.gmra.mrb[168].mxu1 %v4351_v48  ;;  %v4334_v33 = vmul.f32 %v8706_v29, %v12354_v51  ;;  %v12644_v51 = vld [vmem:[%s14414_s2 + $0x2c] ss:$16 sps:$4 sm:$0xff]   ;;  %v12692_v42 = vld [vmem:[%s14414_s2 + $0x64] ss:$16 sps:$4 sm:$0xff]   ;;  %15270 = vst [vmem:[#allocation34_spill] sm:$0xff] %v12698_v11  ;;  %v8708_v27 = vpop.eup %8707  ;;  %15272 = vst [vmem:[#allocation36_spill] sm:$0xff] %v12710_v4 }
 0xbb2   :  { %4476 = vmatpush1.bf16.msra.mxu0 %v12626_v15  ;;  %4529 = vmatpush1.bf16.msra.mxu1 %v12632_v44  ;;  %15261 = vst [vmem:[#allocation26_spill] sm:$0xff] %v12644_v51  ;;  %15269 = vst [vmem:[#allocation43_spill] sm:$0xff] %v12692_v42  ;;  %v12716_v49 = vld [vmem:[%s14414_s2 + $0x84] ss:$16 sps:$4 sm:$0xff]   ;;  %v12722_v48 = vld [vmem:[%s14414_s2 + $0x8c] ss:$16 sps:$4 sm:$0xff]  }
 0xbb3   :  { %15257 = vst [vmem:[#allocation31_spill] sm:$0xff] %v12620_v14  ;;  %4477 = vmatprep.subr.bf16.mxu0 %v12638_v47  ;;  %4530 = vmatprep.subr.bf16.mxu1 %v12644_v51  ;;  %8709 = vtanh.f32 %v12620_v14  ;;  %v12648_v58 = vadd.f32 %v4338_v54, %v4334_v33  ;;  %15273 = vst [vmem:[#allocation47_spill] sm:$0xff] %v12716_v49  ;;  %v12728_v33 = vld [vmem:[%s14414_s2 + $0x80] ss:$16 sps:$4 sm:$0xff]  }
 0xbb4   :  { %4395 = vmatprep.mubr.bf16.mxu0 %v14876_v22  ;;  %4448 = vmatprep.mubr.bf16.mxu1 %v14876_v22  ;;  %8711 = vrcp.f32 %v4302_v59  ;;  %15274 = vst [vmem:[#allocation38_spill] sm:$0xff] %v12722_v48  ;;  %15275 = vst [vmem:[#allocation49_spill] sm:$0xff] %v12728_v33 }
 0xbb5   :  { %15262 = vst [vmem:[#allocation35_spill] sm:$0xff] %v12648_v58  ;;  %8713 = vtanh.f32 %v12648_v58 }
 0xbb6   :  { %4478 = vmatpush1.bf16.msra.mxu0 %v12656_v57  ;;  %4531 = vmatpush1.bf16.msra.mxu1 %v12662_v39 }
 0xbb7   :  { %4479 = vmatprep.subr.bf16.mxu0 %v12668_v36  ;;  %4532 = vmatprep.subr.bf16.mxu1 %v12674_v52 }
 0xbba   :  { %4480 = vmatpush1.bf16.msra.mxu0 %v12680_v19  ;;  %4533 = vmatpush1.bf16.msra.mxu1 %v12686_v9 }
 0xbbb   :  { %4481 = vmatprep.subr.bf16.mxu0 %v12692_v42  ;;  %4534 = vmatprep.subr.bf16.mxu1 %v12698_v11 }
 0xbbd   :  { %v8710_v0 = vpop.eup %8709 }
 0xbbe   :  { %4482 = vmatpush1.bf16.msra.mxu0 %v12704_v30  ;;  %4535 = vmatpush1.bf16.msra.mxu1 %v12710_v4  ;;  %v8712_v16 = vpop.eup %8711  ;;  %v4349_v29 = vmul.f32 %v8710_v0, %v8708_v27  ;;  %v12740_v27 = vld [vmem:[%s14414_s2 + $0xa4] ss:$16 sps:$4 sm:$0xff]   ;;  %v12746_v0 = vld [vmem:[%s14414_s2 + $0xac] ss:$16 sps:$4 sm:$0xff]  }
 0xbbf   :  { %4483 = vmatprep.subr.bf16.mxu0 %v12716_v49  ;;  %4536 = vmatprep.subr.bf16.mxu1 %v12722_v48  ;;  %v8714_v54 = vpop.eup %8713  ;;  %v12734_v49 = vld [vmem:[%s14414_s2 + $0x88] ss:$16 sps:$4 sm:$0xff]   ;;  %15277 = vst [vmem:[#allocation42_spill] sm:$0xff] %v12740_v27  ;;  %15278 = vst [vmem:[#allocation51_spill] sm:$0xff] %v12746_v0 }
 0xbc0   :  { %v4350_v59 = vmul.f32 %v8714_v54, %v8712_v16  ;;  %15276 = vst [vmem:[#allocation40_spill] sm:$0xff] %v12734_v49  ;;  %v12752_v16 = vld [vmem:[%s14414_s2 + $0xa0] ss:$16 sps:$4 sm:$0xff]   ;;  %v12758_v54 = vld [vmem:[%s14414_s2 + $0xa8] ss:$16 sps:$4 sm:$0xff]  }
 0xbc1   :  { %15279 = vst [vmem:[#allocation44_spill] sm:$0xff] %v12752_v16  ;;  %15280 = vst [vmem:[#allocation53_spill] sm:$0xff] %v12758_v54 }
 0xbc2   :  { %4484 = vmatpush1.bf16.msra.mxu0 %v12728_v33  ;;  %4537 = vmatpush1.bf16.msra.mxu1 %v12734_v49  ;;  %v4352_v4 = vpack.c.bf16 %v4350_v59, %v4349_v29  ;;  %v12764_v29 = vld [vmem:[%s14414_s2 + $0xc4] ss:$16 sps:$4 sm:$0xff]   ;;  %v12778_v59 = vld [vmem:[%s14414_s2 + $0xc0] ss:$16 sps:$4 sm:$0xff]  }
 0xbc3   :  { %4485 = vmatprep.subr.bf16.mxu0 %v12740_v27  ;;  %4538 = vmatprep.subr.bf16.mxu1 %v12746_v0  ;;  %15281 = vst [vmem:[#allocation55_spill] sm:$0xff] %v12764_v29  ;;  %15283 = vst [vmem:[#allocation144_spill] sm:$0xff] %v12778_v59  ;;  %v15324_v0 = vld [vmem:[#allocation75_spill] sm:$0xff] }
 0xbc4   :  { %4396 = vmatmul.mubr.bf16.gmra.mrb[160].mxu0 %v4352_v4  ;;  %4449 = vmatmul.mubr.bf16.gmra.mrb[172].mxu1 %v4352_v4  ;;  %v12770_v4 = vld [vmem:[%s14414_s2 + $0xcc] ss:$16 sps:$4 sm:$0xff]   ;;  %v888_v27 = vadd.f32 %v15324_v0, %v10861_v63 }
 0xbc5   :  { %15282 = vst [vmem:[#allocation143_spill] sm:$0xff] %v12770_v4  ;;  %4507 = vmatprep.mubr.bf16.mxu0 %v14876_v22  ;;  %4560 = vmatprep.mubr.bf16.mxu1 %v14876_v22 }
 0xbc6   :  { %4486 = vmatpush1.bf16.msra.mxu0 %v12752_v16  ;;  %4539 = vmatpush1.bf16.msra.mxu1 %v12758_v54  ;;  %v12796_v54 = vld [vmem:[%s14414_s2 + $0xec] ss:$16 sps:$4 sm:$0xff]   ;;  %v15323_v16 = vld [vmem:[#allocation64_spill] sm:$0xff] }
 0xbc7   :  { %4487 = vmatprep.subr.bf16.mxu0 %v12764_v29  ;;  %4540 = vmatprep.subr.bf16.mxu1 %v12770_v4  ;;  %v12784_v29 = vld [vmem:[%s14414_s2 + $0xc8] ss:$16 sps:$4 sm:$0xff]   ;;  %v12790_v4 = vld [vmem:[%s14414_s2 + $0xe4] ss:$16 sps:$4 sm:$0xff]   ;;  %15286 = vst [vmem:[#allocation147_spill] sm:$0xff] %v12796_v54 }
 0xbc8   :  { %15284 = vst [vmem:[#allocation145_spill] sm:$0xff] %v12784_v29  ;;  %15285 = vst [vmem:[#allocation146_spill] sm:$0xff] %v12790_v4 }
 0xbca   :  { %4488 = vmatpush1.bf16.msra.mxu0 %v12778_v59  ;;  %4541 = vmatpush1.bf16.msra.mxu1 %v12784_v29  ;;  %v12802_v59 = vld [vmem:[%s14414_s2 + $0xe0] ss:$16 sps:$4 sm:$0xff]   ;;  %v12808_v29 = vld [vmem:[%s14414_s2 + $0xe8] ss:$16 sps:$4 sm:$0xff]  }
 0xbcb   :  { %4489 = vmatprep.subr.bf16.mxu0 %v12790_v4  ;;  %4542 = vmatprep.subr.bf16.mxu1 %v12796_v54  ;;  %15287 = vst [vmem:[#allocation148_spill] sm:$0xff] %v12802_v59  ;;  %15288 = vst [vmem:[#allocation149_spill] sm:$0xff] %v12808_v29  ;;  %v12814_v4 = vld [vmem:[%s14416_s4 + $0x4] ss:$16 sps:$4 sm:$0xff]   ;;  %v12820_v54 = vld [vmem:[%s14416_s4 + $0xc] ss:$16 sps:$4 sm:$0xff]  }
 0xbcc   :  { %15289 = vst [vmem:[#allocation150_spill] sm:$0xff] %v12814_v4  ;;  %15290 = vst [vmem:[#allocation151_spill] sm:$0xff] %v12820_v54 }
 0xbce   :  { %4490 = vmatpush1.bf16.msra.mxu0 %v12802_v59  ;;  %4543 = vmatpush1.bf16.msra.mxu1 %v12808_v29  ;;  %v12830_v29 = vld [vmem:[%s14416_s4] ss:$16 sps:$4 sm:$0xff]  }
 0xbcf   :  { %4695 = vmatprep.subr.bf16.mxu0 %v12814_v4  ;;  %4748 = vmatprep.subr.bf16.mxu1 %v12820_v54  ;;  %15291 = vst [vmem:[#allocation152_spill] sm:$0xff] %v12830_v29  ;;  %v12836_v4 = vld [vmem:[%s14416_s4 + $0x8] ss:$16 sps:$4 sm:$0xff]   ;;  %v12848_v54 = vld [vmem:[%s14416_s4 + $0x2c] ss:$16 sps:$4 sm:$0xff]  }
 0xbd0   :  { %15292 = vst [vmem:[#allocation153_spill] sm:$0xff] %v12836_v4  ;;  %15294 = vst [vmem:[#allocation155_spill] sm:$0xff] %v12848_v54 }
 0xbd1   :  { %4508 = vmatmul.mubr.bf16.vlgmr.msra.gmra.mrb[164].mxu0 %v12480_v28  ;;  %4561 = vmatmul.mubr.bf16.vlgmr.msra.gmra.mrb[176].mxu1 %v12480_v28  ;;  %v12842_v28 = vld [vmem:[%s14416_s4 + $0x24] ss:$16 sps:$4 sm:$0xff]  }
 0xbd2   :  { %4517 = vmatprep.mubr.bf16.mxu0 %v14876_v22  ;;  %4570 = vmatprep.mubr.bf16.mxu1 %v14876_v22  ;;  %15293 = vst [vmem:[#allocation154_spill] sm:$0xff] %v12842_v28 }
 0xbd3   :  { %4696 = vmatpush1.bf16.msra.mxu0 %v12830_v29  ;;  %4749 = vmatpush1.bf16.msra.mxu1 %v12836_v4  ;;  %v12854_v29 = vld [vmem:[%s14416_s4 + $0x20] ss:$16 sps:$4 sm:$0xff]   ;;  %v12860_v4 = vld [vmem:[%s14416_s4 + $0x28] ss:$16 sps:$4 sm:$0xff]  }
 0xbd4   :  { %4697 = vmatprep.subr.bf16.mxu0 %v12842_v28  ;;  %4750 = vmatprep.subr.bf16.mxu1 %v12848_v54  ;;  %15295 = vst [vmem:[#allocation160_spill] sm:$0xff] %v12854_v29  ;;  %15296 = vst [vmem:[#allocation156_spill] sm:$0xff] %v12860_v4  ;;  %v12866_v28 = vld [vmem:[%s14416_s4 + $0x44] ss:$16 sps:$4 sm:$0xff]   ;;  %v12872_v54 = vld [vmem:[%s14416_s4 + $0x4c] ss:$16 sps:$4 sm:$0xff]  }
 0xbd5   :  { %15297 = vst [vmem:[#allocation157_spill] sm:$0xff] %v12866_v28  ;;  %15298 = vst [vmem:[#allocation158_spill] sm:$0xff] %v12872_v54 }
 0xbd7   :  { %4698 = vmatpush1.bf16.msra.mxu0 %v12854_v29  ;;  %4751 = vmatpush1.bf16.msra.mxu1 %v12860_v4  ;;  %v12882_v4 = vld [vmem:[%s14416_s4 + $0x40] ss:$16 sps:$4 sm:$0xff]   ;;  %v15322_v29 = vld [vmem:[#allocation73_spill] sm:$0xff] }
 0xbd8   :  { %4699 = vmatprep.subr.bf16.mxu0 %v12866_v28  ;;  %4752 = vmatprep.subr.bf16.mxu1 %v12872_v54  ;;  %15299 = vst [vmem:[#allocation159_spill] sm:$0xff] %v12882_v4  ;;  %v12888_v28 = vld [vmem:[%s14416_s4 + $0x48] ss:$16 sps:$4 sm:$0xff]   ;;  %v12900_v54 = vld [vmem:[%s14416_s4 + $0x6c] ss:$16 sps:$4 sm:$0xff]   ;;  %v886_v59 = vadd.f32 %v15322_v29, %v10856_v12  ;;  %v15327_v29 = vld [vmem:[#allocation68_spill] sm:$0xff] }
 0xbd9   :  { %4518 = vmatmul.mubr.bf16.gmra.mrb[168].mxu0 %v12523_v26  ;;  %4571 = vmatmul.mubr.bf16.gmra.mrb[180].mxu1 %v12523_v26  ;;  %15300 = vst [vmem:[#allocation161_spill] sm:$0xff] %v12888_v28  ;;  %v12894_v26 = vld [vmem:[%s14416_s4 + $0x64] ss:$16 sps:$4 sm:$0xff]   ;;  %15302 = vst [vmem:[#allocation163_spill] sm:$0xff] %v12900_v54  ;;  %v589_v9 = vadd.f32 %v15327_v29, %v15230_v7 }
 0xbda   :  { %4727 = vmatprep.mubr.bf16.mxu0 %v14876_v22  ;;  %4780 = vmatprep.mubr.bf16.mxu1 %v14876_v22  ;;  %15301 = vst [vmem:[#allocation162_spill] sm:$0xff] %v12894_v26  ;;  %v15329_v29 = vld [vmem:[#allocation70_spill] sm:$0xff] }
 0xbdb   :  { %4700 = vmatpush1.bf16.msra.mxu0 %v12882_v4  ;;  %4753 = vmatpush1.bf16.msra.mxu1 %v12888_v28  ;;  %v12906_v4 = vld [vmem:[%s14416_s4 + $0x60] ss:$16 sps:$4 sm:$0xff]   ;;  %v12912_v28 = vld [vmem:[%s14416_s4 + $0x68] ss:$16 sps:$4 sm:$0xff]   ;;  %v593_v15 = vadd.f32 %v15329_v29, %v15227_v6 }
 0xbdc   :  { %4701 = vmatprep.subr.bf16.mxu0 %v12894_v26  ;;  %4754 = vmatprep.subr.bf16.mxu1 %v12900_v54  ;;  %15303 = vst [vmem:[#allocation164_spill] sm:$0xff] %v12906_v4  ;;  %15304 = vst [vmem:[#allocation165_spill] sm:$0xff] %v12912_v28  ;;  %v12918_v26 = vld [vmem:[%s14416_s4 + $0x84] ss:$16 sps:$4 sm:$0xff]   ;;  %v12924_v54 = vld [vmem:[%s14416_s4 + $0x8c] ss:$16 sps:$4 sm:$0xff]  }
 0xbdd   :  { %15305 = vst [vmem:[#allocation166_spill] sm:$0xff] %v12918_v26  ;;  %15306 = vst [vmem:[#allocation167_spill] sm:$0xff] %v12924_v54 }
 0xbdf   :  { %4702 = vmatpush1.bf16.msra.mxu0 %v12906_v4  ;;  %4755 = vmatpush1.bf16.msra.mxu1 %v12912_v28  ;;  %v12930_v4 = vld [vmem:[%s14416_s4 + $0x80] ss:$16 sps:$4 sm:$0xff]   ;;  %v12936_v28 = vld [vmem:[%s14416_s4 + $0x88] ss:$16 sps:$4 sm:$0xff]  }
 0xbe0   :  { %4703 = vmatprep.subr.bf16.mxu0 %v12918_v26  ;;  %4756 = vmatprep.subr.bf16.mxu1 %v12924_v54  ;;  %15307 = vst [vmem:[#allocation168_spill] sm:$0xff] %v12930_v4  ;;  %15308 = vst [vmem:[#allocation169_spill] sm:$0xff] %v12936_v28  ;;  %v12942_v26 = vld [vmem:[%s14416_s4 + $0xa4] ss:$16 sps:$4 sm:$0xff]   ;;  %v12948_v54 = vld [vmem:[%s14416_s4 + $0xac] ss:$16 sps:$4 sm:$0xff]  }
 0xbe1   :  { %15309 = vst [vmem:[#allocation170_spill] sm:$0xff] %v12942_v26  ;;  %15310 = vst [vmem:[#allocation171_spill] sm:$0xff] %v12948_v54 }
 0xbe3   :  { %4704 = vmatpush1.bf16.msra.mxu0 %v12930_v4  ;;  %4757 = vmatpush1.bf16.msra.mxu1 %v12936_v28  ;;  %v12954_v4 = vld [vmem:[%s14416_s4 + $0xa0] ss:$16 sps:$4 sm:$0xff]   ;;  %v12960_v28 = vld [vmem:[%s14416_s4 + $0xa8] ss:$16 sps:$4 sm:$0xff]  }
 0xbe4   :  { %4705 = vmatprep.subr.bf16.mxu0 %v12942_v26  ;;  %4758 = vmatprep.subr.bf16.mxu1 %v12948_v54  ;;  %15311 = vst [vmem:[#allocation172_spill] sm:$0xff] %v12954_v4  ;;  %15312 = vst [vmem:[#allocation173_spill] sm:$0xff] %v12960_v28  ;;  %v12966_v26 = vld [vmem:[%s14416_s4 + $0xc4] ss:$16 sps:$4 sm:$0xff]   ;;  %v12972_v54 = vld [vmem:[%s14416_s4 + $0xcc] ss:$16 sps:$4 sm:$0xff]  }
 0xbe5   :  { %15313 = vst [vmem:[#allocation174_spill] sm:$0xff] %v12966_v26  ;;  %15314 = vst [vmem:[#allocation175_spill] sm:$0xff] %v12972_v54 }
 0xbe7   :  { %4706 = vmatpush1.bf16.msra.mxu0 %v12954_v4  ;;  %4759 = vmatpush1.bf16.msra.mxu1 %v12960_v28  ;;  %v12978_v4 = vld [vmem:[%s14416_s4 + $0xc0] ss:$16 sps:$4 sm:$0xff]   ;;  %v12984_v28 = vld [vmem:[%s14416_s4 + $0xc8] ss:$16 sps:$4 sm:$0xff]  }
 0xbe8   :  { %4707 = vmatprep.subr.bf16.mxu0 %v12966_v26  ;;  %4760 = vmatprep.subr.bf16.mxu1 %v12972_v54  ;;  %15315 = vst [vmem:[#allocation176_spill] sm:$0xff] %v12978_v4  ;;  %15316 = vst [vmem:[#allocation177_spill] sm:$0xff] %v12984_v28  ;;  %v12990_v26 = vld [vmem:[%s14416_s4 + $0xe4] ss:$16 sps:$4 sm:$0xff]   ;;  %v12996_v54 = vld [vmem:[%s14416_s4 + $0xec] ss:$16 sps:$4 sm:$0xff]  }
 0xbe9   :  { %15317 = vst [vmem:[#allocation178_spill] sm:$0xff] %v12990_v26  ;;  %15318 = vst [vmem:[#allocation179_spill] sm:$0xff] %v12996_v54 }
 0xbeb   :  { %4708 = vmatpush1.bf16.msra.mxu0 %v12978_v4  ;;  %4761 = vmatpush1.bf16.msra.mxu1 %v12984_v28  ;;  %v13002_v4 = vld [vmem:[%s14416_s4 + $0xe0] ss:$16 sps:$4 sm:$0xff]   ;;  %v13008_v28 = vld [vmem:[%s14416_s4 + $0xe8] ss:$16 sps:$4 sm:$0xff]  }
 0xbec   :  { %4709 = vmatprep.subr.bf16.mxu0 %v12990_v26  ;;  %4762 = vmatprep.subr.bf16.mxu1 %v12996_v54  ;;  %15319 = vst [vmem:[#allocation180_spill] sm:$0xff] %v13002_v4  ;;  %15320 = vst [vmem:[#allocation181_spill] sm:$0xff] %v13008_v28  ;;  %v15321_v54 = vld [vmem:[#allocation62_spill] sm:$0xff] }
 0xbed   :  { %v581_v26 = vadd.f32 %v15321_v54, %v15227_v6 }
 0xbef   :  { %4710 = vmatpush1.bf16.msra.mxu0 %v13002_v4  ;;  %4763 = vmatpush1.bf16.msra.mxu1 %v13008_v28  ;;  %v583_v4 = vadd.f32 %v15323_v16, %v15230_v7  ;;  %v15325_v28 = vld [vmem:[#allocation66_spill] sm:$0xff]  ;;  %v15328_v16 = vld [vmem:[#allocation79_spill] sm:$0xff] }
 0xbf0   :  { %4915 = vmatprep.subr.bf16.mxu0 %v12427_v17  ;;  %4968 = vmatprep.subr.bf16.mxu1 %v12430_v46  ;;  %v587_v48 = vadd.f32 %v15325_v28, %v15227_v6  ;;  %v15326_v17 = vld [vmem:[#allocation77_spill] sm:$0xff]  ;;  %v894_v19 = vadd.f32 %v15328_v16, %v10861_v63 }
 0xbf1   :  { %v892_v46 = vadd.f32 %v15326_v17, %v10856_v12  ;;  %v15330_v16 = vld [vmem:[#allocation81_spill] sm:$0xff] }
 0xca4   :  { %v4509_v49 = vpop.f32.mrb[164].mxu0  ;;  %v4562_v33 = vpop.f32.mrb[176].mxu1 }
 0xca5   :  { %v4581_v30 = vadd.f32 %v4509_v49, %v581_v26  ;;  %v4583_v11 = vadd.f32 %v4562_v33, %v886_v59  ;;  %v4511_v54 = vpop.f32.mrb[165].mxu0  ;;  %v4564_v42 = vpop.f32.mrb[177].mxu1 }
 0xca6   :  { %v4582_v52 = vadd.f32 %v4511_v54, %v583_v4  ;;  %v4584_v0 = vadd.f32 %v4564_v42, %v888_v27  ;;  %v4513_v36 = vpop.f32.mrb[166].mxu0  ;;  %v4566_v39 = vpop.f32.mrb[178].mxu1  ;;  %v898_v4 = vadd.f32 %v15330_v16, %v10856_v12  ;;  %v15331_v42 = vld [vmem:[#allocation72_spill] sm:$0xff] }
 0xca7   :  { %v7564_v57 = vmul.f32 -1.442695, %v4581_v30  ;;  %v4585_v51 = vadd.f32 %v4513_v36, %v587_v48  ;;  %v4587_v28 = vadd.f32 %v4566_v39, %v892_v46  ;;  %v4515_v47 = vpop.f32.mrb[167].mxu0  ;;  %v4568_v44 = vpop.f32.mrb[179].mxu1  ;;  %v595_v30 = vadd.f32 %v15331_v42, %v15230_v7  ;;  %v15332_v39 = vld [vmem:[#allocation74_spill] sm:$0xff] }
 0xca8   :  { %v7565_v17 = vmul.f32 -1.442695, %v4582_v52  ;;  %v4586_v49 = vadd.f32 %v4515_v47, %v589_v9  ;;  %v4588_v33 = vadd.f32 %v4568_v44, %v894_v19  ;;  %v599_v36 = vadd.f32 %v15332_v39, %v15227_v6  ;;  %v15333_v52 = vld [vmem:[#allocation83_spill] sm:$0xff]  ;;  %v15335_v9 = vld [vmem:[#allocation85_spill] sm:$0xff] }
 0xca9   :  { %8715 = vpow2.f32 %v7564_v57  ;;  %v7567_v59 = vmul.f32 -1.442695, %v4585_v51  ;;  %v900_v47 = vadd.f32 %v15333_v52, %v10861_v63  ;;  %v15334_v57 = vld [vmem:[#allocation76_spill] sm:$0xff]  ;;  %v904_v48 = vadd.f32 %v15335_v9, %v10856_v12 }
 0xcaa   :  { %v7568_v26 = vmul.f32 -1.442695, %v4586_v49  ;;  %8717 = vpow2.f32 %v7565_v17  ;;  %v601_v19 = vadd.f32 %v15334_v57, %v15230_v7  ;;  %v7566_v49 = vmul.f32 -1.442695, %v4583_v11 }
 0xcab   :  { %8719 = vpow2.f32 %v7567_v59  ;;  %v15336_v59 = vld [vmem:[#allocation87_spill] sm:$0xff] }
 0xcac   :  { %v4519_v44 = vpop.f32.mrb[168].mxu0  ;;  %v4572_v51 = vpop.f32.mrb[180].mxu1  ;;  %8721 = vpow2.f32 %v7568_v26  ;;  %v906_v52 = vadd.f32 %v15336_v59, %v10861_v63 }
 0xcad   :  { %v4589_v27 = vadd.f32 %v4519_v44, %v593_v15  ;;  %v4591_v46 = vadd.f32 %v4572_v51, %v898_v4  ;;  %v4521_v54 = vpop.f32.mrb[169].mxu0  ;;  %v4574_v17 = vpop.f32.mrb[181].mxu1  ;;  %8723 = vtanh.f32 %v4584_v0  ;;  %v7569_v4 = vmul.f32 -1.442695, %v4587_v28 }
 0xcae   :  { %v4590_v29 = vadd.f32 %v4521_v54, %v595_v30  ;;  %v4592_v16 = vadd.f32 %v4574_v17, %v900_v47  ;;  %v4523_v42 = vpop.f32.mrb[170].mxu0  ;;  %v4576_v39 = vpop.f32.mrb[182].mxu1 }
 0xcaf   :  { %v7570_v6 = vmul.f32 -1.442695, %v4589_v27  ;;  %v4593_v58 = vadd.f32 %v4523_v42, %v599_v36  ;;  %v4525_v14 = vpop.f32.mrb[171].mxu0  ;;  %v4578_v57 = vpop.f32.mrb[183].mxu1  ;;  %v4595_v9 = vadd.f32 %v4576_v39, %v904_v48  ;;  %v7572_v42 = vmul.f32 -1.442695, %v4591_v46 }
 0xcb0   :  { %v7571_v7 = vmul.f32 -1.442695, %v4590_v29  ;;  %v4594_v15 = vadd.f32 %v4525_v14, %v601_v19  ;;  %v4596_v11 = vadd.f32 %v4578_v57, %v906_v52 }
 0xcb1   :  { %8725 = vpow2.f32 %v7570_v6  ;;  %v7573_v44 = vmul.f32 -1.442695, %v4593_v58  ;;  %v7575_v52 = vmul.f32 -1.442695, %v4595_v9 }
 0xcb2   :  { %8727 = vpow2.f32 %v7566_v49  ;;  %v7574_v48 = vmul.f32 -1.442695, %v4594_v15 }
 0xcb3   :  { %v8716_v26 = vpop.eup %8715  ;;  %8729 = vpow2.f32 %v7571_v7 }
 0xcb4   :  { %v4633_v30 = vadd.f32 1.0, %v8716_v26  ;;  %8731 = vpow2.f32 %v7573_v44  ;;  %v8718_v47 = vpop.eup %8717 }
 0xcb5   :  { %8733 = vpow2.f32 %v7569_v4  ;;  %v8720_v51 = vpop.eup %8719  ;;  %v4634_v36 = vadd.f32 1.0, %v8718_v47 }
 0xcb6   :  { %8735 = vrcp.f32 %v4633_v30  ;;  %v4636_v27 = vadd.f32 1.0, %v8720_v51  ;;  %v8722_v0 = vpop.eup %8721 }
 0xcb7   :  { %8737 = vtanh.f32 %v4588_v33  ;;  %v4637_v14 = vadd.f32 1.0, %v8722_v0  ;;  %v8724_v6 = vpop.eup %8723 }
 0xcb8   :  { %8739 = vrcp.f32 %v4634_v36 }
 0xcb9   :  { %8741 = vrcp.f32 %v4636_v27 }
 0xcba   :  { %8743 = vrcp.f32 %v4637_v14 }
 0xcbb   :  { %v8726_v58 = vpop.eup %8725  ;;  %8745 = vpow2.f32 %v7574_v48 }
 0xcbc   :  { %v8728_v28 = vpop.eup %8727  ;;  %v4639_v19 = vadd.f32 1.0, %v8726_v58  ;;  %8747 = vtanh.f32 %v4592_v16 }
 0xcbd   :  { %v8730_v7 = vpop.eup %8729  ;;  %v4635_v15 = vadd.f32 1.0, %v8728_v28 }
 0xcbe   :  { %v8732_v54 = vpop.eup %8731  ;;  %8749 = vrcp.f32 %v4639_v19  ;;  %v4640_v17 = vadd.f32 1.0, %v8730_v7 }
 0xcbf   :  { %v8734_v49 = vpop.eup %8733  ;;  %v4642_v29 = vadd.f32 1.0, %v8732_v54  ;;  %8751 = vtanh.f32 %v4596_v11 }
 0xcc0   :  { %v8736_v33 = vpop.eup %8735  ;;  %8753 = vrcp.f32 %v4640_v17  ;;  %v4638_v26 = vadd.f32 1.0, %v8734_v49 }
 0xcc1   :  { %v8738_v39 = vpop.eup %8737  ;;  %v4677_v59 = vmul.f32 %v8736_v33, %v8724_v6  ;;  %8755 = vrcp.f32 %v4642_v29 }
 0xcc2   :  { %v8740_v57 = vpop.eup %8739  ;;  %8757 = vpow2.f32 %v7572_v42 }
 0xcc3   :  { %v8742_v4 = vpop.eup %8741  ;;  %v4673_v44 = vmul.f32 %v8740_v57, %v12466_v43  ;;  %8759 = vpow2.f32 %v7575_v52 }
 0xcc4   :  { %v4678_v16 = vmul.f32 %v8742_v4, %v8738_v39  ;;  %v8744_v30 = vpop.eup %8743  ;;  %8761 = vrcp.f32 %v4635_v15 }
 0xcc5   :  { %v13046_v47 = vadd.f32 %v4677_v59, %v4673_v44  ;;  %v8746_v11 = vpop.eup %8745  ;;  %v4674_v46 = vmul.f32 %v8744_v30, %v12470_v24  ;;  %8763 = vrcp.f32 %v4638_v26 }
 0xcc6   :  { %v8748_v51 = vpop.eup %8747  ;;  %v4643_v36 = vadd.f32 1.0, %v8746_v11 }
 0xcc7   :  { %8765 = vtanh.f32 %v13046_v47  ;;  %v13050_v27 = vadd.f32 %v4678_v16, %v4674_v46 }
 0xcc8   :  { %v8750_v9 = vpop.eup %8749  ;;  %8767 = vrcp.f32 %v4643_v36 }
 0xcc9   :  { %v8752_v43 = vpop.eup %8751  ;;  %v4679_v0 = vmul.f32 %v8750_v9, %v8748_v51  ;;  %8769 = vtanh.f32 %v13050_v27 }
 0xcca   :  { %v8754_v48 = vpop.eup %8753 }
 0xccb   :  { %v8756_v14 = vpop.eup %8755  ;;  %v4675_v6 = vmul.f32 %v8754_v48, %v12474_v41 }
 0xccc   :  { %v4680_v58 = vmul.f32 %v8756_v14, %v8752_v43  ;;  %v8758_v24 = vpop.eup %8757 }
 0xccd   :  { %v13054_v28 = vadd.f32 %v4679_v0, %v4675_v6  ;;  %v8760_v19 = vpop.eup %8759  ;;  %v4641_v17 = vadd.f32 1.0, %v8758_v24 }
 0xcce   :  { %v8762_v7 = vpop.eup %8761  ;;  %v4644_v33 = vadd.f32 1.0, %v8760_v19 }
 0xccf   :  { %v8764_v54 = vpop.eup %8763  ;;  %8771 = vrcp.f32 %v4641_v17 }
 0xcd0   :  { %8773 = vtanh.f32 %v13054_v28 }
 0xcd1   :  { %v8766_v49 = vpop.eup %8765  ;;  %8775 = vrcp.f32 %v4644_v33 }
 0xcd2   :  { %v8768_v29 = vpop.eup %8767  ;;  %v4689_v59 = vmul.f32 %v8766_v49, %v8762_v7 }
 0xcd3   :  { %v8770_v42 = vpop.eup %8769  ;;  %v4676_v39 = vmul.f32 %v8768_v29, %v12478_v23 }
 0xcd4   :  { %v4690_v52 = vmul.f32 %v8770_v42, %v8764_v54 }
 0xcd5   :  { %v13058_v41 = vadd.f32 %v4680_v58, %v4676_v39 }
 0xcd6   :  { %v13060_v57 = vpack.c.bf16 %v4690_v52, %v4689_v59 }
 0xcd7   :  { %8777 = vtanh.f32 %v13058_v41 }
 0xcd8   :  { %4728 = vmatmul.mubr.bf16.vlgmr.msra.gmra.mrb[156].mxu0 %v13060_v57  ;;  %4781 = vmatmul.mubr.bf16.vlgmr.msra.gmra.mrb[168].mxu1 %v13060_v57 }
 0xcd9   :  { %4737 = vmatprep.mubr.bf16.mxu0 %v14876_v22  ;;  %4790 = vmatprep.mubr.bf16.mxu1 %v14876_v22  ;;  %v8772_v23 = vpop.eup %8771 }
 0xcda   :  { %4916 = vmatpush1.bf16.msra.mxu0 %v12487_v60  ;;  %4969 = vmatpush1.bf16.msra.mxu1 %v12490_v50  ;;  %v8774_v15 = vpop.eup %8773 }
 0xcdb   :  { %4917 = vmatprep.subr.bf16.mxu0 %v12493_v20  ;;  %4970 = vmatprep.subr.bf16.mxu1 %v12496_v38  ;;  %v8776_v4 = vpop.eup %8775  ;;  %v4691_v26 = vmul.f32 %v8774_v15, %v8772_v23  ;;  %v15337_v20 = vld [vmem:[#allocation219_spill] sm:$0xff]  ;;  %v15338_v38 = vld [vmem:[#allocation220_spill] sm:$0xff] }
 0xcde   :  { %4918 = vmatpush1.bf16.msra.mxu0 %v12499_v62  ;;  %4971 = vmatpush1.bf16.msra.mxu1 %v12502_v5  ;;  %v15339_v62 = vld [vmem:[#allocation221_spill] sm:$0xff]  ;;  %v15340_v5 = vld [vmem:[#allocation222_spill] sm:$0xff] }
 0xcdf   :  { %4919 = vmatprep.subr.bf16.mxu0 %v12505_v40  ;;  %4972 = vmatprep.subr.bf16.mxu1 %v12508_v61  ;;  %v15341_v40 = vld [vmem:[#allocation223_spill] sm:$0xff] }
 0xce0   :  { %v15342_v61 = vld [vmem:[#allocation19_spill] sm:$0xff] }
 0xce1   :  { %v8778_v44 = vpop.eup %8777 }
 0xce2   :  { %v4692_v60 = vmul.f32 %v8778_v44, %v8776_v4  ;;  %4920 = vmatpush1.bf16.msra.mxu0 %v12511_v35  ;;  %4973 = vmatpush1.bf16.msra.mxu1 %v12514_v2  ;;  %v15343_v35 = vld [vmem:[#allocation25_spill] sm:$0xff]  ;;  %v15344_v2 = vld [vmem:[#allocation20_spill] sm:$0xff] }
 0xce3   :  { %4921 = vmatprep.subr.bf16.mxu0 %v12517_v21  ;;  %4974 = vmatprep.subr.bf16.mxu1 %v12520_v25  ;;  %v15345_v21 = vld [vmem:[#allocation27_spill] sm:$0xff]  ;;  %v15346_v25 = vld [vmem:[#allocation21_spill] sm:$0xff] }
 0xce4   :  { %v13079_v50 = vpack.c.bf16 %v4692_v60, %v4691_v26 }
 0xce6   :  { %4738 = vmatmul.mubr.bf16.gmra.mrb[160].mxu0 %v13079_v50  ;;  %4791 = vmatmul.mubr.bf16.gmra.mrb[172].mxu1 %v13079_v50 }
 0xce7   :  { %4922 = vmatpush1.bf16.msra.mxu0 %v12527_v3  ;;  %4975 = vmatpush1.bf16.msra.mxu1 %v12530_v45  ;;  %v15347_v3 = vld [vmem:[#allocation29_spill] sm:$0xff]  ;;  %v15348_v45 = vld [vmem:[#allocation22_spill] sm:$0xff] }
 0xce8   :  { %4923 = vmatprep.subr.bf16.mxu0 %v12533_v34  ;;  %4976 = vmatprep.subr.bf16.mxu1 %v12536_v37 }
 0xce9   :  { %4947 = vmatprep.mubr.bf16.mxu0 %v14876_v22  ;;  %5000 = vmatprep.mubr.bf16.mxu1 %v14876_v22 }
 0xceb   :  { %4924 = vmatpush1.bf16.msra.mxu0 %v12541_v18  ;;  %4977 = vmatpush1.bf16.msra.mxu1 %v12544_v56 }
 0xcec   :  { %4925 = vmatprep.subr.bf16.mxu0 %v12547_v55  ;;  %4978 = vmatprep.subr.bf16.mxu1 %v12550_v1 }
 0xcef   :  { %4926 = vmatpush1.bf16.msra.mxu0 %v15337_v20  ;;  %4979 = vmatpush1.bf16.msra.mxu1 %v15338_v38 }
 0xcf0   :  { %4927 = vmatprep.subr.bf16.mxu0 %v15339_v62  ;;  %4980 = vmatprep.subr.bf16.mxu1 %v15340_v5 }
 0xcf3   :  { %4928 = vmatpush1.bf16.msra.mxu0 %v15341_v40  ;;  %4981 = vmatpush1.bf16.msra.mxu1 %v15342_v61 }
 0xcf4   :  { %4929 = vmatprep.subr.bf16.mxu0 %v15343_v35  ;;  %4982 = vmatprep.subr.bf16.mxu1 %v15344_v2 }
 0xcf7   :  { %4930 = vmatpush1.bf16.msra.mxu0 %v15345_v21  ;;  %4983 = vmatpush1.bf16.msra.mxu1 %v15346_v25 }
 0xcf8   :  { %5037 = vmatprep.subr.bf16.mxu0 %v15347_v3  ;;  %5090 = vmatprep.subr.bf16.mxu1 %v15348_v45 }
 0xdab   :  { %v4729_v34 = vpop.f32.mrb[156].mxu0  ;;  %v4782_v37 = vpop.f32.mrb[168].mxu1 }
 0xdac   :  { %v4801_v18 = vadd.f32 %v4729_v34, %v14985_v8  ;;  %v4731_v56 = vpop.f32.mrb[157].mxu0  ;;  %v4784_v55 = vpop.f32.mrb[169].mxu1  ;;  %v4803_v48 = vadd.f32 %v4782_v37, %v11026_v13 }
 0xdad   :  { %v4802_v1 = vadd.f32 %v4731_v56, %v11021_v53  ;;  %v4733_v16 = vpop.f32.mrb[158].mxu0  ;;  %v4786_v30 = vpop.f32.mrb[170].mxu1  ;;  %v4804_v19 = vadd.f32 %v4784_v55, %v11032_v32 }
 0xdae   :  { %v7576_v11 = vmul.f32 -1.442695, %v4801_v18  ;;  %v4805_v46 = vadd.f32 %v4733_v16, %v14985_v8  ;;  %v4735_v51 = vpop.f32.mrb[159].mxu0  ;;  %v4788_v36 = vpop.f32.mrb[171].mxu1  ;;  %v4807_v6 = vadd.f32 %v4786_v30, %v11026_v13  ;;  %v7578_v58 = vmul.f32 -1.442695, %v4803_v48 }
 0xdaf   :  { %v7577_v9 = vmul.f32 -1.442695, %v4802_v1  ;;  %v4806_v43 = vadd.f32 %v4735_v51, %v11021_v53  ;;  %v4808_v49 = vadd.f32 %v4788_v36, %v11032_v32 }
 0xdb0   :  { %8779 = vpow2.f32 %v7576_v11  ;;  %v7579_v0 = vmul.f32 -1.442695, %v4805_v46  ;;  %v7581_v24 = vmul.f32 -1.442695, %v4807_v6 }
 0xdb1   :  { %v7580_v14 = vmul.f32 -1.442695, %v4806_v43  ;;  %8781 = vpow2.f32 %v7577_v9 }
 0xdb2   :  { %8783 = vpow2.f32 %v7579_v0 }
 0xdb3   :  { %8785 = vpow2.f32 %v7580_v14 }
 0xdb4   :  { %8787 = vpow2.f32 %v7578_v58 }
 0xdb5   :  { %8789 = vpow2.f32 %v7581_v24 }
 0xdb6   :  { %8791 = vtanh.f32 %v4804_v19 }
 0xdb9   :  { %v4739_v7 = vpop.f32.mrb[160].mxu0  ;;  %v4792_v54 = vpop.f32.mrb[172].mxu1 }
 0xdba   :  { %v8780_v17 = vpop.eup %8779  ;;  %v4741_v29 = vpop.f32.mrb[161].mxu0  ;;  %v4809_v39 = vadd.f32 %v4739_v7, %v14985_v8  ;;  %v4811_v3 = vadd.f32 %v4792_v54, %v11026_v13 }
 0xdbb   :  { %v4794_v33 = vpop.f32.mrb[173].mxu1  ;;  %v4853_v42 = vadd.f32 1.0, %v8780_v17  ;;  %v4743_v59 = vpop.f32.mrb[162].mxu0  ;;  %v4810_v26 = vadd.f32 %v4741_v29, %v11021_v53 }
 0xdbc   :  { %v4796_v52 = vpop.f32.mrb[174].mxu1  ;;  %v8782_v23 = vpop.eup %8781  ;;  %v7582_v62 = vmul.f32 -1.442695, %v4809_v39  ;;  %v4813_v5 = vadd.f32 %v4743_v59, %v14985_v8  ;;  %v7584_v30 = vmul.f32 -1.442695, %v4811_v3  ;;  %v4812_v46 = vadd.f32 %v4794_v33, %v11032_v32  ;;  %v15350_v3 = vld [vmem:[#allocation35_spill] sm:$0xff] }
 0xdbd   :  { %v4745_v15 = vpop.f32.mrb[163].mxu0  ;;  %v8784_v4 = vpop.eup %8783  ;;  %8793 = vrcp.f32 %v4853_v42  ;;  %v4854_v44 = vadd.f32 1.0, %v8782_v23  ;;  %v7583_v61 = vmul.f32 -1.442695, %v4810_v26  ;;  %v4815_v18 = vadd.f32 %v4796_v52, %v11026_v13 }
 0xdbe   :  { %v4798_v60 = vpop.f32.mrb[175].mxu1  ;;  %v4856_v20 = vadd.f32 1.0, %v8784_v4  ;;  %8795 = vtanh.f32 %v4808_v49  ;;  %v8786_v38 = vpop.eup %8785  ;;  %v4814_v35 = vadd.f32 %v4745_v15, %v11021_v53  ;;  %v7585_v21 = vmul.f32 -1.442695, %v4813_v5  ;;  %v15349_v5 = vld [vmem:[#allocation31_spill] sm:$0xff] }
 0xdbf   :  { %8797 = vrcp.f32 %v4854_v44  ;;  %v4857_v40 = vadd.f32 1.0, %v8786_v38  ;;  %v8788_v2 = vpop.eup %8787  ;;  %v7587_v9 = vmul.f32 -1.442695, %v4815_v18  ;;  %v4816_v24 = vadd.f32 %v4798_v60, %v11032_v32  ;;  %v15353_v18 = vld [vmem:[#allocation24_spill] sm:$0xff] }
 0xdc0   :  { %8799 = vrcp.f32 %v4856_v20  ;;  %v8790_v25 = vpop.eup %8789  ;;  %v7586_v45 = vmul.f32 -1.442695, %v4814_v35  ;;  %v4855_v37 = vadd.f32 1.0, %v8788_v2 }
 0xdc1   :  { %8801 = vrcp.f32 %v4857_v40  ;;  %v8792_v34 = vpop.eup %8791  ;;  %v4858_v55 = vadd.f32 1.0, %v8790_v25 }
 0xdc2   :  { %8803 = vpow2.f32 %v7582_v62 }
 0xdc3   :  { %8805 = vpow2.f32 %v7583_v61 }
 0xdc4   :  { %8807 = vpow2.f32 %v7585_v21 }
 0xdc5   :  { %8809 = vpow2.f32 %v7586_v45 }
 0xdc6   :  { %8811 = vrcp.f32 %v4855_v37  ;;  %v15352_v37 = vld [vmem:[#allocation33_spill] sm:$0xff] }
 0xdc7   :  { %v8794_v56 = vpop.eup %8793  ;;  %8813 = vrcp.f32 %v4858_v55 }
 0xdc8   :  { %v8796_v1 = vpop.eup %8795  ;;  %v4897_v16 = vmul.f32 %v8794_v56, %v8792_v34  ;;  %8815 = vpow2.f32 %v7584_v30  ;;  %v15351_v34 = vld [vmem:[#allocation23_spill] sm:$0xff]  ;;  %v15354_v56 = vld [vmem:[#allocation26_spill] sm:$0xff] }
 0xdc9   :  { %v8798_v11 = vpop.eup %8797  ;;  %8817 = vtanh.f32 %v4812_v46  ;;  %v15357_v30 = vld [vmem:[#allocation39_spill] sm:$0xff]  ;;  %v15359_v46 = vld [vmem:[#allocation41_spill] sm:$0xff] }
 0xdca   :  { %v8800_v51 = vpop.eup %8799  ;;  %v4893_v36 = vmul.f32 %v8798_v11, %v12611_v31  ;;  %8819 = vpow2.f32 %v7587_v9  ;;  %v15358_v11 = vld [vmem:[#allocation30_spill] sm:$0xff] }
 0xdcb   :  { %v4898_v43 = vmul.f32 %v8800_v51, %v8796_v1  ;;  %v8802_v0 = vpop.eup %8801  ;;  %v15355_v1 = vld [vmem:[#allocation28_spill] sm:$0xff]  ;;  %v15362_v9 = vld [vmem:[#allocation34_spill] sm:$0xff] }
 0xdcc   :  { %v13121_v48 = vadd.f32 %v4897_v16, %v4893_v36  ;;  %v8804_v14 = vpop.eup %8803  ;;  %v4894_v6 = vmul.f32 %v8802_v0, %v12616_v10  ;;  %v15356_v16 = vld [vmem:[#allocation37_spill] sm:$0xff]  ;;  %v15360_v51 = vld [vmem:[#allocation32_spill] sm:$0xff]  ;;  %v15361_v36 = vld [vmem:[#allocation43_spill] sm:$0xff] }
 0xdcd   :  { %v4859_v58 = vadd.f32 1.0, %v8804_v14  ;;  %v8806_v19 = vpop.eup %8805  ;;  %v15363_v14 = vld [vmem:[#allocation45_spill] sm:$0xff] }
 0xdce   :  { %8821 = vtanh.f32 %v13121_v48  ;;  %v13126_v7 = vadd.f32 %v4898_v43, %v4894_v6  ;;  %v4860_v31 = vadd.f32 1.0, %v8806_v19  ;;  %v8808_v54 = vpop.eup %8807  ;;  %v15364_v6 = vld [vmem:[#allocation36_spill] sm:$0xff]  ;;  %v15366_v19 = vld [vmem:[#allocation38_spill] sm:$0xff] }
 0xdcf   :  { %8823 = vrcp.f32 %v4859_v58  ;;  %v4862_v17 = vadd.f32 1.0, %v8808_v54  ;;  %v8810_v49 = vpop.eup %8809 }
 0xdd0   :  { %8825 = vtanh.f32 %v13126_v7  ;;  %v8812_v10 = vpop.eup %8811  ;;  %v4863_v29 = vadd.f32 1.0, %v8810_v49  ;;  %v15367_v49 = vld [vmem:[#allocation49_spill] sm:$0xff] }
 0xdd1   :  { %8827 = vtanh.f32 %v4816_v24  ;;  %v8814_v33 = vpop.eup %8813  ;;  %v15365_v24 = vld [vmem:[#allocation47_spill] sm:$0xff] }
 0xdd2   :  { %8829 = vrcp.f32 %v4860_v31  ;;  %v8816_v42 = vpop.eup %8815 }
 0xdd3   :  { %8831 = vrcp.f32 %v4862_v17  ;;  %v8818_v39 = vpop.eup %8817  ;;  %v4861_v62 = vadd.f32 1.0, %v8816_v42  ;;  %v15370_v42 = vld [vmem:[#allocation51_spill] sm:$0xff] }
 0xdd4   :  { %8833 = vrcp.f32 %v4863_v29  ;;  %v8820_v59 = vpop.eup %8819 }
 0xdd5   :  { %v4864_v25 = vadd.f32 1.0, %v8820_v59  ;;  %8835 = vrcp.f32 %v4861_v62  ;;  %v15372_v59 = vld [vmem:[#allocation53_spill] sm:$0xff]  ;;  %v15382_v62 = vld [vmem:[#allocation151_spill] sm:$0xff] }
 0xdd8   :  { %v8822_v52 = vpop.eup %8821 }
 0xdd9   :  { %v8824_v23 = vpop.eup %8823  ;;  %v4909_v26 = vmul.f32 %v8822_v52, %v8812_v10  ;;  %v15368_v10 = vld [vmem:[#allocation40_spill] sm:$0xff]  ;;  %v15373_v52 = vld [vmem:[#allocation55_spill] sm:$0xff] }
 0xdda   :  { %v8826_v15 = vpop.eup %8825  ;;  %v4899_v4 = vmul.f32 %v8824_v23, %v8818_v39  ;;  %v15371_v39 = vld [vmem:[#allocation44_spill] sm:$0xff]  ;;  %v15374_v23 = vld [vmem:[#allocation143_spill] sm:$0xff] }
 0xddb   :  { %v8828_v44 = vpop.eup %8827  ;;  %v4910_v60 = vmul.f32 %v8826_v15, %v8814_v33  ;;  %v15369_v33 = vld [vmem:[#allocation42_spill] sm:$0xff]  ;;  %v15375_v15 = vld [vmem:[#allocation144_spill] sm:$0xff] }
 0xddc   :  { %v8830_v20 = vpop.eup %8829 }
 0xddd   :  { %v8832_v38 = vpop.eup %8831  ;;  %v4895_v40 = vmul.f32 %v8830_v20, %v15349_v5  ;;  %v4913_v61 = vpack.c.bf16 %v4910_v60, %v4909_v26  ;;  %v15378_v26 = vld [vmem:[#allocation147_spill] sm:$0xff]  ;;  %v15379_v60 = vld [vmem:[#allocation148_spill] sm:$0xff]  ;;  %v15380_v20 = vld [vmem:[#allocation149_spill] sm:$0xff] }
 0xdde   :  { %v4900_v35 = vmul.f32 %v8832_v38, %v8828_v44  ;;  %v8834_v2 = vpop.eup %8833  ;;  %v15377_v44 = vld [vmem:[#allocation146_spill] sm:$0xff]  ;;  %v15383_v5 = vld [vmem:[#allocation152_spill] sm:$0xff] }
 0xddf   :  { %v13130_v21 = vadd.f32 %v4899_v4, %v4895_v40  ;;  %4948 = vmatmul.mubr.bf16.vlgmr.msra.gmra.mrb[172].mxu0 %v4913_v61  ;;  %5001 = vmatmul.mubr.bf16.vlgmr.msra.gmra.mrb[184].mxu1 %v4913_v61  ;;  %v4896_v45 = vmul.f32 %v8834_v2, %v15350_v3  ;;  %v8836_v43 = vpop.eup %8835  ;;  %v15376_v4 = vld [vmem:[#allocation145_spill] sm:$0xff]  ;;  %v15381_v38 = vld [vmem:[#allocation150_spill] sm:$0xff]  ;;  %v15387_v2 = vld [vmem:[#allocation160_spill] sm:$0xff] }
 0xde0   :  { %5038 = vmatpush1.bf16.msra.mxu0 %v15351_v34  ;;  %5091 = vmatpush1.bf16.msra.mxu1 %v15352_v37  ;;  %v15384_v40 = vld [vmem:[#allocation153_spill] sm:$0xff]  ;;  %v15385_v61 = vld [vmem:[#allocation154_spill] sm:$0xff] }
 0xde1   :  { %5039 = vmatprep.subr.bf16.mxu0 %v15353_v18  ;;  %5092 = vmatprep.subr.bf16.mxu1 %v15354_v56  ;;  %8837 = vtanh.f32 %v13130_v21  ;;  %v13138_v55 = vadd.f32 %v4900_v35, %v4896_v45  ;;  %v15386_v35 = vld [vmem:[#allocation155_spill] sm:$0xff]  ;;  %v15389_v3 = vld [vmem:[#allocation157_spill] sm:$0xff]  ;;  %v15390_v45 = vld [vmem:[#allocation158_spill] sm:$0xff] }
 0xde2   :  { %4957 = vmatprep.mubr.bf16.mxu0 %v14876_v22  ;;  %5010 = vmatprep.mubr.bf16.mxu1 %v14876_v22  ;;  %8839 = vrcp.f32 %v4864_v25  ;;  %v15388_v25 = vld [vmem:[#allocation156_spill] sm:$0xff]  ;;  %v15392_v34 = vld [vmem:[#allocation161_spill] sm:$0xff]  ;;  %v15393_v37 = vld [vmem:[#allocation162_spill] sm:$0xff] }
 0xde3   :  { %8841 = vtanh.f32 %v13138_v55  ;;  %v15394_v18 = vld [vmem:[#allocation163_spill] sm:$0xff]  ;;  %v15395_v56 = vld [vmem:[#allocation164_spill] sm:$0xff] }
 0xde4   :  { %5040 = vmatpush1.bf16.msra.mxu0 %v15355_v1  ;;  %5093 = vmatpush1.bf16.msra.mxu1 %v15356_v16  ;;  %v15396_v1 = vld [vmem:[#allocation165_spill] sm:$0xff]  ;;  %v15397_v16 = vld [vmem:[#allocation166_spill] sm:$0xff] }
 0xde5   :  { %5041 = vmatprep.subr.bf16.mxu0 %v15357_v30  ;;  %5094 = vmatprep.subr.bf16.mxu1 %v15358_v11  ;;  %v15398_v30 = vld [vmem:[#allocation167_spill] sm:$0xff]  ;;  %v15400_v11 = vld [vmem:[#allocation169_spill] sm:$0xff] }
 0xde8   :  { %5042 = vmatpush1.bf16.msra.mxu0 %v15359_v46  ;;  %5095 = vmatpush1.bf16.msra.mxu1 %v15360_v51  ;;  %v15401_v46 = vld [vmem:[#allocation170_spill] sm:$0xff]  ;;  %v15402_v51 = vld [vmem:[#allocation171_spill] sm:$0xff] }
 0xde9   :  { %5043 = vmatprep.subr.bf16.mxu0 %v15361_v36  ;;  %5096 = vmatprep.subr.bf16.mxu1 %v15362_v9  ;;  %v15403_v36 = vld [vmem:[#allocation172_spill] sm:$0xff]  ;;  %v15404_v9 = vld [vmem:[#allocation173_spill] sm:$0xff] }
 0xdeb   :  { %v8838_v0 = vpop.eup %8837 }
 0xdec   :  { %5044 = vmatpush1.bf16.msra.mxu0 %v15363_v14  ;;  %5097 = vmatpush1.bf16.msra.mxu1 %v15364_v6  ;;  %v8840_v58 = vpop.eup %8839  ;;  %v4911_v54 = vmul.f32 %v8838_v0, %v8836_v43  ;;  %v15405_v43 = vld [vmem:[#allocation174_spill] sm:$0xff]  ;;  %v15406_v0 = vld [vmem:[#allocation175_spill] sm:$0xff]  ;;  %v15407_v14 = vld [vmem:[#allocation176_spill] sm:$0xff] }
 0xded   :  { %5045 = vmatprep.subr.bf16.mxu0 %v15365_v24  ;;  %5098 = vmatprep.subr.bf16.mxu1 %v15366_v19  ;;  %v8842_v31 = vpop.eup %8841  ;;  %v15408_v6 = vld [vmem:[#allocation177_spill] sm:$0xff]  ;;  %v15410_v24 = vld [vmem:[#allocation179_spill] sm:$0xff]  ;;  %v15411_v19 = vld [vmem:[#allocation180_spill] sm:$0xff] }
 0xdee   :  { %v4912_v17 = vmul.f32 %v8842_v31, %v8840_v58  ;;  %v15409_v58 = vld [vmem:[#allocation178_spill] sm:$0xff]  ;;  %v15412_v31 = vld [vmem:[#allocation181_spill] sm:$0xff] }
 0xdf0   :  { %5046 = vmatpush1.bf16.msra.mxu0 %v15367_v49  ;;  %5099 = vmatpush1.bf16.msra.mxu1 %v15368_v10  ;;  %v4914_v29 = vpack.c.bf16 %v4912_v17, %v4911_v54  ;;  %v13211_v54 = vld [vmem:[#allocation7 + $0x4] ss:$16 sps:$4 sm:$0xff]   ;;  %v13214_v17 = vld [vmem:[#allocation7 + $0xc] ss:$16 sps:$4 sm:$0xff]  }
 0xdf1   :  { %5047 = vmatprep.subr.bf16.mxu0 %v15369_v33  ;;  %5100 = vmatprep.subr.bf16.mxu1 %v15370_v42  ;;  %v15413_v49 = vld [vmem:[#allocation127_spill] sm:$0xff]  ;;  %v15414_v10 = vld [vmem:[#allocation78_spill] sm:$0xff]  ;;  %v15415_v33 = vld [vmem:[#allocation89_spill] sm:$0xff] }
 0xdf2   :  { %4958 = vmatmul.mubr.bf16.gmra.mrb[176].mxu0 %v4914_v29  ;;  %5011 = vmatmul.mubr.bf16.gmra.mrb[188].mxu1 %v4914_v29  ;;  %v605_v29 = vadd.f32 %v15414_v10, %v15413_v49  ;;  %v910_v42 = vadd.f32 %v15415_v33, %v10856_v12 }
 0xdf3   :  { %5069 = vmatprep.mubr.bf16.mxu0 %v14876_v22  ;;  %5122 = vmatprep.mubr.bf16.mxu1 %v14876_v22 }
 0xdf4   :  { %5048 = vmatpush1.bf16.msra.mxu0 %v15371_v39  ;;  %5101 = vmatpush1.bf16.msra.mxu1 %v15372_v59  ;;  %v15416_v39 = vld [vmem:[#allocation130_spill] sm:$0xff]  ;;  %v15417_v59 = vld [vmem:[#allocation80_spill] sm:$0xff] }
 0xdf5   :  { %5049 = vmatprep.subr.bf16.mxu0 %v15373_v52  ;;  %5102 = vmatprep.subr.bf16.mxu1 %v15374_v23  ;;  %v607_v52 = vadd.f32 %v15417_v59, %v15416_v39  ;;  %v15418_v23 = vld [vmem:[#allocation91_spill] sm:$0xff] }
 0xdf8   :  { %5050 = vmatpush1.bf16.msra.mxu0 %v15375_v15  ;;  %5103 = vmatpush1.bf16.msra.mxu1 %v15376_v4  ;;  %v912_v15 = vadd.f32 %v15418_v23, %v10861_v63 }
 0xdf9   :  { %5051 = vmatprep.subr.bf16.mxu0 %v15377_v44  ;;  %5104 = vmatprep.subr.bf16.mxu1 %v15378_v26  ;;  %v15419_v26 = vld [vmem:[#allocation82_spill] sm:$0xff] }
 0xdfc   :  { %5052 = vmatpush1.bf16.msra.mxu0 %v15379_v60  ;;  %5105 = vmatpush1.bf16.msra.mxu1 %v15380_v20  ;;  %v611_v60 = vadd.f32 %v15419_v26, %v15413_v49  ;;  %v15420_v20 = vld [vmem:[#allocation93_spill] sm:$0xff] }
 0xdfd   :  { %5257 = vmatprep.subr.bf16.mxu0 %v15381_v38  ;;  %5310 = vmatprep.subr.bf16.mxu1 %v15382_v62  ;;  %v916_v38 = vadd.f32 %v15420_v20, %v10856_v12 }
 0xdff   :  { %5070 = vmatmul.mubr.bf16.vlgmr.msra.gmra.mrb[180].mxu0 %v13060_v57  ;;  %5123 = vmatmul.mubr.bf16.vlgmr.msra.gmra.mrb[192].mxu1 %v13060_v57  ;;  %v15391_v57 = vld [vmem:[#allocation159_spill] sm:$0xff] }
 0xe00   :  { %5079 = vmatprep.mubr.bf16.mxu0 %v14876_v22  ;;  %5132 = vmatprep.mubr.bf16.mxu1 %v14876_v22 }
 0xe01   :  { %5258 = vmatpush1.bf16.msra.mxu0 %v15383_v5  ;;  %5311 = vmatpush1.bf16.msra.mxu1 %v15384_v40 }
 0xe02   :  { %5259 = vmatprep.subr.bf16.mxu0 %v15385_v61  ;;  %5312 = vmatprep.subr.bf16.mxu1 %v15386_v35  ;;  %v15421_v35 = vld [vmem:[#allocation84_spill] sm:$0xff] }
 0xe05   :  { %5260 = vmatpush1.bf16.msra.mxu0 %v15387_v2  ;;  %5313 = vmatpush1.bf16.msra.mxu1 %v15388_v25  ;;  %v613_v2 = vadd.f32 %v15421_v35, %v15416_v39  ;;  %v15422_v25 = vld [vmem:[#allocation95_spill] sm:$0xff] }
 0xe06   :  { %5261 = vmatprep.subr.bf16.mxu0 %v15389_v3  ;;  %5314 = vmatprep.subr.bf16.mxu1 %v15390_v45  ;;  %v918_v3 = vadd.f32 %v15422_v25, %v10861_v63 }
 0xe07   :  { %5080 = vmatmul.mubr.bf16.gmra.mrb[184].mxu0 %v13079_v50  ;;  %5133 = vmatmul.mubr.bf16.gmra.mrb[196].mxu1 %v13079_v50  ;;  %v15399_v50 = vld [vmem:[#allocation168_spill] sm:$0xff] }
 0xe08   :  { %5289 = vmatprep.mubr.bf16.mxu0 %v14876_v22  ;;  %5342 = vmatprep.mubr.bf16.mxu1 %v14876_v22 }
 0xe09   :  { %5262 = vmatpush1.bf16.msra.mxu0 %v15391_v57  ;;  %5315 = vmatpush1.bf16.msra.mxu1 %v15392_v34 }
 0xe0a   :  { %5263 = vmatprep.subr.bf16.mxu0 %v15393_v37  ;;  %5316 = vmatprep.subr.bf16.mxu1 %v15394_v18 }
 0xe0d   :  { %5264 = vmatpush1.bf16.msra.mxu0 %v15395_v56  ;;  %5317 = vmatpush1.bf16.msra.mxu1 %v15396_v1 }
 0xe0e   :  { %5265 = vmatprep.subr.bf16.mxu0 %v15397_v16  ;;  %5318 = vmatprep.subr.bf16.mxu1 %v15398_v30 }
 0xe11   :  { %5266 = vmatpush1.bf16.msra.mxu0 %v15399_v50  ;;  %5319 = vmatpush1.bf16.msra.mxu1 %v15400_v11 }
 0xe12   :  { %5267 = vmatprep.subr.bf16.mxu0 %v15401_v46  ;;  %5320 = vmatprep.subr.bf16.mxu1 %v15402_v51 }
 0xe15   :  { %5268 = vmatpush1.bf16.msra.mxu0 %v15403_v36  ;;  %5321 = vmatpush1.bf16.msra.mxu1 %v15404_v9  ;;  %v15423_v9 = vld [vmem:[#allocation86_spill] sm:$0xff] }
 0xe16   :  { %5269 = vmatprep.subr.bf16.mxu0 %v15405_v43  ;;  %5322 = vmatprep.subr.bf16.mxu1 %v15406_v0  ;;  %v617_v43 = vadd.f32 %v15423_v9, %v15413_v49  ;;  %v15424_v0 = vld [vmem:[#allocation97_spill] sm:$0xff] }
 0xe19   :  { %5270 = vmatpush1.bf16.msra.mxu0 %v15407_v14  ;;  %5323 = vmatpush1.bf16.msra.mxu1 %v15408_v6  ;;  %v922_v14 = vadd.f32 %v15424_v0, %v10856_v12  ;;  %v15425_v6 = vld [vmem:[#allocation88_spill] sm:$0xff] }
 0xe1a   :  { %5271 = vmatprep.subr.bf16.mxu0 %v15409_v58  ;;  %5324 = vmatprep.subr.bf16.mxu1 %v15410_v24  ;;  %v619_v58 = vadd.f32 %v15425_v6, %v15416_v39  ;;  %v15426_v24 = vld [vmem:[#allocation90_spill] sm:$0xff] }
 0xe1d   :  { %5272 = vmatpush1.bf16.msra.mxu0 %v15411_v19  ;;  %5325 = vmatpush1.bf16.msra.mxu1 %v15412_v31  ;;  %v623_v19 = vadd.f32 %v15426_v24, %v15413_v49  ;;  %v15427_v31 = vld [vmem:[#allocation99_spill] sm:$0xff] }
 0xe1e   :  { %5477 = vmatprep.subr.bf16.mxu0 %v13211_v54  ;;  %5530 = vmatprep.subr.bf16.mxu1 %v13214_v17  ;;  %v924_v10 = vadd.f32 %v15427_v31, %v10861_v63 }
 0xed2   :  { %v5071_v4 = vpop.f32.mrb[180].mxu0  ;;  %v5124_v44 = vpop.f32.mrb[192].mxu1 }
 0xed3   :  { %v5143_v62 = vadd.f32 %v5071_v4, %v605_v29  ;;  %v5145_v5 = vadd.f32 %v5124_v44, %v910_v42  ;;  %v5073_v40 = vpop.f32.mrb[181].mxu0  ;;  %v5126_v61 = vpop.f32.mrb[193].mxu1  ;;  %v15428_v42 = vld [vmem:[#allocation92_spill] sm:$0xff] }
 0xed4   :  { %v5144_v45 = vadd.f32 %v5073_v40, %v607_v52  ;;  %v5146_v57 = vadd.f32 %v5126_v61, %v912_v15  ;;  %v5075_v34 = vpop.f32.mrb[182].mxu0  ;;  %v5128_v37 = vpop.f32.mrb[194].mxu1  ;;  %v625_v59 = vadd.f32 %v15428_v42, %v15416_v39  ;;  %v15429_v52 = vld [vmem:[#allocation101_spill] sm:$0xff]  ;;  %v15430_v61 = vld [vmem:[#allocation103_spill] sm:$0xff] }
 0xed5   :  { %v7588_v18 = vmul.f32 -1.442695, %v5143_v62  ;;  %v5147_v56 = vadd.f32 %v5075_v34, %v611_v60  ;;  %v5149_v1 = vadd.f32 %v5128_v37, %v916_v38  ;;  %v5077_v16 = vpop.f32.mrb[183].mxu0  ;;  %v5130_v30 = vpop.f32.mrb[195].mxu1  ;;  %v928_v23 = vadd.f32 %v15429_v52, %v10856_v12 }
 0xed6   :  { %v7589_v50 = vmul.f32 -1.442695, %v5144_v45  ;;  %v5148_v11 = vadd.f32 %v5077_v16, %v613_v2  ;;  %v5150_v46 = vadd.f32 %v5130_v30, %v918_v3  ;;  %v7590_v60 = vmul.f32 -1.442695, %v5145_v5 }
 0xed7   :  { %8843 = vpow2.f32 %v7588_v18  ;;  %v7591_v51 = vmul.f32 -1.442695, %v5147_v56  ;;  %v930_v35 = vadd.f32 %v15430_v61, %v10861_v63  ;;  %v7593_v56 = vmul.f32 -1.442695, %v5149_v1 }
 0xed8   :  { %v7592_v36 = vmul.f32 -1.442695, %v5148_v11  ;;  %8845 = vpow2.f32 %v7589_v50 }
 0xed9   :  { %8847 = vpow2.f32 %v7591_v51 }
 0xeda   :  { %v5081_v29 = vpop.f32.mrb[184].mxu0  ;;  %v5134_v33 = vpop.f32.mrb[196].mxu1  ;;  %8849 = vpow2.f32 %v7592_v36 }
 0xedb   :  { %v5151_v15 = vadd.f32 %v5081_v29, %v617_v43  ;;  %v5153_v4 = vadd.f32 %v5134_v33, %v922_v14  ;;  %v5083_v44 = vpop.f32.mrb[185].mxu0  ;;  %v5136_v26 = vpop.f32.mrb[197].mxu1  ;;  %8851 = vtanh.f32 %v5146_v57 }
 0xedc   :  { %v5152_v20 = vadd.f32 %v5083_v44, %v619_v58  ;;  %v5154_v38 = vadd.f32 %v5136_v26, %v924_v10  ;;  %v5085_v62 = vpop.f32.mrb[186].mxu0  ;;  %v5138_v40 = vpop.f32.mrb[198].mxu1 }
 0xedd   :  { %v7594_v2 = vmul.f32 -1.442695, %v5151_v15  ;;  %v5155_v25 = vadd.f32 %v5085_v62, %v623_v19  ;;  %v5087_v3 = vpop.f32.mrb[187].mxu0  ;;  %v5140_v45 = vpop.f32.mrb[199].mxu1  ;;  %v5157_v37 = vadd.f32 %v5138_v40, %v928_v23  ;;  %v7596_v33 = vmul.f32 -1.442695, %v5153_v4 }
 0xede   :  { %v7595_v34 = vmul.f32 -1.442695, %v5152_v20  ;;  %v5156_v18 = vadd.f32 %v5087_v3, %v625_v59  ;;  %v5158_v5 = vadd.f32 %v5140_v45, %v930_v35 }
 0xedf   :  { %8853 = vpow2.f32 %v7594_v2  ;;  %v7597_v16 = vmul.f32 -1.442695, %v5155_v25  ;;  %v7599_v52 = vmul.f32 -1.442695, %v5157_v37 }
 0xee0   :  { %8855 = vpow2.f32 %v7590_v60  ;;  %v7598_v43 = vmul.f32 -1.442695, %v5156_v18 }
 0xee1   :  { %v8844_v30 = vpop.eup %8843  ;;  %8857 = vpow2.f32 %v7595_v34 }
 0xee2   :  { %v5195_v50 = vadd.f32 1.0, %v8844_v30  ;;  %8859 = vpow2.f32 %v7597_v16  ;;  %v8846_v11 = vpop.eup %8845 }
 0xee3   :  { %8861 = vpow2.f32 %v7593_v56  ;;  %v8848_v51 = vpop.eup %8847  ;;  %v5196_v36 = vadd.f32 1.0, %v8846_v11 }
 0xee4   :  { %8863 = vrcp.f32 %v5195_v50  ;;  %v5198_v9 = vadd.f32 1.0, %v8848_v51  ;;  %v8850_v57 = vpop.eup %8849 }
 0xee5   :  { %8865 = vtanh.f32 %v5150_v46  ;;  %v5199_v1 = vadd.f32 1.0, %v8850_v57  ;;  %v8852_v0 = vpop.eup %8851 }
 0xee6   :  { %8867 = vrcp.f32 %v5196_v36 }
 0xee7   :  { %8869 = vrcp.f32 %v5198_v9 }
 0xee8   :  { %8871 = vrcp.f32 %v5199_v1 }
 0xee9   :  { %v8854_v14 = vpop.eup %8853  ;;  %8873 = vpow2.f32 %v7598_v43 }
 0xeea   :  { %v8856_v6 = vpop.eup %8855  ;;  %v5201_v58 = vadd.f32 1.0, %v8854_v14  ;;  %8875 = vtanh.f32 %v5154_v38  ;;  %v13274_v14 = vld [vmem:[#allocation7 + $0x8] ss:$16 sps:$4 sm:$0xff]  }
 0xeeb   :  { %v8858_v24 = vpop.eup %8857  ;;  %v5197_v15 = vadd.f32 1.0, %v8856_v6  ;;  %v13277_v6 = vld [vmem:[#allocation7 + $0x24] ss:$16 sps:$4 sm:$0xff]  }
 0xeec   :  { %v8860_v19 = vpop.eup %8859  ;;  %8877 = vrcp.f32 %v5201_v58  ;;  %v5202_v31 = vadd.f32 1.0, %v8858_v24  ;;  %v13280_v58 = vld [vmem:[#allocation7 + $0x2c] ss:$16 sps:$4 sm:$0xff]  }
 0xeed   :  { %v8862_v10 = vpop.eup %8861  ;;  %v5204_v29 = vadd.f32 1.0, %v8860_v19  ;;  %8879 = vtanh.f32 %v5158_v5  ;;  %v13283_v19 = vld [vmem:[#allocation7 + $0x20] ss:$16 sps:$4 sm:$0xff]  }
 0xeee   :  { %v8864_v46 = vpop.eup %8863  ;;  %8881 = vrcp.f32 %v5202_v31  ;;  %v5200_v60 = vadd.f32 1.0, %v8862_v10  ;;  %v13286_v31 = vld [vmem:[#allocation7 + $0x28] ss:$16 sps:$4 sm:$0xff]  }
 0xeef   :  { %v8866_v42 = vpop.eup %8865  ;;  %v5239_v59 = vmul.f32 %v8864_v46, %v8852_v0  ;;  %8883 = vrcp.f32 %v5204_v29  ;;  %v13289_v29 = vld [vmem:[#allocation7 + $0x44] ss:$16 sps:$4 sm:$0xff]   ;;  %v13292_v46 = vld [vmem:[#allocation7 + $0x4c] ss:$16 sps:$4 sm:$0xff]  }
 0xef0   :  { %v8868_v23 = vpop.eup %8867  ;;  %8885 = vpow2.f32 %v7596_v33 }
 0xef1   :  { %v8870_v44 = vpop.eup %8869  ;;  %v5235_v26 = vmul.f32 %v8868_v23, %v13046_v47  ;;  %8887 = vpow2.f32 %v7599_v52  ;;  %v13295_v23 = vld [vmem:[#allocation7 + $0x40] ss:$16 sps:$4 sm:$0xff]  }
 0xef2   :  { %v5240_v20 = vmul.f32 %v8870_v44, %v8866_v42  ;;  %v8872_v38 = vpop.eup %8871  ;;  %8889 = vrcp.f32 %v5197_v15  ;;  %v13298_v15 = vld [vmem:[#allocation7 + $0x48] ss:$16 sps:$4 sm:$0xff]   ;;  %v13301_v44 = vld [vmem:[#allocation7 + $0x64] ss:$16 sps:$4 sm:$0xff]  }
 0xef3   :  { %v13250_v62 = vadd.f32 %v5239_v59, %v5235_v26  ;;  %v8874_v40 = vpop.eup %8873  ;;  %v5236_v4 = vmul.f32 %v8872_v38, %v13050_v27  ;;  %8891 = vrcp.f32 %v5200_v60  ;;  %v13304_v26 = vld [vmem:[#allocation7 + $0x6c] ss:$16 sps:$4 sm:$0xff]   ;;  %v13314_v38 = vld [vmem:[#allocation7 + $0x68] ss:$16 sps:$4 sm:$0xff]  }
 0xef4   :  { %v8876_v61 = vpop.eup %8875  ;;  %v5205_v35 = vadd.f32 1.0, %v8874_v40  ;;  %v13317_v40 = vld [vmem:[#allocation7 + $0x84] ss:$16 sps:$4 sm:$0xff]  }
 0xef5   :  { %8893 = vtanh.f32 %v13250_v62  ;;  %v13254_v25 = vadd.f32 %v5240_v20, %v5236_v4  ;;  %v13311_v20 = vld [vmem:[#allocation7 + $0x60] ss:$16 sps:$4 sm:$0xff]   ;;  %v13320_v4 = vld [vmem:[#allocation7 + $0x8c] ss:$16 sps:$4 sm:$0xff]  }
 0xef6   :  { %v8878_v2 = vpop.eup %8877  ;;  %8895 = vrcp.f32 %v5205_v35  ;;  %v13328_v35 = vld [vmem:[#allocation7 + $0x88] ss:$16 sps:$4 sm:$0xff]  }
 0xef7   :  { %v8880_v47 = vpop.eup %8879  ;;  %v5241_v3 = vmul.f32 %v8878_v2, %v8876_v61  ;;  %8897 = vtanh.f32 %v13254_v25  ;;  %v13325_v61 = vld [vmem:[#allocation7 + $0x80] ss:$16 sps:$4 sm:$0xff]   ;;  %v13331_v2 = vld [vmem:[#allocation7 + $0xa4] ss:$16 sps:$4 sm:$0xff]  }
 0xef8   :  { %v8882_v45 = vpop.eup %8881 }
 0xef9   :  { %v8884_v34 = vpop.eup %8883  ;;  %v5237_v37 = vmul.f32 %v8882_v45, %v13054_v28  ;;  %v13340_v45 = vld [vmem:[#allocation7 + $0xa8] ss:$16 sps:$4 sm:$0xff]  }
 0xefa   :  { %v5242_v18 = vmul.f32 %v8884_v34, %v8880_v47  ;;  %v8886_v27 = vpop.eup %8885  ;;  %v13334_v47 = vld [vmem:[#allocation7 + $0xac] ss:$16 sps:$4 sm:$0xff]   ;;  %15432 = vst [vmem:[#allocation183_spill] sm:$0xff] %v13340_v45  ;;  %v13343_v34 = vld [vmem:[#allocation7 + $0xc4] ss:$16 sps:$4 sm:$0xff]  }
 0xefb   :  { %v13258_v56 = vadd.f32 %v5241_v3, %v5237_v37  ;;  %v8888_v16 = vpop.eup %8887  ;;  %v5203_v50 = vadd.f32 1.0, %v8886_v27  ;;  %v13337_v3 = vld [vmem:[#allocation7 + $0xa0] ss:$16 sps:$4 sm:$0xff]   ;;  %15433 = vst [vmem:[#allocation184_spill] sm:$0xff] %v13343_v34  ;;  %v13346_v37 = vld [vmem:[#allocation7 + $0xcc] ss:$16 sps:$4 sm:$0xff]  }
 0xefc   :  { %v8890_v5 = vpop.eup %8889  ;;  %v5206_v36 = vadd.f32 1.0, %v8888_v16  ;;  %15431 = vst [vmem:[#allocation182_spill] sm:$0xff] %v13337_v3  ;;  %15434 = vst [vmem:[#allocation185_spill] sm:$0xff] %v13346_v37  ;;  %v13352_v27 = vld [vmem:[#allocation7 + $0xc8] ss:$16 sps:$4 sm:$0xff]  }
 0xefd   :  { %v8892_v30 = vpop.eup %8891  ;;  %8899 = vrcp.f32 %v5203_v50  ;;  %15436 = vst [vmem:[#allocation187_spill] sm:$0xff] %v13352_v27  ;;  %v13355_v16 = vld [vmem:[#allocation7 + $0xe4] ss:$16 sps:$4 sm:$0xff]   ;;  %v13364_v50 = vld [vmem:[#allocation7 + $0xe8] ss:$16 sps:$4 sm:$0xff]  }
 0xefe   :  { %8901 = vtanh.f32 %v13258_v56  ;;  %15437 = vst [vmem:[#allocation188_spill] sm:$0xff] %v13355_v16  ;;  %15440 = vst [vmem:[#allocation191_spill] sm:$0xff] %v13364_v50 }
 0xeff   :  { %v8894_v11 = vpop.eup %8893  ;;  %8903 = vrcp.f32 %v5206_v36 }
 0xf00   :  { %v8896_v51 = vpop.eup %8895  ;;  %v5251_v43 = vmul.f32 %v8894_v11, %v8890_v5  ;;  %v13358_v5 = vld [vmem:[#allocation7 + $0xec] ss:$16 sps:$4 sm:$0xff]   ;;  %v13370_v11 = vld [vmem:[%s14414_s2 + $0x4] ss:$16 sps:$4 sm:$0xff]  }
 0xf01   :  { %v8898_v9 = vpop.eup %8897  ;;  %v5238_v57 = vmul.f32 %v8896_v51, %v13058_v41  ;;  %v13271_v41 = vld [vmem:[#allocation7] ss:$16 sps:$4 sm:$0xff]   ;;  %15438 = vst [vmem:[#allocation189_spill] sm:$0xff] %v13358_v5  ;;  %15441 = vst [vmem:[#allocation192_spill] sm:$0xff] %v13370_v11  ;;  %v13376_v51 = vld [vmem:[%s14414_s2 + $0xc] ss:$16 sps:$4 sm:$0xff]  }
 0xf02   :  { %v5252_v1 = vmul.f32 %v8898_v9, %v8892_v30  ;;  %v13361_v30 = vld [vmem:[#allocation7 + $0xe0] ss:$16 sps:$4 sm:$0xff]   ;;  %15442 = vst [vmem:[#allocation193_spill] sm:$0xff] %v13376_v51 }
 0xf03   :  { %v13262_v28 = vadd.f32 %v5242_v18, %v5238_v57  ;;  %v13349_v18 = vld [vmem:[#allocation7 + $0xc0] ss:$16 sps:$4 sm:$0xff]   ;;  %15439 = vst [vmem:[#allocation190_spill] sm:$0xff] %v13361_v30 }
 0xf04   :  { %v13264_v0 = vpack.c.bf16 %v5252_v1, %v5251_v43  ;;  %15435 = vst [vmem:[#allocation186_spill] sm:$0xff] %v13349_v18 }
 0xf05   :  { %8905 = vtanh.f32 %v13262_v28 }
 0xf06   :  { %5290 = vmatmul.mubr.bf16.vlgmr.msra.gmra.mrb[172].mxu0 %v13264_v0  ;;  %5343 = vmatmul.mubr.bf16.vlgmr.msra.gmra.mrb[184].mxu1 %v13264_v0 }
 0xf07   :  { %5299 = vmatprep.mubr.bf16.mxu0 %v14876_v22  ;;  %5352 = vmatprep.mubr.bf16.mxu1 %v14876_v22  ;;  %v8900_v24 = vpop.eup %8899 }
 0xf08   :  { %5478 = vmatpush1.bf16.msra.mxu0 %v13271_v41  ;;  %5531 = vmatpush1.bf16.msra.mxu1 %v13274_v14  ;;  %v8902_v10 = vpop.eup %8901 }
 0xf09   :  { %5479 = vmatprep.subr.bf16.mxu0 %v13277_v6  ;;  %5532 = vmatprep.subr.bf16.mxu1 %v13280_v58  ;;  %v8904_v33 = vpop.eup %8903  ;;  %v5253_v59 = vmul.f32 %v8902_v10, %v8900_v24 }
 0xf0c   :  { %5480 = vmatpush1.bf16.msra.mxu0 %v13283_v19  ;;  %5533 = vmatpush1.bf16.msra.mxu1 %v13286_v31 }
 0xf0d   :  { %5481 = vmatprep.subr.bf16.mxu0 %v13289_v29  ;;  %5534 = vmatprep.subr.bf16.mxu1 %v13292_v46 }
 0xf0f   :  { %v8906_v42 = vpop.eup %8905 }
 0xf10   :  { %v5254_v52 = vmul.f32 %v8906_v42, %v8904_v33  ;;  %5482 = vmatpush1.bf16.msra.mxu0 %v13295_v23  ;;  %5535 = vmatpush1.bf16.msra.mxu1 %v13298_v15 }
 0xf11   :  { %5483 = vmatprep.subr.bf16.mxu0 %v13301_v44  ;;  %5536 = vmatprep.subr.bf16.mxu1 %v13304_v26 }
 0xf12   :  { %v13307_v60 = vpack.c.bf16 %v5254_v52, %v5253_v59 }
 0xf14   :  { %5300 = vmatmul.mubr.bf16.gmra.mrb[176].mxu0 %v13307_v60  ;;  %5353 = vmatmul.mubr.bf16.gmra.mrb[188].mxu1 %v13307_v60 }
 0xf15   :  { %5484 = vmatpush1.bf16.msra.mxu0 %v13311_v20  ;;  %5537 = vmatpush1.bf16.msra.mxu1 %v13314_v38 }
 0xf16   :  { %5485 = vmatprep.subr.bf16.mxu0 %v13317_v40  ;;  %5538 = vmatprep.subr.bf16.mxu1 %v13320_v4 }
 0xf17   :  { %5509 = vmatprep.mubr.bf16.mxu0 %v14876_v22  ;;  %5562 = vmatprep.mubr.bf16.mxu1 %v14876_v22 }
 0xf19   :  { %5486 = vmatpush1.bf16.msra.mxu0 %v13325_v61  ;;  %5539 = vmatpush1.bf16.msra.mxu1 %v13328_v35 }
 0xf1a   :  { %5487 = vmatprep.subr.bf16.mxu0 %v13331_v2  ;;  %5540 = vmatprep.subr.bf16.mxu1 %v13334_v47 }
 0xf1d   :  { %5488 = vmatpush1.bf16.msra.mxu0 %v13337_v3  ;;  %5541 = vmatpush1.bf16.msra.mxu1 %v13340_v45 }
 0xf1e   :  { %5489 = vmatprep.subr.bf16.mxu0 %v13343_v34  ;;  %5542 = vmatprep.subr.bf16.mxu1 %v13346_v37 }
 0xf21   :  { %5490 = vmatpush1.bf16.msra.mxu0 %v13349_v18  ;;  %5543 = vmatpush1.bf16.msra.mxu1 %v13352_v27 }
 0xf22   :  { %5491 = vmatprep.subr.bf16.mxu0 %v13355_v16  ;;  %5544 = vmatprep.subr.bf16.mxu1 %v13358_v5 }
 0xf25   :  { %5492 = vmatpush1.bf16.msra.mxu0 %v13361_v30  ;;  %5545 = vmatpush1.bf16.msra.mxu1 %v13364_v50 }
 0xf26   :  { %5599 = vmatprep.subr.bf16.mxu0 %v13370_v11  ;;  %5652 = vmatprep.subr.bf16.mxu1 %v13376_v51 }
 0xfd9   :  { %v5291_v36 = vpop.f32.mrb[172].mxu0  ;;  %v5344_v9 = vpop.f32.mrb[184].mxu1 }
 0xfda   :  { %v5363_v57 = vadd.f32 %v5291_v36, %v14985_v8  ;;  %v5293_v43 = vpop.f32.mrb[173].mxu0  ;;  %v5346_v1 = vpop.f32.mrb[185].mxu1  ;;  %v5365_v5 = vadd.f32 %v5344_v9, %v11026_v13 }
 0xfdb   :  { %v5364_v24 = vadd.f32 %v5293_v43, %v11021_v53  ;;  %v5295_v10 = vpop.f32.mrb[174].mxu0  ;;  %v5348_v33 = vpop.f32.mrb[186].mxu1 }
 0xfdc   :  { %v7600_v42 = vmul.f32 -1.442695, %v5363_v57  ;;  %v5367_v59 = vadd.f32 %v5295_v10, %v14985_v8  ;;  %v5297_v52 = vpop.f32.mrb[175].mxu0  ;;  %v5350_v11 = vpop.f32.mrb[187].mxu1  ;;  %v5369_v36 = vadd.f32 %v5348_v33, %v11026_v13  ;;  %v7602_v43 = vmul.f32 -1.442695, %v5365_v5 }
 0xfdd   :  { %v7601_v50 = vmul.f32 -1.442695, %v5364_v24  ;;  %v5368_v30 = vadd.f32 %v5297_v52, %v11021_v53  ;;  %v5366_v57 = vadd.f32 %v5346_v1, %v11032_v32 }
 0xfde   :  { %8907 = vpow2.f32 %v7600_v42  ;;  %v7603_v51 = vmul.f32 -1.442695, %v5367_v59  ;;  %v7605_v27 = vmul.f32 -1.442695, %v5369_v36  ;;  %v5370_v42 = vadd.f32 %v5350_v11, %v11032_v32 }
 0xfdf   :  { %v7604_v16 = vmul.f32 -1.442695, %v5368_v30  ;;  %8909 = vpow2.f32 %v7601_v50 }
 0xfe0   :  { %8911 = vpow2.f32 %v7603_v51 }
 0xfe1   :  { %8913 = vpow2.f32 %v7604_v16 }
 0xfe2   :  { %8915 = vpow2.f32 %v7602_v43 }
 0xfe3   :  { %8917 = vpow2.f32 %v7605_v27 }
 0xfe4   :  { %8919 = vtanh.f32 %v5366_v57 }
 0xfe7   :  { %v5301_v10 = vpop.f32.mrb[176].mxu0  ;;  %v5354_v18 = vpop.f32.mrb[188].mxu1 }
 0xfe8   :  { %v8908_v24 = vpop.eup %8907  ;;  %v5303_v59 = vpop.f32.mrb[177].mxu0  ;;  %v5371_v30 = vadd.f32 %v5301_v10, %v14985_v8 }
 0xfe9   :  { %v5356_v52 = vpop.f32.mrb[189].mxu1  ;;  %v5415_v9 = vadd.f32 1.0, %v8908_v24  ;;  %v5305_v50 = vpop.f32.mrb[178].mxu0  ;;  %v5372_v36 = vadd.f32 %v5303_v59, %v11021_v53  ;;  %v5373_v59 = vadd.f32 %v5354_v18, %v11026_v13 }
 0xfea   :  { %v5358_v33 = vpop.f32.mrb[190].mxu1  ;;  %v8910_v51 = vpop.eup %8909  ;;  %v7606_v11 = vmul.f32 -1.442695, %v5371_v30  ;;  %v5375_v24 = vadd.f32 %v5305_v50, %v14985_v8 }
 0xfeb   :  { %v5307_v16 = vpop.f32.mrb[179].mxu0  ;;  %v8912_v5 = vpop.eup %8911  ;;  %8921 = vrcp.f32 %v5415_v9  ;;  %v5416_v1 = vadd.f32 1.0, %v8910_v51  ;;  %v7607_v34 = vmul.f32 -1.442695, %v5372_v36  ;;  %v5377_v30 = vadd.f32 %v5358_v33, %v11026_v13 }
 0xfec   :  { %v5360_v43 = vpop.f32.mrb[191].mxu1  ;;  %v5418_v37 = vadd.f32 1.0, %v8912_v5  ;;  %8923 = vtanh.f32 %v5370_v42  ;;  %v8914_v27 = vpop.eup %8913  ;;  %v5376_v45 = vadd.f32 %v5307_v16, %v11021_v53  ;;  %v7609_v9 = vmul.f32 -1.442695, %v5375_v24 }
 0xfed   :  { %8925 = vrcp.f32 %v5416_v1  ;;  %v5419_v10 = vadd.f32 1.0, %v8914_v27  ;;  %v8916_v57 = vpop.eup %8915  ;;  %v7608_v27 = vmul.f32 -1.442695, %v5373_v59 }
 0xfee   :  { %8927 = vrcp.f32 %v5418_v37  ;;  %v8918_v51 = vpop.eup %8917  ;;  %v7610_v5 = vmul.f32 -1.442695, %v5376_v45  ;;  %v5417_v3 = vadd.f32 1.0, %v8916_v57 }
 0xfef   :  { %8929 = vrcp.f32 %v5419_v10  ;;  %v8920_v42 = vpop.eup %8919  ;;  %v5420_v50 = vadd.f32 1.0, %v8918_v51  ;;  %v5374_v10 = vadd.f32 %v5356_v52, %v11032_v32  ;;  %v5378_v52 = vadd.f32 %v5360_v43, %v11032_v32 }
 0xff0   :  { %8931 = vpow2.f32 %v7606_v11 }
 0xff1   :  { %8933 = vpow2.f32 %v7607_v34  ;;  %v7611_v34 = vmul.f32 -1.442695, %v5377_v30 }
 0xff2   :  { %8935 = vpow2.f32 %v7609_v9 }
 0xff3   :  { %8937 = vpow2.f32 %v7610_v5 }
 0xff4   :  { %8939 = vrcp.f32 %v5417_v3 }
 0xff5   :  { %v8922_v1 = vpop.eup %8921  ;;  %8941 = vrcp.f32 %v5420_v50 }
 0xff6   :  { %v8924_v37 = vpop.eup %8923  ;;  %v5459_v36 = vmul.f32 %v8922_v1, %v8920_v42  ;;  %8943 = vpow2.f32 %v7608_v27 }
 0xff7   :  { %v8926_v16 = vpop.eup %8925  ;;  %8945 = vtanh.f32 %v5374_v10 }
 0xff8   :  { %v8928_v11 = vpop.eup %8927  ;;  %v5455_v18 = vmul.f32 %v8926_v16, %v13121_v48  ;;  %8947 = vpow2.f32 %v7611_v34 }
 0xff9   :  { %v5460_v45 = vmul.f32 %v8928_v11, %v8924_v37  ;;  %v8930_v24 = vpop.eup %8929 }
 0xffa   :  { %v13395_v57 = vadd.f32 %v5459_v36, %v5455_v18  ;;  %v8932_v33 = vpop.eup %8931  ;;  %v5456_v9 = vmul.f32 %v8930_v24, %v13126_v7 }
 0xffb   :  { %v5421_v51 = vadd.f32 1.0, %v8932_v33  ;;  %v8934_v59 = vpop.eup %8933 }
 0xffc   :  { %8949 = vtanh.f32 %v13395_v57  ;;  %v13400_v3 = vadd.f32 %v5460_v45, %v5456_v9  ;;  %v5422_v48 = vadd.f32 1.0, %v8934_v59  ;;  %v8936_v5 = vpop.eup %8935 }
 0xffd   :  { %8951 = vrcp.f32 %v5421_v51  ;;  %v5424_v42 = vadd.f32 1.0, %v8936_v5  ;;  %v8938_v30 = vpop.eup %8937 }
 0xffe   :  { %8953 = vtanh.f32 %v13400_v3  ;;  %v8940_v7 = vpop.eup %8939  ;;  %v5425_v1 = vadd.f32 1.0, %v8938_v30 }
 0xfff   :  { %8955 = vtanh.f32 %v5378_v52  ;;  %v8942_v50 = vpop.eup %8941 }
0x1000   :  { %8957 = vrcp.f32 %v5422_v48  ;;  %v8944_v37 = vpop.eup %8943 }
0x1001   :  { %8959 = vrcp.f32 %v5424_v42  ;;  %v8946_v43 = vpop.eup %8945  ;;  %v5423_v9 = vadd.f32 1.0, %v8944_v37  ;;  %v13440_v37 = vld [vmem:[%s14414_s2 + $0x20] ss:$16 sps:$4 sm:$0xff]  }
0x1002   :  { %8961 = vrcp.f32 %v5425_v1  ;;  %v8948_v36 = vpop.eup %8947  ;;  %v13422_v1 = vld [vmem:[%s14414_s2 + $0x24] ss:$16 sps:$4 sm:$0xff]   ;;  %15449 = vst [vmem:[#allocation200_spill] sm:$0xff] %v13440_v37 }
0x1003   :  { %v5426_v42 = vadd.f32 1.0, %v8948_v36  ;;  %8963 = vrcp.f32 %v5423_v9  ;;  %15446 = vst [vmem:[#allocation197_spill] sm:$0xff] %v13422_v1  ;;  %v13452_v36 = vld [vmem:[%s14414_s2 + $0x44] ss:$16 sps:$4 sm:$0xff]  }
0x1004   :  { %15451 = vst [vmem:[#allocation202_spill] sm:$0xff] %v13452_v36 }
0x1006   :  { %v8950_v27 = vpop.eup %8949 }
0x1007   :  { %v8952_v16 = vpop.eup %8951  ;;  %v5471_v34 = vmul.f32 %v8950_v27, %v8940_v7  ;;  %v13410_v7 = vld [vmem:[%s14414_s2] ss:$16 sps:$4 sm:$0xff]   ;;  %v13458_v27 = vld [vmem:[%s14414_s2 + $0x4c] ss:$16 sps:$4 sm:$0xff]  }
0x1008   :  { %v8954_v10 = vpop.eup %8953  ;;  %v5461_v11 = vmul.f32 %v8952_v16, %v8946_v43  ;;  %15444 = vst [vmem:[#allocation195_spill] sm:$0xff] %v13410_v7  ;;  %v13446_v43 = vld [vmem:[%s14414_s2 + $0x28] ss:$16 sps:$4 sm:$0xff]   ;;  %15452 = vst [vmem:[#allocation203_spill] sm:$0xff] %v13458_v27  ;;  %v13464_v16 = vld [vmem:[%s14414_s2 + $0x40] ss:$16 sps:$4 sm:$0xff]  }
0x1009   :  { %v8956_v18 = vpop.eup %8955  ;;  %v5472_v45 = vmul.f32 %v8954_v10, %v8942_v50  ;;  %15450 = vst [vmem:[#allocation201_spill] sm:$0xff] %v13446_v43  ;;  %15453 = vst [vmem:[#allocation204_spill] sm:$0xff] %v13464_v16  ;;  %v13470_v10 = vld [vmem:[%s14414_s2 + $0x48] ss:$16 sps:$4 sm:$0xff]  }
0x100a   :  { %v8958_v24 = vpop.eup %8957  ;;  %15454 = vst [vmem:[#allocation205_spill] sm:$0xff] %v13470_v10 }
0x100b   :  { %v8960_v33 = vpop.eup %8959  ;;  %v5457_v51 = vmul.f32 %v8958_v24, %v13130_v21  ;;  %v5475_v52 = vpack.c.bf16 %v5472_v45, %v5471_v34  ;;  %v13416_v21 = vld [vmem:[%s14414_s2 + $0x8] ss:$16 sps:$4 sm:$0xff]   ;;  %v13488_v24 = vld [vmem:[%s14414_s2 + $0x60] ss:$16 sps:$4 sm:$0xff]  }
0x100c   :  { %v5462_v59 = vmul.f32 %v8960_v33, %v8956_v18  ;;  %v8962_v48 = vpop.eup %8961  ;;  %15445 = vst [vmem:[#allocation196_spill] sm:$0xff] %v13416_v21  ;;  %v13482_v18 = vld [vmem:[%s14414_s2 + $0x6c] ss:$16 sps:$4 sm:$0xff]   ;;  %15457 = vst [vmem:[#allocation208_spill] sm:$0xff] %v13488_v24  ;;  %v13494_v33 = vld [vmem:[%s14414_s2 + $0x68] ss:$16 sps:$4 sm:$0xff]  }
0x100d   :  { %v13404_v5 = vadd.f32 %v5461_v11, %v5457_v51  ;;  %5510 = vmatmul.mubr.bf16.vlgmr.msra.gmra.mrb[188].mxu0 %v5475_v52  ;;  %5563 = vmatmul.mubr.bf16.vlgmr.msra.gmra.mrb[200].mxu1 %v5475_v52  ;;  %v5458_v30 = vmul.f32 %v8962_v48, %v13138_v55  ;;  %v13428_v55 = vld [vmem:[%s14414_s2 + $0x2c] ss:$16 sps:$4 sm:$0xff]   ;;  %v13476_v11 = vld [vmem:[%s14414_s2 + $0x64] ss:$16 sps:$4 sm:$0xff]   ;;  %15456 = vst [vmem:[#allocation207_spill] sm:$0xff] %v13482_v18  ;;  %v8964_v34 = vpop.eup %8963  ;;  %15458 = vst [vmem:[#allocation209_spill] sm:$0xff] %v13494_v33 }
0x100e   :  { %5600 = vmatpush1.bf16.msra.mxu0 %v13410_v7  ;;  %5653 = vmatpush1.bf16.msra.mxu1 %v13416_v21  ;;  %15447 = vst [vmem:[#allocation198_spill] sm:$0xff] %v13428_v55  ;;  %15455 = vst [vmem:[#allocation206_spill] sm:$0xff] %v13476_v11  ;;  %v13500_v51 = vld [vmem:[%s14414_s2 + $0x84] ss:$16 sps:$4 sm:$0xff]   ;;  %v13506_v52 = vld [vmem:[%s14414_s2 + $0x8c] ss:$16 sps:$4 sm:$0xff]  }
0x100f   :  { %15443 = vst [vmem:[#allocation194_spill] sm:$0xff] %v13404_v5  ;;  %5601 = vmatprep.subr.bf16.mxu0 %v13422_v1  ;;  %5654 = vmatprep.subr.bf16.mxu1 %v13428_v55  ;;  %8965 = vtanh.f32 %v13404_v5  ;;  %v13432_v50 = vadd.f32 %v5462_v59, %v5458_v30  ;;  %15459 = vst [vmem:[#allocation210_spill] sm:$0xff] %v13500_v51  ;;  %v13512_v30 = vld [vmem:[%s14414_s2 + $0x80] ss:$16 sps:$4 sm:$0xff]  }
0x1010   :  { %5519 = vmatprep.mubr.bf16.mxu0 %v14876_v22  ;;  %5572 = vmatprep.mubr.bf16.mxu1 %v14876_v22  ;;  %8967 = vrcp.f32 %v5426_v42  ;;  %15460 = vst [vmem:[#allocation211_spill] sm:$0xff] %v13506_v52  ;;  %15461 = vst [vmem:[#allocation212_spill] sm:$0xff] %v13512_v30 }
0x1011   :  { %15448 = vst [vmem:[#allocation199_spill] sm:$0xff] %v13432_v50  ;;  %8969 = vtanh.f32 %v13432_v50 }
0x1012   :  { %5602 = vmatpush1.bf16.msra.mxu0 %v13440_v37  ;;  %5655 = vmatpush1.bf16.msra.mxu1 %v13446_v43 }
0x1013   :  { %5603 = vmatprep.subr.bf16.mxu0 %v13452_v36  ;;  %5656 = vmatprep.subr.bf16.mxu1 %v13458_v27 }
0x1016   :  { %5604 = vmatpush1.bf16.msra.mxu0 %v13464_v16  ;;  %5657 = vmatpush1.bf16.msra.mxu1 %v13470_v10 }
0x1017   :  { %5605 = vmatprep.subr.bf16.mxu0 %v13476_v11  ;;  %5658 = vmatprep.subr.bf16.mxu1 %v13482_v18 }
0x1019   :  { %v8966_v45 = vpop.eup %8965 }
0x101a   :  { %5606 = vmatpush1.bf16.msra.mxu0 %v13488_v24  ;;  %5659 = vmatpush1.bf16.msra.mxu1 %v13494_v33  ;;  %v8968_v9 = vpop.eup %8967  ;;  %v5473_v48 = vmul.f32 %v8966_v45, %v8964_v34  ;;  %v13524_v34 = vld [vmem:[%s14414_s2 + $0xa4] ss:$16 sps:$4 sm:$0xff]   ;;  %v13530_v45 = vld [vmem:[%s14414_s2 + $0xac] ss:$16 sps:$4 sm:$0xff]  }
0x101b   :  { %5607 = vmatprep.subr.bf16.mxu0 %v13500_v51  ;;  %5660 = vmatprep.subr.bf16.mxu1 %v13506_v52  ;;  %v8970_v59 = vpop.eup %8969  ;;  %v13518_v51 = vld [vmem:[%s14414_s2 + $0x88] ss:$16 sps:$4 sm:$0xff]   ;;  %15463 = vst [vmem:[#allocation214_spill] sm:$0xff] %v13524_v34  ;;  %15464 = vst [vmem:[#allocation215_spill] sm:$0xff] %v13530_v45 }
0x101c   :  { %v5474_v42 = vmul.f32 %v8970_v59, %v8968_v9  ;;  %15462 = vst [vmem:[#allocation213_spill] sm:$0xff] %v13518_v51  ;;  %v13536_v9 = vld [vmem:[%s14414_s2 + $0xa0] ss:$16 sps:$4 sm:$0xff]   ;;  %v13542_v59 = vld [vmem:[%s14414_s2 + $0xa8] ss:$16 sps:$4 sm:$0xff]  }
0x101d   :  { %15465 = vst [vmem:[#allocation216_spill] sm:$0xff] %v13536_v9  ;;  %15466 = vst [vmem:[#allocation217_spill] sm:$0xff] %v13542_v59 }
0x101e   :  { %5608 = vmatpush1.bf16.msra.mxu0 %v13512_v30  ;;  %5661 = vmatpush1.bf16.msra.mxu1 %v13518_v51  ;;  %v5476_v33 = vpack.c.bf16 %v5474_v42, %v5473_v48  ;;  %v13548_v48 = vld [vmem:[%s14414_s2 + $0xc4] ss:$16 sps:$4 sm:$0xff]   ;;  %v13562_v42 = vld [vmem:[%s14414_s2 + $0xc0] ss:$16 sps:$4 sm:$0xff]  }
0x101f   :  { %5609 = vmatprep.subr.bf16.mxu0 %v13524_v34  ;;  %5662 = vmatprep.subr.bf16.mxu1 %v13530_v45  ;;  %15467 = vst [vmem:[#allocation218_spill] sm:$0xff] %v13548_v48  ;;  %15469 = vst [vmem:[#allocation57_spill] sm:$0xff] %v13562_v42  ;;  %v15510_v45 = vld [vmem:[#allocation107_spill] sm:$0xff] }
0x1020   :  { %5520 = vmatmul.mubr.bf16.gmra.mrb[192].mxu0 %v5476_v33  ;;  %5573 = vmatmul.mubr.bf16.gmra.mrb[204].mxu1 %v5476_v33  ;;  %v13554_v33 = vld [vmem:[%s14414_s2 + $0xcc] ss:$16 sps:$4 sm:$0xff]   ;;  %v936_v34 = vadd.f32 %v15510_v45, %v10861_v63 }
0x1021   :  { %15468 = vst [vmem:[#allocation46_spill] sm:$0xff] %v13554_v33  ;;  %5631 = vmatprep.mubr.bf16.mxu0 %v14876_v22  ;;  %5684 = vmatprep.mubr.bf16.mxu1 %v14876_v22 }
0x1022   :  { %5610 = vmatpush1.bf16.msra.mxu0 %v13536_v9  ;;  %5663 = vmatpush1.bf16.msra.mxu1 %v13542_v59  ;;  %v13580_v59 = vld [vmem:[%s14414_s2 + $0xec] ss:$16 sps:$4 sm:$0xff]   ;;  %v15509_v9 = vld [vmem:[#allocation96_spill] sm:$0xff] }
0x1023   :  { %5611 = vmatprep.subr.bf16.mxu0 %v13548_v48  ;;  %5664 = vmatprep.subr.bf16.mxu1 %v13554_v33  ;;  %v13568_v48 = vld [vmem:[%s14414_s2 + $0xc8] ss:$16 sps:$4 sm:$0xff]   ;;  %v13574_v33 = vld [vmem:[%s14414_s2 + $0xe4] ss:$16 sps:$4 sm:$0xff]   ;;  %15472 = vst [vmem:[#allocation50_spill] sm:$0xff] %v13580_v59 }
0x1024   :  { %15470 = vst [vmem:[#allocation48_spill] sm:$0xff] %v13568_v48  ;;  %15471 = vst [vmem:[#allocation59_spill] sm:$0xff] %v13574_v33 }
0x1026   :  { %5612 = vmatpush1.bf16.msra.mxu0 %v13562_v42  ;;  %5665 = vmatpush1.bf16.msra.mxu1 %v13568_v48  ;;  %v13586_v42 = vld [vmem:[%s14414_s2 + $0xe0] ss:$16 sps:$4 sm:$0xff]   ;;  %v13592_v48 = vld [vmem:[%s14414_s2 + $0xe8] ss:$16 sps:$4 sm:$0xff]  }
0x1027   :  { %5613 = vmatprep.subr.bf16.mxu0 %v13574_v33  ;;  %5666 = vmatprep.subr.bf16.mxu1 %v13580_v59  ;;  %15473 = vst [vmem:[#allocation61_spill] sm:$0xff] %v13586_v42  ;;  %15474 = vst [vmem:[#allocation52_spill] sm:$0xff] %v13592_v48  ;;  %v13598_v33 = vld [vmem:[%s14416_s4 + $0x4] ss:$16 sps:$4 sm:$0xff]   ;;  %v13604_v59 = vld [vmem:[%s14416_s4 + $0xc] ss:$16 sps:$4 sm:$0xff]  }
0x1028   :  { %15475 = vst [vmem:[#allocation63_spill] sm:$0xff] %v13598_v33  ;;  %15476 = vst [vmem:[#allocation54_spill] sm:$0xff] %v13604_v59 }
0x102a   :  { %5614 = vmatpush1.bf16.msra.mxu0 %v13586_v42  ;;  %5667 = vmatpush1.bf16.msra.mxu1 %v13592_v48  ;;  %v13614_v48 = vld [vmem:[%s14416_s4] ss:$16 sps:$4 sm:$0xff]  }
0x102b   :  { %5819 = vmatprep.subr.bf16.mxu0 %v13598_v33  ;;  %5872 = vmatprep.subr.bf16.mxu1 %v13604_v59  ;;  %15477 = vst [vmem:[#allocation65_spill] sm:$0xff] %v13614_v48  ;;  %v13620_v33 = vld [vmem:[%s14416_s4 + $0x8] ss:$16 sps:$4 sm:$0xff]   ;;  %v13632_v59 = vld [vmem:[%s14416_s4 + $0x2c] ss:$16 sps:$4 sm:$0xff]  }
0x102c   :  { %15478 = vst [vmem:[#allocation56_spill] sm:$0xff] %v13620_v33  ;;  %15480 = vst [vmem:[#allocation67_spill] sm:$0xff] %v13632_v59 }
0x102d   :  { %5632 = vmatmul.mubr.bf16.vlgmr.msra.gmra.mrb[196].mxu0 %v13264_v0  ;;  %5685 = vmatmul.mubr.bf16.vlgmr.msra.gmra.mrb[208].mxu1 %v13264_v0  ;;  %v13626_v0 = vld [vmem:[%s14416_s4 + $0x24] ss:$16 sps:$4 sm:$0xff]  }
0x102e   :  { %5641 = vmatprep.mubr.bf16.mxu0 %v14876_v22  ;;  %5694 = vmatprep.mubr.bf16.mxu1 %v14876_v22  ;;  %15479 = vst [vmem:[#allocation58_spill] sm:$0xff] %v13626_v0 }
0x102f   :  { %5820 = vmatpush1.bf16.msra.mxu0 %v13614_v48  ;;  %5873 = vmatpush1.bf16.msra.mxu1 %v13620_v33  ;;  %v13638_v48 = vld [vmem:[%s14416_s4 + $0x20] ss:$16 sps:$4 sm:$0xff]   ;;  %v13644_v33 = vld [vmem:[%s14416_s4 + $0x28] ss:$16 sps:$4 sm:$0xff]  }
0x1030   :  { %5821 = vmatprep.subr.bf16.mxu0 %v13626_v0  ;;  %5874 = vmatprep.subr.bf16.mxu1 %v13632_v59  ;;  %15481 = vst [vmem:[#allocation60_spill] sm:$0xff] %v13638_v48  ;;  %15482 = vst [vmem:[#allocation69_spill] sm:$0xff] %v13644_v33  ;;  %v13650_v0 = vld [vmem:[%s14416_s4 + $0x44] ss:$16 sps:$4 sm:$0xff]   ;;  %v13656_v59 = vld [vmem:[%s14416_s4 + $0x4c] ss:$16 sps:$4 sm:$0xff]  }
0x1031   :  { %15483 = vst [vmem:[#allocation71_spill] sm:$0xff] %v13650_v0  ;;  %15484 = vst [vmem:[#allocation62_spill] sm:$0xff] %v13656_v59 }
0x1033   :  { %5822 = vmatpush1.bf16.msra.mxu0 %v13638_v48  ;;  %5875 = vmatpush1.bf16.msra.mxu1 %v13644_v33  ;;  %v13666_v33 = vld [vmem:[%s14416_s4 + $0x40] ss:$16 sps:$4 sm:$0xff]   ;;  %v15508_v48 = vld [vmem:[#allocation105_spill] sm:$0xff] }
0x1034   :  { %5823 = vmatprep.subr.bf16.mxu0 %v13650_v0  ;;  %5876 = vmatprep.subr.bf16.mxu1 %v13656_v59  ;;  %15485 = vst [vmem:[#allocation73_spill] sm:$0xff] %v13666_v33  ;;  %v13672_v0 = vld [vmem:[%s14416_s4 + $0x48] ss:$16 sps:$4 sm:$0xff]   ;;  %v13684_v59 = vld [vmem:[%s14416_s4 + $0x6c] ss:$16 sps:$4 sm:$0xff]   ;;  %v934_v42 = vadd.f32 %v15508_v48, %v10856_v12  ;;  %v15513_v48 = vld [vmem:[#allocation100_spill] sm:$0xff] }
0x1035   :  { %5642 = vmatmul.mubr.bf16.gmra.mrb[200].mxu0 %v13307_v60  ;;  %5695 = vmatmul.mubr.bf16.gmra.mrb[212].mxu1 %v13307_v60  ;;  %15486 = vst [vmem:[#allocation64_spill] sm:$0xff] %v13672_v0  ;;  %v13678_v60 = vld [vmem:[%s14416_s4 + $0x64] ss:$16 sps:$4 sm:$0xff]   ;;  %15488 = vst [vmem:[#allocation66_spill] sm:$0xff] %v13684_v59  ;;  %v637_v10 = vadd.f32 %v15513_v48, %v15416_v39 }
0x1036   :  { %5851 = vmatprep.mubr.bf16.mxu0 %v14876_v22  ;;  %5904 = vmatprep.mubr.bf16.mxu1 %v14876_v22  ;;  %15487 = vst [vmem:[#allocation75_spill] sm:$0xff] %v13678_v60  ;;  %v15515_v48 = vld [vmem:[#allocation102_spill] sm:$0xff] }
0x1037   :  { %5824 = vmatpush1.bf16.msra.mxu0 %v13666_v33  ;;  %5877 = vmatpush1.bf16.msra.mxu1 %v13672_v0  ;;  %v13690_v33 = vld [vmem:[%s14416_s4 + $0x60] ss:$16 sps:$4 sm:$0xff]   ;;  %v13696_v0 = vld [vmem:[%s14416_s4 + $0x68] ss:$16 sps:$4 sm:$0xff]   ;;  %v641_v7 = vadd.f32 %v15515_v48, %v15413_v49 }
0x1038   :  { %5825 = vmatprep.subr.bf16.mxu0 %v13678_v60  ;;  %5878 = vmatprep.subr.bf16.mxu1 %v13684_v59  ;;  %15489 = vst [vmem:[#allocation77_spill] sm:$0xff] %v13690_v33  ;;  %15490 = vst [vmem:[#allocation68_spill] sm:$0xff] %v13696_v0  ;;  %v13702_v60 = vld [vmem:[%s14416_s4 + $0x84] ss:$16 sps:$4 sm:$0xff]   ;;  %v13708_v59 = vld [vmem:[%s14416_s4 + $0x8c] ss:$16 sps:$4 sm:$0xff]  }
0x1039   :  { %15491 = vst [vmem:[#allocation79_spill] sm:$0xff] %v13702_v60  ;;  %15492 = vst [vmem:[#allocation70_spill] sm:$0xff] %v13708_v59 }
0x103b   :  { %5826 = vmatpush1.bf16.msra.mxu0 %v13690_v33  ;;  %5879 = vmatpush1.bf16.msra.mxu1 %v13696_v0  ;;  %v13714_v33 = vld [vmem:[%s14416_s4 + $0x80] ss:$16 sps:$4 sm:$0xff]   ;;  %v13720_v0 = vld [vmem:[%s14416_s4 + $0x88] ss:$16 sps:$4 sm:$0xff]  }
0x103c   :  { %5827 = vmatprep.subr.bf16.mxu0 %v13702_v60  ;;  %5880 = vmatprep.subr.bf16.mxu1 %v13708_v59  ;;  %15493 = vst [vmem:[#allocation81_spill] sm:$0xff] %v13714_v33  ;;  %15494 = vst [vmem:[#allocation72_spill] sm:$0xff] %v13720_v0  ;;  %v13726_v60 = vld [vmem:[%s14416_s4 + $0xa4] ss:$16 sps:$4 sm:$0xff]   ;;  %v13732_v59 = vld [vmem:[%s14416_s4 + $0xac] ss:$16 sps:$4 sm:$0xff]  }
0x103d   :  { %15495 = vst [vmem:[#allocation74_spill] sm:$0xff] %v13726_v60  ;;  %15496 = vst [vmem:[#allocation83_spill] sm:$0xff] %v13732_v59 }
0x103f   :  { %5828 = vmatpush1.bf16.msra.mxu0 %v13714_v33  ;;  %5881 = vmatpush1.bf16.msra.mxu1 %v13720_v0  ;;  %v13738_v33 = vld [vmem:[%s14416_s4 + $0xa0] ss:$16 sps:$4 sm:$0xff]   ;;  %v13744_v0 = vld [vmem:[%s14416_s4 + $0xa8] ss:$16 sps:$4 sm:$0xff]  }
0x1040   :  { %5829 = vmatprep.subr.bf16.mxu0 %v13726_v60  ;;  %5882 = vmatprep.subr.bf16.mxu1 %v13732_v59  ;;  %15497 = vst [vmem:[#allocation76_spill] sm:$0xff] %v13738_v33  ;;  %15498 = vst [vmem:[#allocation85_spill] sm:$0xff] %v13744_v0  ;;  %v13750_v60 = vld [vmem:[%s14416_s4 + $0xc4] ss:$16 sps:$4 sm:$0xff]   ;;  %v13756_v59 = vld [vmem:[%s14416_s4 + $0xcc] ss:$16 sps:$4 sm:$0xff]  }
0x1041   :  { %15499 = vst [vmem:[#allocation87_spill] sm:$0xff] %v13750_v60  ;;  %15500 = vst [vmem:[#allocation219_spill] sm:$0xff] %v13756_v59 }
0x1043   :  { %5830 = vmatpush1.bf16.msra.mxu0 %v13738_v33  ;;  %5883 = vmatpush1.bf16.msra.mxu1 %v13744_v0  ;;  %v13762_v33 = vld [vmem:[%s14416_s4 + $0xc0] ss:$16 sps:$4 sm:$0xff]   ;;  %v13768_v0 = vld [vmem:[%s14416_s4 + $0xc8] ss:$16 sps:$4 sm:$0xff]  }
0x1044   :  { %5831 = vmatprep.subr.bf16.mxu0 %v13750_v60  ;;  %5884 = vmatprep.subr.bf16.mxu1 %v13756_v59  ;;  %15501 = vst [vmem:[#allocation220_spill] sm:$0xff] %v13762_v33  ;;  %15502 = vst [vmem:[#allocation221_spill] sm:$0xff] %v13768_v0  ;;  %v13774_v60 = vld [vmem:[%s14416_s4 + $0xe4] ss:$16 sps:$4 sm:$0xff]   ;;  %v13780_v59 = vld [vmem:[%s14416_s4 + $0xec] ss:$16 sps:$4 sm:$0xff]  }
0x1045   :  { %15503 = vst [vmem:[#allocation222_spill] sm:$0xff] %v13774_v60  ;;  %15504 = vst [vmem:[#allocation223_spill] sm:$0xff] %v13780_v59 }
0x1047   :  { %5832 = vmatpush1.bf16.msra.mxu0 %v13762_v33  ;;  %5885 = vmatpush1.bf16.msra.mxu1 %v13768_v0  ;;  %v13786_v33 = vld [vmem:[%s14416_s4 + $0xe0] ss:$16 sps:$4 sm:$0xff]   ;;  %v13792_v0 = vld [vmem:[%s14416_s4 + $0xe8] ss:$16 sps:$4 sm:$0xff]  }
0x1048   :  { %5833 = vmatprep.subr.bf16.mxu0 %v13774_v60  ;;  %5886 = vmatprep.subr.bf16.mxu1 %v13780_v59  ;;  %15505 = vst [vmem:[#allocation19_spill] sm:$0xff] %v13786_v33  ;;  %15506 = vst [vmem:[#allocation25_spill] sm:$0xff] %v13792_v0  ;;  %v15507_v59 = vld [vmem:[#allocation94_spill] sm:$0xff] }
0x1049   :  { %v629_v60 = vadd.f32 %v15507_v59, %v15413_v49 }
0x104b   :  { %5834 = vmatpush1.bf16.msra.mxu0 %v13786_v33  ;;  %5887 = vmatpush1.bf16.msra.mxu1 %v13792_v0  ;;  %v631_v33 = vadd.f32 %v15509_v9, %v15416_v39  ;;  %v15511_v0 = vld [vmem:[#allocation98_spill] sm:$0xff]  ;;  %v15514_v9 = vld [vmem:[#allocation111_spill] sm:$0xff] }
0x104c   :  { %6039 = vmatprep.subr.bf16.mxu0 %v13211_v54  ;;  %6092 = vmatprep.subr.bf16.mxu1 %v13214_v17  ;;  %v635_v52 = vadd.f32 %v15511_v0, %v15413_v49  ;;  %v15512_v54 = vld [vmem:[#allocation109_spill] sm:$0xff]  ;;  %v942_v16 = vadd.f32 %v15514_v9, %v10861_v63 }
0x104d   :  { %v940_v17 = vadd.f32 %v15512_v54, %v10856_v12  ;;  %v15516_v9 = vld [vmem:[#allocation113_spill] sm:$0xff] }
0x1100   :  { %v5633_v51 = vpop.f32.mrb[196].mxu0  ;;  %v5686_v30 = vpop.f32.mrb[208].mxu1 }
0x1101   :  { %v5705_v24 = vadd.f32 %v5633_v51, %v629_v60  ;;  %v5707_v18 = vadd.f32 %v5686_v30, %v934_v42  ;;  %v5635_v59 = vpop.f32.mrb[197].mxu0  ;;  %v5688_v11 = vpop.f32.mrb[209].mxu1 }
0x1102   :  { %v5706_v27 = vadd.f32 %v5635_v59, %v631_v33  ;;  %v5708_v45 = vadd.f32 %v5688_v11, %v936_v34  ;;  %v5637_v36 = vpop.f32.mrb[198].mxu0  ;;  %v5690_v43 = vpop.f32.mrb[210].mxu1  ;;  %v946_v33 = vadd.f32 %v15516_v9, %v10856_v12  ;;  %v15517_v11 = vld [vmem:[#allocation104_spill] sm:$0xff] }
0x1103   :  { %v7612_v37 = vmul.f32 -1.442695, %v5705_v24  ;;  %v5709_v55 = vadd.f32 %v5637_v36, %v635_v52  ;;  %v5711_v0 = vadd.f32 %v5690_v43, %v940_v17  ;;  %v5639_v1 = vpop.f32.mrb[199].mxu0  ;;  %v5692_v21 = vpop.f32.mrb[211].mxu1  ;;  %v643_v24 = vadd.f32 %v15517_v11, %v15416_v39  ;;  %v15518_v43 = vld [vmem:[#allocation106_spill] sm:$0xff] }
0x1104   :  { %v7613_v54 = vmul.f32 -1.442695, %v5706_v27  ;;  %v5710_v51 = vadd.f32 %v5639_v1, %v637_v10  ;;  %v5712_v30 = vadd.f32 %v5692_v21, %v942_v16  ;;  %v647_v36 = vadd.f32 %v15518_v43, %v15413_v49  ;;  %v15519_v27 = vld [vmem:[#allocation115_spill] sm:$0xff]  ;;  %v15521_v10 = vld [vmem:[#allocation117_spill] sm:$0xff] }
0x1105   :  { %8971 = vpow2.f32 %v7612_v37  ;;  %v7615_v42 = vmul.f32 -1.442695, %v5709_v55  ;;  %v948_v1 = vadd.f32 %v15519_v27, %v10861_v63  ;;  %v15520_v37 = vld [vmem:[#allocation108_spill] sm:$0xff]  ;;  %v952_v52 = vadd.f32 %v15521_v10, %v10856_v12 }
0x1106   :  { %v7616_v60 = vmul.f32 -1.442695, %v5710_v51  ;;  %8973 = vpow2.f32 %v7613_v54  ;;  %v649_v16 = vadd.f32 %v15520_v37, %v15416_v39  ;;  %v7614_v51 = vmul.f32 -1.442695, %v5707_v18 }
0x1107   :  { %8975 = vpow2.f32 %v7615_v42  ;;  %v15522_v42 = vld [vmem:[#allocation119_spill] sm:$0xff] }
0x1108   :  { %v5643_v21 = vpop.f32.mrb[200].mxu0  ;;  %v5696_v55 = vpop.f32.mrb[212].mxu1  ;;  %8977 = vpow2.f32 %v7616_v60  ;;  %v954_v27 = vadd.f32 %v15522_v42, %v10861_v63 }
0x1109   :  { %v5713_v34 = vadd.f32 %v5643_v21, %v641_v7  ;;  %v5715_v17 = vadd.f32 %v5696_v55, %v946_v33  ;;  %v5645_v59 = vpop.f32.mrb[201].mxu0  ;;  %v5698_v54 = vpop.f32.mrb[213].mxu1  ;;  %8979 = vtanh.f32 %v5708_v45  ;;  %v7617_v33 = vmul.f32 -1.442695, %v5711_v0 }
0x110a   :  { %v5714_v48 = vadd.f32 %v5645_v59, %v643_v24  ;;  %v5716_v9 = vadd.f32 %v5698_v54, %v948_v1  ;;  %v5647_v11 = vpop.f32.mrb[202].mxu0  ;;  %v5700_v43 = vpop.f32.mrb[214].mxu1 }
0x110b   :  { %v7618_v49 = vmul.f32 -1.442695, %v5713_v34  ;;  %v5717_v50 = vadd.f32 %v5647_v11, %v647_v36  ;;  %v5649_v5 = vpop.f32.mrb[203].mxu0  ;;  %v5702_v37 = vpop.f32.mrb[215].mxu1  ;;  %v5719_v10 = vadd.f32 %v5700_v43, %v952_v52  ;;  %v7620_v11 = vmul.f32 -1.442695, %v5715_v17 }
0x110c   :  { %v7619_v39 = vmul.f32 -1.442695, %v5714_v48  ;;  %v5718_v7 = vadd.f32 %v5649_v5, %v649_v16  ;;  %v5720_v18 = vadd.f32 %v5702_v37, %v954_v27 }
0x110d   :  { %8981 = vpow2.f32 %v7618_v49  ;;  %v7621_v21 = vmul.f32 -1.442695, %v5717_v50  ;;  %v7623_v27 = vmul.f32 -1.442695, %v5719_v10 }
0x110e   :  { %8983 = vpow2.f32 %v7614_v51  ;;  %v7622_v52 = vmul.f32 -1.442695, %v5718_v7 }
0x110f   :  { %v8972_v60 = vpop.eup %8971  ;;  %8985 = vpow2.f32 %v7619_v39 }
0x1110   :  { %v5757_v24 = vadd.f32 1.0, %v8972_v60  ;;  %8987 = vpow2.f32 %v7621_v21  ;;  %v8974_v1 = vpop.eup %8973 }
0x1111   :  { %8989 = vpow2.f32 %v7617_v33  ;;  %v8976_v55 = vpop.eup %8975  ;;  %v5758_v36 = vadd.f32 1.0, %v8974_v1 }
0x1112   :  { %8991 = vrcp.f32 %v5757_v24  ;;  %v5760_v34 = vadd.f32 1.0, %v8976_v55  ;;  %v8978_v45 = vpop.eup %8977 }
0x1113   :  { %8993 = vtanh.f32 %v5712_v30  ;;  %v5761_v5 = vadd.f32 1.0, %v8978_v45  ;;  %v8980_v49 = vpop.eup %8979 }
0x1114   :  { %8995 = vrcp.f32 %v5758_v36 }
0x1115   :  { %8997 = vrcp.f32 %v5760_v34 }
0x1116   :  { %8999 = vrcp.f32 %v5761_v5 }
0x1117   :  { %v8982_v50 = vpop.eup %8981  ;;  %9001 = vpow2.f32 %v7622_v52 }
0x1118   :  { %v8984_v0 = vpop.eup %8983  ;;  %v5763_v16 = vadd.f32 1.0, %v8982_v50  ;;  %9003 = vtanh.f32 %v5716_v9 }
0x1119   :  { %v8986_v39 = vpop.eup %8985  ;;  %v5759_v7 = vadd.f32 1.0, %v8984_v0 }
0x111a   :  { %v8988_v59 = vpop.eup %8987  ;;  %9005 = vrcp.f32 %v5763_v16  ;;  %v5764_v54 = vadd.f32 1.0, %v8986_v39 }
0x111b   :  { %v8990_v51 = vpop.eup %8989  ;;  %v5766_v48 = vadd.f32 1.0, %v8988_v59  ;;  %9007 = vtanh.f32 %v5720_v18 }
0x111c   :  { %v8992_v30 = vpop.eup %8991  ;;  %9009 = vrcp.f32 %v5764_v54  ;;  %v5762_v60 = vadd.f32 1.0, %v8990_v51 }
0x111d   :  { %v8994_v43 = vpop.eup %8993  ;;  %v5801_v42 = vmul.f32 %v8992_v30, %v8980_v49  ;;  %9011 = vrcp.f32 %v5766_v48 }
0x111e   :  { %v8996_v37 = vpop.eup %8995  ;;  %9013 = vpow2.f32 %v7620_v11 }
0x111f   :  { %v8998_v33 = vpop.eup %8997  ;;  %v5797_v21 = vmul.f32 %v8996_v37, %v13250_v62  ;;  %9015 = vpow2.f32 %v7623_v27 }
0x1120   :  { %v5802_v9 = vmul.f32 %v8998_v33, %v8994_v43  ;;  %v9000_v24 = vpop.eup %8999  ;;  %9017 = vrcp.f32 %v5759_v7 }
0x1121   :  { %v13830_v1 = vadd.f32 %v5801_v42, %v5797_v21  ;;  %v9002_v18 = vpop.eup %9001  ;;  %v5798_v17 = vmul.f32 %v9000_v24, %v13254_v25  ;;  %9019 = vrcp.f32 %v5762_v60 }
0x1122   :  { %v9004_v55 = vpop.eup %9003  ;;  %v5767_v36 = vadd.f32 1.0, %v9002_v18 }
0x1123   :  { %9021 = vtanh.f32 %v13830_v1  ;;  %v13834_v34 = vadd.f32 %v5802_v9, %v5798_v17 }
0x1124   :  { %v9006_v10 = vpop.eup %9005  ;;  %9023 = vrcp.f32 %v5767_v36 }
0x1125   :  { %v9008_v62 = vpop.eup %9007  ;;  %v5803_v45 = vmul.f32 %v9006_v10, %v9004_v55  ;;  %9025 = vtanh.f32 %v13834_v34 }
0x1126   :  { %v9010_v52 = vpop.eup %9009 }
0x1127   :  { %v9012_v5 = vpop.eup %9011  ;;  %v5799_v49 = vmul.f32 %v9010_v52, %v13258_v56 }
0x1128   :  { %v5804_v50 = vmul.f32 %v9012_v5, %v9008_v62  ;;  %v9014_v25 = vpop.eup %9013 }
0x1129   :  { %v13838_v0 = vadd.f32 %v5803_v45, %v5799_v49  ;;  %v9016_v16 = vpop.eup %9015  ;;  %v5765_v54 = vadd.f32 1.0, %v9014_v25 }
0x112a   :  { %v9018_v39 = vpop.eup %9017  ;;  %v5768_v30 = vadd.f32 1.0, %v9016_v16 }
0x112b   :  { %v9020_v59 = vpop.eup %9019  ;;  %9027 = vrcp.f32 %v5765_v54 }
0x112c   :  { %9029 = vtanh.f32 %v13838_v0 }
0x112d   :  { %v9022_v51 = vpop.eup %9021  ;;  %9031 = vrcp.f32 %v5768_v30 }
0x112e   :  { %v9024_v48 = vpop.eup %9023  ;;  %v5813_v42 = vmul.f32 %v9022_v51, %v9018_v39 }
0x112f   :  { %v9026_v11 = vpop.eup %9025  ;;  %v5800_v43 = vmul.f32 %v9024_v48, %v13262_v28 }
0x1130   :  { %v5814_v27 = vmul.f32 %v9026_v11, %v9020_v59 }
0x1131   :  { %v13842_v56 = vadd.f32 %v5804_v50, %v5800_v43 }
0x1132   :  { %v13844_v37 = vpack.c.bf16 %v5814_v27, %v5813_v42 }
0x1133   :  { %9033 = vtanh.f32 %v13842_v56 }
0x1134   :  { %5852 = vmatmul.mubr.bf16.vlgmr.msra.gmra.mrb[188].mxu0 %v13844_v37  ;;  %5905 = vmatmul.mubr.bf16.vlgmr.msra.gmra.mrb[200].mxu1 %v13844_v37 }
0x1135   :  { %5861 = vmatprep.mubr.bf16.mxu0 %v14876_v22  ;;  %5914 = vmatprep.mubr.bf16.mxu1 %v14876_v22  ;;  %v9028_v28 = vpop.eup %9027 }
0x1136   :  { %6040 = vmatpush1.bf16.msra.mxu0 %v13271_v41  ;;  %6093 = vmatpush1.bf16.msra.mxu1 %v13274_v14  ;;  %v9030_v7 = vpop.eup %9029 }
0x1137   :  { %6041 = vmatprep.subr.bf16.mxu0 %v13277_v6  ;;  %6094 = vmatprep.subr.bf16.mxu1 %v13280_v58  ;;  %v9032_v33 = vpop.eup %9031  ;;  %v5815_v60 = vmul.f32 %v9030_v7, %v9028_v28  ;;  %v15523_v6 = vld [vmem:[#allocation182_spill] sm:$0xff]  ;;  %v15524_v58 = vld [vmem:[#allocation183_spill] sm:$0xff] }
0x113a   :  { %6042 = vmatpush1.bf16.msra.mxu0 %v13283_v19  ;;  %6095 = vmatpush1.bf16.msra.mxu1 %v13286_v31  ;;  %v15525_v19 = vld [vmem:[#allocation184_spill] sm:$0xff]  ;;  %v15526_v31 = vld [vmem:[#allocation185_spill] sm:$0xff] }
0x113b   :  { %6043 = vmatprep.subr.bf16.mxu0 %v13289_v29  ;;  %6096 = vmatprep.subr.bf16.mxu1 %v13292_v46  ;;  %v15527_v29 = vld [vmem:[#allocation186_spill] sm:$0xff]  ;;  %v15528_v46 = vld [vmem:[#allocation187_spill] sm:$0xff] }
0x113d   :  { %v9034_v21 = vpop.eup %9033 }
0x113e   :  { %v5816_v41 = vmul.f32 %v9034_v21, %v9032_v33  ;;  %6044 = vmatpush1.bf16.msra.mxu0 %v13295_v23  ;;  %6097 = vmatpush1.bf16.msra.mxu1 %v13298_v15  ;;  %v15529_v23 = vld [vmem:[#allocation188_spill] sm:$0xff]  ;;  %v15530_v15 = vld [vmem:[#allocation189_spill] sm:$0xff] }
0x113f   :  { %6045 = vmatprep.subr.bf16.mxu0 %v13301_v44  ;;  %6098 = vmatprep.subr.bf16.mxu1 %v13304_v26  ;;  %v15531_v44 = vld [vmem:[#allocation190_spill] sm:$0xff]  ;;  %v15532_v26 = vld [vmem:[#allocation191_spill] sm:$0xff] }
0x1140   :  { %v13863_v14 = vpack.c.bf16 %v5816_v41, %v5815_v60 }
0x1142   :  { %5862 = vmatmul.mubr.bf16.gmra.mrb[192].mxu0 %v13863_v14  ;;  %5915 = vmatmul.mubr.bf16.gmra.mrb[204].mxu1 %v13863_v14 }
0x1143   :  { %6046 = vmatpush1.bf16.msra.mxu0 %v13311_v20  ;;  %6099 = vmatpush1.bf16.msra.mxu1 %v13314_v38  ;;  %v15533_v20 = vld [vmem:[#allocation192_spill] sm:$0xff]  ;;  %v15534_v38 = vld [vmem:[#allocation193_spill] sm:$0xff] }
0x1144   :  { %6047 = vmatprep.subr.bf16.mxu0 %v13317_v40  ;;  %6100 = vmatprep.subr.bf16.mxu1 %v13320_v4 }
0x1145   :  { %6071 = vmatprep.mubr.bf16.mxu0 %v14876_v22  ;;  %6124 = vmatprep.mubr.bf16.mxu1 %v14876_v22 }
0x1147   :  { %6048 = vmatpush1.bf16.msra.mxu0 %v13325_v61  ;;  %6101 = vmatpush1.bf16.msra.mxu1 %v13328_v35 }
0x1148   :  { %6049 = vmatprep.subr.bf16.mxu0 %v13331_v2  ;;  %6102 = vmatprep.subr.bf16.mxu1 %v13334_v47 }
0x114b   :  { %6050 = vmatpush1.bf16.msra.mxu0 %v15523_v6  ;;  %6103 = vmatpush1.bf16.msra.mxu1 %v15524_v58 }
0x114c   :  { %6051 = vmatprep.subr.bf16.mxu0 %v15525_v19  ;;  %6104 = vmatprep.subr.bf16.mxu1 %v15526_v31 }
0x114f   :  { %6052 = vmatpush1.bf16.msra.mxu0 %v15527_v29  ;;  %6105 = vmatpush1.bf16.msra.mxu1 %v15528_v46 }
0x1150   :  { %6053 = vmatprep.subr.bf16.mxu0 %v15529_v23  ;;  %6106 = vmatprep.subr.bf16.mxu1 %v15530_v15 }
0x1153   :  { %6054 = vmatpush1.bf16.msra.mxu0 %v15531_v44  ;;  %6107 = vmatpush1.bf16.msra.mxu1 %v15532_v26 }
0x1154   :  { %6161 = vmatprep.subr.bf16.mxu0 %v15533_v20  ;;  %6214 = vmatprep.subr.bf16.mxu1 %v15534_v38 }
0x1207   :  { %v5853_v40 = vpop.f32.mrb[188].mxu0  ;;  %v5906_v4 = vpop.f32.mrb[200].mxu1 }
0x1208   :  { %v5925_v61 = vadd.f32 %v5853_v40, %v14985_v8  ;;  %v5855_v35 = vpop.f32.mrb[189].mxu0  ;;  %v5908_v2 = vpop.f32.mrb[201].mxu1  ;;  %v5927_v52 = vadd.f32 %v5906_v4, %v11026_v13 }
0x1209   :  { %v5926_v47 = vadd.f32 %v5855_v35, %v11021_v53  ;;  %v5857_v9 = vpop.f32.mrb[190].mxu0  ;;  %v5910_v24 = vpop.f32.mrb[202].mxu1  ;;  %v5928_v16 = vadd.f32 %v5908_v2, %v11032_v32 }
0x120a   :  { %v7624_v18 = vmul.f32 -1.442695, %v5925_v61  ;;  %v5929_v17 = vadd.f32 %v5857_v9, %v14985_v8  ;;  %v5859_v55 = vpop.f32.mrb[191].mxu0  ;;  %v5912_v36 = vpop.f32.mrb[203].mxu1  ;;  %v5931_v49 = vadd.f32 %v5910_v24, %v11026_v13  ;;  %v7626_v50 = vmul.f32 -1.442695, %v5927_v52 }
0x120b   :  { %v7625_v10 = vmul.f32 -1.442695, %v5926_v47  ;;  %v5930_v62 = vadd.f32 %v5859_v55, %v11021_v53  ;;  %v5932_v51 = vadd.f32 %v5912_v36, %v11032_v32 }
0x120c   :  { %9035 = vpow2.f32 %v7624_v18  ;;  %v7627_v45 = vmul.f32 -1.442695, %v5929_v17  ;;  %v7629_v25 = vmul.f32 -1.442695, %v5931_v49 }
0x120d   :  { %v7628_v5 = vmul.f32 -1.442695, %v5930_v62  ;;  %9037 = vpow2.f32 %v7625_v10 }
0x120e   :  { %9039 = vpow2.f32 %v7627_v45 }
0x120f   :  { %9041 = vpow2.f32 %v7628_v5 }
0x1210   :  { %9043 = vpow2.f32 %v7626_v50 }
0x1211   :  { %9045 = vpow2.f32 %v7629_v25 }
0x1212   :  { %9047 = vtanh.f32 %v5928_v16 }
0x1215   :  { %v5863_v39 = vpop.f32.mrb[192].mxu0  ;;  %v5916_v59 = vpop.f32.mrb[204].mxu1 }
0x1216   :  { %v9036_v54 = vpop.eup %9035  ;;  %v5865_v48 = vpop.f32.mrb[193].mxu0  ;;  %v5933_v43 = vadd.f32 %v5863_v39, %v14985_v8  ;;  %v5935_v20 = vadd.f32 %v5916_v59, %v11026_v13 }
0x1217   :  { %v5918_v30 = vpop.f32.mrb[205].mxu1  ;;  %v5977_v11 = vadd.f32 1.0, %v9036_v54  ;;  %v5867_v42 = vpop.f32.mrb[194].mxu0  ;;  %v5934_v60 = vadd.f32 %v5865_v48, %v11021_v53 }
0x1218   :  { %v5920_v27 = vpop.f32.mrb[206].mxu1  ;;  %v9038_v28 = vpop.eup %9037  ;;  %v7630_v19 = vmul.f32 -1.442695, %v5933_v43  ;;  %v5937_v31 = vadd.f32 %v5867_v42, %v14985_v8  ;;  %v7632_v24 = vmul.f32 -1.442695, %v5935_v20  ;;  %v5936_v17 = vadd.f32 %v5918_v30, %v11032_v32  ;;  %v15536_v20 = vld [vmem:[#allocation199_spill] sm:$0xff] }
0x1219   :  { %v5869_v7 = vpop.f32.mrb[195].mxu0  ;;  %v9040_v33 = vpop.eup %9039  ;;  %9049 = vrcp.f32 %v5977_v11  ;;  %v5978_v21 = vadd.f32 1.0, %v9038_v28  ;;  %v7631_v46 = vmul.f32 -1.442695, %v5934_v60  ;;  %v5939_v61 = vadd.f32 %v5920_v27, %v11026_v13 }
0x121a   :  { %v5922_v41 = vpop.f32.mrb[207].mxu1  ;;  %v5980_v6 = vadd.f32 1.0, %v9040_v33  ;;  %9051 = vtanh.f32 %v5932_v51  ;;  %v9042_v58 = vpop.eup %9041  ;;  %v5938_v23 = vadd.f32 %v5869_v7, %v11021_v53  ;;  %v7633_v44 = vmul.f32 -1.442695, %v5937_v31  ;;  %v15535_v31 = vld [vmem:[#allocation194_spill] sm:$0xff] }
0x121b   :  { %9053 = vrcp.f32 %v5978_v21  ;;  %v5981_v29 = vadd.f32 1.0, %v9042_v58  ;;  %v9044_v15 = vpop.eup %9043  ;;  %v7635_v10 = vmul.f32 -1.442695, %v5939_v61  ;;  %v5940_v25 = vadd.f32 %v5922_v41, %v11032_v32  ;;  %v15539_v61 = vld [vmem:[#allocation197_spill] sm:$0xff] }
0x121c   :  { %9055 = vrcp.f32 %v5980_v6  ;;  %v9046_v26 = vpop.eup %9045  ;;  %v7634_v38 = vmul.f32 -1.442695, %v5938_v23  ;;  %v5979_v4 = vadd.f32 1.0, %v9044_v15 }
0x121d   :  { %9057 = vrcp.f32 %v5981_v29  ;;  %v9048_v40 = vpop.eup %9047  ;;  %v5982_v2 = vadd.f32 1.0, %v9046_v26 }
0x121e   :  { %9059 = vpow2.f32 %v7630_v19 }
0x121f   :  { %9061 = vpow2.f32 %v7631_v46 }
0x1220   :  { %9063 = vpow2.f32 %v7633_v44 }
0x1221   :  { %9065 = vpow2.f32 %v7634_v38 }
0x1222   :  { %9067 = vrcp.f32 %v5979_v4  ;;  %v15538_v4 = vld [vmem:[#allocation196_spill] sm:$0xff] }
0x1223   :  { %v9050_v35 = vpop.eup %9049  ;;  %9069 = vrcp.f32 %v5982_v2 }
0x1224   :  { %v9052_v47 = vpop.eup %9051  ;;  %v6021_v9 = vmul.f32 %v9050_v35, %v9048_v40  ;;  %9071 = vpow2.f32 %v7632_v24  ;;  %v15537_v40 = vld [vmem:[#allocation195_spill] sm:$0xff]  ;;  %v15540_v35 = vld [vmem:[#allocation198_spill] sm:$0xff] }
0x1225   :  { %v9054_v18 = vpop.eup %9053  ;;  %9073 = vtanh.f32 %v5936_v17  ;;  %v15543_v24 = vld [vmem:[#allocation202_spill] sm:$0xff]  ;;  %v15545_v17 = vld [vmem:[#allocation204_spill] sm:$0xff] }
0x1226   :  { %v9056_v55 = vpop.eup %9055  ;;  %v6017_v36 = vmul.f32 %v9054_v18, %v13395_v57  ;;  %9075 = vpow2.f32 %v7635_v10  ;;  %v15544_v18 = vld [vmem:[#allocation203_spill] sm:$0xff] }
0x1227   :  { %v6022_v62 = vmul.f32 %v9056_v55, %v9052_v47  ;;  %v9058_v45 = vpop.eup %9057  ;;  %v15541_v47 = vld [vmem:[#allocation200_spill] sm:$0xff]  ;;  %v15546_v55 = vld [vmem:[#allocation205_spill] sm:$0xff]  ;;  %v15548_v10 = vld [vmem:[#allocation207_spill] sm:$0xff] }
0x1228   :  { %v13905_v52 = vadd.f32 %v6021_v9, %v6017_v36  ;;  %v9060_v5 = vpop.eup %9059  ;;  %v6018_v49 = vmul.f32 %v9058_v45, %v13400_v3  ;;  %v15542_v9 = vld [vmem:[#allocation201_spill] sm:$0xff]  ;;  %v15547_v36 = vld [vmem:[#allocation206_spill] sm:$0xff] }
0x1229   :  { %v5983_v50 = vadd.f32 1.0, %v9060_v5  ;;  %v9062_v16 = vpop.eup %9061  ;;  %v15549_v5 = vld [vmem:[#allocation208_spill] sm:$0xff] }
0x122a   :  { %9077 = vtanh.f32 %v13905_v52  ;;  %v13910_v39 = vadd.f32 %v6022_v62, %v6018_v49  ;;  %v5984_v57 = vadd.f32 1.0, %v9062_v16  ;;  %v9064_v59 = vpop.eup %9063  ;;  %v15550_v49 = vld [vmem:[#allocation209_spill] sm:$0xff]  ;;  %v15552_v16 = vld [vmem:[#allocation211_spill] sm:$0xff] }
0x122b   :  { %9079 = vrcp.f32 %v5983_v50  ;;  %v5986_v54 = vadd.f32 1.0, %v9064_v59  ;;  %v9066_v51 = vpop.eup %9065 }
0x122c   :  { %9081 = vtanh.f32 %v13910_v39  ;;  %v9068_v3 = vpop.eup %9067  ;;  %v5987_v48 = vadd.f32 1.0, %v9066_v51  ;;  %v15553_v51 = vld [vmem:[#allocation212_spill] sm:$0xff] }
0x122d   :  { %9083 = vtanh.f32 %v5940_v25  ;;  %v9070_v30 = vpop.eup %9069  ;;  %v15551_v25 = vld [vmem:[#allocation210_spill] sm:$0xff] }
0x122e   :  { %9085 = vrcp.f32 %v5984_v57  ;;  %v9072_v11 = vpop.eup %9071 }
0x122f   :  { %9087 = vrcp.f32 %v5986_v54  ;;  %v9074_v43 = vpop.eup %9073  ;;  %v5985_v19 = vadd.f32 1.0, %v9072_v11  ;;  %v15556_v11 = vld [vmem:[#allocation215_spill] sm:$0xff] }
0x1230   :  { %9089 = vrcp.f32 %v5987_v48  ;;  %v9076_v42 = vpop.eup %9075 }
0x1231   :  { %v5988_v26 = vadd.f32 1.0, %v9076_v42  ;;  %9091 = vrcp.f32 %v5985_v19  ;;  %v15558_v42 = vld [vmem:[#allocation217_spill] sm:$0xff]  ;;  %v15568_v19 = vld [vmem:[#allocation54_spill] sm:$0xff] }
0x1234   :  { %v9078_v27 = vpop.eup %9077 }
0x1235   :  { %v9080_v28 = vpop.eup %9079  ;;  %v6033_v60 = vmul.f32 %v9078_v27, %v9068_v3  ;;  %v15554_v3 = vld [vmem:[#allocation213_spill] sm:$0xff]  ;;  %v15559_v27 = vld [vmem:[#allocation218_spill] sm:$0xff] }
0x1236   :  { %v9082_v7 = vpop.eup %9081  ;;  %v6023_v33 = vmul.f32 %v9080_v28, %v9074_v43  ;;  %v15557_v43 = vld [vmem:[#allocation216_spill] sm:$0xff]  ;;  %v15560_v28 = vld [vmem:[#allocation46_spill] sm:$0xff] }
0x1237   :  { %v9084_v21 = vpop.eup %9083  ;;  %v6034_v41 = vmul.f32 %v9082_v7, %v9070_v30  ;;  %v15555_v30 = vld [vmem:[#allocation214_spill] sm:$0xff]  ;;  %v15561_v7 = vld [vmem:[#allocation57_spill] sm:$0xff] }
0x1238   :  { %v9086_v6 = vpop.eup %9085 }
0x1239   :  { %v9088_v58 = vpop.eup %9087  ;;  %v6019_v29 = vmul.f32 %v9086_v6, %v15535_v31  ;;  %v6037_v46 = vpack.c.bf16 %v6034_v41, %v6033_v60  ;;  %v15564_v60 = vld [vmem:[#allocation50_spill] sm:$0xff]  ;;  %v15565_v41 = vld [vmem:[#allocation61_spill] sm:$0xff]  ;;  %v15566_v6 = vld [vmem:[#allocation52_spill] sm:$0xff] }
0x123a   :  { %v6024_v23 = vmul.f32 %v9088_v58, %v9084_v21  ;;  %v9090_v15 = vpop.eup %9089  ;;  %v15563_v21 = vld [vmem:[#allocation59_spill] sm:$0xff]  ;;  %v15569_v31 = vld [vmem:[#allocation65_spill] sm:$0xff] }
0x123b   :  { %v13914_v44 = vadd.f32 %v6023_v33, %v6019_v29  ;;  %6072 = vmatmul.mubr.bf16.vlgmr.msra.gmra.mrb[204].mxu0 %v6037_v46  ;;  %6125 = vmatmul.mubr.bf16.vlgmr.msra.gmra.mrb[216].mxu1 %v6037_v46  ;;  %v6020_v38 = vmul.f32 %v9090_v15, %v15536_v20  ;;  %v9092_v62 = vpop.eup %9091  ;;  %v15562_v33 = vld [vmem:[#allocation48_spill] sm:$0xff]  ;;  %v15567_v58 = vld [vmem:[#allocation63_spill] sm:$0xff]  ;;  %v15571_v46 = vld [vmem:[#allocation58_spill] sm:$0xff] }
0x123c   :  { %6162 = vmatpush1.bf16.msra.mxu0 %v15537_v40  ;;  %6215 = vmatpush1.bf16.msra.mxu1 %v15538_v4  ;;  %v15570_v29 = vld [vmem:[#allocation56_spill] sm:$0xff]  ;;  %v15575_v20 = vld [vmem:[#allocation71_spill] sm:$0xff] }
0x123d   :  { %6163 = vmatprep.subr.bf16.mxu0 %v15539_v61  ;;  %6216 = vmatprep.subr.bf16.mxu1 %v15540_v35  ;;  %9093 = vtanh.f32 %v13914_v44  ;;  %v13922_v2 = vadd.f32 %v6024_v23, %v6020_v38  ;;  %v15572_v23 = vld [vmem:[#allocation67_spill] sm:$0xff]  ;;  %v15573_v15 = vld [vmem:[#allocation60_spill] sm:$0xff]  ;;  %v15576_v38 = vld [vmem:[#allocation62_spill] sm:$0xff] }
0x123e   :  { %6081 = vmatprep.mubr.bf16.mxu0 %v14876_v22  ;;  %6134 = vmatprep.mubr.bf16.mxu1 %v14876_v22  ;;  %9095 = vrcp.f32 %v5988_v26  ;;  %v15574_v26 = vld [vmem:[#allocation69_spill] sm:$0xff]  ;;  %v15578_v40 = vld [vmem:[#allocation64_spill] sm:$0xff]  ;;  %v15579_v4 = vld [vmem:[#allocation75_spill] sm:$0xff] }
0x123f   :  { %9097 = vtanh.f32 %v13922_v2  ;;  %v15580_v61 = vld [vmem:[#allocation66_spill] sm:$0xff]  ;;  %v15581_v35 = vld [vmem:[#allocation77_spill] sm:$0xff] }
0x1240   :  { %6164 = vmatpush1.bf16.msra.mxu0 %v15541_v47  ;;  %6217 = vmatpush1.bf16.msra.mxu1 %v15542_v9  ;;  %v15582_v47 = vld [vmem:[#allocation68_spill] sm:$0xff]  ;;  %v15583_v9 = vld [vmem:[#allocation79_spill] sm:$0xff] }
0x1241   :  { %6165 = vmatprep.subr.bf16.mxu0 %v15543_v24  ;;  %6218 = vmatprep.subr.bf16.mxu1 %v15544_v18  ;;  %v15584_v24 = vld [vmem:[#allocation70_spill] sm:$0xff]  ;;  %v15586_v18 = vld [vmem:[#allocation72_spill] sm:$0xff] }
0x1244   :  { %6166 = vmatpush1.bf16.msra.mxu0 %v15545_v17  ;;  %6219 = vmatpush1.bf16.msra.mxu1 %v15546_v55  ;;  %v15587_v17 = vld [vmem:[#allocation74_spill] sm:$0xff]  ;;  %v15588_v55 = vld [vmem:[#allocation83_spill] sm:$0xff] }
0x1245   :  { %6167 = vmatprep.subr.bf16.mxu0 %v15547_v36  ;;  %6220 = vmatprep.subr.bf16.mxu1 %v15548_v10  ;;  %v15589_v36 = vld [vmem:[#allocation76_spill] sm:$0xff]  ;;  %v15590_v10 = vld [vmem:[#allocation85_spill] sm:$0xff] }
0x1247   :  { %v9094_v45 = vpop.eup %9093 }
0x1248   :  { %6168 = vmatpush1.bf16.msra.mxu0 %v15549_v5  ;;  %6221 = vmatpush1.bf16.msra.mxu1 %v15550_v49  ;;  %v9096_v50 = vpop.eup %9095  ;;  %v6035_v59 = vmul.f32 %v9094_v45, %v9092_v62  ;;  %v15591_v62 = vld [vmem:[#allocation87_spill] sm:$0xff]  ;;  %v15593_v5 = vld [vmem:[#allocation220_spill] sm:$0xff]  ;;  %v15594_v49 = vld [vmem:[#allocation221_spill] sm:$0xff] }
0x1249   :  { %6169 = vmatprep.subr.bf16.mxu0 %v15551_v25  ;;  %6222 = vmatprep.subr.bf16.mxu1 %v15552_v16  ;;  %v9098_v57 = vpop.eup %9097  ;;  %v15592_v45 = vld [vmem:[#allocation219_spill] sm:$0xff] }
0x124a   :  { %v6036_v54 = vmul.f32 %v9098_v57, %v9096_v50  ;;  %v15595_v50 = vld [vmem:[#allocation222_spill] sm:$0xff]  ;;  %v15596_v25 = vld [vmem:[#allocation223_spill] sm:$0xff]  ;;  %v15598_v57 = vld [vmem:[#allocation25_spill] sm:$0xff] }
0x124b   :  { %v15597_v16 = vld [vmem:[#allocation19_spill] sm:$0xff] }
0x124c   :  { %6170 = vmatpush1.bf16.msra.mxu0 %v15553_v51  ;;  %6223 = vmatpush1.bf16.msra.mxu1 %v15554_v3  ;;  %v6038_v48 = vpack.c.bf16 %v6036_v54, %v6035_v59  ;;  %v9707_v59 = vld [vmem:[#allocation7 + $0x4] ss:$16 sps:$4 sm:$0xff]   ;;  %v9708_v54 = vld [vmem:[#allocation7 + $0xc] ss:$16 sps:$4 sm:$0xff]  }
0x124d   :  { %6171 = vmatprep.subr.bf16.mxu0 %v15555_v30  ;;  %6224 = vmatprep.subr.bf16.mxu1 %v15556_v11  ;;  %v15599_v51 = vld [vmem:[#allocation127_spill] sm:$0xff]  ;;  %v15600_v3 = vld [vmem:[#allocation110_spill] sm:$0xff]  ;;  %v15601_v30 = vld [vmem:[#allocation121_spill] sm:$0xff] }
0x124e   :  { %6082 = vmatmul.mubr.bf16.gmra.mrb[208].mxu0 %v6038_v48  ;;  %6135 = vmatmul.mubr.bf16.gmra.mrb[220].mxu1 %v6038_v48  ;;  %v653_v48 = vadd.f32 %v15600_v3, %v15599_v51  ;;  %v958_v11 = vadd.f32 %v15601_v30, %v10856_v12 }
0x124f   :  { %6193 = vmatprep.mubr.bf16.mxu0 %v14876_v22  ;;  %6246 = vmatprep.mubr.bf16.mxu1 %v14876_v22 }
0x1250   :  { %6172 = vmatpush1.bf16.msra.mxu0 %v15557_v43  ;;  %6225 = vmatpush1.bf16.msra.mxu1 %v15558_v42  ;;  %v15602_v43 = vld [vmem:[#allocation130_spill] sm:$0xff]  ;;  %v15603_v42 = vld [vmem:[#allocation112_spill] sm:$0xff] }
0x1251   :  { %6173 = vmatprep.subr.bf16.mxu0 %v15559_v27  ;;  %6226 = vmatprep.subr.bf16.mxu1 %v15560_v28  ;;  %v655_v27 = vadd.f32 %v15603_v42, %v15602_v43  ;;  %v15604_v28 = vld [vmem:[#allocation123_spill] sm:$0xff] }
0x1254   :  { %6174 = vmatpush1.bf16.msra.mxu0 %v15561_v7  ;;  %6227 = vmatpush1.bf16.msra.mxu1 %v15562_v33  ;;  %v960_v7 = vadd.f32 %v15604_v28, %v10861_v63 }
0x1255   :  { %6175 = vmatprep.subr.bf16.mxu0 %v15563_v21  ;;  %6228 = vmatprep.subr.bf16.mxu1 %v15564_v60  ;;  %v15605_v60 = vld [vmem:[#allocation114_spill] sm:$0xff] }
0x1258   :  { %6176 = vmatpush1.bf16.msra.mxu0 %v15565_v41  ;;  %6229 = vmatpush1.bf16.msra.mxu1 %v15566_v6  ;;  %v659_v41 = vadd.f32 %v15605_v60, %v15599_v51  ;;  %v15606_v6 = vld [vmem:[#allocation125_spill] sm:$0xff] }
0x1259   :  { %6381 = vmatprep.subr.bf16.mxu0 %v15567_v58  ;;  %6434 = vmatprep.subr.bf16.mxu1 %v15568_v19  ;;  %v964_v58 = vadd.f32 %v15606_v6, %v10856_v12 }
0x125b   :  { %6194 = vmatmul.mubr.bf16.vlgmr.msra.gmra.mrb[212].mxu0 %v13844_v37  ;;  %6247 = vmatmul.mubr.bf16.vlgmr.msra.gmra.mrb[224].mxu1 %v13844_v37  ;;  %v15577_v37 = vld [vmem:[#allocation73_spill] sm:$0xff] }
0x125c   :  { %6203 = vmatprep.mubr.bf16.mxu0 %v14876_v22  ;;  %6256 = vmatprep.mubr.bf16.mxu1 %v14876_v22 }
0x125d   :  { %6382 = vmatpush1.bf16.msra.mxu0 %v15569_v31  ;;  %6435 = vmatpush1.bf16.msra.mxu1 %v15570_v29 }
0x125e   :  { %6383 = vmatprep.subr.bf16.mxu0 %v15571_v46  ;;  %6436 = vmatprep.subr.bf16.mxu1 %v15572_v23  ;;  %v15607_v23 = vld [vmem:[#allocation116_spill] sm:$0xff] }
0x1261   :  { %6384 = vmatpush1.bf16.msra.mxu0 %v15573_v15  ;;  %6437 = vmatpush1.bf16.msra.mxu1 %v15574_v26  ;;  %v661_v15 = vadd.f32 %v15607_v23, %v15602_v43  ;;  %v15608_v26 = vld [vmem:[#allocation128_spill] sm:$0xff] }
0x1262   :  { %6385 = vmatprep.subr.bf16.mxu0 %v15575_v20  ;;  %6438 = vmatprep.subr.bf16.mxu1 %v15576_v38  ;;  %v966_v20 = vadd.f32 %v15608_v26, %v10861_v63 }
0x1263   :  { %6204 = vmatmul.mubr.bf16.gmra.mrb[216].mxu0 %v13863_v14  ;;  %6257 = vmatmul.mubr.bf16.gmra.mrb[228].mxu1 %v13863_v14  ;;  %v15585_v14 = vld [vmem:[#allocation81_spill] sm:$0xff] }
0x1264   :  { %6413 = vmatprep.mubr.bf16.mxu0 %v14876_v22  ;;  %6466 = vmatprep.mubr.bf16.mxu1 %v14876_v22 }
0x1265   :  { %6386 = vmatpush1.bf16.msra.mxu0 %v15577_v37  ;;  %6439 = vmatpush1.bf16.msra.mxu1 %v15578_v40 }
0x1266   :  { %6387 = vmatprep.subr.bf16.mxu0 %v15579_v4  ;;  %6440 = vmatprep.subr.bf16.mxu1 %v15580_v61 }
0x1269   :  { %6388 = vmatpush1.bf16.msra.mxu0 %v15581_v35  ;;  %6441 = vmatpush1.bf16.msra.mxu1 %v15582_v47 }
0x126a   :  { %6389 = vmatprep.subr.bf16.mxu0 %v15583_v9  ;;  %6442 = vmatprep.subr.bf16.mxu1 %v15584_v24 }
0x126d   :  { %6390 = vmatpush1.bf16.msra.mxu0 %v15585_v14  ;;  %6443 = vmatpush1.bf16.msra.mxu1 %v15586_v18 }
0x126e   :  { %6391 = vmatprep.subr.bf16.mxu0 %v15587_v17  ;;  %6444 = vmatprep.subr.bf16.mxu1 %v15588_v55 }
0x1271   :  { %6392 = vmatpush1.bf16.msra.mxu0 %v15589_v36  ;;  %6445 = vmatpush1.bf16.msra.mxu1 %v15590_v10  ;;  %v15609_v10 = vld [vmem:[#allocation118_spill] sm:$0xff] }
0x1272   :  { %6393 = vmatprep.subr.bf16.mxu0 %v15591_v62  ;;  %6446 = vmatprep.subr.bf16.mxu1 %v15592_v45  ;;  %v665_v62 = vadd.f32 %v15609_v10, %v15599_v51  ;;  %v15610_v45 = vld [vmem:[#allocation131_spill] sm:$0xff] }
0x1275   :  { %6394 = vmatpush1.bf16.msra.mxu0 %v15593_v5  ;;  %6447 = vmatpush1.bf16.msra.mxu1 %v15594_v49  ;;  %v970_v5 = vadd.f32 %v15610_v45, %v10856_v12  ;;  %v15611_v49 = vld [vmem:[#allocation120_spill] sm:$0xff] }
0x1276   :  { %6395 = vmatprep.subr.bf16.mxu0 %v15595_v50  ;;  %6448 = vmatprep.subr.bf16.mxu1 %v15596_v25  ;;  %v667_v50 = vadd.f32 %v15611_v49, %v15602_v43  ;;  %v15612_v25 = vld [vmem:[#allocation122_spill] sm:$0xff] }
0x1279   :  { %6396 = vmatpush1.bf16.msra.mxu0 %v15597_v16  ;;  %6449 = vmatpush1.bf16.msra.mxu1 %v15598_v57  ;;  %v671_v16 = vadd.f32 %v15612_v25, %v15599_v51  ;;  %v15613_v57 = vld [vmem:[#allocation132_spill] sm:$0xff] }
0x127a   :  { %6601 = vmatprep.subr.bf16.mxu0 %v9707_v59  ;;  %6654 = vmatprep.subr.bf16.mxu1 %v9708_v54  ;;  %v972_v59 = vadd.f32 %v15613_v57, %v10861_v63 }
0x132e   :  { %v6195_v33 = vpop.f32.mrb[212].mxu0  ;;  %v6248_v21 = vpop.f32.mrb[224].mxu1 }
0x132f   :  { %v6267_v19 = vadd.f32 %v6195_v33, %v653_v48  ;;  %v6269_v31 = vadd.f32 %v6248_v21, %v958_v11  ;;  %v6197_v29 = vpop.f32.mrb[213].mxu0  ;;  %v6250_v46 = vpop.f32.mrb[225].mxu1  ;;  %v15614_v48 = vld [vmem:[#allocation124_spill] sm:$0xff]  ;;  %v15615_v11 = vld [vmem:[#allocation133_spill] sm:$0xff] }
0x1330   :  { %v6268_v38 = vadd.f32 %v6197_v29, %v655_v27  ;;  %v6270_v37 = vadd.f32 %v6250_v46, %v960_v7  ;;  %v6199_v40 = vpop.f32.mrb[214].mxu0  ;;  %v6252_v4 = vpop.f32.mrb[226].mxu1  ;;  %v673_v30 = vadd.f32 %v15614_v48, %v15602_v43  ;;  %v976_v42 = vadd.f32 %v15615_v11, %v10856_v12 }
0x1331   :  { %v7636_v61 = vmul.f32 -1.442695, %v6267_v19  ;;  %v6271_v35 = vadd.f32 %v6199_v40, %v659_v41  ;;  %v6273_v47 = vadd.f32 %v6252_v4, %v964_v58  ;;  %v6201_v9 = vpop.f32.mrb[215].mxu0  ;;  %v6254_v24 = vpop.f32.mrb[227].mxu1  ;;  %v7638_v21 = vmul.f32 -1.442695, %v6269_v31 }
0x1332   :  { %v7637_v14 = vmul.f32 -1.442695, %v6268_v38  ;;  %v6272_v18 = vadd.f32 %v6201_v9, %v661_v15  ;;  %v6274_v17 = vadd.f32 %v6254_v24, %v966_v20  ;;  %v15616_v19 = vld [vmem:[#allocation134_spill] sm:$0xff] }
0x1333   :  { %9099 = vpow2.f32 %v7636_v61  ;;  %v7639_v55 = vmul.f32 -1.442695, %v6271_v35  ;;  %v978_v29 = vadd.f32 %v15616_v19, %v10861_v63  ;;  %v7641_v4 = vmul.f32 -1.442695, %v6273_v47 }
0x1334   :  { %v7640_v36 = vmul.f32 -1.442695, %v6272_v18  ;;  %9101 = vpow2.f32 %v7637_v14 }
0x1335   :  { %9103 = vpow2.f32 %v7639_v55 }
0x1336   :  { %v6205_v54 = vpop.f32.mrb[216].mxu0  ;;  %v6258_v3 = vpop.f32.mrb[228].mxu1  ;;  %9105 = vpow2.f32 %v7640_v36 }
0x1337   :  { %v6275_v27 = vadd.f32 %v6205_v54, %v665_v62  ;;  %v6277_v28 = vadd.f32 %v6258_v3, %v970_v5  ;;  %v6207_v7 = vpop.f32.mrb[217].mxu0  ;;  %v6260_v33 = vpop.f32.mrb[229].mxu1  ;;  %9107 = vtanh.f32 %v6270_v37 }
0x1338   :  { %v6276_v60 = vadd.f32 %v6207_v7, %v667_v50  ;;  %v6278_v41 = vadd.f32 %v6260_v33, %v972_v59  ;;  %v6209_v6 = vpop.f32.mrb[218].mxu0  ;;  %v6262_v58 = vpop.f32.mrb[230].mxu1 }
0x1339   :  { %v7642_v46 = vmul.f32 -1.442695, %v6275_v27  ;;  %v6279_v23 = vadd.f32 %v6209_v6, %v671_v16  ;;  %v6211_v15 = vpop.f32.mrb[219].mxu0  ;;  %v6264_v26 = vpop.f32.mrb[231].mxu1  ;;  %v6281_v38 = vadd.f32 %v6262_v58, %v976_v42  ;;  %v7644_v59 = vmul.f32 -1.442695, %v6277_v28 }
0x133a   :  { %v7643_v20 = vmul.f32 -1.442695, %v6276_v60  ;;  %v6280_v40 = vadd.f32 %v6211_v15, %v673_v30  ;;  %v6282_v31 = vadd.f32 %v6264_v26, %v978_v29 }
0x133b   :  { %9109 = vpow2.f32 %v7642_v46  ;;  %v7645_v61 = vmul.f32 -1.442695, %v6279_v23  ;;  %v7647_v48 = vmul.f32 -1.442695, %v6281_v38 }
0x133c   :  { %9111 = vpow2.f32 %v7638_v21  ;;  %v7646_v36 = vmul.f32 -1.442695, %v6280_v40 }
0x133d   :  { %v9100_v35 = vpop.eup %9099  ;;  %9113 = vpow2.f32 %v7643_v20 }
0x133e   :  { %v6319_v9 = vadd.f32 1.0, %v9100_v35  ;;  %9115 = vpow2.f32 %v7645_v61  ;;  %v9102_v24 = vpop.eup %9101 }
0x133f   :  { %9117 = vpow2.f32 %v7641_v4  ;;  %v9104_v14 = vpop.eup %9103  ;;  %v6320_v18 = vadd.f32 1.0, %v9102_v24 }
0x1340   :  { %9119 = vrcp.f32 %v6319_v9  ;;  %v6322_v55 = vadd.f32 1.0, %v9104_v14  ;;  %v9106_v37 = vpop.eup %9105 }
0x1341   :  { %9121 = vtanh.f32 %v6274_v17  ;;  %v6323_v47 = vadd.f32 1.0, %v9106_v37  ;;  %v9108_v10 = vpop.eup %9107 }
0x1342   :  { %9123 = vrcp.f32 %v6320_v18 }
0x1343   :  { %9125 = vrcp.f32 %v6322_v55 }
0x1344   :  { %9127 = vrcp.f32 %v6323_v47  ;;  %v9710_v47 = vld [vmem:[#allocation7 + $0x8] ss:$16 sps:$4 sm:$0xff]  }
0x1345   :  { %v9110_v62 = vpop.eup %9109  ;;  %9129 = vpow2.f32 %v7646_v36 }
0x1346   :  { %v9112_v45 = vpop.eup %9111  ;;  %v6325_v5 = vadd.f32 1.0, %v9110_v62  ;;  %9131 = vtanh.f32 %v6278_v41  ;;  %v9712_v62 = vld [vmem:[#allocation7 + $0x2c] ss:$16 sps:$4 sm:$0xff]  }
0x1347   :  { %v9114_v49 = vpop.eup %9113  ;;  %v6321_v11 = vadd.f32 1.0, %v9112_v45 }
0x1348   :  { %v9116_v50 = vpop.eup %9115  ;;  %9133 = vrcp.f32 %v6325_v5  ;;  %v6326_v25 = vadd.f32 1.0, %v9114_v49  ;;  %v9713_v5 = vld [vmem:[#allocation7 + $0x20] ss:$16 sps:$4 sm:$0xff]   ;;  %v9714_v49 = vld [vmem:[#allocation7 + $0x28] ss:$16 sps:$4 sm:$0xff]  }
0x1349   :  { %v9118_v16 = vpop.eup %9117  ;;  %v6328_v57 = vadd.f32 1.0, %v9116_v50  ;;  %9135 = vtanh.f32 %v6282_v31 }
0x134a   :  { %v9120_v17 = vpop.eup %9119  ;;  %9137 = vrcp.f32 %v6326_v25  ;;  %v6324_v7 = vadd.f32 1.0, %v9118_v16  ;;  %v9715_v25 = vld [vmem:[#allocation7 + $0x44] ss:$16 sps:$4 sm:$0xff]   ;;  %v9716_v16 = vld [vmem:[#allocation7 + $0x4c] ss:$16 sps:$4 sm:$0xff]  }
0x134b   :  { %v9122_v54 = vpop.eup %9121  ;;  %v6363_v3 = vmul.f32 %v9120_v17, %v9108_v10  ;;  %9139 = vrcp.f32 %v6328_v57  ;;  %v9711_v10 = vld [vmem:[#allocation7 + $0x24] ss:$16 sps:$4 sm:$0xff]  }
0x134c   :  { %v9124_v30 = vpop.eup %9123  ;;  %9141 = vpow2.f32 %v7644_v59 }
0x134d   :  { %v9126_v42 = vpop.eup %9125  ;;  %v6359_v27 = vmul.f32 %v9124_v30, %v13830_v1  ;;  %9143 = vpow2.f32 %v7647_v48  ;;  %v9718_v48 = vld [vmem:[#allocation7 + $0x48] ss:$16 sps:$4 sm:$0xff]   ;;  %v9719_v30 = vld [vmem:[#allocation7 + $0x64] ss:$16 sps:$4 sm:$0xff]  }
0x134e   :  { %v6364_v33 = vmul.f32 %v9126_v42, %v9122_v54  ;;  %v9128_v21 = vpop.eup %9127  ;;  %9145 = vrcp.f32 %v6321_v11  ;;  %v9720_v11 = vld [vmem:[#allocation7 + $0x6c] ss:$16 sps:$4 sm:$0xff]  }
0x134f   :  { %v14028_v60 = vadd.f32 %v6363_v3, %v6359_v27  ;;  %v9130_v41 = vpop.eup %9129  ;;  %v6360_v28 = vmul.f32 %v9128_v21, %v13834_v34  ;;  %9147 = vrcp.f32 %v6324_v7  ;;  %v9717_v3 = vld [vmem:[#allocation7 + $0x40] ss:$16 sps:$4 sm:$0xff]   ;;  %v9722_v7 = vld [vmem:[#allocation7 + $0x68] ss:$16 sps:$4 sm:$0xff]   ;;  %v9724_v21 = vld [vmem:[#allocation7 + $0x8c] ss:$16 sps:$4 sm:$0xff]  }
0x1350   :  { %v9132_v6 = vpop.eup %9131  ;;  %v6329_v58 = vadd.f32 1.0, %v9130_v41  ;;  %v9721_v27 = vld [vmem:[#allocation7 + $0x60] ss:$16 sps:$4 sm:$0xff]  }
0x1351   :  { %9149 = vtanh.f32 %v14028_v60  ;;  %v14032_v29 = vadd.f32 %v6364_v33, %v6360_v28  ;;  %v9723_v33 = vld [vmem:[#allocation7 + $0x84] ss:$16 sps:$4 sm:$0xff]   ;;  %v9725_v41 = vld [vmem:[#allocation7 + $0x80] ss:$16 sps:$4 sm:$0xff]   ;;  %v9726_v28 = vld [vmem:[#allocation7 + $0x88] ss:$16 sps:$4 sm:$0xff]  }
0x1352   :  { %v9134_v19 = vpop.eup %9133  ;;  %9151 = vrcp.f32 %v6329_v58  ;;  %v9728_v58 = vld [vmem:[#allocation7 + $0xac] ss:$16 sps:$4 sm:$0xff]  }
0x1353   :  { %v9136_v1 = vpop.eup %9135  ;;  %v6365_v46 = vmul.f32 %v9134_v19, %v9132_v6  ;;  %9153 = vtanh.f32 %v14032_v29  ;;  %v9727_v6 = vld [vmem:[#allocation7 + $0xa4] ss:$16 sps:$4 sm:$0xff]   ;;  %v9729_v19 = vld [vmem:[#allocation7 + $0xa0] ss:$16 sps:$4 sm:$0xff]  }
0x1354   :  { %v9138_v23 = vpop.eup %9137 }
0x1355   :  { %v9140_v15 = vpop.eup %9139  ;;  %v6361_v26 = vmul.f32 %v9138_v23, %v13838_v0  ;;  %v9732_v23 = vld [vmem:[#allocation7 + $0xcc] ss:$16 sps:$4 sm:$0xff]  }
0x1356   :  { %v6366_v20 = vmul.f32 %v9140_v15, %v9136_v1  ;;  %v9142_v34 = vpop.eup %9141  ;;  %v9730_v1 = vld [vmem:[#allocation7 + $0xa8] ss:$16 sps:$4 sm:$0xff]   ;;  %v9733_v15 = vld [vmem:[#allocation7 + $0xc0] ss:$16 sps:$4 sm:$0xff]  }
0x1357   :  { %v14036_v38 = vadd.f32 %v6365_v46, %v6361_v26  ;;  %v9144_v40 = vpop.eup %9143  ;;  %v6327_v31 = vadd.f32 1.0, %v9142_v34  ;;  %v9731_v46 = vld [vmem:[#allocation7 + $0xc4] ss:$16 sps:$4 sm:$0xff]   ;;  %v9734_v26 = vld [vmem:[#allocation7 + $0xc8] ss:$16 sps:$4 sm:$0xff]  }
0x1358   :  { %v9146_v4 = vpop.eup %9145  ;;  %v6330_v24 = vadd.f32 1.0, %v9144_v40  ;;  %v9736_v34 = vld [vmem:[#allocation7 + $0xec] ss:$16 sps:$4 sm:$0xff]   ;;  %v9737_v40 = vld [vmem:[#allocation7 + $0xe0] ss:$16 sps:$4 sm:$0xff]  }
0x1359   :  { %v9148_v61 = vpop.eup %9147  ;;  %9155 = vrcp.f32 %v6327_v31  ;;  %v9740_v31 = vld [vmem:[%s14414_s2 + $0xc] ss:$16 sps:$4 sm:$0xff]  }
0x135a   :  { %9157 = vtanh.f32 %v14036_v38 }
0x135b   :  { %v9150_v35 = vpop.eup %9149  ;;  %9159 = vrcp.f32 %v6330_v24 }
0x135c   :  { %v9152_v9 = vpop.eup %9151  ;;  %v6375_v55 = vmul.f32 %v9150_v35, %v9146_v4  ;;  %v9738_v4 = vld [vmem:[#allocation7 + $0xe8] ss:$16 sps:$4 sm:$0xff]  }
0x135d   :  { %v9154_v14 = vpop.eup %9153  ;;  %v6362_v18 = vmul.f32 %v9152_v9, %v13842_v56  ;;  %v9709_v56 = vld [vmem:[#allocation7] ss:$16 sps:$4 sm:$0xff]  }
0x135e   :  { %v6376_v37 = vmul.f32 %v9154_v14, %v9148_v61  ;;  %v9739_v61 = vld [vmem:[%s14414_s2 + $0x4] ss:$16 sps:$4 sm:$0xff]  }
0x135f   :  { %v14040_v0 = vadd.f32 %v6366_v20, %v6362_v18  ;;  %v9735_v20 = vld [vmem:[#allocation7 + $0xe4] ss:$16 sps:$4 sm:$0xff]  }
0x1360   :  { %v14042_v36 = vpack.c.bf16 %v6376_v37, %v6375_v55 }
0x1361   :  { %9161 = vtanh.f32 %v14040_v0 }
0x1362   :  { %6414 = vmatmul.mubr.bf16.vlgmr.msra.gmra.mrb[204].mxu0 %v14042_v36  ;;  %6467 = vmatmul.mubr.bf16.vlgmr.msra.gmra.mrb[216].mxu1 %v14042_v36 }
0x1363   :  { %6423 = vmatprep.mubr.bf16.mxu0 %v14876_v22  ;;  %6476 = vmatprep.mubr.bf16.mxu1 %v14876_v22  ;;  %v9156_v45 = vpop.eup %9155 }
0x1364   :  { %6602 = vmatpush1.bf16.msra.mxu0 %v9709_v56  ;;  %6655 = vmatpush1.bf16.msra.mxu1 %v9710_v47  ;;  %v9158_v50 = vpop.eup %9157 }
0x1365   :  { %6603 = vmatprep.subr.bf16.mxu0 %v9711_v10  ;;  %6656 = vmatprep.subr.bf16.mxu1 %v9712_v62  ;;  %v9160_v57 = vpop.eup %9159  ;;  %v6377_v59 = vmul.f32 %v9158_v50, %v9156_v45 }
0x1368   :  { %6604 = vmatpush1.bf16.msra.mxu0 %v9713_v5  ;;  %6657 = vmatpush1.bf16.msra.mxu1 %v9714_v49 }
0x1369   :  { %6605 = vmatprep.subr.bf16.mxu0 %v9715_v25  ;;  %6658 = vmatprep.subr.bf16.mxu1 %v9716_v16 }
0x136b   :  { %v9162_v17 = vpop.eup %9161 }
0x136c   :  { %v6378_v54 = vmul.f32 %v9162_v17, %v9160_v57  ;;  %6606 = vmatpush1.bf16.msra.mxu0 %v9717_v3  ;;  %6659 = vmatpush1.bf16.msra.mxu1 %v9718_v48 }
0x136d   :  { %6607 = vmatprep.subr.bf16.mxu0 %v9719_v30  ;;  %6660 = vmatprep.subr.bf16.mxu1 %v9720_v11 }
0x136e   :  { %v14049_v42 = vpack.c.bf16 %v6378_v54, %v6377_v59 }
0x1370   :  { %6424 = vmatmul.mubr.bf16.gmra.mrb[208].mxu0 %v14049_v42  ;;  %6477 = vmatmul.mubr.bf16.gmra.mrb[220].mxu1 %v14049_v42 }
0x1371   :  { %6608 = vmatpush1.bf16.msra.mxu0 %v9721_v27  ;;  %6661 = vmatpush1.bf16.msra.mxu1 %v9722_v7 }
0x1372   :  { %6609 = vmatprep.subr.bf16.mxu0 %v9723_v33  ;;  %6662 = vmatprep.subr.bf16.mxu1 %v9724_v21 }
0x1373   :  { %6633 = vmatprep.mubr.bf16.mxu0 %v14876_v22  ;;  %6686 = vmatprep.mubr.bf16.mxu1 %v14876_v22 }
0x1375   :  { %6610 = vmatpush1.bf16.msra.mxu0 %v9725_v41  ;;  %6663 = vmatpush1.bf16.msra.mxu1 %v9726_v28 }
0x1376   :  { %6611 = vmatprep.subr.bf16.mxu0 %v9727_v6  ;;  %6664 = vmatprep.subr.bf16.mxu1 %v9728_v58 }
0x1379   :  { %6612 = vmatpush1.bf16.msra.mxu0 %v9729_v19  ;;  %6665 = vmatpush1.bf16.msra.mxu1 %v9730_v1 }
0x137a   :  { %6613 = vmatprep.subr.bf16.mxu0 %v9731_v46  ;;  %6666 = vmatprep.subr.bf16.mxu1 %v9732_v23 }
0x137d   :  { %6614 = vmatpush1.bf16.msra.mxu0 %v9733_v15  ;;  %6667 = vmatpush1.bf16.msra.mxu1 %v9734_v26 }
0x137e   :  { %6615 = vmatprep.subr.bf16.mxu0 %v9735_v20  ;;  %6668 = vmatprep.subr.bf16.mxu1 %v9736_v34 }
0x1381   :  { %6616 = vmatpush1.bf16.msra.mxu0 %v9737_v40  ;;  %6669 = vmatpush1.bf16.msra.mxu1 %v9738_v4 }
0x1382   :  { %6723 = vmatprep.subr.bf16.mxu0 %v9739_v61  ;;  %6776 = vmatprep.subr.bf16.mxu1 %v9740_v31 }
0x1435   :  { %v6415_v35 = vpop.f32.mrb[204].mxu0  ;;  %v6468_v9 = vpop.f32.mrb[216].mxu1 }
0x1436   :  { %v6487_v24 = vadd.f32 %v6415_v35, %v14985_v8  ;;  %v6417_v14 = vpop.f32.mrb[205].mxu0  ;;  %v6470_v18 = vpop.f32.mrb[217].mxu1  ;;  %v6489_v25 = vadd.f32 %v6468_v9, %v11026_v13 }
0x1437   :  { %v6488_v55 = vadd.f32 %v6417_v14, %v11021_v53  ;;  %v6419_v37 = vpop.f32.mrb[206].mxu0  ;;  %v6472_v56 = vpop.f32.mrb[218].mxu1  ;;  %v6490_v54 = vadd.f32 %v6470_v18, %v11032_v32 }
0x1438   :  { %v7648_v47 = vmul.f32 -1.442695, %v6487_v24  ;;  %v6491_v10 = vadd.f32 %v6419_v37, %v14985_v8  ;;  %v6421_v62 = vpop.f32.mrb[207].mxu0  ;;  %v6474_v45 = vpop.f32.mrb[219].mxu1  ;;  %v6493_v57 = vadd.f32 %v6472_v56, %v11026_v13  ;;  %v7650_v17 = vmul.f32 -1.442695, %v6489_v25 }
0x1439   :  { %v7649_v5 = vmul.f32 -1.442695, %v6488_v55  ;;  %v6492_v49 = vadd.f32 %v6421_v62, %v11021_v53  ;;  %v6494_v11 = vadd.f32 %v6474_v45, %v11032_v32 }
0x143a   :  { %9163 = vpow2.f32 %v7648_v47  ;;  %v7651_v50 = vmul.f32 -1.442695, %v6491_v10  ;;  %v7653_v59 = vmul.f32 -1.442695, %v6493_v57 }
0x143b   :  { %v7652_v16 = vmul.f32 -1.442695, %v6492_v49  ;;  %9165 = vpow2.f32 %v7649_v5 }
0x143c   :  { %9167 = vpow2.f32 %v7651_v50 }
0x143d   :  { %9169 = vpow2.f32 %v7652_v16 }
0x143e   :  { %9171 = vpow2.f32 %v7650_v17 }
0x143f   :  { %9173 = vpow2.f32 %v7653_v59 }
0x1440   :  { %9175 = vtanh.f32 %v6490_v54 }
0x1443   :  { %v6425_v3 = vpop.f32.mrb[208].mxu0  ;;  %v6478_v48 = vpop.f32.mrb[220].mxu1 }
0x1444   :  { %v9164_v30 = vpop.eup %9163  ;;  %v6427_v27 = vpop.f32.mrb[209].mxu0  ;;  %v6495_v21 = vadd.f32 %v6425_v3, %v14985_v8  ;;  %v6497_v24 = vadd.f32 %v6478_v48, %v11026_v13 }
0x1445   :  { %v6480_v7 = vpop.f32.mrb[221].mxu1  ;;  %v6539_v33 = vadd.f32 1.0, %v9164_v30  ;;  %v6429_v41 = vpop.f32.mrb[210].mxu0  ;;  %v6496_v46 = vadd.f32 %v6427_v27, %v11021_v53 }
0x1446   :  { %v6482_v28 = vpop.f32.mrb[222].mxu1  ;;  %v9166_v6 = vpop.eup %9165  ;;  %v7654_v20 = vmul.f32 -1.442695, %v6495_v21  ;;  %v6499_v34 = vadd.f32 %v6429_v41, %v14985_v8  ;;  %v7656_v45 = vmul.f32 -1.442695, %v6497_v24  ;;  %v6498_v49 = vadd.f32 %v6480_v7, %v11032_v32 }
0x1447   :  { %v6431_v58 = vpop.f32.mrb[211].mxu0  ;;  %v9168_v19 = vpop.eup %9167  ;;  %9177 = vrcp.f32 %v6539_v33  ;;  %v6540_v1 = vadd.f32 1.0, %v9166_v6  ;;  %v7655_v4 = vmul.f32 -1.442695, %v6496_v46  ;;  %v6501_v37 = vadd.f32 %v6482_v28, %v11026_v13 }
0x1448   :  { %v6484_v23 = vpop.f32.mrb[223].mxu1  ;;  %v6542_v15 = vadd.f32 1.0, %v9168_v19  ;;  %9179 = vtanh.f32 %v6494_v11  ;;  %v9170_v26 = vpop.eup %9169  ;;  %v6500_v61 = vadd.f32 %v6431_v58, %v11021_v53  ;;  %v7657_v35 = vmul.f32 -1.442695, %v6499_v34 }
0x1449   :  { %9181 = vrcp.f32 %v6540_v1  ;;  %v6543_v40 = vadd.f32 1.0, %v9170_v26  ;;  %v9172_v31 = vpop.eup %9171  ;;  %v7659_v16 = vmul.f32 -1.442695, %v6501_v37  ;;  %v6502_v30 = vadd.f32 %v6484_v23, %v11032_v32  ;;  %v9741_v37 = vld [vmem:[%s14414_s2] ss:$16 sps:$4 sm:$0xff]  }
0x144a   :  { %9183 = vrcp.f32 %v6542_v15  ;;  %v9174_v9 = vpop.eup %9173  ;;  %v7658_v14 = vmul.f32 -1.442695, %v6500_v61  ;;  %v6541_v55 = vadd.f32 1.0, %v9172_v31 }
0x144b   :  { %9185 = vrcp.f32 %v6543_v40  ;;  %v9176_v18 = vpop.eup %9175  ;;  %v6544_v47 = vadd.f32 1.0, %v9174_v9 }
0x144c   :  { %9187 = vpow2.f32 %v7654_v20 }
0x144d   :  { %9189 = vpow2.f32 %v7655_v4 }
0x144e   :  { %9191 = vpow2.f32 %v7657_v35 }
0x144f   :  { %9193 = vpow2.f32 %v7658_v14 }
0x1450   :  { %9195 = vrcp.f32 %v6541_v55 }
0x1451   :  { %v9178_v56 = vpop.eup %9177  ;;  %9197 = vrcp.f32 %v6544_v47 }
0x1452   :  { %v9180_v10 = vpop.eup %9179  ;;  %v6583_v62 = vmul.f32 %v9178_v56, %v9176_v18  ;;  %9199 = vpow2.f32 %v7656_v45  ;;  %v9742_v56 = vld [vmem:[%s14414_s2 + $0x8] ss:$16 sps:$4 sm:$0xff]   ;;  %v9747_v45 = vld [vmem:[%s14414_s2 + $0x44] ss:$16 sps:$4 sm:$0xff]  }
0x1453   :  { %v9182_v5 = vpop.eup %9181  ;;  %9201 = vtanh.f32 %v6498_v49  ;;  %v9749_v49 = vld [vmem:[%s14414_s2 + $0x40] ss:$16 sps:$4 sm:$0xff]  }
0x1454   :  { %v9184_v50 = vpop.eup %9183  ;;  %v6579_v25 = vmul.f32 %v9182_v5, %v13905_v52  ;;  %9203 = vpow2.f32 %v7659_v16  ;;  %v9748_v5 = vld [vmem:[%s14414_s2 + $0x4c] ss:$16 sps:$4 sm:$0xff]  }
0x1455   :  { %v6584_v57 = vmul.f32 %v9184_v50, %v9180_v10  ;;  %v9186_v17 = vpop.eup %9185  ;;  %v9745_v10 = vld [vmem:[%s14414_s2 + $0x20] ss:$16 sps:$4 sm:$0xff]   ;;  %v9750_v50 = vld [vmem:[%s14414_s2 + $0x48] ss:$16 sps:$4 sm:$0xff]   ;;  %v9752_v16 = vld [vmem:[%s14414_s2 + $0x6c] ss:$16 sps:$4 sm:$0xff]  }
0x1456   :  { %v14077_v59 = vadd.f32 %v6583_v62, %v6579_v25  ;;  %v9188_v54 = vpop.eup %9187  ;;  %v6580_v3 = vmul.f32 %v9186_v17, %v13910_v39  ;;  %v9746_v62 = vld [vmem:[%s14414_s2 + $0x28] ss:$16 sps:$4 sm:$0xff]   ;;  %v9751_v25 = vld [vmem:[%s14414_s2 + $0x64] ss:$16 sps:$4 sm:$0xff]  }
0x1457   :  { %v6545_v48 = vadd.f32 1.0, %v9188_v54  ;;  %v9190_v11 = vpop.eup %9189  ;;  %v9753_v54 = vld [vmem:[%s14414_s2 + $0x60] ss:$16 sps:$4 sm:$0xff]  }
0x1458   :  { %9205 = vtanh.f32 %v14077_v59  ;;  %v14082_v27 = vadd.f32 %v6584_v57, %v6580_v3  ;;  %v6546_v52 = vadd.f32 1.0, %v9190_v11  ;;  %v9192_v7 = vpop.eup %9191  ;;  %v9754_v3 = vld [vmem:[%s14414_s2 + $0x68] ss:$16 sps:$4 sm:$0xff]   ;;  %v9756_v11 = vld [vmem:[%s14414_s2 + $0x8c] ss:$16 sps:$4 sm:$0xff]  }
0x1459   :  { %9207 = vrcp.f32 %v6545_v48  ;;  %v6548_v33 = vadd.f32 1.0, %v9192_v7  ;;  %v9194_v21 = vpop.eup %9193 }
0x145a   :  { %9209 = vtanh.f32 %v14082_v27  ;;  %v9196_v39 = vpop.eup %9195  ;;  %v6549_v41 = vadd.f32 1.0, %v9194_v21  ;;  %v9757_v21 = vld [vmem:[%s14414_s2 + $0x80] ss:$16 sps:$4 sm:$0xff]  }
0x145b   :  { %9211 = vtanh.f32 %v6502_v30  ;;  %v9198_v28 = vpop.eup %9197  ;;  %v9755_v30 = vld [vmem:[%s14414_s2 + $0x84] ss:$16 sps:$4 sm:$0xff]  }
0x145c   :  { %9213 = vrcp.f32 %v6546_v52  ;;  %v9200_v6 = vpop.eup %9199 }
0x145d   :  { %9215 = vrcp.f32 %v6548_v33  ;;  %v9202_v58 = vpop.eup %9201  ;;  %v6547_v61 = vadd.f32 1.0, %v9200_v6  ;;  %v9760_v6 = vld [vmem:[%s14414_s2 + $0xac] ss:$16 sps:$4 sm:$0xff]  }
0x145e   :  { %9217 = vrcp.f32 %v6549_v41  ;;  %v9204_v19 = vpop.eup %9203 }
0x145f   :  { %v6550_v18 = vadd.f32 1.0, %v9204_v19  ;;  %9219 = vrcp.f32 %v6547_v61  ;;  %v9762_v19 = vld [vmem:[%s14414_s2 + $0xa8] ss:$16 sps:$4 sm:$0xff]   ;;  %v9772_v61 = vld [vmem:[%s14416_s4 + $0xc] ss:$16 sps:$4 sm:$0xff]  }
0x1462   :  { %v9206_v1 = vpop.eup %9205 }
0x1463   :  { %v9208_v46 = vpop.eup %9207  ;;  %v6595_v20 = vmul.f32 %v9206_v1, %v9196_v39  ;;  %v9758_v39 = vld [vmem:[%s14414_s2 + $0x88] ss:$16 sps:$4 sm:$0xff]   ;;  %v9763_v1 = vld [vmem:[%s14414_s2 + $0xc4] ss:$16 sps:$4 sm:$0xff]  }
0x1464   :  { %v9210_v23 = vpop.eup %9209  ;;  %v6585_v15 = vmul.f32 %v9208_v46, %v9202_v58  ;;  %v9761_v58 = vld [vmem:[%s14414_s2 + $0xa0] ss:$16 sps:$4 sm:$0xff]   ;;  %v9764_v46 = vld [vmem:[%s14414_s2 + $0xcc] ss:$16 sps:$4 sm:$0xff]  }
0x1465   :  { %v9212_v26 = vpop.eup %9211  ;;  %v6596_v34 = vmul.f32 %v9210_v23, %v9198_v28  ;;  %v9759_v28 = vld [vmem:[%s14414_s2 + $0xa4] ss:$16 sps:$4 sm:$0xff]   ;;  %v9765_v23 = vld [vmem:[%s14414_s2 + $0xc0] ss:$16 sps:$4 sm:$0xff]  }
0x1466   :  { %v9214_v40 = vpop.eup %9213 }
0x1467   :  { %v9216_v4 = vpop.eup %9215  ;;  %v6581_v31 = vmul.f32 %v9214_v40, %v13914_v44  ;;  %v6599_v35 = vpack.c.bf16 %v6596_v34, %v6595_v20  ;;  %v9743_v44 = vld [vmem:[%s14414_s2 + $0x24] ss:$16 sps:$4 sm:$0xff]   ;;  %v9768_v20 = vld [vmem:[%s14414_s2 + $0xec] ss:$16 sps:$4 sm:$0xff]   ;;  %v9769_v34 = vld [vmem:[%s14414_s2 + $0xe0] ss:$16 sps:$4 sm:$0xff]  }
0x1468   :  { %v6586_v9 = vmul.f32 %v9216_v4, %v9212_v26  ;;  %v9218_v24 = vpop.eup %9217  ;;  %v9767_v26 = vld [vmem:[%s14414_s2 + $0xe4] ss:$16 sps:$4 sm:$0xff]   ;;  %v9770_v40 = vld [vmem:[%s14414_s2 + $0xe8] ss:$16 sps:$4 sm:$0xff]  }
0x1469   :  { %v14086_v14 = vadd.f32 %v6585_v15, %v6581_v31  ;;  %6634 = vmatmul.mubr.bf16.vlgmr.msra.gmra.mrb[220].mxu0 %v6599_v35  ;;  %6687 = vmatmul.mubr.bf16.vlgmr.msra.gmra.mrb[232].mxu1 %v6599_v35  ;;  %v6582_v55 = vmul.f32 %v9218_v24, %v13922_v2  ;;  %v9744_v2 = vld [vmem:[%s14414_s2 + $0x2c] ss:$16 sps:$4 sm:$0xff]   ;;  %v9220_v57 = vpop.eup %9219  ;;  %v9766_v15 = vld [vmem:[%s14414_s2 + $0xc8] ss:$16 sps:$4 sm:$0xff]   ;;  %v9771_v4 = vld [vmem:[%s14416_s4 + $0x4] ss:$16 sps:$4 sm:$0xff]  }
0x146a   :  { %6724 = vmatpush1.bf16.msra.mxu0 %v9741_v37  ;;  %6777 = vmatpush1.bf16.msra.mxu1 %v9742_v56  ;;  %v9773_v31 = vld [vmem:[%s14416_s4] ss:$16 sps:$4 sm:$0xff]   ;;  %v9774_v35 = vld [vmem:[%s14416_s4 + $0x8] ss:$16 sps:$4 sm:$0xff]   ;;  %v9780_v37 = vld [vmem:[%s14416_s4 + $0x4c] ss:$16 sps:$4 sm:$0xff]  }
0x146b   :  { %6725 = vmatprep.subr.bf16.mxu0 %v9743_v44  ;;  %6778 = vmatprep.subr.bf16.mxu1 %v9744_v2  ;;  %9221 = vtanh.f32 %v14086_v14  ;;  %v14102_v47 = vadd.f32 %v6586_v9, %v6582_v55  ;;  %v9775_v9 = vld [vmem:[%s14416_s4 + $0x24] ss:$16 sps:$4 sm:$0xff]   ;;  %v9777_v24 = vld [vmem:[%s14416_s4 + $0x20] ss:$16 sps:$4 sm:$0xff]   ;;  %v9782_v44 = vld [vmem:[%s14416_s4 + $0x48] ss:$16 sps:$4 sm:$0xff]  }
0x146c   :  { %6643 = vmatprep.mubr.bf16.mxu0 %v14876_v22  ;;  %6696 = vmatprep.mubr.bf16.mxu1 %v14876_v22  ;;  %9223 = vrcp.f32 %v6550_v18  ;;  %v9778_v18 = vld [vmem:[%s14416_s4 + $0x28] ss:$16 sps:$4 sm:$0xff]   ;;  %v9779_v55 = vld [vmem:[%s14416_s4 + $0x44] ss:$16 sps:$4 sm:$0xff]   ;;  %v9781_v56 = vld [vmem:[%s14416_s4 + $0x40] ss:$16 sps:$4 sm:$0xff]  }
0x146d   :  { %9225 = vtanh.f32 %v14102_v47  ;;  %v9783_v2 = vld [vmem:[%s14416_s4 + $0x64] ss:$16 sps:$4 sm:$0xff]  }
0x146e   :  { %6726 = vmatpush1.bf16.msra.mxu0 %v9745_v10  ;;  %6779 = vmatpush1.bf16.msra.mxu1 %v9746_v62  ;;  %v9785_v10 = vld [vmem:[%s14416_s4 + $0x60] ss:$16 sps:$4 sm:$0xff]   ;;  %v9786_v62 = vld [vmem:[%s14416_s4 + $0x68] ss:$16 sps:$4 sm:$0xff]  }
0x146f   :  { %6727 = vmatprep.subr.bf16.mxu0 %v9747_v45  ;;  %6780 = vmatprep.subr.bf16.mxu1 %v9748_v5  ;;  %v9787_v45 = vld [vmem:[%s14416_s4 + $0x84] ss:$16 sps:$4 sm:$0xff]   ;;  %v9788_v5 = vld [vmem:[%s14416_s4 + $0x8c] ss:$16 sps:$4 sm:$0xff]  }
0x1472   :  { %6728 = vmatpush1.bf16.msra.mxu0 %v9749_v49  ;;  %6781 = vmatpush1.bf16.msra.mxu1 %v9750_v50  ;;  %v9789_v49 = vld [vmem:[%s14416_s4 + $0x80] ss:$16 sps:$4 sm:$0xff]   ;;  %v9790_v50 = vld [vmem:[%s14416_s4 + $0x88] ss:$16 sps:$4 sm:$0xff]  }
0x1473   :  { %6729 = vmatprep.subr.bf16.mxu0 %v9751_v25  ;;  %6782 = vmatprep.subr.bf16.mxu1 %v9752_v16  ;;  %v9791_v25 = vld [vmem:[%s14416_s4 + $0xa4] ss:$16 sps:$4 sm:$0xff]   ;;  %v9792_v16 = vld [vmem:[%s14416_s4 + $0xac] ss:$16 sps:$4 sm:$0xff]  }
0x1475   :  { %v9222_v17 = vpop.eup %9221 }
0x1476   :  { %6730 = vmatpush1.bf16.msra.mxu0 %v9753_v54  ;;  %6783 = vmatpush1.bf16.msra.mxu1 %v9754_v3  ;;  %v9224_v48 = vpop.eup %9223  ;;  %v6597_v7 = vmul.f32 %v9222_v17, %v9220_v57  ;;  %v9793_v57 = vld [vmem:[%s14416_s4 + $0xa0] ss:$16 sps:$4 sm:$0xff]   ;;  %v9794_v17 = vld [vmem:[%s14416_s4 + $0xa8] ss:$16 sps:$4 sm:$0xff]   ;;  %v9795_v54 = vld [vmem:[%s14416_s4 + $0xc4] ss:$16 sps:$4 sm:$0xff]  }
0x1477   :  { %6731 = vmatprep.subr.bf16.mxu0 %v9755_v30  ;;  %6784 = vmatprep.subr.bf16.mxu1 %v9756_v11  ;;  %v9226_v52 = vpop.eup %9225  ;;  %v9796_v3 = vld [vmem:[%s14416_s4 + $0xcc] ss:$16 sps:$4 sm:$0xff]   ;;  %v9798_v30 = vld [vmem:[%s14416_s4 + $0xc8] ss:$16 sps:$4 sm:$0xff]   ;;  %v9799_v11 = vld [vmem:[%s14416_s4 + $0xe4] ss:$16 sps:$4 sm:$0xff]  }
0x1478   :  { %v6598_v33 = vmul.f32 %v9226_v52, %v9224_v48  ;;  %v9797_v48 = vld [vmem:[%s14416_s4 + $0xc0] ss:$16 sps:$4 sm:$0xff]   ;;  %v9800_v52 = vld [vmem:[%s14416_s4 + $0xec] ss:$16 sps:$4 sm:$0xff]  }
0x147a   :  { %6732 = vmatpush1.bf16.msra.mxu0 %v9757_v21  ;;  %6785 = vmatpush1.bf16.msra.mxu1 %v9758_v39  ;;  %v6600_v41 = vpack.c.bf16 %v6598_v33, %v6597_v7  ;;  %v9801_v7 = vld [vmem:[%s14416_s4 + $0xe0] ss:$16 sps:$4 sm:$0xff]   ;;  %v9802_v33 = vld [vmem:[%s14416_s4 + $0xe8] ss:$16 sps:$4 sm:$0xff]  }
0x147b   :  { %6733 = vmatprep.subr.bf16.mxu0 %v9759_v28  ;;  %6786 = vmatprep.subr.bf16.mxu1 %v9760_v6  ;;  %v15617_v21 = vld [vmem:[#allocation126_spill] sm:$0xff]  ;;  %v15619_v6 = vld [vmem:[#allocation129_spill] sm:$0xff] }
0x147c   :  { %6644 = vmatmul.mubr.bf16.gmra.mrb[224].mxu0 %v6600_v41  ;;  %6697 = vmatmul.mubr.bf16.gmra.mrb[236].mxu1 %v6600_v41  ;;  %v677_v39 = vadd.f32 %v15617_v21, %v15599_v51  ;;  %v15618_v41 = vld [vmem:[#allocation135_spill] sm:$0xff] }
0x147d   :  { %6755 = vmatprep.mubr.bf16.mxu0 %v14876_v22  ;;  %6808 = vmatprep.mubr.bf16.mxu1 %v14876_v22  ;;  %v982_v28 = vadd.f32 %v15618_v41, %v10856_v12 }
0x147e   :  { %6734 = vmatpush1.bf16.msra.mxu0 %v9761_v58  ;;  %6787 = vmatpush1.bf16.msra.mxu1 %v9762_v19  ;;  %v679_v58 = vadd.f32 %v15619_v6, %v15602_v43  ;;  %v15620_v19 = vld [vmem:[#allocation136_spill] sm:$0xff] }
0x147f   :  { %6735 = vmatprep.subr.bf16.mxu0 %v9763_v1  ;;  %6788 = vmatprep.subr.bf16.mxu1 %v9764_v46  ;;  %v984_v1 = vadd.f32 %v15620_v19, %v10861_v63 }
0x1482   :  { %6736 = vmatpush1.bf16.msra.mxu0 %v9765_v23  ;;  %6789 = vmatpush1.bf16.msra.mxu1 %v9766_v15  ;;  %v15621_v15 = vld [vmem:[#allocation13_spill] sm:$0xff] }
0x1483   :  { %6737 = vmatprep.subr.bf16.mxu0 %v9767_v26  ;;  %6790 = vmatprep.subr.bf16.mxu1 %v9768_v20  ;;  %v683_v26 = vadd.f32 %v15621_v15, %v15599_v51  ;;  %v15622_v20 = vld [vmem:[#allocation137_spill] sm:$0xff] }
0x1486   :  { %6738 = vmatpush1.bf16.msra.mxu0 %v9769_v34  ;;  %6791 = vmatpush1.bf16.msra.mxu1 %v9770_v40  ;;  %v988_v34 = vadd.f32 %v15622_v20, %v10856_v12 }
0x1487   :  { %6943 = vmatprep.subr.bf16.mxu0 %v9771_v4  ;;  %6996 = vmatprep.subr.bf16.mxu1 %v9772_v61 }
0x1489   :  { %6756 = vmatmul.mubr.bf16.vlgmr.msra.gmra.mrb[228].mxu0 %v14042_v36  ;;  %6809 = vmatmul.mubr.bf16.vlgmr.msra.gmra.mrb[240].mxu1 %v14042_v36  ;;  %v9776_v36 = vld [vmem:[%s14416_s4 + $0x2c] ss:$16 sps:$4 sm:$0xff]  }
0x148a   :  { %6765 = vmatprep.mubr.bf16.mxu0 %v14876_v22  ;;  %6818 = vmatprep.mubr.bf16.mxu1 %v14876_v22 }
0x148b   :  { %6944 = vmatpush1.bf16.msra.mxu0 %v9773_v31  ;;  %6997 = vmatpush1.bf16.msra.mxu1 %v9774_v35  ;;  %v15623_v35 = vld [vmem:[#allocation14_spill] sm:$0xff] }
0x148c   :  { %6945 = vmatprep.subr.bf16.mxu0 %v9775_v9  ;;  %6998 = vmatprep.subr.bf16.mxu1 %v9776_v36  ;;  %v685_v9 = vadd.f32 %v15623_v35, %v15602_v43  ;;  %v15624_v36 = vld [vmem:[#allocation138_spill] sm:$0xff] }
0x148f   :  { %6946 = vmatpush1.bf16.msra.mxu0 %v9777_v24  ;;  %6999 = vmatpush1.bf16.msra.mxu1 %v9778_v18  ;;  %v990_v24 = vadd.f32 %v15624_v36, %v10861_v63 }
0x1490   :  { %6947 = vmatprep.subr.bf16.mxu0 %v9779_v55  ;;  %7000 = vmatprep.subr.bf16.mxu1 %v9780_v37 }
0x1491   :  { %6766 = vmatmul.mubr.bf16.gmra.mrb[232].mxu0 %v14049_v42  ;;  %6819 = vmatmul.mubr.bf16.gmra.mrb[244].mxu1 %v14049_v42  ;;  %v9784_v42 = vld [vmem:[%s14416_s4 + $0x6c] ss:$16 sps:$4 sm:$0xff]  }
0x1492   :  { %6975 = vmatprep.mubr.bf16.mxu0 %v14876_v22  ;;  %7028 = vmatprep.mubr.bf16.mxu1 %v14876_v22 }
0x1493   :  { %6948 = vmatpush1.bf16.msra.mxu0 %v9781_v56  ;;  %7001 = vmatpush1.bf16.msra.mxu1 %v9782_v44 }
0x1494   :  { %6949 = vmatprep.subr.bf16.mxu0 %v9783_v2  ;;  %7002 = vmatprep.subr.bf16.mxu1 %v9784_v42 }
0x1497   :  { %6950 = vmatpush1.bf16.msra.mxu0 %v9785_v10  ;;  %7003 = vmatpush1.bf16.msra.mxu1 %v9786_v62 }
0x1498   :  { %6951 = vmatprep.subr.bf16.mxu0 %v9787_v45  ;;  %7004 = vmatprep.subr.bf16.mxu1 %v9788_v5 }
0x149b   :  { %6952 = vmatpush1.bf16.msra.mxu0 %v9789_v49  ;;  %7005 = vmatpush1.bf16.msra.mxu1 %v9790_v50 }
0x149c   :  { %6953 = vmatprep.subr.bf16.mxu0 %v9791_v25  ;;  %7006 = vmatprep.subr.bf16.mxu1 %v9792_v16  ;;  %v15625_v16 = vld [vmem:[#allocation15_spill] sm:$0xff] }
0x149f   :  { %6954 = vmatpush1.bf16.msra.mxu0 %v9793_v57  ;;  %7007 = vmatpush1.bf16.msra.mxu1 %v9794_v17  ;;  %v689_v57 = vadd.f32 %v15625_v16, %v15599_v51  ;;  %v15626_v17 = vld [vmem:[#allocation139_spill] sm:$0xff] }
0x14a0   :  { %6955 = vmatprep.subr.bf16.mxu0 %v9795_v54  ;;  %7008 = vmatprep.subr.bf16.mxu1 %v9796_v3  ;;  %v994_v54 = vadd.f32 %v15626_v17, %v10856_v12  ;;  %v15627_v3 = vld [vmem:[#allocation16_spill] sm:$0xff] }
0x14a3   :  { %6956 = vmatpush1.bf16.msra.mxu0 %v9797_v48  ;;  %7009 = vmatpush1.bf16.msra.mxu1 %v9798_v30  ;;  %v691_v48 = vadd.f32 %v15627_v3, %v15602_v43  ;;  %v15628_v30 = vld [vmem:[#allocation17_spill] sm:$0xff] }
0x14a4   :  { %6957 = vmatprep.subr.bf16.mxu0 %v9799_v11  ;;  %7010 = vmatprep.subr.bf16.mxu1 %v9800_v52  ;;  %v695_v11 = vadd.f32 %v15628_v30, %v15599_v51  ;;  %v15629_v52 = vld [vmem:[#allocation140_spill] sm:$0xff] }
0x14a7   :  { %6958 = vmatpush1.bf16.msra.mxu0 %v9801_v7  ;;  %7011 = vmatpush1.bf16.msra.mxu1 %v9802_v33  ;;  %v996_v7 = vadd.f32 %v15629_v52, %v10861_v63 }
0x155c   :  { %v6757_v46 = vpop.f32.mrb[228].mxu0  ;;  %v6810_v23 = vpop.f32.mrb[240].mxu1 }
0x155d   :  { %v6829_v40 = vadd.f32 %v6757_v46, %v677_v39  ;;  %v6831_v4 = vadd.f32 %v6810_v23, %v982_v28  ;;  %v6759_v61 = vpop.f32.mrb[229].mxu0  ;;  %v6812_v31 = vpop.f32.mrb[241].mxu1  ;;  %v15630_v39 = vld [vmem:[#allocation18_spill] sm:$0xff]  ;;  %v15631_v28 = vld [vmem:[#allocation141_spill] sm:$0xff] }
0x155e   :  { %v6830_v18 = vadd.f32 %v6759_v61, %v679_v58  ;;  %v6832_v55 = vadd.f32 %v6812_v31, %v984_v1  ;;  %v6761_v37 = vpop.f32.mrb[230].mxu0  ;;  %v6814_v56 = vpop.f32.mrb[242].mxu1  ;;  %v697_v41 = vadd.f32 %v15630_v39, %v15602_v43  ;;  %v1000_v6 = vadd.f32 %v15631_v28, %v10856_v12 }
0x155f   :  { %v7660_v44 = vmul.f32 -1.442695, %v6829_v40  ;;  %v6833_v2 = vadd.f32 %v6761_v37, %v683_v26  ;;  %v6835_v42 = vadd.f32 %v6814_v56, %v988_v34  ;;  %v6763_v10 = vpop.f32.mrb[231].mxu0  ;;  %v6816_v62 = vpop.f32.mrb[243].mxu1  ;;  %v7662_v23 = vmul.f32 -1.442695, %v6831_v4 }
0x1560   :  { %v7661_v45 = vmul.f32 -1.442695, %v6830_v18  ;;  %v6834_v5 = vadd.f32 %v6763_v10, %v685_v9  ;;  %v6836_v49 = vadd.f32 %v6816_v62, %v990_v24  ;;  %v15632_v34 = vld [vmem:[#allocation142_spill] sm:$0xff] }
0x1561   :  { %9227 = vpow2.f32 %v7660_v44  ;;  %v7663_v50 = vmul.f32 -1.442695, %v6833_v2  ;;  %v1002_v40 = vadd.f32 %v15632_v34, %v10861_v63  ;;  %v7665_v24 = vmul.f32 -1.442695, %v6835_v42 }
0x1562   :  { %v7664_v25 = vmul.f32 -1.442695, %v6834_v5  ;;  %9229 = vpow2.f32 %v7661_v45 }
0x1563   :  { %9231 = vpow2.f32 %v7663_v50 }
0x1564   :  { %v6767_v33 = vpop.f32.mrb[232].mxu0  ;;  %v6820_v21 = vpop.f32.mrb[244].mxu1  ;;  %9233 = vpow2.f32 %v7664_v25 }
0x1565   :  { %v6837_v58 = vadd.f32 %v6767_v33, %v689_v57  ;;  %v6839_v19 = vadd.f32 %v6820_v21, %v994_v54  ;;  %v6769_v1 = vpop.f32.mrb[233].mxu0  ;;  %v6822_v46 = vpop.f32.mrb[245].mxu1  ;;  %9235 = vtanh.f32 %v6832_v55 }
0x1566   :  { %v6838_v15 = vadd.f32 %v6769_v1, %v691_v48  ;;  %v6840_v51 = vadd.f32 %v6822_v46, %v996_v7  ;;  %v6771_v26 = vpop.f32.mrb[234].mxu0  ;;  %v6824_v20 = vpop.f32.mrb[246].mxu1 }
0x1567   :  { %v7666_v61 = vmul.f32 -1.442695, %v6837_v58  ;;  %v6841_v31 = vadd.f32 %v6771_v26, %v695_v11  ;;  %v6773_v35 = vpop.f32.mrb[235].mxu0  ;;  %v6826_v43 = vpop.f32.mrb[247].mxu1  ;;  %v6843_v12 = vadd.f32 %v6824_v20, %v1000_v6  ;;  %v7668_v45 = vmul.f32 -1.442695, %v6839_v19 }
0x1568   :  { %v7667_v9 = vmul.f32 -1.442695, %v6838_v15  ;;  %v6842_v36 = vadd.f32 %v6773_v35, %v697_v41  ;;  %v6844_v4 = vadd.f32 %v6826_v43, %v1002_v40 }
0x1569   :  { %9237 = vpow2.f32 %v7666_v61  ;;  %v7669_v18 = vmul.f32 -1.442695, %v6841_v31  ;;  %v7671_v52 = vmul.f32 -1.442695, %v6843_v12 }
0x156a   :  { %9239 = vpow2.f32 %v7662_v23  ;;  %v7670_v62 = vmul.f32 -1.442695, %v6842_v36 }
0x156b   :  { %v9228_v37 = vpop.eup %9227  ;;  %9241 = vpow2.f32 %v7667_v9 }
0x156c   :  { %v6881_v56 = vadd.f32 1.0, %v9228_v37  ;;  %9243 = vpow2.f32 %v7669_v18  ;;  %v9230_v44 = vpop.eup %9229 }
0x156d   :  { %9245 = vpow2.f32 %v7665_v24  ;;  %v9232_v63 = vpop.eup %9231  ;;  %v6882_v2 = vadd.f32 1.0, %v9230_v44 }
0x156e   :  { %9247 = vrcp.f32 %v6881_v56  ;;  %v6884_v10 = vadd.f32 1.0, %v9232_v63  ;;  %v9234_v55 = vpop.eup %9233 }
0x156f   :  { %9249 = vtanh.f32 %v6836_v49  ;;  %v6885_v42 = vadd.f32 1.0, %v9234_v55  ;;  %v9236_v5 = vpop.eup %9235 }
0x1570   :  { %9251 = vrcp.f32 %v6882_v2 }
0x1571   :  { %9253 = vrcp.f32 %v6884_v10 }
0x1572   :  { %9255 = vtanh.f32 %v6840_v51 }
0x1573   :  { %v9238_v50 = vpop.eup %9237  ;;  %9257 = vrcp.f32 %v6885_v42 }
0x1574   :  { %v9240_v25 = vpop.eup %9239  ;;  %v6887_v16 = vadd.f32 1.0, %v9238_v50  ;;  %9259 = vpow2.f32 %v7670_v62  ;;  %v183_v50 = vld [vmem:[%s14419_s7 + $0x8] sm:$0xff] }
0x1575   :  { %v9242_v57 = vpop.eup %9241  ;;  %9261 = vpow2.f32 %v7668_v45  ;;  %v6883_v33 = vadd.f32 1.0, %v9240_v25 }
0x1576   :  { %v9244_v17 = vpop.eup %9243  ;;  %9263 = vrcp.f32 %v6887_v16  ;;  %v6888_v54 = vadd.f32 1.0, %v9242_v57  ;;  %v185_v16 = vld [vmem:[%s14419_s7 + $0x18] sm:$0xff] }
0x1577   :  { %v9246_v3 = vpop.eup %9245  ;;  %v6890_v49 = vadd.f32 1.0, %v9244_v17  ;;  %9265 = vtanh.f32 %v6844_v4  ;;  %v186_v17 = vld [vmem:[%s14419_s7 + $0x20] sm:$0xff] }
0x1578   :  { %v9248_v48 = vpop.eup %9247  ;;  %9267 = vrcp.f32 %v6888_v54  ;;  %v6886_v28 = vadd.f32 1.0, %v9246_v3  ;;  %v187_v54 = vld [vmem:[%s14419_s7 + $0x28] sm:$0xff] }
0x1579   :  { %v9250_v30 = vpop.eup %9249  ;;  %v6925_v11 = vmul.f32 %v9248_v48, %v9236_v5  ;;  %9269 = vrcp.f32 %v6890_v49  ;;  %v7751_v3 = vpack.c.bf16 %v187_v54, %v186_v17  ;;  %v188_v49 = vld [vmem:[%s14419_s7 + $0x30] sm:$0xff]  ;;  %v189_v48 = vld [vmem:[%s14419_s7 + $0x38] sm:$0xff] }
0x157a   :  { %v9252_v7 = vpop.eup %9251  ;;  %9271 = vpow2.f32 %v7671_v52  ;;  %v191_v52 = vld [vmem:[%s14419_s7 + $0x48] sm:$0xff] }
0x157b   :  { %v9254_v21 = vpop.eup %9253  ;;  %v6921_v39 = vmul.f32 %v9252_v7, %v14028_v60  ;;  %9273 = vrcp.f32 %v6883_v33  ;;  %v192_v33 = vld [vmem:[%s14419_s7 + $0x50] sm:$0xff] }
0x157c   :  { %v9256_v41 = vpop.eup %9255  ;;  %v6926_v6 = vmul.f32 %v9254_v21, %v9250_v30  ;;  %v7755_v30 = vpack.c.bf16 %v189_v48, %v188_v49  ;;  %v193_v21 = vld [vmem:[%s14419_s7 + $0x58] sm:$0xff] }
0x157d   :  { %v9258_v58 = vpop.eup %9257  ;;  %v6929_v19 = vadd.f32 %v6925_v11, %v6921_v39  ;;  %v190_v11 = vld [vmem:[%s14419_s7 + $0x40] sm:$0xff]  ;;  %v7763_v39 = vpack.c.bf16 %v193_v21, %v192_v33 }
0x157e   :  { %v9260_v1 = vpop.eup %9259  ;;  %v6922_v46 = vmul.f32 %v9258_v58, %v14032_v29  ;;  %v7759_v7 = vpack.c.bf16 %v191_v52, %v190_v11  ;;  %v196_v58 = vld [vmem:[%s14419_s7 + $0x70] sm:$0xff] }
0x157f   :  { %v9262_v23 = vpop.eup %9261  ;;  %9275 = vtanh.f32 %v6929_v19  ;;  %v6891_v15 = vadd.f32 1.0, %v9260_v1  ;;  %v197_v19 = vld [vmem:[%s14419_s7 + $0x78] sm:$0xff] }
0x1580   :  { %v9264_v51 = vpop.eup %9263  ;;  %9277 = vrcp.f32 %v6886_v28  ;;  %v6930_v26 = vadd.f32 %v6926_v6, %v6922_v46  ;;  %v6889_v40 = vadd.f32 1.0, %v9262_v23  ;;  %v195_v28 = vld [vmem:[%s14419_s7 + $0x68] sm:$0xff]  ;;  %v7771_v1 = vpack.c.bf16 %v197_v19, %v196_v58 }
0x1581   :  { %v9266_v20 = vpop.eup %9265  ;;  %v6927_v34 = vmul.f32 %v9264_v51, %v9256_v41  ;;  %9279 = vrcp.f32 %v6891_v15  ;;  %v194_v41 = vld [vmem:[%s14419_s7 + $0x60] sm:$0xff] }
0x1582   :  { %v9268_v60 = vpop.eup %9267  ;;  %9281 = vtanh.f32 %v6930_v26  ;;  %v7767_v6 = vpack.c.bf16 %v195_v28, %v194_v41 }
0x1583   :  { %v9270_v61 = vpop.eup %9269  ;;  %v6923_v31 = vmul.f32 %v9268_v60, %v14036_v38  ;;  %9283 = vrcp.f32 %v6889_v40 }
0x1584   :  { %v6928_v35 = vmul.f32 %v9270_v61, %v9266_v20  ;;  %v9272_v9 = vpop.eup %9271 }
0x1585   :  { %v6931_v43 = vadd.f32 %v6927_v34, %v6923_v31  ;;  %v9274_v29 = vpop.eup %9273  ;;  %v6892_v4 = vadd.f32 1.0, %v9272_v9 }
0x1587   :  { %9285 = vtanh.f32 %v6931_v43 }
0x1588   :  { %9287 = vrcp.f32 %v6892_v4 }
0x1589   :  { %v9276_v12 = vpop.eup %9275 }
0x158a   :  { %v9278_v36 = vpop.eup %9277  ;;  %v6937_v24 = vmul.f32 %v9276_v12, %v9274_v29 }
0x158b   :  { %v9280_v18 = vpop.eup %9279 }
0x158c   :  { %v9282_v37 = vpop.eup %9281  ;;  %v6924_v56 = vmul.f32 %v9280_v18, %v14040_v0  ;;  %v182_v0 = vld [vmem:[%s14419_s7] sm:$0xff] }
0x158d   :  { %v6938_v44 = vmul.f32 %v9282_v37, %v9278_v36  ;;  %v9284_v10 = vpop.eup %9283  ;;  %v7743_v25 = vpack.c.bf16 %v183_v50, %v182_v0 }
0x158e   :  { %v6932_v63 = vadd.f32 %v6928_v35, %v6924_v56 }
0x158f   :  { %v6941_v2 = vpack.c.bf16 %v6938_v44, %v6937_v24  ;;  %7744 = vmatprep.subr.bf16.mxu0 %v7743_v25 }
0x1590   :  { %9289 = vtanh.f32 %v6932_v63 }
0x1591   :  { %v9286_v38 = vpop.eup %9285  ;;  %6976 = vmatmul.mubr.bf16.vlgmr.msra.gmra.mrb[220].mxu0 %v6941_v2  ;;  %7029 = vmatmul.mubr.bf16.vlgmr.msra.gmra.mrb[232].mxu1 %v6941_v2 }
0x1592   :  { %6985 = vmatprep.mubr.bf16.mxu0 %v14876_v22  ;;  %7038 = vmatprep.mubr.bf16.mxu1 %v14876_v22  ;;  %v6939_v55 = vmul.f32 %v9286_v38, %v9284_v10  ;;  %v9288_v62 = vpop.eup %9287  ;;  %v184_v22 = vld [vmem:[%s14419_s7 + $0x10] sm:$0xff] }
0x1593   :  { %7746 = vmatpush3.bf16.msra.mxu0 %v7743_v25  ;;  %v7747_v57 = vpack.c.bf16 %v185_v16, %v184_v22 }
0x1595   :  { %7748 = vmatprep.subr.bf16.mxu0 %v7747_v57 }
0x1597   :  { %7750 = vmatpush3.bf16.msra.mxu0 %v7747_v57 }
0x1598   :  { %7752 = vmatprep.subr.bf16.mxu0 %v7751_v3 }
0x159a   :  { %v9290_v42 = vpop.eup %9289 }
0x159b   :  { %v6940_v45 = vmul.f32 %v9290_v42, %v9288_v62  ;;  %7754 = vmatpush3.bf16.msra.mxu0 %v7751_v3 }
0x159c   :  { %7756 = vmatprep.subr.bf16.mxu0 %v7755_v30 }
0x159d   :  { %v6942_v5 = vpack.c.bf16 %v6940_v45, %v6939_v55 }
0x159f   :  { %6986 = vmatmul.mubr.bf16.gmra.mrb[224].mxu0 %v6942_v5  ;;  %7039 = vmatmul.mubr.bf16.gmra.mrb[236].mxu1 %v6942_v5 }
0x15a0   :  { %7758 = vmatpush3.bf16.msra.mxu0 %v7755_v30 }
0x15a1   :  { %7760 = vmatprep.subr.bf16.mxu0 %v7759_v7 }
0x15a4   :  { %7762 = vmatpush3.bf16.msra.mxu0 %v7759_v7 }
0x15a5   :  { %7764 = vmatprep.subr.bf16.mxu0 %v7763_v39 }
0x15a8   :  { %7766 = vmatpush3.bf16.msra.mxu0 %v7763_v39 }
0x15a9   :  { %7768 = vmatprep.subr.bf16.mxu0 %v7767_v6 }
0x15ac   :  { %7770 = vmatpush3.bf16.msra.mxu0 %v7767_v6 }
0x15ad   :  { %7772 = vmatprep.subr.bf16.mxu0 %v7771_v1 }
0x15b0   :  { %7774 = vmatpush3.bf16.msra.mxu0 %v7771_v1 }
0x1664   :  { %v6977_v46 = vpop.f32.mrb[220].mxu0  ;;  %v7030_v23 = vpop.f32.mrb[232].mxu1 }
0x1665   :  { %v7049_v15 = vadd.f32 %v6977_v46, %v14985_v8  ;;  %v6979_v51 = vpop.f32.mrb[221].mxu0  ;;  %v7032_v26 = vpop.f32.mrb[233].mxu1  ;;  %v7051_v12 = vadd.f32 %v7030_v23, %v11026_v13 }
0x1666   :  { %v7050_v20 = vadd.f32 %v6979_v51, %v11021_v53  ;;  %v6981_v34 = vpop.f32.mrb[222].mxu0  ;;  %v7034_v60 = vpop.f32.mrb[234].mxu1  ;;  %v7052_v37 = vadd.f32 %v7032_v26, %v11032_v32 }
0x1667   :  { %v7672_v40 = vmul.f32 -1.442695, %v7049_v15  ;;  %v7053_v61 = vadd.f32 %v6981_v34, %v14985_v8  ;;  %v6983_v31 = vpop.f32.mrb[223].mxu0  ;;  %v7036_v35 = vpop.f32.mrb[235].mxu1  ;;  %v7055_v24 = vadd.f32 %v7034_v60, %v11026_v13  ;;  %v7674_v18 = vmul.f32 -1.442695, %v7051_v12 }
0x1668   :  { %v7673_v43 = vmul.f32 -1.442695, %v7050_v20  ;;  %v7054_v9 = vadd.f32 %v6983_v31, %v11021_v53  ;;  %v7056_v2 = vadd.f32 %v7036_v35, %v11032_v32 }
0x1669   :  { %9291 = vpow2.f32 %v7672_v40  ;;  %v7675_v29 = vmul.f32 -1.442695, %v7053_v61  ;;  %v7677_v4 = vmul.f32 -1.442695, %v7055_v24 }
0x166a   :  { %v7676_v36 = vmul.f32 -1.442695, %v7054_v9  ;;  %9293 = vpow2.f32 %v7673_v43 }
0x166b   :  { %9295 = vpow2.f32 %v7675_v29 }
0x166c   :  { %9297 = vpow2.f32 %v7676_v36 }
0x166d   :  { %9299 = vpow2.f32 %v7674_v18 }
0x166e   :  { %9301 = vpow2.f32 %v7677_v4 }
0x166f   :  { %9303 = vtanh.f32 %v7052_v37 }
0x1672   :  { %v6987_v56 = vpop.f32.mrb[224].mxu0  ;;  %v7040_v44 = vpop.f32.mrb[236].mxu1 }
0x1673   :  { %v9292_v63 = vpop.eup %9291  ;;  %v6989_v10 = vpop.f32.mrb[225].mxu0  ;;  %v7057_v62 = vadd.f32 %v6987_v56, %v14985_v8  ;;  %v7059_v33 = vadd.f32 %v7040_v44, %v11026_v13 }
0x1674   :  { %v7042_v38 = vpop.f32.mrb[237].mxu1  ;;  %v7101_v55 = vadd.f32 1.0, %v9292_v63  ;;  %v6991_v42 = vpop.f32.mrb[226].mxu0  ;;  %v7058_v22 = vadd.f32 %v6989_v10, %v11021_v53 }
0x1675   :  { %v7044_v45 = vpop.f32.mrb[238].mxu1  ;;  %v9294_v5 = vpop.eup %9293  ;;  %v7678_v54 = vmul.f32 -1.442695, %v7057_v62  ;;  %v7061_v3 = vadd.f32 %v6991_v42, %v14985_v8  ;;  %v7680_v1 = vmul.f32 -1.442695, %v7059_v33  ;;  %v7060_v46 = vadd.f32 %v7042_v38, %v11032_v32 }
0x1676   :  { %v6993_v0 = vpop.f32.mrb[227].mxu0  ;;  %v9296_v50 = vpop.eup %9295  ;;  %9305 = vrcp.f32 %v7101_v55  ;;  %v7102_v25 = vadd.f32 1.0, %v9294_v5  ;;  %v7679_v48 = vmul.f32 -1.442695, %v7058_v22  ;;  %v7063_v8 = vadd.f32 %v7044_v45, %v11026_v13 }
0x1677   :  { %v7046_v16 = vpop.f32.mrb[239].mxu1  ;;  %v7104_v57 = vadd.f32 1.0, %v9296_v50  ;;  %9307 = vtanh.f32 %v7056_v2  ;;  %v9298_v17 = vpop.eup %9297  ;;  %v7062_v30 = vadd.f32 %v6993_v0, %v11021_v53  ;;  %v7681_v52 = vmul.f32 -1.442695, %v7061_v3 }
0x1678   :  { %9309 = vrcp.f32 %v7102_v25  ;;  %v7105_v49 = vadd.f32 1.0, %v9298_v17  ;;  %v9300_v11 = vpop.eup %9299  ;;  %v7683_v26 = vmul.f32 -1.442695, %v7063_v8  ;;  %v7064_v61 = vadd.f32 %v7046_v16, %v11032_v32 }
0x1679   :  { %9311 = vrcp.f32 %v7104_v57  ;;  %v9302_v7 = vpop.eup %9301  ;;  %v7682_v21 = vmul.f32 -1.442695, %v7062_v30  ;;  %v7103_v41 = vadd.f32 1.0, %v9300_v11 }
0x167a   :  { %9313 = vrcp.f32 %v7105_v49  ;;  %v9304_v39 = vpop.eup %9303  ;;  %v7106_v6 = vadd.f32 1.0, %v9302_v7 }
0x167b   :  { %9315 = vpow2.f32 %v7678_v54 }
0x167c   :  { %9317 = vpow2.f32 %v7679_v48 }
0x167d   :  { %9319 = vpow2.f32 %v7681_v52 }
0x167e   :  { %9321 = vpow2.f32 %v7682_v21 }
0x167f   :  { %9323 = vrcp.f32 %v7103_v41 }
0x1680   :  { %v9306_v28 = vpop.eup %9305  ;;  %9325 = vrcp.f32 %v7106_v6 }
0x1681   :  { %v9308_v58 = vpop.eup %9307  ;;  %v7145_v19 = vmul.f32 %v9306_v28, %v9304_v39  ;;  %9327 = vpow2.f32 %v7680_v1 }
0x1682   :  { %v9310_v53 = vpop.eup %9309  ;;  %9329 = vtanh.f32 %v7060_v46 }
0x1683   :  { %v9312_v23 = vpop.eup %9311  ;;  %v7141_v15 = vmul.f32 %v9310_v53, %v14077_v59 }
0x1684   :  { %v7146_v51 = vmul.f32 %v9312_v23, %v9308_v58  ;;  %v9314_v20 = vpop.eup %9313 }
0x1685   :  { %v7149_v34 = vadd.f32 %v7145_v19, %v7141_v15  ;;  %v9316_v60 = vpop.eup %9315  ;;  %v7142_v13 = vmul.f32 %v9314_v20, %v14082_v27 }
0x1686   :  { %v7107_v40 = vadd.f32 1.0, %v9316_v60  ;;  %v9318_v31 = vpop.eup %9317 }
0x1687   :  { %9331 = vtanh.f32 %v7149_v34  ;;  %v7150_v35 = vadd.f32 %v7146_v51, %v7142_v13  ;;  %v7108_v43 = vadd.f32 1.0, %v9318_v31  ;;  %v9320_v59 = vpop.eup %9319 }
0x1688   :  { %9333 = vpow2.f32 %v7683_v26  ;;  %v7110_v9 = vadd.f32 1.0, %v9320_v59  ;;  %v9322_v29 = vpop.eup %9321 }
0x1689   :  { %9335 = vrcp.f32 %v7107_v40  ;;  %v9324_v12 = vpop.eup %9323  ;;  %v7111_v36 = vadd.f32 1.0, %v9322_v29 }
0x168a   :  { %9337 = vtanh.f32 %v7150_v35  ;;  %v9326_v27 = vpop.eup %9325 }
0x168b   :  { %9339 = vtanh.f32 %v7064_v61  ;;  %v9328_v24 = vpop.eup %9327 }
0x168c   :  { %9341 = vrcp.f32 %v7108_v43  ;;  %v9330_v18 = vpop.eup %9329  ;;  %v7109_v55 = vadd.f32 1.0, %v9328_v24 }
0x168d   :  { %9343 = vrcp.f32 %v7110_v9 }
0x168e   :  { %9345 = vrcp.f32 %v7111_v36 }
0x168f   :  { %9347 = vrcp.f32 %v7109_v55 }
0x1691   :  { %v9332_v4 = vpop.eup %9331 }
0x1692   :  { %v9334_v32 = vpop.eup %9333  ;;  %v7157_v37 = vmul.f32 %v9332_v4, %v9324_v12 }
0x1693   :  { %v9336_v56 = vpop.eup %9335  ;;  %v7112_v50 = vadd.f32 1.0, %v9334_v32 }
0x1694   :  { %v9338_v44 = vpop.eup %9337  ;;  %v7147_v63 = vmul.f32 %v9336_v56, %v9330_v18  ;;  %7737 = vmatprep.mubr.f32.mxu0 %v7157_v37 }
0x1695   :  { %v9340_v2 = vpop.eup %9339  ;;  %v7158_v10 = vmul.f32 %v9338_v44, %v9326_v27 }
0x1696   :  { %v9342_v38 = vpop.eup %9341 }
0x1697   :  { %v9344_v62 = vpop.eup %9343  ;;  %v7143_v42 = vmul.f32 %v9342_v38, %v14086_v14  ;;  %7738 = vmatmul.mubr.f32.vlgmr.msra.gmra.mrb[74].mxu0 %v7158_v10  ;;  %v7684_v14 = vld [vmem:[%s14420_s8] ss:$0 sm:$0xff] }
0x1698   :  { %v7148_v45 = vmul.f32 %v9344_v62, %v9340_v2  ;;  %v9346_v5 = vpop.eup %9345 }
0x1699   :  { %v7151_v0 = vadd.f32 %v7147_v63, %v7143_v42  ;;  %v7144_v25 = vmul.f32 %v9346_v5, %v14102_v47  ;;  %v9348_v16 = vpop.eup %9347 }
0x169b   :  { %9349 = vtanh.f32 %v7151_v0  ;;  %v7152_v22 = vadd.f32 %v7148_v45, %v7144_v25 }
0x169c   :  { %9351 = vrcp.f32 %v7112_v50 }
0x169d   :  { %9353 = vtanh.f32 %v7152_v22 }
0x16a5   :  { %v9350_v57 = vpop.eup %9349 }
0x16a6   :  { %v7159_v17 = vmul.f32 %v9350_v57, %v9348_v16  ;;  %v9352_v54 = vpop.eup %9351 }
0x16a7   :  { %v9354_v3 = vpop.eup %9353 }
0x16a8   :  { %7740 = vmatprep.mubr.f32.mxu0 %v7159_v17  ;;  %v7160_v49 = vmul.f32 %v9354_v3, %v9352_v54 }
0x16aa   :  { %7741 = vmatmul.mubr.f32.gmra.mrb[236].mxu0 %v7160_v49 }
0x176a   :  { %v7739_v48 = vpop.f32.mrb[74].mxu0 }
0x176b   :  { %v7239_v30 = vadd.f32 %v7739_v48, %v7684_v14  ;;  %v7233_v47 = vpop.f32.mrb[75].mxu0 }
0x176c   :  { %v7234_v11 = vadd.f32 %v7684_v14, %v7233_v47 }
0x176d   :  { %7254 = vst.msk [vmem:[%s14421_s9 + $0x8] sm:$0xff] %vm7252_vm2, %v7239_v30 }
0x176e   :  { %7253 = vst.msk [vmem:[%s14421_s9] sm:$0xff] %vm7252_vm2, %v7234_v11 }
0x177d   :  { %v7742_v52 = vpop.f32.mrb[236].mxu0 }
0x177e   :  { %v7249_v7 = vadd.f32 %v7742_v52, %v7684_v14  ;;  %v7243_v33 = vpop.f32.mrb[237].mxu0 }
0x177f   :  { %v7244_v21 = vadd.f32 %v7684_v14, %v7243_v33 }
0x1780   :  { %7256 = vst.msk [vmem:[%s14421_s9 + $0x18] sm:$0xff] %vm7252_vm2, %v7249_v7 }
0x1781   :  { %7255 = vst.msk [vmem:[%s14421_s9 + $0x10] sm:$0xff] %vm7252_vm2, %v7244_v21 }
0x1782   :  { %7261 = vsyncpa [#allocation4], 1 }
0x1783   :  { %7262 = vsyncpa [#allocation6], 1 }
0x1784   :  { %7263 = vsyncpa [#allocation9], 1 }

</bundles_post_ra>
